<compile_context>
chip_gen: v6e
topology: v6e:2x2x1
jax: 0.10.0
libtpu: 0.0.40
codegen_flags: <defaults>
</compile_context>

<pallas_src>
import functools
import math

import jax
import jax.numpy as jnp
from jax import lax
from jax.experimental import pallas as pl
from jax.experimental.pallas import tpu as pltpu


def _round_up(x, m):
    return -(-x // m) * m


# ----------------------------------------------------------------------------
# Kernel 1: fused per-hyperedge pipeline (block of BE hyperedges per step)
# ----------------------------------------------------------------------------

def _fused_edge_kernel(vg_ref, wt_ref, q_ref, sr_ref, sc_ref, ir_ref, ic_ref,
                       er_ref, wslab_ref, bslab_ref, o_ref, att_ref,
                       *, num_heads, meta):
    bf16 = jnp.bfloat16

    def W(m):                          # bf16 weight-matrix slice from the slab
        off, r, c = m
        return wslab_ref[off:off + r, 0:c]

    def B(m):                          # f32 bias row slice from the slab
        off, c = m
        return bslab_ref[off:off + 1, 0:c]

    def mab(Qf, Kf, rid, cid, mmeta):
        # Set-Transformer MAB (ln=False), batched over the BE edges of the
        # block via an additive block-diagonal bias (same-edge attention only).
        (wq, bq), (wkv, bkv), (wo, bo) = mmeta
        dV = wq[2]
        dh = dV // num_heads
        rq = Qf.shape[0]
        scale = 1.0 / math.sqrt(dV)    # Set-Transformer scales by sqrt(dim_V)
        Qp = jnp.dot(Qf.astype(bf16), W(wq),
                     preferred_element_type=jnp.float32) + B(bq)
        KV = jnp.dot(Kf.astype(bf16), W(wkv),
                     preferred_element_type=jnp.float32) + B(bkv)  # fused K|V
        Kp = KV[:, :dV]
        Vp = KV[:, dV:2 * dV]
        Qs = Qp * scale
        bias = jnp.where(rid == cid, 0.0, -1e30)     # hoisted out of head loop
        for h in range(num_heads):                   # static lane slices
            sl = slice(h * dh, (h + 1) * dh)
            S = lax.dot_general(Qs[:, sl].astype(bf16), Kp[:, sl].astype(bf16),
                                (((1,), (1,)), ((), ())),
                                preferred_element_type=jnp.float32) + bias
            S = S - jnp.max(S, axis=-1, keepdims=True)
            P = jnp.exp(S)
            inv = pl.reciprocal(jnp.sum(P, axis=-1, keepdims=True), approx=True)
            pv = jnp.dot(P.astype(bf16), Vp[:, sl].astype(bf16),
                         preferred_element_type=jnp.float32)
            att_ref[0:rq, sl] = Qp[:, sl] + pv * inv  # normalize after matmul
        A = att_ref[0:rq, 0:dV]
        return A + jnp.maximum(
            jnp.dot(A.astype(bf16), W(wo),
                    preferred_element_type=jnp.float32) + B(bo), 0.0)

    # --- OrderPE: v = V + pe_v(W), on the flattened (BE*Dg, dv) slab ---------
    pe_w, pe_b = meta["pe"]
    v = vg_ref[...].astype(jnp.float32) + (
        jnp.dot(wt_ref[...], W(pe_w), preferred_element_type=jnp.float32)
        + B(pe_b))

    sr = sr_ref[...]
    sc = sc_ref[...]
    ir = ir_ref[...]
    ic = ic_ref[...]
    er = er_ref[...]

    # --- encoder: ISAB(X) = MAB1(X, MAB0(I, X)) ------------------------------
    for lyr in meta["layers"]:
        I_t = W(lyr["I"])                      # pre-tiled inducing points (bf16)
        H = mab(I_t, v, ir, sc, lyr["mab0"])   # (BE*num_inds, dim_hidden)
        v = mab(v, H, sr, ic, lyr["mab1"])     # (BE*Dg,       dim_hidden)

    # TODO(synk): dropout layers are identity (inference semantics).

    # --- decoder: PrevQ MAB(Q=efeat, K=v), then Linear(dim_hidden -> oe_pad) -
    o = mab(q_ref[...], v, er, sc, meta["dec"])          # (BE, dim_hidden)
    dw, db = meta["dec_lin"]
    o_ref[...] = jnp.dot(o.astype(bf16), W(dw),
                         preferred_element_type=jnp.float32) + B(db)


# ----------------------------------------------------------------------------
# Kernel 2: HNHN aggregation + ev_lin + ReLU, tiled over (N, E)
# ----------------------------------------------------------------------------

def _hnhn_kernel(inc_ref, erw_ref, vrs_ref, ef_ref, w_ref, b_ref, o_ref, acc_ref):
    ke = pl.program_id(1)

    @pl.when(ke == 0)
    def _():
        acc_ref[...] = jnp.zeros_like(acc_ref)

    scaled = (ef_ref[...].astype(jnp.float32) * erw_ref[...]).astype(jnp.bfloat16)
    acc_ref[...] += jnp.dot(inc_ref[...], scaled,
                            preferred_element_type=jnp.float32)

    @pl.when(ke == pl.num_programs(1) - 1)
    def _():
        aggr = acc_ref[...] / vrs_ref[...]
        out = jnp.dot(aggr.astype(jnp.bfloat16), w_ref[...],
                      preferred_element_type=jnp.float32) + b_ref[...]
        o_ref[...] = jnp.maximum(out, 0.0)                    # ReLU


# ----------------------------- parameter packing ------------------------------

def _pack_params(params, BE, oe_pad):
    """Pack all matmul weights into one bf16 slab (16-row-aligned segments)
    and all bias rows into one f32 slab.  Returns (wslab, bslab, static meta)."""
    mats, brows = [], []
    wrow, brow = [0], [0]

    def add_w(w):
        off = wrow[0]
        mats.append((w, off))
        wrow[0] += _round_up(int(w.shape[0]), 16)
        return (off, int(w.shape[0]), int(w.shape[1]))

    def add_b(b):
        off = brow[0]
        brows.append((b, off))
        brow[0] += 1
        return (off, int(b.shape[1]))

    def add_lin(w, b):
        return (add_w(w), add_b(b))

    def add_mab(p):
        wkv = jnp.concatenate([p["wk"], p["wv"]], axis=1)    # fused K|V weights
        bkv = jnp.concatenate([p["bk"], p["bv"]], axis=1)
        return (add_lin(p["wq"], p["bq"]),
                add_lin(wkv, bkv),
                add_lin(p["wo"], p["bo"]))

    meta = {"pe": add_lin(*params["pe_v"]), "layers": []}
    for isab in params["enc_v"]:
        I_t = jnp.tile(isab["I"][0], (BE, 1))                # (BE*num_inds, dh)
        meta["layers"].append({"I": add_w(I_t),
                               "mab0": add_mab(isab["mab0"]),
                               "mab1": add_mab(isab["mab1"])})
    meta["dec"] = add_mab(params["dec_mab"])
    dec_w, dec_b = params["dec_lin"]
    oe = int(dec_w.shape[1])
    meta["dec_lin"] = add_lin(jnp.pad(dec_w, ((0, 0), (0, oe_pad - oe))),
                              jnp.pad(dec_b, ((0, 0), (0, oe_pad - oe))))

    wC = _round_up(max(int(w.shape[1]) for w, _ in mats), 128)
    wR = max(_round_up(wrow[0], 16), 16)
    wslab = jnp.zeros((wR, wC), jnp.float32)
    for w, off in mats:
        wslab = wslab.at[off:off + w.shape[0], :w.shape[1]].set(
            w.astype(jnp.float32))

    bC = _round_up(max(int(b.shape[1]) for b, _ in brows), 128)
    bR = max(_round_up(brow[0], 8), 8)
    bslab = jnp.zeros((bR, bC), jnp.float32)
    for b, off in brows:
        bslab = bslab.at[off:off + 1, :b.shape[1]].set(b)

    return wslab.astype(jnp.bfloat16), bslab, meta


# ----------------------------- pallas_call wrappers --------------------------

def fused_edge_forward(params, vfeat, efeat, nbr_idx, edge_weight, *,
                       num_heads, block_edges=64):
    E, Dg = nbr_idx.shape
    dv = vfeat.shape[1]
    de = efeat.shape[1]
    wd = edge_weight.shape[2]
    num_inds = params["enc_v"][0]["I"].shape[1] if params["enc_v"] else 1
    dim_hidden = params["dec_mab"]["wq"].shape[1]
    oe = params["dec_lin"][0].shape[1]
    oe_pad = _round_up(oe, 128)

    # Block of hyperedges per grid step: large enough to fill the MXU M dim,
    # capped so dense per-head score matrices stay modest; multiple of 16 so
    # bf16 blocks tile cleanly; clamped for tiny E.
    row_cap = 640
    BE = min(block_edges, max(1, row_cap // max(Dg, num_inds, 1)))
    BE = max(16, (BE // 16) * 16)
    BE = min(BE, _round_up(E, 16))

    E_pad = _round_up(E, BE)
    pad = E_pad - E
    nbr_p = jnp.pad(nbr_idx, ((0, pad), (0, 0)))
    Vg = vfeat.astype(jnp.bfloat16)[nbr_p].reshape(E_pad * Dg, dv)  # XLA gather
    Wf = jnp.pad(edge_weight, ((0, pad), (0, 0), (0, 0))
                 ).reshape(E_pad * Dg, wd).astype(jnp.bfloat16)
    ef_p = jnp.pad(efeat, ((0, pad), (0, 0))).astype(jnp.bfloat16)

    # block-local edge ids -> in-kernel block-diagonal attention bias
    eid = jnp.arange(BE, dtype=jnp.float32)
    ids_set = jnp.repeat(eid, Dg)
    ids_ind = jnp.repeat(eid, num_inds)
    sr = ids_set[:, None]
    sc = ids_set[None, :]
    ir = ids_ind[:, None]
    ic = ids_ind[None, :]
    er = eid[:, None]

    wslab, bslab, meta = _pack_params(params, BE, oe_pad)

    const = lambda e: (0, 0)
    in_specs = [
        pl.BlockSpec((BE * Dg, dv), lambda e: (e, 0)),
        pl.BlockSpec((BE * Dg, wd), lambda e: (e, 0)),
        pl.BlockSpec((BE, de), lambda e: (e, 0)),
        pl.BlockSpec(sr.shape, const),
        pl.BlockSpec(sc.shape, const),
        pl.BlockSpec(ir.shape, const),
        pl.BlockSpec(ic.shape, const),
        pl.BlockSpec(er.shape, const),
        pl.BlockSpec(wslab.shape, const),
        pl.BlockSpec(bslab.shape, const),
    ]
    att_rows = _round_up(max(BE * Dg, BE * num_inds, BE), 8)

    out = pl.pallas_call(
        functools.partial(_fused_edge_kernel, num_heads=num_heads, meta=meta),
        out_shape=jax.ShapeDtypeStruct((E_pad, oe_pad), jnp.float32),
        grid=(E_pad // BE,),
        in_specs=in_specs,
        out_specs=pl.BlockSpec((BE, oe_pad), lambda e: (e, 0)),
        scratch_shapes=[pltpu.VMEM((att_rows, dim_hidden), jnp.float32)],
        compiler_params=pltpu.CompilerParams(
            dimension_semantics=("parallel",),
            vmem_limit_bytes=48 * 1024 * 1024),
    )(Vg, Wf, ef_p, sr, sc, ir, ic, er, wslab, bslab)
    return out[:E]          # (E, oe_pad) lane-dense; cols >= output_edim are 0


def hnhn_forward(incidence, e_reg_weight, v_reg_sum, efeat_wide, ev_w, ev_b):
    N, E = incidence.shape
    ce = efeat_wide.shape[1]                  # 128-padded edge-feature width
    oe = ev_w.shape[0]
    ov = ev_w.shape[1]
    ov_pad = _round_up(ov, 128)

    ev_w_p = jnp.pad(ev_w, ((0, ce - oe), (0, ov_pad - ov))).astype(jnp.bfloat16)
    ev_b_p = jnp.pad(ev_b, ((0, 0), (0, ov_pad - ov)))

    te = min(512, _round_up(E, 128))
    tn = min(512, _round_up(N, 16))
    E_pad = _round_up(E, te)
    N_pad = _round_up(N, tn)

    inc_p = jnp.pad(incidence, ((0, N_pad - N), (0, E_pad - E))
                    ).astype(jnp.bfloat16)                  # 0/1 -> exact in bf16
    erw_p = jnp.pad(e_reg_weight, ((0, E_pad - E), (0, 0)))
    vrs_p = jnp.pad(v_reg_sum, ((0, N_pad - N), (0, 0)), constant_values=1.0)
    ef_p = jnp.pad(efeat_wide, ((0, E_pad - E), (0, 0))).astype(jnp.bfloat16)

    out = pl.pallas_call(
        _hnhn_kernel,
        out_shape=jax.ShapeDtypeStruct((N_pad, ov_pad), jnp.float32),
        grid=(N_pad // tn, E_pad // te),
        in_specs=[
            pl.BlockSpec((tn, te), lambda n, e: (n, e)),
            pl.BlockSpec((te, 1), lambda n, e: (e, 0)),
            pl.BlockSpec((tn, 1), lambda n, e: (n, 0)),
            pl.BlockSpec((te, ce), lambda n, e: (e, 0)),
            pl.BlockSpec(ev_w_p.shape, lambda n, e: (0, 0)),
            pl.BlockSpec(ev_b_p.shape, lambda n, e: (0, 0)),
        ],
        out_specs=pl.BlockSpec((tn, ov_pad), lambda n, e: (n, 0)),
        scratch_shapes=[pltpu.VMEM((tn, ce), jnp.float32)],
        compiler_params=pltpu.CompilerParams(
            dimension_semantics=("parallel", "arbitrary")),
    )(inc_p, erw_p, vrs_p, ef_p, ev_w_p, ev_b_p)
    return out[:N, :ov]


# ----------------------------- parameters ------------------------------------

def _init_linear(key, in_dim, out_dim):
    # PyTorch nn.Linear default init; weight stored transposed as (in, out).
    kw, kb = jax.random.split(key)
    bound = 1.0 / math.sqrt(in_dim)
    W = jax.random.uniform(kw, (in_dim, out_dim), jnp.float32, -bound, bound)
    b = jax.random.uniform(kb, (1, out_dim), jnp.float32, -bound, bound)
    return W, b


def _init_mab(key, dim_Q, dim_K, dim_V):
    ks = jax.random.split(key, 4)
    wq, bq = _init_linear(ks[0], dim_Q, dim_V)
    wk, bk = _init_linear(ks[1], dim_K, dim_V)
    wv, bv = _init_linear(ks[2], dim_K, dim_V)
    wo, bo = _init_linear(ks[3], dim_V, dim_V)
    return dict(wq=wq, bq=bq, wk=wk, bk=bk, wv=wv, bv=bv, wo=wo, bo=bo)


def _init_isab(key, dim_in, dim_out, num_inds):
    ks = jax.random.split(key, 3)
    bound = math.sqrt(6.0 / (num_inds + dim_out))   # xavier_uniform for I
    I = jax.random.uniform(ks[0], (1, num_inds, dim_out), jnp.float32, -bound, bound)
    return dict(I=I,
                mab0=_init_mab(ks[1], dim_out, dim_in, dim_out),
                mab1=_init_mab(ks[2], dim_in, dim_out, dim_out))


def init_params(key, *, input_vdim, input_edim, output_vdim, output_edim,
                weight_dim, dim_hidden, num_inds, num_att_layer):
    keys = jax.random.split(key, num_att_layer + 4)
    params = {}
    params["pe_v"] = _init_linear(keys[0], weight_dim, input_vdim)          # OrderPE
    enc, dim = [], input_vdim
    for l in range(num_att_layer):
        enc.append(_init_isab(keys[1 + l], dim, dim_hidden, num_inds))
        dim = dim_hidden
    params["enc_v"] = enc
    params["dec_mab"] = _init_mab(keys[1 + num_att_layer], input_edim, dim, dim_hidden)
    params["dec_lin"] = _init_linear(keys[2 + num_att_layer], dim_hidden, output_edim)
    # ev_lin: xavier_normal_ with relu gain, default bias init.
    kw, kb = jax.random.split(keys[3 + num_att_layer])
    gain = math.sqrt(2.0)
    std = gain * math.sqrt(2.0 / (output_edim + output_vdim))
    params["ev_w"] = (jax.random.normal(kw, (output_edim, output_vdim)) * std
                      ).astype(jnp.float32)
    bound = 1.0 / math.sqrt(output_edim)
    params["ev_b"] = jax.random.uniform(kb, (1, output_vdim), jnp.float32, -bound, bound)
    return params


# ----------------------------- forward ---------------------------------------

def whatsnet_hnhn_forward(params, vfeat, efeat, nbr_idx, edge_weight, incidence,
                          e_reg_weight, v_reg_sum, *, num_heads, block_edges=64):
    # ---- g1 : node -> hyperedge (WHATsNet set attention), fused kernel ------
    efeat_wide = fused_edge_forward(params, vfeat, efeat, nbr_idx, edge_weight,
                                    num_heads=num_heads, block_edges=block_edges)
    # ---- g2 : hyperedge -> node (HNHN-normalized aggregation) + ev_lin + relu
    vfeat_new = hnhn_forward(incidence, e_reg_weight, v_reg_sum, efeat_wide,
                             params["ev_w"], params["ev_b"])
    oe = params["dec_lin"][0].shape[1]
    return vfeat_new, efeat_wide[:, :oe]


# ----------------------------- main ------------------------------------------

if __name__ == "__main__":
    # small synthetic hypergraph / dims
    N, E, Dg = 12, 6, 5
    input_vdim, input_edim = 16, 24
    output_vdim, output_edim = 16, 24
    weight_dim = 4
    dim_hidden, num_heads, num_inds, num_att_layer = 32, 4, 4, 2

    key = jax.random.PRNGKey(0)
    k = jax.random.split(key, 5)
    vfeat = jax.random.normal(k[0], (N, input_vdim), jnp.float32)
    efeat = jax.random.normal(k[1], (E, input_edim), jnp.float32)
    edge_weight = jax.random.normal(k[2], (E, Dg, weight_dim), jnp.float32)
    e_reg_weight = jnp.abs(jax.random.normal(k[3], (E, 1), jnp.float32)) + 0.5
    v_reg_sum = jnp.abs(jax.random.normal(k[4], (N, 1), jnp.float32)) + 0.5

    # regular synthetic hypergraph: hyperedge e contains nodes (3e + d) mod N
    nbr_idx = (3 * jnp.arange(E)[:, None] + jnp.arange(Dg)[None, :]) % N     # (E, Dg)
    incidence = jnp.zeros((N, E), jnp.float32).at[
        nbr_idx, jnp.arange(E)[:, None]].set(1.0)                            # (N, E)

    params = init_params(
        jax.random.PRNGKey(1),
        input_vdim=input_vdim, input_edim=input_edim,
        output_vdim=output_vdim, output_edim=output_edim,
        weight_dim=weight_dim, dim_hidden=dim_hidden,
        num_inds=num_inds, num_att_layer=num_att_layer)

    vout, eout = whatsnet_hnhn_forward(
        params, vfeat, efeat, nbr_idx, edge_weight, incidence,
        e_reg_weight, v_reg_sum, num_heads=num_heads, block_edges=64)
    jax.block_until_ready((vout, eout))

    assert vout.shape == (N, output_vdim)
    assert eout.shape == (E, output_edim)
    assert bool(jnp.all(jnp.isfinite(vout))) and bool(jnp.all(jnp.isfinite(eout)))
    print("KERNEL_OK")
</pallas_src>

<mosaic_0001>
module attributes {stable_mosaic.version = 11 : i64} {
  func.func @_fused_edge_kernel(%arg0: i32, %arg1: memref<80x16xbf16, #tpu.memory_space<vmem>>, %arg2: memref<80x4xbf16, #tpu.memory_space<vmem>>, %arg3: memref<16x24xbf16, #tpu.memory_space<vmem>>, %arg4: memref<80x1xf32, #tpu.memory_space<vmem>>, %arg5: memref<1x80xf32, #tpu.memory_space<vmem>>, %arg6: memref<64x1xf32, #tpu.memory_space<vmem>>, %arg7: memref<1x64xf32, #tpu.memory_space<vmem>>, %arg8: memref<16x1xf32, #tpu.memory_space<vmem>>, %arg9: memref<624x128xbf16, #tpu.memory_space<vmem>>, %arg10: memref<24x128xf32, #tpu.memory_space<vmem>>, %arg11: memref<16x128xf32, #tpu.memory_space<vmem>>, %arg12: memref<80x32xf32, #tpu.memory_space<vmem>>) attributes {dimension_semantics = [#tpu.dimension_semantics<parallel>], iteration_bounds = array<i64: 1>, scalar_prefetch = 0 : i64, scratch_operands = 1 : i64, tpu.core_type = #tpu.core_type<tc>, window_params = [{transform_indices = @transform_0, window_bounds = array<i64: 80, 16>}, {transform_indices = @transform_1, window_bounds = array<i64: 80, 4>}, {transform_indices = @transform_2, window_bounds = array<i64: 16, 24>}, {pipeline_mode = #tpu.pipeline_mode<synchronous>, transform_indices = @transform_3, window_bounds = array<i64: 80, 1>}, {pipeline_mode = #tpu.pipeline_mode<synchronous>, transform_indices = @transform_4, window_bounds = array<i64: 1, 80>}, {pipeline_mode = #tpu.pipeline_mode<synchronous>, transform_indices = @transform_5, window_bounds = array<i64: 64, 1>}, {pipeline_mode = #tpu.pipeline_mode<synchronous>, transform_indices = @transform_6, window_bounds = array<i64: 1, 64>}, {pipeline_mode = #tpu.pipeline_mode<synchronous>, transform_indices = @transform_7, window_bounds = array<i64: 16, 1>}, {pipeline_mode = #tpu.pipeline_mode<synchronous>, transform_indices = @transform_8, window_bounds = array<i64: 624, 128>}, {pipeline_mode = #tpu.pipeline_mode<synchronous>, transform_indices = @transform_9, window_bounds = array<i64: 24, 128>}, {transform_indices = @transform_10, window_bounds = array<i64: 16, 128>}]} {
    %c0 = arith.constant 0 : index
    %c0_0 = arith.constant 0 : index
    %0 = vector.load %arg1[%c0, %c0_0] : memref<80x16xbf16, #tpu.memory_space<vmem>>, vector<80x16xbf16>
    %1 = arith.extf %0 : vector<80x16xbf16> to vector<80x16xf32>
    %c0_1 = arith.constant 0 : index
    %c0_2 = arith.constant 0 : index
    %2 = vector.load %arg2[%c0_1, %c0_2] : memref<80x4xbf16, #tpu.memory_space<vmem>>, vector<80x4xbf16>
    %c0_3 = arith.constant 0 : index
    %c0_4 = arith.constant 0 : index
    %3 = vector.load %arg9[%c0_3, %c0_4] : memref<624x128xbf16, #tpu.memory_space<vmem>>, vector<4x16xbf16>
    %cst = arith.constant dense<0.000000e+00> : vector<80x16xf32>
    %4 = tpu.matmul %2, %3, %cst {dimension_numbers = #tpu.dot_dimension_numbers<[1], [0], [0], [1], [0, 0, 1, 1], [], []>} : vector<80x4xbf16>, vector<4x16xbf16>, vector<80x16xf32> -> vector<80x16xf32>
    %c0_5 = arith.constant 0 : index
    %c0_6 = arith.constant 0 : index
    %5 = vector.load %arg10[%c0_5, %c0_6] : memref<24x128xf32, #tpu.memory_space<vmem>>, vector<1x16xf32>
    %6 = vector.broadcast %5 : vector<1x16xf32> to vector<80x16xf32>
    %7 = arith.addf %4, %6 : vector<80x16xf32>
    %8 = arith.addf %1, %7 : vector<80x16xf32>
    %c0_7 = arith.constant 0 : index
    %c0_8 = arith.constant 0 : index
    %9 = vector.load %arg4[%c0_7, %c0_8] : memref<80x1xf32, #tpu.memory_space<vmem>>, vector<80x1xf32>
    %c0_9 = arith.constant 0 : index
    %c0_10 = arith.constant 0 : index
    %10 = vector.load %arg5[%c0_9, %c0_10] : memref<1x80xf32, #tpu.memory_space<vmem>>, vector<1x80xf32>
    %c0_11 = arith.constant 0 : index
    %c0_12 = arith.constant 0 : index
    %11 = vector.load %arg6[%c0_11, %c0_12] : memref<64x1xf32, #tpu.memory_space<vmem>>, vector<64x1xf32>
    %c0_13 = arith.constant 0 : index
    %c0_14 = arith.constant 0 : index
    %12 = vector.load %arg7[%c0_13, %c0_14] : memref<1x64xf32, #tpu.memory_space<vmem>>, vector<1x64xf32>
    %c0_15 = arith.constant 0 : index
    %c0_16 = arith.constant 0 : index
    %13 = vector.load %arg8[%c0_15, %c0_16] : memref<16x1xf32, #tpu.memory_space<vmem>>, vector<16x1xf32>
    %c16 = arith.constant 16 : index
    %c0_17 = arith.constant 0 : index
    %14 = vector.load %arg9[%c16, %c0_17] : memref<624x128xbf16, #tpu.memory_space<vmem>>, vector<64x32xbf16>
    %c80 = arith.constant 80 : index
    %c0_18 = arith.constant 0 : index
    %15 = vector.load %arg9[%c80, %c0_18] : memref<624x128xbf16, #tpu.memory_space<vmem>>, vector<32x32xbf16>
    %cst_19 = arith.constant dense<0.000000e+00> : vector<64x32xf32>
    %16 = tpu.matmul %14, %15, %cst_19 {dimension_numbers = #tpu.dot_dimension_numbers<[1], [0], [0], [1], [0, 0, 1, 1], [], []>} : vector<64x32xbf16>, vector<32x32xbf16>, vector<64x32xf32> -> vector<64x32xf32>
    %c1 = arith.constant 1 : index
    %c0_20 = arith.constant 0 : index
    %17 = vector.load %arg10[%c1, %c0_20] : memref<24x128xf32, #tpu.memory_space<vmem>>, vector<1x32xf32>
    %18 = vector.broadcast %17 : vector<1x32xf32> to vector<64x32xf32>
    %19 = arith.addf %16, %18 : vector<64x32xf32>
    %20 = arith.truncf %8 : vector<80x16xf32> to vector<80x16xbf16>
    %c112 = arith.constant 112 : index
    %c0_21 = arith.constant 0 : index
    %21 = vector.load %arg9[%c112, %c0_21] : memref<624x128xbf16, #tpu.memory_space<vmem>>, vector<16x64xbf16>
    %cst_22 = arith.constant dense<0.000000e+00> : vector<80x64xf32>
    %22 = tpu.matmul %20, %21, %cst_22 {dimension_numbers = #tpu.dot_dimension_numbers<[1], [0], [0], [1], [0, 0, 1, 1], [], []>} : vector<80x16xbf16>, vector<16x64xbf16>, vector<80x64xf32> -> vector<80x64xf32>
    %c2 = arith.constant 2 : index
    %c0_23 = arith.constant 0 : index
    %23 = vector.load %arg10[%c2, %c0_23] : memref<24x128xf32, #tpu.memory_space<vmem>>, vector<1x64xf32>
    %24 = vector.broadcast %23 : vector<1x64xf32> to vector<80x64xf32>
    %25 = arith.addf %22, %24 : vector<80x64xf32>
    %26 = vector.extract_strided_slice %25 {offsets = [0, 0], sizes = [80, 32], strides = [1, 1]} : vector<80x64xf32> to vector<80x32xf32>
    %27 = vector.extract_strided_slice %25 {offsets = [0, 32], sizes = [80, 32], strides = [1, 1]} : vector<80x64xf32> to vector<80x32xf32>
    %cst_24 = arith.constant 0.176776692 : f32
    %28 = vector.broadcast %cst_24 : f32 to vector<64x32xf32>
    %29 = arith.mulf %19, %28 : vector<64x32xf32>
    %30 = vector.broadcast %11 : vector<64x1xf32> to vector<64x80xf32>
    %31 = vector.broadcast %10 : vector<1x80xf32> to vector<64x80xf32>
    %32 = arith.cmpf oeq, %30, %31 : vector<64x80xf32>
    %cst_25 = arith.constant 0.000000e+00 : f32
    %cst_26 = arith.constant -1.000000e+30 : f32
    %33 = vector.broadcast %cst_25 : f32 to vector<64x80xf32>
    %34 = vector.broadcast %cst_26 : f32 to vector<64x80xf32>
    %35 = arith.select %32, %33, %34 : vector<64x80xi1>, vector<64x80xf32>
    %36 = vector.extract_strided_slice %29 {offsets = [0, 0], sizes = [64, 8], strides = [1, 1]} : vector<64x32xf32> to vector<64x8xf32>
    %37 = arith.truncf %36 : vector<64x8xf32> to vector<64x8xbf16>
    %38 = vector.extract_strided_slice %26 {offsets = [0, 0], sizes = [80, 8], strides = [1, 1]} : vector<80x32xf32> to vector<80x8xf32>
    %39 = arith.truncf %38 : vector<80x8xf32> to vector<80x8xbf16>
    %cst_27 = arith.constant dense<0.000000e+00> : vector<64x80xf32>
    %40 = tpu.matmul %37, %39, %cst_27 {dimension_numbers = #tpu.dot_dimension_numbers<[1], [1], [0], [0], [0, 0, 1, 0], [], []>} : vector<64x8xbf16>, vector<80x8xbf16>, vector<64x80xf32> -> vector<64x80xf32>
    %41 = arith.addf %40, %35 : vector<64x80xf32>
    %cst_28 = arith.constant dense<0xFF800000> : vector<64xf32>
    %42 = vector.multi_reduction <maximumf>, %41, %cst_28 [1] : vector<64x80xf32> to vector<64xf32>
    %43 = vector.shape_cast %42 : vector<64xf32> to vector<64x1xf32>
    %44 = vector.broadcast %43 : vector<64x1xf32> to vector<64x80xf32>
    %45 = arith.subf %41, %44 : vector<64x80xf32>
    %46 = math.exp %45 : vector<64x80xf32>
    %cst_29 = arith.constant dense<0.000000e+00> : vector<64xf32>
    %47 = vector.multi_reduction <add>, %46, %cst_29 [1] : vector<64x80xf32> to vector<64xf32>
    %48 = vector.shape_cast %47 : vector<64xf32> to vector<64x1xf32>
    %49 = tpu.reciprocal %48 {approx = true} : vector<64x1xf32> -> vector<64x1xf32>
    %50 = arith.truncf %46 : vector<64x80xf32> to vector<64x80xbf16>
    %51 = vector.extract_strided_slice %27 {offsets = [0, 0], sizes = [80, 8], strides = [1, 1]} : vector<80x32xf32> to vector<80x8xf32>
    %52 = arith.truncf %51 : vector<80x8xf32> to vector<80x8xbf16>
    %cst_30 = arith.constant dense<0.000000e+00> : vector<64x8xf32>
    %53 = tpu.matmul %50, %52, %cst_30 {dimension_numbers = #tpu.dot_dimension_numbers<[1], [0], [0], [1], [0, 0, 1, 1], [], []>} : vector<64x80xbf16>, vector<80x8xbf16>, vector<64x8xf32> -> vector<64x8xf32>
    %54 = vector.extract_strided_slice %19 {offsets = [0, 0], sizes = [64, 8], strides = [1, 1]} : vector<64x32xf32> to vector<64x8xf32>
    %55 = vector.broadcast %49 : vector<64x1xf32> to vector<64x8xf32>
    %56 = arith.mulf %53, %55 : vector<64x8xf32>
    %57 = arith.addf %54, %56 : vector<64x8xf32>
    %c0_31 = arith.constant 0 : index
    %c0_32 = arith.constant 0 : index
    %58 = vector.load %arg12[%c0_31, %c0_32] : memref<80x32xf32, #tpu.memory_space<vmem>>, vector<64x8xf32>
    tpu.vector_store %arg12[%c0_31, %c0_32], %57 {strides = array<i32>} : memref<80x32xf32, #tpu.memory_space<vmem>>, vector<64x8xf32>,
    %59 = vector.extract_strided_slice %29 {offsets = [0, 8], sizes = [64, 8], strides = [1, 1]} : vector<64x32xf32> to vector<64x8xf32>
    %60 = arith.truncf %59 : vector<64x8xf32> to vector<64x8xbf16>
    %61 = vector.extract_strided_slice %26 {offsets = [0, 8], sizes = [80, 8], strides = [1, 1]} : vector<80x32xf32> to vector<80x8xf32>
    %62 = arith.truncf %61 : vector<80x8xf32> to vector<80x8xbf16>
    %cst_33 = arith.constant dense<0.000000e+00> : vector<64x80xf32>
    %63 = tpu.matmul %60, %62, %cst_33 {dimension_numbers = #tpu.dot_dimension_numbers<[1], [1], [0], [0], [0, 0, 1, 0], [], []>} : vector<64x8xbf16>, vector<80x8xbf16>, vector<64x80xf32> -> vector<64x80xf32>
    %64 = arith.addf %63, %35 : vector<64x80xf32>
    %cst_34 = arith.constant dense<0xFF800000> : vector<64xf32>
    %65 = vector.multi_reduction <maximumf>, %64, %cst_34 [1] : vector<64x80xf32> to vector<64xf32>
    %66 = vector.shape_cast %65 : vector<64xf32> to vector<64x1xf32>
    %67 = vector.broadcast %66 : vector<64x1xf32> to vector<64x80xf32>
    %68 = arith.subf %64, %67 : vector<64x80xf32>
    %69 = math.exp %68 : vector<64x80xf32>
    %cst_35 = arith.constant dense<0.000000e+00> : vector<64xf32>
    %70 = vector.multi_reduction <add>, %69, %cst_35 [1] : vector<64x80xf32> to vector<64xf32>
    %71 = vector.shape_cast %70 : vector<64xf32> to vector<64x1xf32>
    %72 = tpu.reciprocal %71 {approx = true} : vector<64x1xf32> -> vector<64x1xf32>
    %73 = arith.truncf %69 : vector<64x80xf32> to vector<64x80xbf16>
    %74 = vector.extract_strided_slice %27 {offsets = [0, 8], sizes = [80, 8], strides = [1, 1]} : vector<80x32xf32> to vector<80x8xf32>
    %75 = arith.truncf %74 : vector<80x8xf32> to vector<80x8xbf16>
    %cst_36 = arith.constant dense<0.000000e+00> : vector<64x8xf32>
    %76 = tpu.matmul %73, %75, %cst_36 {dimension_numbers = #tpu.dot_dimension_numbers<[1], [0], [0], [1], [0, 0, 1, 1], [], []>} : vector<64x80xbf16>, vector<80x8xbf16>, vector<64x8xf32> -> vector<64x8xf32>
    %77 = vector.extract_strided_slice %19 {offsets = [0, 8], sizes = [64, 8], strides = [1, 1]} : vector<64x32xf32> to vector<64x8xf32>
    %78 = vector.broadcast %72 : vector<64x1xf32> to vector<64x8xf32>
    %79 = arith.mulf %76, %78 : vector<64x8xf32>
    %80 = arith.addf %77, %79 : vector<64x8xf32>
    %c0_37 = arith.constant 0 : index
    %c8 = arith.constant 8 : index
    %81 = vector.load %arg12[%c0_37, %c8] : memref<80x32xf32, #tpu.memory_space<vmem>>, vector<64x8xf32>
    tpu.vector_store %arg12[%c0_37, %c8], %80 {strides = array<i32>} : memref<80x32xf32, #tpu.memory_space<vmem>>, vector<64x8xf32>,
    %82 = vector.extract_strided_slice %29 {offsets = [0, 16], sizes = [64, 8], strides = [1, 1]} : vector<64x32xf32> to vector<64x8xf32>
    %83 = arith.truncf %82 : vector<64x8xf32> to vector<64x8xbf16>
    %84 = vector.extract_strided_slice %26 {offsets = [0, 16], sizes = [80, 8], strides = [1, 1]} : vector<80x32xf32> to vector<80x8xf32>
    %85 = arith.truncf %84 : vector<80x8xf32> to vector<80x8xbf16>
    %cst_38 = arith.constant dense<0.000000e+00> : vector<64x80xf32>
    %86 = tpu.matmul %83, %85, %cst_38 {dimension_numbers = #tpu.dot_dimension_numbers<[1], [1], [0], [0], [0, 0, 1, 0], [], []>} : vector<64x8xbf16>, vector<80x8xbf16>, vector<64x80xf32> -> vector<64x80xf32>
    %87 = arith.addf %86, %35 : vector<64x80xf32>
    %cst_39 = arith.constant dense<0xFF800000> : vector<64xf32>
    %88 = vector.multi_reduction <maximumf>, %87, %cst_39 [1] : vector<64x80xf32> to vector<64xf32>
    %89 = vector.shape_cast %88 : vector<64xf32> to vector<64x1xf32>
    %90 = vector.broadcast %89 : vector<64x1xf32> to vector<64x80xf32>
    %91 = arith.subf %87, %90 : vector<64x80xf32>
    %92 = math.exp %91 : vector<64x80xf32>
    %cst_40 = arith.constant dense<0.000000e+00> : vector<64xf32>
    %93 = vector.multi_reduction <add>, %92, %cst_40 [1] : vector<64x80xf32> to vector<64xf32>
    %94 = vector.shape_cast %93 : vector<64xf32> to vector<64x1xf32>
    %95 = tpu.reciprocal %94 {approx = true} : vector<64x1xf32> -> vector<64x1xf32>
    %96 = arith.truncf %92 : vector<64x80xf32> to vector<64x80xbf16>
    %97 = vector.extract_strided_slice %27 {offsets = [0, 16], sizes = [80, 8], strides = [1, 1]} : vector<80x32xf32> to vector<80x8xf32>
    %98 = arith.truncf %97 : vector<80x8xf32> to vector<80x8xbf16>
    %cst_41 = arith.constant dense<0.000000e+00> : vector<64x8xf32>
    %99 = tpu.matmul %96, %98, %cst_41 {dimension_numbers = #tpu.dot_dimension_numbers<[1], [0], [0], [1], [0, 0, 1, 1], [], []>} : vector<64x80xbf16>, vector<80x8xbf16>, vector<64x8xf32> -> vector<64x8xf32>
    %100 = vector.extract_strided_slice %19 {offsets = [0, 16], sizes = [64, 8], strides = [1, 1]} : vector<64x32xf32> to vector<64x8xf32>
    %101 = vector.broadcast %95 : vector<64x1xf32> to vector<64x8xf32>
    %102 = arith.mulf %99, %101 : vector<64x8xf32>
    %103 = arith.addf %100, %102 : vector<64x8xf32>
    %c0_42 = arith.constant 0 : index
    %c16_43 = arith.constant 16 : index
    %104 = vector.load %arg12[%c0_42, %c16_43] : memref<80x32xf32, #tpu.memory_space<vmem>>, vector<64x8xf32>
    tpu.vector_store %arg12[%c0_42, %c16_43], %103 {strides = array<i32>} : memref<80x32xf32, #tpu.memory_space<vmem>>, vector<64x8xf32>,
    %105 = vector.extract_strided_slice %29 {offsets = [0, 24], sizes = [64, 8], strides = [1, 1]} : vector<64x32xf32> to vector<64x8xf32>
    %106 = arith.truncf %105 : vector<64x8xf32> to vector<64x8xbf16>
    %107 = vector.extract_strided_slice %26 {offsets = [0, 24], sizes = [80, 8], strides = [1, 1]} : vector<80x32xf32> to vector<80x8xf32>
    %108 = arith.truncf %107 : vector<80x8xf32> to vector<80x8xbf16>
    %cst_44 = arith.constant dense<0.000000e+00> : vector<64x80xf32>
    %109 = tpu.matmul %106, %108, %cst_44 {dimension_numbers = #tpu.dot_dimension_numbers<[1], [1], [0], [0], [0, 0, 1, 0], [], []>} : vector<64x8xbf16>, vector<80x8xbf16>, vector<64x80xf32> -> vector<64x80xf32>
    %110 = arith.addf %109, %35 : vector<64x80xf32>
    %cst_45 = arith.constant dense<0xFF800000> : vector<64xf32>
    %111 = vector.multi_reduction <maximumf>, %110, %cst_45 [1] : vector<64x80xf32> to vector<64xf32>
    %112 = vector.shape_cast %111 : vector<64xf32> to vector<64x1xf32>
    %113 = vector.broadcast %112 : vector<64x1xf32> to vector<64x80xf32>
    %114 = arith.subf %110, %113 : vector<64x80xf32>
    %115 = math.exp %114 : vector<64x80xf32>
    %cst_46 = arith.constant dense<0.000000e+00> : vector<64xf32>
    %116 = vector.multi_reduction <add>, %115, %cst_46 [1] : vector<64x80xf32> to vector<64xf32>
    %117 = vector.shape_cast %116 : vector<64xf32> to vector<64x1xf32>
    %118 = tpu.reciprocal %117 {approx = true} : vector<64x1xf32> -> vector<64x1xf32>
    %119 = arith.truncf %115 : vector<64x80xf32> to vector<64x80xbf16>
    %120 = vector.extract_strided_slice %27 {offsets = [0, 24], sizes = [80, 8], strides = [1, 1]} : vector<80x32xf32> to vector<80x8xf32>
    %121 = arith.truncf %120 : vector<80x8xf32> to vector<80x8xbf16>
    %cst_47 = arith.constant dense<0.000000e+00> : vector<64x8xf32>
    %122 = tpu.matmul %119, %121, %cst_47 {dimension_numbers = #tpu.dot_dimension_numbers<[1], [0], [0], [1], [0, 0, 1, 1], [], []>} : vector<64x80xbf16>, vector<80x8xbf16>, vector<64x8xf32> -> vector<64x8xf32>
    %123 = vector.extract_strided_slice %19 {offsets = [0, 24], sizes = [64, 8], strides = [1, 1]} : vector<64x32xf32> to vector<64x8xf32>
    %124 = vector.broadcast %118 : vector<64x1xf32> to vector<64x8xf32>
    %125 = arith.mulf %122, %124 : vector<64x8xf32>
    %126 = arith.addf %123, %125 : vector<64x8xf32>
    %c0_48 = arith.constant 0 : index
    %c24 = arith.constant 24 : index
    %127 = vector.load %arg12[%c0_48, %c24] : memref<80x32xf32, #tpu.memory_space<vmem>>, vector<64x8xf32>
    tpu.vector_store %arg12[%c0_48, %c24], %126 {strides = array<i32>} : memref<80x32xf32, #tpu.memory_space<vmem>>, vector<64x8xf32>,
    %c0_49 = arith.constant 0 : index
    %c0_50 = arith.constant 0 : index
    %128 = vector.load %arg12[%c0_49, %c0_50] : memref<80x32xf32, #tpu.memory_space<vmem>>, vector<64x32xf32>
    %129 = arith.truncf %128 : vector<64x32xf32> to vector<64x32xbf16>
    %c128 = arith.constant 128 : index
    %c0_51 = arith.constant 0 : index
    %130 = vector.load %arg9[%c128, %c0_51] : memref<624x128xbf16, #tpu.memory_space<vmem>>, vector<32x32xbf16>
    %cst_52 = arith.constant dense<0.000000e+00> : vector<64x32xf32>
    %131 = tpu.matmul %129, %130, %cst_52 {dimension_numbers = #tpu.dot_dimension_numbers<[1], [0], [0], [1], [0, 0, 1, 1], [], []>} : vector<64x32xbf16>, vector<32x32xbf16>, vector<64x32xf32> -> vector<64x32xf32>
    %c3 = arith.constant 3 : index
    %c0_53 = arith.constant 0 : index
    %132 = vector.load %arg10[%c3, %c0_53] : memref<24x128xf32, #tpu.memory_space<vmem>>, vector<1x32xf32>
    %133 = vector.broadcast %132 : vector<1x32xf32> to vector<64x32xf32>
    %134 = arith.addf %131, %133 : vector<64x32xf32>
    %cst_54 = arith.constant 0.000000e+00 : f32
    %135 = vector.broadcast %cst_54 : f32 to vector<64x32xf32>
    %136 = arith.maximumf %134, %135 : vector<64x32xf32>
    %137 = arith.addf %128, %136 : vector<64x32xf32>
    %138 = arith.truncf %8 : vector<80x16xf32> to vector<80x16xbf16>
    %c160 = arith.constant 160 : index
    %c0_55 = arith.constant 0 : index
    %139 = vector.load %arg9[%c160, %c0_55] : memref<624x128xbf16, #tpu.memory_space<vmem>>, vector<16x32xbf16>
    %cst_56 = arith.constant dense<0.000000e+00> : vector<80x32xf32>
    %140 = tpu.matmul %138, %139, %cst_56 {dimension_numbers = #tpu.dot_dimension_numbers<[1], [0], [0], [1], [0, 0, 1, 1], [], []>} : vector<80x16xbf16>, vector<16x32xbf16>, vector<80x32xf32> -> vector<80x32xf32>
    %c4 = arith.constant 4 : index
    %c0_57 = arith.constant 0 : index
    %141 = vector.load %arg10[%c4, %c0_57] : memref<24x128xf32, #tpu.memory_space<vmem>>, vector<1x32xf32>
    %142 = vector.broadcast %141 : vector<1x32xf32> to vector<80x32xf32>
    %143 = arith.addf %140, %142 : vector<80x32xf32>
    %144 = arith.truncf %137 : vector<64x32xf32> to vector<64x32xbf16>
    %c176 = arith.constant 176 : index
    %c0_58 = arith.constant 0 : index
    %145 = vector.load %arg9[%c176, %c0_58] : memref<624x128xbf16, #tpu.memory_space<vmem>>, vector<32x64xbf16>
    %cst_59 = arith.constant dense<0.000000e+00> : vector<64x64xf32>
    %146 = tpu.matmul %144, %145, %cst_59 {dimension_numbers = #tpu.dot_dimension_numbers<[1], [0], [0], [1], [0, 0, 1, 1], [], []>} : vector<64x32xbf16>, vector<32x64xbf16>, vector<64x64xf32> -> vector<64x64xf32>
    %c5 = arith.constant 5 : index
    %c0_60 = arith.constant 0 : index
    %147 = vector.load %arg10[%c5, %c0_60] : memref<24x128xf32, #tpu.memory_space<vmem>>, vector<1x64xf32>
    %148 = vector.broadcast %147 : vector<1x64xf32> to vector<64x64xf32>
    %149 = arith.addf %146, %148 : vector<64x64xf32>
    %150 = vector.extract_strided_slice %149 {offsets = [0, 0], sizes = [64, 32], strides = [1, 1]} : vector<64x64xf32> to vector<64x32xf32>
    %151 = vector.extract_strided_slice %149 {offsets = [0, 32], sizes = [64, 32], strides = [1, 1]} : vector<64x64xf32> to vector<64x32xf32>
    %cst_61 = arith.constant 0.176776692 : f32
    %152 = vector.broadcast %cst_61 : f32 to vector<80x32xf32>
    %153 = arith.mulf %143, %152 : vector<80x32xf32>
    %154 = vector.broadcast %9 : vector<80x1xf32> to vector<80x64xf32>
    %155 = vector.broadcast %12 : vector<1x64xf32> to vector<80x64xf32>
    %156 = arith.cmpf oeq, %154, %155 : vector<80x64xf32>
    %cst_62 = arith.constant 0.000000e+00 : f32
    %cst_63 = arith.constant -1.000000e+30 : f32
    %157 = vector.broadcast %cst_62 : f32 to vector<80x64xf32>
    %158 = vector.broadcast %cst_63 : f32 to vector<80x64xf32>
    %159 = arith.select %156, %157, %158 : vector<80x64xi1>, vector<80x64xf32>
    %160 = vector.extract_strided_slice %153 {offsets = [0, 0], sizes = [80, 8], strides = [1, 1]} : vector<80x32xf32> to vector<80x8xf32>
    %161 = arith.truncf %160 : vector<80x8xf32> to vector<80x8xbf16>
    %162 = vector.extract_strided_slice %150 {offsets = [0, 0], sizes = [64, 8], strides = [1, 1]} : vector<64x32xf32> to vector<64x8xf32>
    %163 = arith.truncf %162 : vector<64x8xf32> to vector<64x8xbf16>
    %cst_64 = arith.constant dense<0.000000e+00> : vector<80x64xf32>
    %164 = tpu.matmul %161, %163, %cst_64 {dimension_numbers = #tpu.dot_dimension_numbers<[1], [1], [0], [0], [0, 0, 1, 0], [], []>} : vector<80x8xbf16>, vector<64x8xbf16>, vector<80x64xf32> -> vector<80x64xf32>
    %165 = arith.addf %164, %159 : vector<80x64xf32>
    %cst_65 = arith.constant dense<0xFF800000> : vector<80xf32>
    %166 = vector.multi_reduction <maximumf>, %165, %cst_65 [1] : vector<80x64xf32> to vector<80xf32>
    %167 = vector.shape_cast %166 : vector<80xf32> to vector<80x1xf32>
    %168 = vector.broadcast %167 : vector<80x1xf32> to vector<80x64xf32>
    %169 = arith.subf %165, %168 : vector<80x64xf32>
    %170 = math.exp %169 : vector<80x64xf32>
    %cst_66 = arith.constant dense<0.000000e+00> : vector<80xf32>
    %171 = vector.multi_reduction <add>, %170, %cst_66 [1] : vector<80x64xf32> to vector<80xf32>
    %172 = vector.shape_cast %171 : vector<80xf32> to vector<80x1xf32>
    %173 = tpu.reciprocal %172 {approx = true} : vector<80x1xf32> -> vector<80x1xf32>
    %174 = arith.truncf %170 : vector<80x64xf32> to vector<80x64xbf16>
    %175 = vector.extract_strided_slice %151 {offsets = [0, 0], sizes = [64, 8], strides = [1, 1]} : vector<64x32xf32> to vector<64x8xf32>
    %176 = arith.truncf %175 : vector<64x8xf32> to vector<64x8xbf16>
    %cst_67 = arith.constant dense<0.000000e+00> : vector<80x8xf32>
    %177 = tpu.matmul %174, %176, %cst_67 {dimension_numbers = #tpu.dot_dimension_numbers<[1], [0], [0], [1], [0, 0, 1, 1], [], []>} : vector<80x64xbf16>, vector<64x8xbf16>, vector<80x8xf32> -> vector<80x8xf32>
    %178 = vector.extract_strided_slice %143 {offsets = [0, 0], sizes = [80, 8], strides = [1, 1]} : vector<80x32xf32> to vector<80x8xf32>
    %179 = vector.broadcast %173 : vector<80x1xf32> to vector<80x8xf32>
    %180 = arith.mulf %177, %179 : vector<80x8xf32>
    %181 = arith.addf %178, %180 : vector<80x8xf32>
    %c0_68 = arith.constant 0 : index
    %c0_69 = arith.constant 0 : index
    %182 = vector.load %arg12[%c0_68, %c0_69] : memref<80x32xf32, #tpu.memory_space<vmem>>, vector<80x8xf32>
    tpu.vector_store %arg12[%c0_68, %c0_69], %181 {strides = array<i32>} : memref<80x32xf32, #tpu.memory_space<vmem>>, vector<80x8xf32>,
    %183 = vector.extract_strided_slice %153 {offsets = [0, 8], sizes = [80, 8], strides = [1, 1]} : vector<80x32xf32> to vector<80x8xf32>
    %184 = arith.truncf %183 : vector<80x8xf32> to vector<80x8xbf16>
    %185 = vector.extract_strided_slice %150 {offsets = [0, 8], sizes = [64, 8], strides = [1, 1]} : vector<64x32xf32> to vector<64x8xf32>
    %186 = arith.truncf %185 : vector<64x8xf32> to vector<64x8xbf16>
    %cst_70 = arith.constant dense<0.000000e+00> : vector<80x64xf32>
    %187 = tpu.matmul %184, %186, %cst_70 {dimension_numbers = #tpu.dot_dimension_numbers<[1], [1], [0], [0], [0, 0, 1, 0], [], []>} : vector<80x8xbf16>, vector<64x8xbf16>, vector<80x64xf32> -> vector<80x64xf32>
    %188 = arith.addf %187, %159 : vector<80x64xf32>
    %cst_71 = arith.constant dense<0xFF800000> : vector<80xf32>
    %189 = vector.multi_reduction <maximumf>, %188, %cst_71 [1] : vector<80x64xf32> to vector<80xf32>
    %190 = vector.shape_cast %189 : vector<80xf32> to vector<80x1xf32>
    %191 = vector.broadcast %190 : vector<80x1xf32> to vector<80x64xf32>
    %192 = arith.subf %188, %191 : vector<80x64xf32>
    %193 = math.exp %192 : vector<80x64xf32>
    %cst_72 = arith.constant dense<0.000000e+00> : vector<80xf32>
    %194 = vector.multi_reduction <add>, %193, %cst_72 [1] : vector<80x64xf32> to vector<80xf32>
    %195 = vector.shape_cast %194 : vector<80xf32> to vector<80x1xf32>
    %196 = tpu.reciprocal %195 {approx = true} : vector<80x1xf32> -> vector<80x1xf32>
    %197 = arith.truncf %193 : vector<80x64xf32> to vector<80x64xbf16>
    %198 = vector.extract_strided_slice %151 {offsets = [0, 8], sizes = [64, 8], strides = [1, 1]} : vector<64x32xf32> to vector<64x8xf32>
    %199 = arith.truncf %198 : vector<64x8xf32> to vector<64x8xbf16>
    %cst_73 = arith.constant dense<0.000000e+00> : vector<80x8xf32>
    %200 = tpu.matmul %197, %199, %cst_73 {dimension_numbers = #tpu.dot_dimension_numbers<[1], [0], [0], [1], [0, 0, 1, 1], [], []>} : vector<80x64xbf16>, vector<64x8xbf16>, vector<80x8xf32> -> vector<80x8xf32>
    %201 = vector.extract_strided_slice %143 {offsets = [0, 8], sizes = [80, 8], strides = [1, 1]} : vector<80x32xf32> to vector<80x8xf32>
    %202 = vector.broadcast %196 : vector<80x1xf32> to vector<80x8xf32>
    %203 = arith.mulf %200, %202 : vector<80x8xf32>
    %204 = arith.addf %201, %203 : vector<80x8xf32>
    %c0_74 = arith.constant 0 : index
    %c8_75 = arith.constant 8 : index
    %205 = vector.load %arg12[%c0_74, %c8_75] : memref<80x32xf32, #tpu.memory_space<vmem>>, vector<80x8xf32>
    tpu.vector_store %arg12[%c0_74, %c8_75], %204 {strides = array<i32>} : memref<80x32xf32, #tpu.memory_space<vmem>>, vector<80x8xf32>,
    %206 = vector.extract_strided_slice %153 {offsets = [0, 16], sizes = [80, 8], strides = [1, 1]} : vector<80x32xf32> to vector<80x8xf32>
    %207 = arith.truncf %206 : vector<80x8xf32> to vector<80x8xbf16>
    %208 = vector.extract_strided_slice %150 {offsets = [0, 16], sizes = [64, 8], strides = [1, 1]} : vector<64x32xf32> to vector<64x8xf32>
    %209 = arith.truncf %208 : vector<64x8xf32> to vector<64x8xbf16>
    %cst_76 = arith.constant dense<0.000000e+00> : vector<80x64xf32>
    %210 = tpu.matmul %207, %209, %cst_76 {dimension_numbers = #tpu.dot_dimension_numbers<[1], [1], [0], [0], [0, 0, 1, 0], [], []>} : vector<80x8xbf16>, vector<64x8xbf16>, vector<80x64xf32> -> vector<80x64xf32>
    %211 = arith.addf %210, %159 : vector<80x64xf32>
    %cst_77 = arith.constant dense<0xFF800000> : vector<80xf32>
    %212 = vector.multi_reduction <maximumf>, %211, %cst_77 [1] : vector<80x64xf32> to vector<80xf32>
    %213 = vector.shape_cast %212 : vector<80xf32> to vector<80x1xf32>
    %214 = vector.broadcast %213 : vector<80x1xf32> to vector<80x64xf32>
    %215 = arith.subf %211, %214 : vector<80x64xf32>
    %216 = math.exp %215 : vector<80x64xf32>
    %cst_78 = arith.constant dense<0.000000e+00> : vector<80xf32>
    %217 = vector.multi_reduction <add>, %216, %cst_78 [1] : vector<80x64xf32> to vector<80xf32>
    %218 = vector.shape_cast %217 : vector<80xf32> to vector<80x1xf32>
    %219 = tpu.reciprocal %218 {approx = true} : vector<80x1xf32> -> vector<80x1xf32>
    %220 = arith.truncf %216 : vector<80x64xf32> to vector<80x64xbf16>
    %221 = vector.extract_strided_slice %151 {offsets = [0, 16], sizes = [64, 8], strides = [1, 1]} : vector<64x32xf32> to vector<64x8xf32>
    %222 = arith.truncf %221 : vector<64x8xf32> to vector<64x8xbf16>
    %cst_79 = arith.constant dense<0.000000e+00> : vector<80x8xf32>
    %223 = tpu.matmul %220, %222, %cst_79 {dimension_numbers = #tpu.dot_dimension_numbers<[1], [0], [0], [1], [0, 0, 1, 1], [], []>} : vector<80x64xbf16>, vector<64x8xbf16>, vector<80x8xf32> -> vector<80x8xf32>
    %224 = vector.extract_strided_slice %143 {offsets = [0, 16], sizes = [80, 8], strides = [1, 1]} : vector<80x32xf32> to vector<80x8xf32>
    %225 = vector.broadcast %219 : vector<80x1xf32> to vector<80x8xf32>
    %226 = arith.mulf %223, %225 : vector<80x8xf32>
    %227 = arith.addf %224, %226 : vector<80x8xf32>
    %c0_80 = arith.constant 0 : index
    %c16_81 = arith.constant 16 : index
    %228 = vector.load %arg12[%c0_80, %c16_81] : memref<80x32xf32, #tpu.memory_space<vmem>>, vector<80x8xf32>
    tpu.vector_store %arg12[%c0_80, %c16_81], %227 {strides = array<i32>} : memref<80x32xf32, #tpu.memory_space<vmem>>, vector<80x8xf32>,
    %229 = vector.extract_strided_slice %153 {offsets = [0, 24], sizes = [80, 8], strides = [1, 1]} : vector<80x32xf32> to vector<80x8xf32>
    %230 = arith.truncf %229 : vector<80x8xf32> to vector<80x8xbf16>
    %231 = vector.extract_strided_slice %150 {offsets = [0, 24], sizes = [64, 8], strides = [1, 1]} : vector<64x32xf32> to vector<64x8xf32>
    %232 = arith.truncf %231 : vector<64x8xf32> to vector<64x8xbf16>
    %cst_82 = arith.constant dense<0.000000e+00> : vector<80x64xf32>
    %233 = tpu.matmul %230, %232, %cst_82 {dimension_numbers = #tpu.dot_dimension_numbers<[1], [1], [0], [0], [0, 0, 1, 0], [], []>} : vector<80x8xbf16>, vector<64x8xbf16>, vector<80x64xf32> -> vector<80x64xf32>
    %234 = arith.addf %233, %159 : vector<80x64xf32>
    %cst_83 = arith.constant dense<0xFF800000> : vector<80xf32>
    %235 = vector.multi_reduction <maximumf>, %234, %cst_83 [1] : vector<80x64xf32> to vector<80xf32>
    %236 = vector.shape_cast %235 : vector<80xf32> to vector<80x1xf32>
    %237 = vector.broadcast %236 : vector<80x1xf32> to vector<80x64xf32>
    %238 = arith.subf %234, %237 : vector<80x64xf32>
    %239 = math.exp %238 : vector<80x64xf32>
    %cst_84 = arith.constant dense<0.000000e+00> : vector<80xf32>
    %240 = vector.multi_reduction <add>, %239, %cst_84 [1] : vector<80x64xf32> to vector<80xf32>
    %241 = vector.shape_cast %240 : vector<80xf32> to vector<80x1xf32>
    %242 = tpu.reciprocal %241 {approx = true} : vector<80x1xf32> -> vector<80x1xf32>
    %243 = arith.truncf %239 : vector<80x64xf32> to vector<80x64xbf16>
    %244 = vector.extract_strided_slice %151 {offsets = [0, 24], sizes = [64, 8], strides = [1, 1]} : vector<64x32xf32> to vector<64x8xf32>
    %245 = arith.truncf %244 : vector<64x8xf32> to vector<64x8xbf16>
    %cst_85 = arith.constant dense<0.000000e+00> : vector<80x8xf32>
    %246 = tpu.matmul %243, %245, %cst_85 {dimension_numbers = #tpu.dot_dimension_numbers<[1], [0], [0], [1], [0, 0, 1, 1], [], []>} : vector<80x64xbf16>, vector<64x8xbf16>, vector<80x8xf32> -> vector<80x8xf32>
    %247 = vector.extract_strided_slice %143 {offsets = [0, 24], sizes = [80, 8], strides = [1, 1]} : vector<80x32xf32> to vector<80x8xf32>
    %248 = vector.broadcast %242 : vector<80x1xf32> to vector<80x8xf32>
    %249 = arith.mulf %246, %248 : vector<80x8xf32>
    %250 = arith.addf %247, %249 : vector<80x8xf32>
    %c0_86 = arith.constant 0 : index
    %c24_87 = arith.constant 24 : index
    %251 = vector.load %arg12[%c0_86, %c24_87] : memref<80x32xf32, #tpu.memory_space<vmem>>, vector<80x8xf32>
    tpu.vector_store %arg12[%c0_86, %c24_87], %250 {strides = array<i32>} : memref<80x32xf32, #tpu.memory_space<vmem>>, vector<80x8xf32>,
    %c0_88 = arith.constant 0 : index
    %c0_89 = arith.constant 0 : index
    %252 = vector.load %arg12[%c0_88, %c0_89] : memref<80x32xf32, #tpu.memory_space<vmem>>, vector<80x32xf32>
    %253 = arith.truncf %252 : vector<80x32xf32> to vector<80x32xbf16>
    %c208 = arith.constant 208 : index
    %c0_90 = arith.constant 0 : index
    %254 = vector.load %arg9[%c208, %c0_90] : memref<624x128xbf16, #tpu.memory_space<vmem>>, vector<32x32xbf16>
    %cst_91 = arith.constant dense<0.000000e+00> : vector<80x32xf32>
    %255 = tpu.matmul %253, %254, %cst_91 {dimension_numbers = #tpu.dot_dimension_numbers<[1], [0], [0], [1], [0, 0, 1, 1], [], []>} : vector<80x32xbf16>, vector<32x32xbf16>, vector<80x32xf32> -> vector<80x32xf32>
    %c6 = arith.constant 6 : index
    %c0_92 = arith.constant 0 : index
    %256 = vector.load %arg10[%c6, %c0_92] : memref<24x128xf32, #tpu.memory_space<vmem>>, vector<1x32xf32>
    %257 = vector.broadcast %256 : vector<1x32xf32> to vector<80x32xf32>
    %258 = arith.addf %255, %257 : vector<80x32xf32>
    %cst_93 = arith.constant 0.000000e+00 : f32
    %259 = vector.broadcast %cst_93 : f32 to vector<80x32xf32>
    %260 = arith.maximumf %258, %259 : vector<80x32xf32>
    %261 = arith.addf %252, %260 : vector<80x32xf32>
    %c240 = arith.constant 240 : index
    %c0_94 = arith.constant 0 : index
    %262 = vector.load %arg9[%c240, %c0_94] : memref<624x128xbf16, #tpu.memory_space<vmem>>, vector<64x32xbf16>
    %c304 = arith.constant 304 : index
    %c0_95 = arith.constant 0 : index
    %263 = vector.load %arg9[%c304, %c0_95] : memref<624x128xbf16, #tpu.memory_space<vmem>>, vector<32x32xbf16>
    %cst_96 = arith.constant dense<0.000000e+00> : vector<64x32xf32>
    %264 = tpu.matmul %262, %263, %cst_96 {dimension_numbers = #tpu.dot_dimension_numbers<[1], [0], [0], [1], [0, 0, 1, 1], [], []>} : vector<64x32xbf16>, vector<32x32xbf16>, vector<64x32xf32> -> vector<64x32xf32>
    %c7 = arith.constant 7 : index
    %c0_97 = arith.constant 0 : index
    %265 = vector.load %arg10[%c7, %c0_97] : memref<24x128xf32, #tpu.memory_space<vmem>>, vector<1x32xf32>
    %266 = vector.broadcast %265 : vector<1x32xf32> to vector<64x32xf32>
    %267 = arith.addf %264, %266 : vector<64x32xf32>
    %268 = arith.truncf %261 : vector<80x32xf32> to vector<80x32xbf16>
    %c336 = arith.constant 336 : index
    %c0_98 = arith.constant 0 : index
    %269 = vector.load %arg9[%c336, %c0_98] : memref<624x128xbf16, #tpu.memory_space<vmem>>, vector<32x64xbf16>
    %cst_99 = arith.constant dense<0.000000e+00> : vector<80x64xf32>
    %270 = tpu.matmul %268, %269, %cst_99 {dimension_numbers = #tpu.dot_dimension_numbers<[1], [0], [0], [1], [0, 0, 1, 1], [], []>} : vector<80x32xbf16>, vector<32x64xbf16>, vector<80x64xf32> -> vector<80x64xf32>
    %c8_100 = arith.constant 8 : index
    %c0_101 = arith.constant 0 : index
    %271 = vector.load %arg10[%c8_100, %c0_101] : memref<24x128xf32, #tpu.memory_space<vmem>>, vector<1x64xf32>
    %272 = vector.broadcast %271 : vector<1x64xf32> to vector<80x64xf32>
    %273 = arith.addf %270, %272 : vector<80x64xf32>
    %274 = vector.extract_strided_slice %273 {offsets = [0, 0], sizes = [80, 32], strides = [1, 1]} : vector<80x64xf32> to vector<80x32xf32>
    %275 = vector.extract_strided_slice %273 {offsets = [0, 32], sizes = [80, 32], strides = [1, 1]} : vector<80x64xf32> to vector<80x32xf32>
    %cst_102 = arith.constant 0.176776692 : f32
    %276 = vector.broadcast %cst_102 : f32 to vector<64x32xf32>
    %277 = arith.mulf %267, %276 : vector<64x32xf32>
    %278 = vector.broadcast %11 : vector<64x1xf32> to vector<64x80xf32>
    %279 = vector.broadcast %10 : vector<1x80xf32> to vector<64x80xf32>
    %280 = arith.cmpf oeq, %278, %279 : vector<64x80xf32>
    %cst_103 = arith.constant 0.000000e+00 : f32
    %cst_104 = arith.constant -1.000000e+30 : f32
    %281 = vector.broadcast %cst_103 : f32 to vector<64x80xf32>
    %282 = vector.broadcast %cst_104 : f32 to vector<64x80xf32>
    %283 = arith.select %280, %281, %282 : vector<64x80xi1>, vector<64x80xf32>
    %284 = vector.extract_strided_slice %277 {offsets = [0, 0], sizes = [64, 8], strides = [1, 1]} : vector<64x32xf32> to vector<64x8xf32>
    %285 = arith.truncf %284 : vector<64x8xf32> to vector<64x8xbf16>
    %286 = vector.extract_strided_slice %274 {offsets = [0, 0], sizes = [80, 8], strides = [1, 1]} : vector<80x32xf32> to vector<80x8xf32>
    %287 = arith.truncf %286 : vector<80x8xf32> to vector<80x8xbf16>
    %cst_105 = arith.constant dense<0.000000e+00> : vector<64x80xf32>
    %288 = tpu.matmul %285, %287, %cst_105 {dimension_numbers = #tpu.dot_dimension_numbers<[1], [1], [0], [0], [0, 0, 1, 0], [], []>} : vector<64x8xbf16>, vector<80x8xbf16>, vector<64x80xf32> -> vector<64x80xf32>
    %289 = arith.addf %288, %283 : vector<64x80xf32>
    %cst_106 = arith.constant dense<0xFF800000> : vector<64xf32>
    %290 = vector.multi_reduction <maximumf>, %289, %cst_106 [1] : vector<64x80xf32> to vector<64xf32>
    %291 = vector.shape_cast %290 : vector<64xf32> to vector<64x1xf32>
    %292 = vector.broadcast %291 : vector<64x1xf32> to vector<64x80xf32>
    %293 = arith.subf %289, %292 : vector<64x80xf32>
    %294 = math.exp %293 : vector<64x80xf32>
    %cst_107 = arith.constant dense<0.000000e+00> : vector<64xf32>
    %295 = vector.multi_reduction <add>, %294, %cst_107 [1] : vector<64x80xf32> to vector<64xf32>
    %296 = vector.shape_cast %295 : vector<64xf32> to vector<64x1xf32>
    %297 = tpu.reciprocal %296 {approx = true} : vector<64x1xf32> -> vector<64x1xf32>
    %298 = arith.truncf %294 : vector<64x80xf32> to vector<64x80xbf16>
    %299 = vector.extract_strided_slice %275 {offsets = [0, 0], sizes = [80, 8], strides = [1, 1]} : vector<80x32xf32> to vector<80x8xf32>
    %300 = arith.truncf %299 : vector<80x8xf32> to vector<80x8xbf16>
    %cst_108 = arith.constant dense<0.000000e+00> : vector<64x8xf32>
    %301 = tpu.matmul %298, %300, %cst_108 {dimension_numbers = #tpu.dot_dimension_numbers<[1], [0], [0], [1], [0, 0, 1, 1], [], []>} : vector<64x80xbf16>, vector<80x8xbf16>, vector<64x8xf32> -> vector<64x8xf32>
    %302 = vector.extract_strided_slice %267 {offsets = [0, 0], sizes = [64, 8], strides = [1, 1]} : vector<64x32xf32> to vector<64x8xf32>
    %303 = vector.broadcast %297 : vector<64x1xf32> to vector<64x8xf32>
    %304 = arith.mulf %301, %303 : vector<64x8xf32>
    %305 = arith.addf %302, %304 : vector<64x8xf32>
    %c0_109 = arith.constant 0 : index
    %c0_110 = arith.constant 0 : index
    %306 = vector.load %arg12[%c0_109, %c0_110] : memref<80x32xf32, #tpu.memory_space<vmem>>, vector<64x8xf32>
    tpu.vector_store %arg12[%c0_109, %c0_110], %305 {strides = array<i32>} : memref<80x32xf32, #tpu.memory_space<vmem>>, vector<64x8xf32>,
    %307 = vector.extract_strided_slice %277 {offsets = [0, 8], sizes = [64, 8], strides = [1, 1]} : vector<64x32xf32> to vector<64x8xf32>
    %308 = arith.truncf %307 : vector<64x8xf32> to vector<64x8xbf16>
    %309 = vector.extract_strided_slice %274 {offsets = [0, 8], sizes = [80, 8], strides = [1, 1]} : vector<80x32xf32> to vector<80x8xf32>
    %310 = arith.truncf %309 : vector<80x8xf32> to vector<80x8xbf16>
    %cst_111 = arith.constant dense<0.000000e+00> : vector<64x80xf32>
    %311 = tpu.matmul %308, %310, %cst_111 {dimension_numbers = #tpu.dot_dimension_numbers<[1], [1], [0], [0], [0, 0, 1, 0], [], []>} : vector<64x8xbf16>, vector<80x8xbf16>, vector<64x80xf32> -> vector<64x80xf32>
    %312 = arith.addf %311, %283 : vector<64x80xf32>
    %cst_112 = arith.constant dense<0xFF800000> : vector<64xf32>
    %313 = vector.multi_reduction <maximumf>, %312, %cst_112 [1] : vector<64x80xf32> to vector<64xf32>
    %314 = vector.shape_cast %313 : vector<64xf32> to vector<64x1xf32>
    %315 = vector.broadcast %314 : vector<64x1xf32> to vector<64x80xf32>
    %316 = arith.subf %312, %315 : vector<64x80xf32>
    %317 = math.exp %316 : vector<64x80xf32>
    %cst_113 = arith.constant dense<0.000000e+00> : vector<64xf32>
    %318 = vector.multi_reduction <add>, %317, %cst_113 [1] : vector<64x80xf32> to vector<64xf32>
    %319 = vector.shape_cast %318 : vector<64xf32> to vector<64x1xf32>
    %320 = tpu.reciprocal %319 {approx = true} : vector<64x1xf32> -> vector<64x1xf32>
    %321 = arith.truncf %317 : vector<64x80xf32> to vector<64x80xbf16>
    %322 = vector.extract_strided_slice %275 {offsets = [0, 8], sizes = [80, 8], strides = [1, 1]} : vector<80x32xf32> to vector<80x8xf32>
    %323 = arith.truncf %322 : vector<80x8xf32> to vector<80x8xbf16>
    %cst_114 = arith.constant dense<0.000000e+00> : vector<64x8xf32>
    %324 = tpu.matmul %321, %323, %cst_114 {dimension_numbers = #tpu.dot_dimension_numbers<[1], [0], [0], [1], [0, 0, 1, 1], [], []>} : vector<64x80xbf16>, vector<80x8xbf16>, vector<64x8xf32> -> vector<64x8xf32>
    %325 = vector.extract_strided_slice %267 {offsets = [0, 8], sizes = [64, 8], strides = [1, 1]} : vector<64x32xf32> to vector<64x8xf32>
    %326 = vector.broadcast %320 : vector<64x1xf32> to vector<64x8xf32>
    %327 = arith.mulf %324, %326 : vector<64x8xf32>
    %328 = arith.addf %325, %327 : vector<64x8xf32>
    %c0_115 = arith.constant 0 : index
    %c8_116 = arith.constant 8 : index
    %329 = vector.load %arg12[%c0_115, %c8_116] : memref<80x32xf32, #tpu.memory_space<vmem>>, vector<64x8xf32>
    tpu.vector_store %arg12[%c0_115, %c8_116], %328 {strides = array<i32>} : memref<80x32xf32, #tpu.memory_space<vmem>>, vector<64x8xf32>,
    %330 = vector.extract_strided_slice %277 {offsets = [0, 16], sizes = [64, 8], strides = [1, 1]} : vector<64x32xf32> to vector<64x8xf32>
    %331 = arith.truncf %330 : vector<64x8xf32> to vector<64x8xbf16>
    %332 = vector.extract_strided_slice %274 {offsets = [0, 16], sizes = [80, 8], strides = [1, 1]} : vector<80x32xf32> to vector<80x8xf32>
    %333 = arith.truncf %332 : vector<80x8xf32> to vector<80x8xbf16>
    %cst_117 = arith.constant dense<0.000000e+00> : vector<64x80xf32>
    %334 = tpu.matmul %331, %333, %cst_117 {dimension_numbers = #tpu.dot_dimension_numbers<[1], [1], [0], [0], [0, 0, 1, 0], [], []>} : vector<64x8xbf16>, vector<80x8xbf16>, vector<64x80xf32> -> vector<64x80xf32>
    %335 = arith.addf %334, %283 : vector<64x80xf32>
    %cst_118 = arith.constant dense<0xFF800000> : vector<64xf32>
    %336 = vector.multi_reduction <maximumf>, %335, %cst_118 [1] : vector<64x80xf32> to vector<64xf32>
    %337 = vector.shape_cast %336 : vector<64xf32> to vector<64x1xf32>
    %338 = vector.broadcast %337 : vector<64x1xf32> to vector<64x80xf32>
    %339 = arith.subf %335, %338 : vector<64x80xf32>
    %340 = math.exp %339 : vector<64x80xf32>
    %cst_119 = arith.constant dense<0.000000e+00> : vector<64xf32>
    %341 = vector.multi_reduction <add>, %340, %cst_119 [1] : vector<64x80xf32> to vector<64xf32>
    %342 = vector.shape_cast %341 : vector<64xf32> to vector<64x1xf32>
    %343 = tpu.reciprocal %342 {approx = true} : vector<64x1xf32> -> vector<64x1xf32>
    %344 = arith.truncf %340 : vector<64x80xf32> to vector<64x80xbf16>
    %345 = vector.extract_strided_slice %275 {offsets = [0, 16], sizes = [80, 8], strides = [1, 1]} : vector<80x32xf32> to vector<80x8xf32>
    %346 = arith.truncf %345 : vector<80x8xf32> to vector<80x8xbf16>
    %cst_120 = arith.constant dense<0.000000e+00> : vector<64x8xf32>
    %347 = tpu.matmul %344, %346, %cst_120 {dimension_numbers = #tpu.dot_dimension_numbers<[1], [0], [0], [1], [0, 0, 1, 1], [], []>} : vector<64x80xbf16>, vector<80x8xbf16>, vector<64x8xf32> -> vector<64x8xf32>
    %348 = vector.extract_strided_slice %267 {offsets = [0, 16], sizes = [64, 8], strides = [1, 1]} : vector<64x32xf32> to vector<64x8xf32>
    %349 = vector.broadcast %343 : vector<64x1xf32> to vector<64x8xf32>
    %350 = arith.mulf %347, %349 : vector<64x8xf32>
    %351 = arith.addf %348, %350 : vector<64x8xf32>
    %c0_121 = arith.constant 0 : index
    %c16_122 = arith.constant 16 : index
    %352 = vector.load %arg12[%c0_121, %c16_122] : memref<80x32xf32, #tpu.memory_space<vmem>>, vector<64x8xf32>
    tpu.vector_store %arg12[%c0_121, %c16_122], %351 {strides = array<i32>} : memref<80x32xf32, #tpu.memory_space<vmem>>, vector<64x8xf32>,
    %353 = vector.extract_strided_slice %277 {offsets = [0, 24], sizes = [64, 8], strides = [1, 1]} : vector<64x32xf32> to vector<64x8xf32>
    %354 = arith.truncf %353 : vector<64x8xf32> to vector<64x8xbf16>
    %355 = vector.extract_strided_slice %274 {offsets = [0, 24], sizes = [80, 8], strides = [1, 1]} : vector<80x32xf32> to vector<80x8xf32>
    %356 = arith.truncf %355 : vector<80x8xf32> to vector<80x8xbf16>
    %cst_123 = arith.constant dense<0.000000e+00> : vector<64x80xf32>
    %357 = tpu.matmul %354, %356, %cst_123 {dimension_numbers = #tpu.dot_dimension_numbers<[1], [1], [0], [0], [0, 0, 1, 0], [], []>} : vector<64x8xbf16>, vector<80x8xbf16>, vector<64x80xf32> -> vector<64x80xf32>
    %358 = arith.addf %357, %283 : vector<64x80xf32>
    %cst_124 = arith.constant dense<0xFF800000> : vector<64xf32>
    %359 = vector.multi_reduction <maximumf>, %358, %cst_124 [1] : vector<64x80xf32> to vector<64xf32>
    %360 = vector.shape_cast %359 : vector<64xf32> to vector<64x1xf32>
    %361 = vector.broadcast %360 : vector<64x1xf32> to vector<64x80xf32>
    %362 = arith.subf %358, %361 : vector<64x80xf32>
    %363 = math.exp %362 : vector<64x80xf32>
    %cst_125 = arith.constant dense<0.000000e+00> : vector<64xf32>
    %364 = vector.multi_reduction <add>, %363, %cst_125 [1] : vector<64x80xf32> to vector<64xf32>
    %365 = vector.shape_cast %364 : vector<64xf32> to vector<64x1xf32>
    %366 = tpu.reciprocal %365 {approx = true} : vector<64x1xf32> -> vector<64x1xf32>
    %367 = arith.truncf %363 : vector<64x80xf32> to vector<64x80xbf16>
    %368 = vector.extract_strided_slice %275 {offsets = [0, 24], sizes = [80, 8], strides = [1, 1]} : vector<80x32xf32> to vector<80x8xf32>
    %369 = arith.truncf %368 : vector<80x8xf32> to vector<80x8xbf16>
    %cst_126 = arith.constant dense<0.000000e+00> : vector<64x8xf32>
    %370 = tpu.matmul %367, %369, %cst_126 {dimension_numbers = #tpu.dot_dimension_numbers<[1], [0], [0], [1], [0, 0, 1, 1], [], []>} : vector<64x80xbf16>, vector<80x8xbf16>, vector<64x8xf32> -> vector<64x8xf32>
    %371 = vector.extract_strided_slice %267 {offsets = [0, 24], sizes = [64, 8], strides = [1, 1]} : vector<64x32xf32> to vector<64x8xf32>
    %372 = vector.broadcast %366 : vector<64x1xf32> to vector<64x8xf32>
    %373 = arith.mulf %370, %372 : vector<64x8xf32>
    %374 = arith.addf %371, %373 : vector<64x8xf32>
    %c0_127 = arith.constant 0 : index
    %c24_128 = arith.constant 24 : index
    %375 = vector.load %arg12[%c0_127, %c24_128] : memref<80x32xf32, #tpu.memory_space<vmem>>, vector<64x8xf32>
    tpu.vector_store %arg12[%c0_127, %c24_128], %374 {strides = array<i32>} : memref<80x32xf32, #tpu.memory_space<vmem>>, vector<64x8xf32>,
    %c0_129 = arith.constant 0 : index
    %c0_130 = arith.constant 0 : index
    %376 = vector.load %arg12[%c0_129, %c0_130] : memref<80x32xf32, #tpu.memory_space<vmem>>, vector<64x32xf32>
    %377 = arith.truncf %376 : vector<64x32xf32> to vector<64x32xbf16>
    %c368 = arith.constant 368 : index
    %c0_131 = arith.constant 0 : index
    %378 = vector.load %arg9[%c368, %c0_131] : memref<624x128xbf16, #tpu.memory_space<vmem>>, vector<32x32xbf16>
    %cst_132 = arith.constant dense<0.000000e+00> : vector<64x32xf32>
    %379 = tpu.matmul %377, %378, %cst_132 {dimension_numbers = #tpu.dot_dimension_numbers<[1], [0], [0], [1], [0, 0, 1, 1], [], []>} : vector<64x32xbf16>, vector<32x32xbf16>, vector<64x32xf32> -> vector<64x32xf32>
    %c9 = arith.constant 9 : index
    %c0_133 = arith.constant 0 : index
    %380 = vector.load %arg10[%c9, %c0_133] : memref<24x128xf32, #tpu.memory_space<vmem>>, vector<1x32xf32>
    %381 = vector.broadcast %380 : vector<1x32xf32> to vector<64x32xf32>
    %382 = arith.addf %379, %381 : vector<64x32xf32>
    %cst_134 = arith.constant 0.000000e+00 : f32
    %383 = vector.broadcast %cst_134 : f32 to vector<64x32xf32>
    %384 = arith.maximumf %382, %383 : vector<64x32xf32>
    %385 = arith.addf %376, %384 : vector<64x32xf32>
    %386 = arith.truncf %261 : vector<80x32xf32> to vector<80x32xbf16>
    %c400 = arith.constant 400 : index
    %c0_135 = arith.constant 0 : index
    %387 = vector.load %arg9[%c400, %c0_135] : memref<624x128xbf16, #tpu.memory_space<vmem>>, vector<32x32xbf16>
    %cst_136 = arith.constant dense<0.000000e+00> : vector<80x32xf32>
    %388 = tpu.matmul %386, %387, %cst_136 {dimension_numbers = #tpu.dot_dimension_numbers<[1], [0], [0], [1], [0, 0, 1, 1], [], []>} : vector<80x32xbf16>, vector<32x32xbf16>, vector<80x32xf32> -> vector<80x32xf32>
    %c10 = arith.constant 10 : index
    %c0_137 = arith.constant 0 : index
    %389 = vector.load %arg10[%c10, %c0_137] : memref<24x128xf32, #tpu.memory_space<vmem>>, vector<1x32xf32>
    %390 = vector.broadcast %389 : vector<1x32xf32> to vector<80x32xf32>
    %391 = arith.addf %388, %390 : vector<80x32xf32>
    %392 = arith.truncf %385 : vector<64x32xf32> to vector<64x32xbf16>
    %c432 = arith.constant 432 : index
    %c0_138 = arith.constant 0 : index
    %393 = vector.load %arg9[%c432, %c0_138] : memref<624x128xbf16, #tpu.memory_space<vmem>>, vector<32x64xbf16>
    %cst_139 = arith.constant dense<0.000000e+00> : vector<64x64xf32>
    %394 = tpu.matmul %392, %393, %cst_139 {dimension_numbers = #tpu.dot_dimension_numbers<[1], [0], [0], [1], [0, 0, 1, 1], [], []>} : vector<64x32xbf16>, vector<32x64xbf16>, vector<64x64xf32> -> vector<64x64xf32>
    %c11 = arith.constant 11 : index
    %c0_140 = arith.constant 0 : index
    %395 = vector.load %arg10[%c11, %c0_140] : memref<24x128xf32, #tpu.memory_space<vmem>>, vector<1x64xf32>
    %396 = vector.broadcast %395 : vector<1x64xf32> to vector<64x64xf32>
    %397 = arith.addf %394, %396 : vector<64x64xf32>
    %398 = vector.extract_strided_slice %397 {offsets = [0, 0], sizes = [64, 32], strides = [1, 1]} : vector<64x64xf32> to vector<64x32xf32>
    %399 = vector.extract_strided_slice %397 {offsets = [0, 32], sizes = [64, 32], strides = [1, 1]} : vector<64x64xf32> to vector<64x32xf32>
    %cst_141 = arith.constant 0.176776692 : f32
    %400 = vector.broadcast %cst_141 : f32 to vector<80x32xf32>
    %401 = arith.mulf %391, %400 : vector<80x32xf32>
    %402 = vector.broadcast %9 : vector<80x1xf32> to vector<80x64xf32>
    %403 = vector.broadcast %12 : vector<1x64xf32> to vector<80x64xf32>
    %404 = arith.cmpf oeq, %402, %403 : vector<80x64xf32>
    %cst_142 = arith.constant 0.000000e+00 : f32
    %cst_143 = arith.constant -1.000000e+30 : f32
    %405 = vector.broadcast %cst_142 : f32 to vector<80x64xf32>
    %406 = vector.broadcast %cst_143 : f32 to vector<80x64xf32>
    %407 = arith.select %404, %405, %406 : vector<80x64xi1>, vector<80x64xf32>
    %408 = vector.extract_strided_slice %401 {offsets = [0, 0], sizes = [80, 8], strides = [1, 1]} : vector<80x32xf32> to vector<80x8xf32>
    %409 = arith.truncf %408 : vector<80x8xf32> to vector<80x8xbf16>
    %410 = vector.extract_strided_slice %398 {offsets = [0, 0], sizes = [64, 8], strides = [1, 1]} : vector<64x32xf32> to vector<64x8xf32>
    %411 = arith.truncf %410 : vector<64x8xf32> to vector<64x8xbf16>
    %cst_144 = arith.constant dense<0.000000e+00> : vector<80x64xf32>
    %412 = tpu.matmul %409, %411, %cst_144 {dimension_numbers = #tpu.dot_dimension_numbers<[1], [1], [0], [0], [0, 0, 1, 0], [], []>} : vector<80x8xbf16>, vector<64x8xbf16>, vector<80x64xf32> -> vector<80x64xf32>
    %413 = arith.addf %412, %407 : vector<80x64xf32>
    %cst_145 = arith.constant dense<0xFF800000> : vector<80xf32>
    %414 = vector.multi_reduction <maximumf>, %413, %cst_145 [1] : vector<80x64xf32> to vector<80xf32>
    %415 = vector.shape_cast %414 : vector<80xf32> to vector<80x1xf32>
    %416 = vector.broadcast %415 : vector<80x1xf32> to vector<80x64xf32>
    %417 = arith.subf %413, %416 : vector<80x64xf32>
    %418 = math.exp %417 : vector<80x64xf32>
    %cst_146 = arith.constant dense<0.000000e+00> : vector<80xf32>
    %419 = vector.multi_reduction <add>, %418, %cst_146 [1] : vector<80x64xf32> to vector<80xf32>
    %420 = vector.shape_cast %419 : vector<80xf32> to vector<80x1xf32>
    %421 = tpu.reciprocal %420 {approx = true} : vector<80x1xf32> -> vector<80x1xf32>
    %422 = arith.truncf %418 : vector<80x64xf32> to vector<80x64xbf16>
    %423 = vector.extract_strided_slice %399 {offsets = [0, 0], sizes = [64, 8], strides = [1, 1]} : vector<64x32xf32> to vector<64x8xf32>
    %424 = arith.truncf %423 : vector<64x8xf32> to vector<64x8xbf16>
    %cst_147 = arith.constant dense<0.000000e+00> : vector<80x8xf32>
    %425 = tpu.matmul %422, %424, %cst_147 {dimension_numbers = #tpu.dot_dimension_numbers<[1], [0], [0], [1], [0, 0, 1, 1], [], []>} : vector<80x64xbf16>, vector<64x8xbf16>, vector<80x8xf32> -> vector<80x8xf32>
    %426 = vector.extract_strided_slice %391 {offsets = [0, 0], sizes = [80, 8], strides = [1, 1]} : vector<80x32xf32> to vector<80x8xf32>
    %427 = vector.broadcast %421 : vector<80x1xf32> to vector<80x8xf32>
    %428 = arith.mulf %425, %427 : vector<80x8xf32>
    %429 = arith.addf %426, %428 : vector<80x8xf32>
    %c0_148 = arith.constant 0 : index
    %c0_149 = arith.constant 0 : index
    %430 = vector.load %arg12[%c0_148, %c0_149] : memref<80x32xf32, #tpu.memory_space<vmem>>, vector<80x8xf32>
    tpu.vector_store %arg12[%c0_148, %c0_149], %429 {strides = array<i32>} : memref<80x32xf32, #tpu.memory_space<vmem>>, vector<80x8xf32>,
    %431 = vector.extract_strided_slice %401 {offsets = [0, 8], sizes = [80, 8], strides = [1, 1]} : vector<80x32xf32> to vector<80x8xf32>
    %432 = arith.truncf %431 : vector<80x8xf32> to vector<80x8xbf16>
    %433 = vector.extract_strided_slice %398 {offsets = [0, 8], sizes = [64, 8], strides = [1, 1]} : vector<64x32xf32> to vector<64x8xf32>
    %434 = arith.truncf %433 : vector<64x8xf32> to vector<64x8xbf16>
    %cst_150 = arith.constant dense<0.000000e+00> : vector<80x64xf32>
    %435 = tpu.matmul %432, %434, %cst_150 {dimension_numbers = #tpu.dot_dimension_numbers<[1], [1], [0], [0], [0, 0, 1, 0], [], []>} : vector<80x8xbf16>, vector<64x8xbf16>, vector<80x64xf32> -> vector<80x64xf32>
    %436 = arith.addf %435, %407 : vector<80x64xf32>
    %cst_151 = arith.constant dense<0xFF800000> : vector<80xf32>
    %437 = vector.multi_reduction <maximumf>, %436, %cst_151 [1] : vector<80x64xf32> to vector<80xf32>
    %438 = vector.shape_cast %437 : vector<80xf32> to vector<80x1xf32>
    %439 = vector.broadcast %438 : vector<80x1xf32> to vector<80x64xf32>
    %440 = arith.subf %436, %439 : vector<80x64xf32>
    %441 = math.exp %440 : vector<80x64xf32>
    %cst_152 = arith.constant dense<0.000000e+00> : vector<80xf32>
    %442 = vector.multi_reduction <add>, %441, %cst_152 [1] : vector<80x64xf32> to vector<80xf32>
    %443 = vector.shape_cast %442 : vector<80xf32> to vector<80x1xf32>
    %444 = tpu.reciprocal %443 {approx = true} : vector<80x1xf32> -> vector<80x1xf32>
    %445 = arith.truncf %441 : vector<80x64xf32> to vector<80x64xbf16>
    %446 = vector.extract_strided_slice %399 {offsets = [0, 8], sizes = [64, 8], strides = [1, 1]} : vector<64x32xf32> to vector<64x8xf32>
    %447 = arith.truncf %446 : vector<64x8xf32> to vector<64x8xbf16>
    %cst_153 = arith.constant dense<0.000000e+00> : vector<80x8xf32>
    %448 = tpu.matmul %445, %447, %cst_153 {dimension_numbers = #tpu.dot_dimension_numbers<[1], [0], [0], [1], [0, 0, 1, 1], [], []>} : vector<80x64xbf16>, vector<64x8xbf16>, vector<80x8xf32> -> vector<80x8xf32>
    %449 = vector.extract_strided_slice %391 {offsets = [0, 8], sizes = [80, 8], strides = [1, 1]} : vector<80x32xf32> to vector<80x8xf32>
    %450 = vector.broadcast %444 : vector<80x1xf32> to vector<80x8xf32>
    %451 = arith.mulf %448, %450 : vector<80x8xf32>
    %452 = arith.addf %449, %451 : vector<80x8xf32>
    %c0_154 = arith.constant 0 : index
    %c8_155 = arith.constant 8 : index
    %453 = vector.load %arg12[%c0_154, %c8_155] : memref<80x32xf32, #tpu.memory_space<vmem>>, vector<80x8xf32>
    tpu.vector_store %arg12[%c0_154, %c8_155], %452 {strides = array<i32>} : memref<80x32xf32, #tpu.memory_space<vmem>>, vector<80x8xf32>,
    %454 = vector.extract_strided_slice %401 {offsets = [0, 16], sizes = [80, 8], strides = [1, 1]} : vector<80x32xf32> to vector<80x8xf32>
    %455 = arith.truncf %454 : vector<80x8xf32> to vector<80x8xbf16>
    %456 = vector.extract_strided_slice %398 {offsets = [0, 16], sizes = [64, 8], strides = [1, 1]} : vector<64x32xf32> to vector<64x8xf32>
    %457 = arith.truncf %456 : vector<64x8xf32> to vector<64x8xbf16>
    %cst_156 = arith.constant dense<0.000000e+00> : vector<80x64xf32>
    %458 = tpu.matmul %455, %457, %cst_156 {dimension_numbers = #tpu.dot_dimension_numbers<[1], [1], [0], [0], [0, 0, 1, 0], [], []>} : vector<80x8xbf16>, vector<64x8xbf16>, vector<80x64xf32> -> vector<80x64xf32>
    %459 = arith.addf %458, %407 : vector<80x64xf32>
    %cst_157 = arith.constant dense<0xFF800000> : vector<80xf32>
    %460 = vector.multi_reduction <maximumf>, %459, %cst_157 [1] : vector<80x64xf32> to vector<80xf32>
    %461 = vector.shape_cast %460 : vector<80xf32> to vector<80x1xf32>
    %462 = vector.broadcast %461 : vector<80x1xf32> to vector<80x64xf32>
    %463 = arith.subf %459, %462 : vector<80x64xf32>
    %464 = math.exp %463 : vector<80x64xf32>
    %cst_158 = arith.constant dense<0.000000e+00> : vector<80xf32>
    %465 = vector.multi_reduction <add>, %464, %cst_158 [1] : vector<80x64xf32> to vector<80xf32>
    %466 = vector.shape_cast %465 : vector<80xf32> to vector<80x1xf32>
    %467 = tpu.reciprocal %466 {approx = true} : vector<80x1xf32> -> vector<80x1xf32>
    %468 = arith.truncf %464 : vector<80x64xf32> to vector<80x64xbf16>
    %469 = vector.extract_strided_slice %399 {offsets = [0, 16], sizes = [64, 8], strides = [1, 1]} : vector<64x32xf32> to vector<64x8xf32>
    %470 = arith.truncf %469 : vector<64x8xf32> to vector<64x8xbf16>
    %cst_159 = arith.constant dense<0.000000e+00> : vector<80x8xf32>
    %471 = tpu.matmul %468, %470, %cst_159 {dimension_numbers = #tpu.dot_dimension_numbers<[1], [0], [0], [1], [0, 0, 1, 1], [], []>} : vector<80x64xbf16>, vector<64x8xbf16>, vector<80x8xf32> -> vector<80x8xf32>
    %472 = vector.extract_strided_slice %391 {offsets = [0, 16], sizes = [80, 8], strides = [1, 1]} : vector<80x32xf32> to vector<80x8xf32>
    %473 = vector.broadcast %467 : vector<80x1xf32> to vector<80x8xf32>
    %474 = arith.mulf %471, %473 : vector<80x8xf32>
    %475 = arith.addf %472, %474 : vector<80x8xf32>
    %c0_160 = arith.constant 0 : index
    %c16_161 = arith.constant 16 : index
    %476 = vector.load %arg12[%c0_160, %c16_161] : memref<80x32xf32, #tpu.memory_space<vmem>>, vector<80x8xf32>
    tpu.vector_store %arg12[%c0_160, %c16_161], %475 {strides = array<i32>} : memref<80x32xf32, #tpu.memory_space<vmem>>, vector<80x8xf32>,
    %477 = vector.extract_strided_slice %401 {offsets = [0, 24], sizes = [80, 8], strides = [1, 1]} : vector<80x32xf32> to vector<80x8xf32>
    %478 = arith.truncf %477 : vector<80x8xf32> to vector<80x8xbf16>
    %479 = vector.extract_strided_slice %398 {offsets = [0, 24], sizes = [64, 8], strides = [1, 1]} : vector<64x32xf32> to vector<64x8xf32>
    %480 = arith.truncf %479 : vector<64x8xf32> to vector<64x8xbf16>
    %cst_162 = arith.constant dense<0.000000e+00> : vector<80x64xf32>
    %481 = tpu.matmul %478, %480, %cst_162 {dimension_numbers = #tpu.dot_dimension_numbers<[1], [1], [0], [0], [0, 0, 1, 0], [], []>} : vector<80x8xbf16>, vector<64x8xbf16>, vector<80x64xf32> -> vector<80x64xf32>
    %482 = arith.addf %481, %407 : vector<80x64xf32>
    %cst_163 = arith.constant dense<0xFF800000> : vector<80xf32>
    %483 = vector.multi_reduction <maximumf>, %482, %cst_163 [1] : vector<80x64xf32> to vector<80xf32>
    %484 = vector.shape_cast %483 : vector<80xf32> to vector<80x1xf32>
    %485 = vector.broadcast %484 : vector<80x1xf32> to vector<80x64xf32>
    %486 = arith.subf %482, %485 : vector<80x64xf32>
    %487 = math.exp %486 : vector<80x64xf32>
    %cst_164 = arith.constant dense<0.000000e+00> : vector<80xf32>
    %488 = vector.multi_reduction <add>, %487, %cst_164 [1] : vector<80x64xf32> to vector<80xf32>
    %489 = vector.shape_cast %488 : vector<80xf32> to vector<80x1xf32>
    %490 = tpu.reciprocal %489 {approx = true} : vector<80x1xf32> -> vector<80x1xf32>
    %491 = arith.truncf %487 : vector<80x64xf32> to vector<80x64xbf16>
    %492 = vector.extract_strided_slice %399 {offsets = [0, 24], sizes = [64, 8], strides = [1, 1]} : vector<64x32xf32> to vector<64x8xf32>
    %493 = arith.truncf %492 : vector<64x8xf32> to vector<64x8xbf16>
    %cst_165 = arith.constant dense<0.000000e+00> : vector<80x8xf32>
    %494 = tpu.matmul %491, %493, %cst_165 {dimension_numbers = #tpu.dot_dimension_numbers<[1], [0], [0], [1], [0, 0, 1, 1], [], []>} : vector<80x64xbf16>, vector<64x8xbf16>, vector<80x8xf32> -> vector<80x8xf32>
    %495 = vector.extract_strided_slice %391 {offsets = [0, 24], sizes = [80, 8], strides = [1, 1]} : vector<80x32xf32> to vector<80x8xf32>
    %496 = vector.broadcast %490 : vector<80x1xf32> to vector<80x8xf32>
    %497 = arith.mulf %494, %496 : vector<80x8xf32>
    %498 = arith.addf %495, %497 : vector<80x8xf32>
    %c0_166 = arith.constant 0 : index
    %c24_167 = arith.constant 24 : index
    %499 = vector.load %arg12[%c0_166, %c24_167] : memref<80x32xf32, #tpu.memory_space<vmem>>, vector<80x8xf32>
    tpu.vector_store %arg12[%c0_166, %c24_167], %498 {strides = array<i32>} : memref<80x32xf32, #tpu.memory_space<vmem>>, vector<80x8xf32>,
    %c0_168 = arith.constant 0 : index
    %c0_169 = arith.constant 0 : index
    %500 = vector.load %arg12[%c0_168, %c0_169] : memref<80x32xf32, #tpu.memory_space<vmem>>, vector<80x32xf32>
    %501 = arith.truncf %500 : vector<80x32xf32> to vector<80x32xbf16>
    %c464 = arith.constant 464 : index
    %c0_170 = arith.constant 0 : index
    %502 = vector.load %arg9[%c464, %c0_170] : memref<624x128xbf16, #tpu.memory_space<vmem>>, vector<32x32xbf16>
    %cst_171 = arith.constant dense<0.000000e+00> : vector<80x32xf32>
    %503 = tpu.matmul %501, %502, %cst_171 {dimension_numbers = #tpu.dot_dimension_numbers<[1], [0], [0], [1], [0, 0, 1, 1], [], []>} : vector<80x32xbf16>, vector<32x32xbf16>, vector<80x32xf32> -> vector<80x32xf32>
    %c12 = arith.constant 12 : index
    %c0_172 = arith.constant 0 : index
    %504 = vector.load %arg10[%c12, %c0_172] : memref<24x128xf32, #tpu.memory_space<vmem>>, vector<1x32xf32>
    %505 = vector.broadcast %504 : vector<1x32xf32> to vector<80x32xf32>
    %506 = arith.addf %503, %505 : vector<80x32xf32>
    %cst_173 = arith.constant 0.000000e+00 : f32
    %507 = vector.broadcast %cst_173 : f32 to vector<80x32xf32>
    %508 = arith.maximumf %506, %507 : vector<80x32xf32>
    %509 = arith.addf %500, %508 : vector<80x32xf32>
    %c0_174 = arith.constant 0 : index
    %c0_175 = arith.constant 0 : index
    %510 = vector.load %arg3[%c0_174, %c0_175] : memref<16x24xbf16, #tpu.memory_space<vmem>>, vector<16x24xbf16>
    %c496 = arith.constant 496 : index
    %c0_176 = arith.constant 0 : index
    %511 = vector.load %arg9[%c496, %c0_176] : memref<624x128xbf16, #tpu.memory_space<vmem>>, vector<24x32xbf16>
    %cst_177 = arith.constant dense<0.000000e+00> : vector<16x32xf32>
    %512 = tpu.matmul %510, %511, %cst_177 {dimension_numbers = #tpu.dot_dimension_numbers<[1], [0], [0], [1], [0, 0, 1, 1], [], []>} : vector<16x24xbf16>, vector<24x32xbf16>, vector<16x32xf32> -> vector<16x32xf32>
    %c13 = arith.constant 13 : index
    %c0_178 = arith.constant 0 : index
    %513 = vector.load %arg10[%c13, %c0_178] : memref<24x128xf32, #tpu.memory_space<vmem>>, vector<1x32xf32>
    %514 = vector.broadcast %513 : vector<1x32xf32> to vector<16x32xf32>
    %515 = arith.addf %512, %514 : vector<16x32xf32>
    %516 = arith.truncf %509 : vector<80x32xf32> to vector<80x32xbf16>
    %c528 = arith.constant 528 : index
    %c0_179 = arith.constant 0 : index
    %517 = vector.load %arg9[%c528, %c0_179] : memref<624x128xbf16, #tpu.memory_space<vmem>>, vector<32x64xbf16>
    %cst_180 = arith.constant dense<0.000000e+00> : vector<80x64xf32>
    %518 = tpu.matmul %516, %517, %cst_180 {dimension_numbers = #tpu.dot_dimension_numbers<[1], [0], [0], [1], [0, 0, 1, 1], [], []>} : vector<80x32xbf16>, vector<32x64xbf16>, vector<80x64xf32> -> vector<80x64xf32>
    %c14 = arith.constant 14 : index
    %c0_181 = arith.constant 0 : index
    %519 = vector.load %arg10[%c14, %c0_181] : memref<24x128xf32, #tpu.memory_space<vmem>>, vector<1x64xf32>
    %520 = vector.broadcast %519 : vector<1x64xf32> to vector<80x64xf32>
    %521 = arith.addf %518, %520 : vector<80x64xf32>
    %522 = vector.extract_strided_slice %521 {offsets = [0, 0], sizes = [80, 32], strides = [1, 1]} : vector<80x64xf32> to vector<80x32xf32>
    %523 = vector.extract_strided_slice %521 {offsets = [0, 32], sizes = [80, 32], strides = [1, 1]} : vector<80x64xf32> to vector<80x32xf32>
    %cst_182 = arith.constant 0.176776692 : f32
    %524 = vector.broadcast %cst_182 : f32 to vector<16x32xf32>
    %525 = arith.mulf %515, %524 : vector<16x32xf32>
    %526 = vector.broadcast %13 : vector<16x1xf32> to vector<16x80xf32>
    %527 = vector.broadcast %10 : vector<1x80xf32> to vector<16x80xf32>
    %528 = arith.cmpf oeq, %526, %527 : vector<16x80xf32>
    %cst_183 = arith.constant 0.000000e+00 : f32
    %cst_184 = arith.constant -1.000000e+30 : f32
    %529 = vector.broadcast %cst_183 : f32 to vector<16x80xf32>
    %530 = vector.broadcast %cst_184 : f32 to vector<16x80xf32>
    %531 = arith.select %528, %529, %530 : vector<16x80xi1>, vector<16x80xf32>
    %532 = vector.extract_strided_slice %525 {offsets = [0, 0], sizes = [16, 8], strides = [1, 1]} : vector<16x32xf32> to vector<16x8xf32>
    %533 = arith.truncf %532 : vector<16x8xf32> to vector<16x8xbf16>
    %534 = vector.extract_strided_slice %522 {offsets = [0, 0], sizes = [80, 8], strides = [1, 1]} : vector<80x32xf32> to vector<80x8xf32>
    %535 = arith.truncf %534 : vector<80x8xf32> to vector<80x8xbf16>
    %cst_185 = arith.constant dense<0.000000e+00> : vector<16x80xf32>
    %536 = tpu.matmul %533, %535, %cst_185 {dimension_numbers = #tpu.dot_dimension_numbers<[1], [1], [0], [0], [0, 0, 1, 0], [], []>} : vector<16x8xbf16>, vector<80x8xbf16>, vector<16x80xf32> -> vector<16x80xf32>
    %537 = arith.addf %536, %531 : vector<16x80xf32>
    %cst_186 = arith.constant dense<0xFF800000> : vector<16xf32>
    %538 = vector.multi_reduction <maximumf>, %537, %cst_186 [1] : vector<16x80xf32> to vector<16xf32>
    %539 = vector.shape_cast %538 : vector<16xf32> to vector<16x1xf32>
    %540 = vector.broadcast %539 : vector<16x1xf32> to vector<16x80xf32>
    %541 = arith.subf %537, %540 : vector<16x80xf32>
    %542 = math.exp %541 : vector<16x80xf32>
    %cst_187 = arith.constant dense<0.000000e+00> : vector<16xf32>
    %543 = vector.multi_reduction <add>, %542, %cst_187 [1] : vector<16x80xf32> to vector<16xf32>
    %544 = vector.shape_cast %543 : vector<16xf32> to vector<16x1xf32>
    %545 = tpu.reciprocal %544 {approx = true} : vector<16x1xf32> -> vector<16x1xf32>
    %546 = arith.truncf %542 : vector<16x80xf32> to vector<16x80xbf16>
    %547 = vector.extract_strided_slice %523 {offsets = [0, 0], sizes = [80, 8], strides = [1, 1]} : vector<80x32xf32> to vector<80x8xf32>
    %548 = arith.truncf %547 : vector<80x8xf32> to vector<80x8xbf16>
    %cst_188 = arith.constant dense<0.000000e+00> : vector<16x8xf32>
    %549 = tpu.matmul %546, %548, %cst_188 {dimension_numbers = #tpu.dot_dimension_numbers<[1], [0], [0], [1], [0, 0, 1, 1], [], []>} : vector<16x80xbf16>, vector<80x8xbf16>, vector<16x8xf32> -> vector<16x8xf32>
    %550 = vector.extract_strided_slice %515 {offsets = [0, 0], sizes = [16, 8], strides = [1, 1]} : vector<16x32xf32> to vector<16x8xf32>
    %551 = vector.broadcast %545 : vector<16x1xf32> to vector<16x8xf32>
    %552 = arith.mulf %549, %551 : vector<16x8xf32>
    %553 = arith.addf %550, %552 : vector<16x8xf32>
    %c0_189 = arith.constant 0 : index
    %c0_190 = arith.constant 0 : index
    %554 = vector.load %arg12[%c0_189, %c0_190] : memref<80x32xf32, #tpu.memory_space<vmem>>, vector<16x8xf32>
    tpu.vector_store %arg12[%c0_189, %c0_190], %553 {strides = array<i32>} : memref<80x32xf32, #tpu.memory_space<vmem>>, vector<16x8xf32>,
    %555 = vector.extract_strided_slice %525 {offsets = [0, 8], sizes = [16, 8], strides = [1, 1]} : vector<16x32xf32> to vector<16x8xf32>
    %556 = arith.truncf %555 : vector<16x8xf32> to vector<16x8xbf16>
    %557 = vector.extract_strided_slice %522 {offsets = [0, 8], sizes = [80, 8], strides = [1, 1]} : vector<80x32xf32> to vector<80x8xf32>
    %558 = arith.truncf %557 : vector<80x8xf32> to vector<80x8xbf16>
    %cst_191 = arith.constant dense<0.000000e+00> : vector<16x80xf32>
    %559 = tpu.matmul %556, %558, %cst_191 {dimension_numbers = #tpu.dot_dimension_numbers<[1], [1], [0], [0], [0, 0, 1, 0], [], []>} : vector<16x8xbf16>, vector<80x8xbf16>, vector<16x80xf32> -> vector<16x80xf32>
    %560 = arith.addf %559, %531 : vector<16x80xf32>
    %cst_192 = arith.constant dense<0xFF800000> : vector<16xf32>
    %561 = vector.multi_reduction <maximumf>, %560, %cst_192 [1] : vector<16x80xf32> to vector<16xf32>
    %562 = vector.shape_cast %561 : vector<16xf32> to vector<16x1xf32>
    %563 = vector.broadcast %562 : vector<16x1xf32> to vector<16x80xf32>
    %564 = arith.subf %560, %563 : vector<16x80xf32>
    %565 = math.exp %564 : vector<16x80xf32>
    %cst_193 = arith.constant dense<0.000000e+00> : vector<16xf32>
    %566 = vector.multi_reduction <add>, %565, %cst_193 [1] : vector<16x80xf32> to vector<16xf32>
    %567 = vector.shape_cast %566 : vector<16xf32> to vector<16x1xf32>
    %568 = tpu.reciprocal %567 {approx = true} : vector<16x1xf32> -> vector<16x1xf32>
    %569 = arith.truncf %565 : vector<16x80xf32> to vector<16x80xbf16>
    %570 = vector.extract_strided_slice %523 {offsets = [0, 8], sizes = [80, 8], strides = [1, 1]} : vector<80x32xf32> to vector<80x8xf32>
    %571 = arith.truncf %570 : vector<80x8xf32> to vector<80x8xbf16>
    %cst_194 = arith.constant dense<0.000000e+00> : vector<16x8xf32>
    %572 = tpu.matmul %569, %571, %cst_194 {dimension_numbers = #tpu.dot_dimension_numbers<[1], [0], [0], [1], [0, 0, 1, 1], [], []>} : vector<16x80xbf16>, vector<80x8xbf16>, vector<16x8xf32> -> vector<16x8xf32>
    %573 = vector.extract_strided_slice %515 {offsets = [0, 8], sizes = [16, 8], strides = [1, 1]} : vector<16x32xf32> to vector<16x8xf32>
    %574 = vector.broadcast %568 : vector<16x1xf32> to vector<16x8xf32>
    %575 = arith.mulf %572, %574 : vector<16x8xf32>
    %576 = arith.addf %573, %575 : vector<16x8xf32>
    %c0_195 = arith.constant 0 : index
    %c8_196 = arith.constant 8 : index
    %577 = vector.load %arg12[%c0_195, %c8_196] : memref<80x32xf32, #tpu.memory_space<vmem>>, vector<16x8xf32>
    tpu.vector_store %arg12[%c0_195, %c8_196], %576 {strides = array<i32>} : memref<80x32xf32, #tpu.memory_space<vmem>>, vector<16x8xf32>,
    %578 = vector.extract_strided_slice %525 {offsets = [0, 16], sizes = [16, 8], strides = [1, 1]} : vector<16x32xf32> to vector<16x8xf32>
    %579 = arith.truncf %578 : vector<16x8xf32> to vector<16x8xbf16>
    %580 = vector.extract_strided_slice %522 {offsets = [0, 16], sizes = [80, 8], strides = [1, 1]} : vector<80x32xf32> to vector<80x8xf32>
    %581 = arith.truncf %580 : vector<80x8xf32> to vector<80x8xbf16>
    %cst_197 = arith.constant dense<0.000000e+00> : vector<16x80xf32>
    %582 = tpu.matmul %579, %581, %cst_197 {dimension_numbers = #tpu.dot_dimension_numbers<[1], [1], [0], [0], [0, 0, 1, 0], [], []>} : vector<16x8xbf16>, vector<80x8xbf16>, vector<16x80xf32> -> vector<16x80xf32>
    %583 = arith.addf %582, %531 : vector<16x80xf32>
    %cst_198 = arith.constant dense<0xFF800000> : vector<16xf32>
    %584 = vector.multi_reduction <maximumf>, %583, %cst_198 [1] : vector<16x80xf32> to vector<16xf32>
    %585 = vector.shape_cast %584 : vector<16xf32> to vector<16x1xf32>
    %586 = vector.broadcast %585 : vector<16x1xf32> to vector<16x80xf32>
    %587 = arith.subf %583, %586 : vector<16x80xf32>
    %588 = math.exp %587 : vector<16x80xf32>
    %cst_199 = arith.constant dense<0.000000e+00> : vector<16xf32>
    %589 = vector.multi_reduction <add>, %588, %cst_199 [1] : vector<16x80xf32> to vector<16xf32>
    %590 = vector.shape_cast %589 : vector<16xf32> to vector<16x1xf32>
    %591 = tpu.reciprocal %590 {approx = true} : vector<16x1xf32> -> vector<16x1xf32>
    %592 = arith.truncf %588 : vector<16x80xf32> to vector<16x80xbf16>
    %593 = vector.extract_strided_slice %523 {offsets = [0, 16], sizes = [80, 8], strides = [1, 1]} : vector<80x32xf32> to vector<80x8xf32>
    %594 = arith.truncf %593 : vector<80x8xf32> to vector<80x8xbf16>
    %cst_200 = arith.constant dense<0.000000e+00> : vector<16x8xf32>
    %595 = tpu.matmul %592, %594, %cst_200 {dimension_numbers = #tpu.dot_dimension_numbers<[1], [0], [0], [1], [0, 0, 1, 1], [], []>} : vector<16x80xbf16>, vector<80x8xbf16>, vector<16x8xf32> -> vector<16x8xf32>
    %596 = vector.extract_strided_slice %515 {offsets = [0, 16], sizes = [16, 8], strides = [1, 1]} : vector<16x32xf32> to vector<16x8xf32>
    %597 = vector.broadcast %591 : vector<16x1xf32> to vector<16x8xf32>
    %598 = arith.mulf %595, %597 : vector<16x8xf32>
    %599 = arith.addf %596, %598 : vector<16x8xf32>
    %c0_201 = arith.constant 0 : index
    %c16_202 = arith.constant 16 : index
    %600 = vector.load %arg12[%c0_201, %c16_202] : memref<80x32xf32, #tpu.memory_space<vmem>>, vector<16x8xf32>
    tpu.vector_store %arg12[%c0_201, %c16_202], %599 {strides = array<i32>} : memref<80x32xf32, #tpu.memory_space<vmem>>, vector<16x8xf32>,
    %601 = vector.extract_strided_slice %525 {offsets = [0, 24], sizes = [16, 8], strides = [1, 1]} : vector<16x32xf32> to vector<16x8xf32>
    %602 = arith.truncf %601 : vector<16x8xf32> to vector<16x8xbf16>
    %603 = vector.extract_strided_slice %522 {offsets = [0, 24], sizes = [80, 8], strides = [1, 1]} : vector<80x32xf32> to vector<80x8xf32>
    %604 = arith.truncf %603 : vector<80x8xf32> to vector<80x8xbf16>
    %cst_203 = arith.constant dense<0.000000e+00> : vector<16x80xf32>
    %605 = tpu.matmul %602, %604, %cst_203 {dimension_numbers = #tpu.dot_dimension_numbers<[1], [1], [0], [0], [0, 0, 1, 0], [], []>} : vector<16x8xbf16>, vector<80x8xbf16>, vector<16x80xf32> -> vector<16x80xf32>
    %606 = arith.addf %605, %531 : vector<16x80xf32>
    %cst_204 = arith.constant dense<0xFF800000> : vector<16xf32>
    %607 = vector.multi_reduction <maximumf>, %606, %cst_204 [1] : vector<16x80xf32> to vector<16xf32>
    %608 = vector.shape_cast %607 : vector<16xf32> to vector<16x1xf32>
    %609 = vector.broadcast %608 : vector<16x1xf32> to vector<16x80xf32>
    %610 = arith.subf %606, %609 : vector<16x80xf32>
    %611 = math.exp %610 : vector<16x80xf32>
    %cst_205 = arith.constant dense<0.000000e+00> : vector<16xf32>
    %612 = vector.multi_reduction <add>, %611, %cst_205 [1] : vector<16x80xf32> to vector<16xf32>
    %613 = vector.shape_cast %612 : vector<16xf32> to vector<16x1xf32>
    %614 = tpu.reciprocal %613 {approx = true} : vector<16x1xf32> -> vector<16x1xf32>
    %615 = arith.truncf %611 : vector<16x80xf32> to vector<16x80xbf16>
    %616 = vector.extract_strided_slice %523 {offsets = [0, 24], sizes = [80, 8], strides = [1, 1]} : vector<80x32xf32> to vector<80x8xf32>
    %617 = arith.truncf %616 : vector<80x8xf32> to vector<80x8xbf16>
    %cst_206 = arith.constant dense<0.000000e+00> : vector<16x8xf32>
    %618 = tpu.matmul %615, %617, %cst_206 {dimension_numbers = #tpu.dot_dimension_numbers<[1], [0], [0], [1], [0, 0, 1, 1], [], []>} : vector<16x80xbf16>, vector<80x8xbf16>, vector<16x8xf32> -> vector<16x8xf32>
    %619 = vector.extract_strided_slice %515 {offsets = [0, 24], sizes = [16, 8], strides = [1, 1]} : vector<16x32xf32> to vector<16x8xf32>
    %620 = vector.broadcast %614 : vector<16x1xf32> to vector<16x8xf32>
    %621 = arith.mulf %618, %620 : vector<16x8xf32>
    %622 = arith.addf %619, %621 : vector<16x8xf32>
    %c0_207 = arith.constant 0 : index
    %c24_208 = arith.constant 24 : index
    %623 = vector.load %arg12[%c0_207, %c24_208] : memref<80x32xf32, #tpu.memory_space<vmem>>, vector<16x8xf32>
    tpu.vector_store %arg12[%c0_207, %c24_208], %622 {strides = array<i32>} : memref<80x32xf32, #tpu.memory_space<vmem>>, vector<16x8xf32>,
    %c0_209 = arith.constant 0 : index
    %c0_210 = arith.constant 0 : index
    %624 = vector.load %arg12[%c0_209, %c0_210] : memref<80x32xf32, #tpu.memory_space<vmem>>, vector<16x32xf32>
    %625 = arith.truncf %624 : vector<16x32xf32> to vector<16x32xbf16>
    %c560 = arith.constant 560 : index
    %c0_211 = arith.constant 0 : index
    %626 = vector.load %arg9[%c560, %c0_211] : memref<624x128xbf16, #tpu.memory_space<vmem>>, vector<32x32xbf16>
    %cst_212 = arith.constant dense<0.000000e+00> : vector<16x32xf32>
    %627 = tpu.matmul %625, %626, %cst_212 {dimension_numbers = #tpu.dot_dimension_numbers<[1], [0], [0], [1], [0, 0, 1, 1], [], []>} : vector<16x32xbf16>, vector<32x32xbf16>, vector<16x32xf32> -> vector<16x32xf32>
    %c15 = arith.constant 15 : index
    %c0_213 = arith.constant 0 : index
    %628 = vector.load %arg10[%c15, %c0_213] : memref<24x128xf32, #tpu.memory_space<vmem>>, vector<1x32xf32>
    %629 = vector.broadcast %628 : vector<1x32xf32> to vector<16x32xf32>
    %630 = arith.addf %627, %629 : vector<16x32xf32>
    %cst_214 = arith.constant 0.000000e+00 : f32
    %631 = vector.broadcast %cst_214 : f32 to vector<16x32xf32>
    %632 = arith.maximumf %630, %631 : vector<16x32xf32>
    %633 = arith.addf %624, %632 : vector<16x32xf32>
    %634 = arith.truncf %633 : vector<16x32xf32> to vector<16x32xbf16>
    %c592 = arith.constant 592 : index
    %c0_215 = arith.constant 0 : index
    %635 = vector.load %arg9[%c592, %c0_215] : memref<624x128xbf16, #tpu.memory_space<vmem>>, vector<32x128xbf16>
    %cst_216 = arith.constant dense<0.000000e+00> : vector<16x128xf32>
    %636 = tpu.matmul %634, %635, %cst_216 {dimension_numbers = #tpu.dot_dimension_numbers<[1], [0], [0], [1], [0, 0, 1, 1], [], []>} : vector<16x32xbf16>, vector<32x128xbf16>, vector<16x128xf32> -> vector<16x128xf32>
    %c16_217 = arith.constant 16 : index
    %c0_218 = arith.constant 0 : index
    %637 = vector.load %arg10[%c16_217, %c0_218] : memref<24x128xf32, #tpu.memory_space<vmem>>, vector<1x128xf32>
    %638 = vector.broadcast %637 : vector<1x128xf32> to vector<16x128xf32>
    %639 = arith.addf %636, %638 : vector<16x128xf32>
    %c0_219 = arith.constant 0 : index
    %c0_220 = arith.constant 0 : index
    %640 = vector.load %arg11[%c0_219, %c0_220] : memref<16x128xf32, #tpu.memory_space<vmem>>, vector<16x128xf32>
    tpu.vector_store %arg11[%c0_219, %c0_220], %639 {strides = array<i32>} : memref<16x128xf32, #tpu.memory_space<vmem>>, vector<16x128xf32>,
    return
  }
  func.func @transform_0(%arg0: i32) -> (i32, i32) {
    %c0_i32 = arith.constant 0 : i32
    %c0_i32_0 = arith.constant 0 : i32
    return %arg0, %c0_i32 : i32, i32
  }
  func.func @transform_1(%arg0: i32) -> (i32, i32) {
    %c0_i32 = arith.constant 0 : i32
    %c0_i32_0 = arith.constant 0 : i32
    return %arg0, %c0_i32 : i32, i32
  }
  func.func @transform_2(%arg0: i32) -> (i32, i32) {
    %c0_i32 = arith.constant 0 : i32
    %c0_i32_0 = arith.constant 0 : i32
    return %arg0, %c0_i32 : i32, i32
  }
  func.func @transform_3(%arg0: i32) -> (i32, i32) {
    %c0_i32 = arith.constant 0 : i32
    %c0_i32_0 = arith.constant 0 : i32
    %c0_i32_1 = arith.constant 0 : i32
    return %c0_i32, %c0_i32_0 : i32, i32
  }
  func.func @transform_4(%arg0: i32) -> (i32, i32) {
    %c0_i32 = arith.constant 0 : i32
    %c0_i32_0 = arith.constant 0 : i32
    %c0_i32_1 = arith.constant 0 : i32
    return %c0_i32, %c0_i32_0 : i32, i32
  }
  func.func @transform_5(%arg0: i32) -> (i32, i32) {
    %c0_i32 = arith.constant 0 : i32
    %c0_i32_0 = arith.constant 0 : i32
    %c0_i32_1 = arith.constant 0 : i32
    return %c0_i32, %c0_i32_0 : i32, i32
  }
  func.func @transform_6(%arg0: i32) -> (i32, i32) {
    %c0_i32 = arith.constant 0 : i32
    %c0_i32_0 = arith.constant 0 : i32
    %c0_i32_1 = arith.constant 0 : i32
    return %c0_i32, %c0_i32_0 : i32, i32
  }
  func.func @transform_7(%arg0: i32) -> (i32, i32) {
    %c0_i32 = arith.constant 0 : i32
    %c0_i32_0 = arith.constant 0 : i32
    %c0_i32_1 = arith.constant 0 : i32
    return %c0_i32, %c0_i32_0 : i32, i32
  }
  func.func @transform_8(%arg0: i32) -> (i32, i32) {
    %c0_i32 = arith.constant 0 : i32
    %c0_i32_0 = arith.constant 0 : i32
    %c0_i32_1 = arith.constant 0 : i32
    return %c0_i32, %c0_i32_0 : i32, i32
  }
  func.func @transform_9(%arg0: i32) -> (i32, i32) {
    %c0_i32 = arith.constant 0 : i32
    %c0_i32_0 = arith.constant 0 : i32
    %c0_i32_1 = arith.constant 0 : i32
    return %c0_i32, %c0_i32_0 : i32, i32
  }
  func.func @transform_10(%arg0: i32) -> (i32, i32) {
    %c0_i32 = arith.constant 0 : i32
    %c0_i32_0 = arith.constant 0 : i32
    return %arg0, %c0_i32 : i32, i32
  }
}

</mosaic_0001>

<bundles_post_ra>
// kernel: tpu_custom_call.1
= control target key start
LH: loop header
LB: loop body
LE: loop exit
PB: predicated region body
PF: predicated region fallthrough
CT: control target
= control target key end

     0   :  { %15 = vsyncpa [#allocation4], 0  ;;  %s15586_s0 = inlined_call_operand.vmem [shape: bf16[80,16], index: 0, kind: input, shape index: {}]   ;;  %s15587_s1 = inlined_call_operand.vmem [shape: bf16[80,4], index: 1, kind: input, shape index: {}]   ;;  %s15588_s2 = inlined_call_operand.vmem [shape: bf16[16,24], index: 2, kind: input, shape index: {}]   ;;  %s15589_s3 = inlined_call_operand.vmem [shape: f32[80,1], index: 3, kind: input, shape index: {}]   ;;  %s15590_s4 = inlined_call_operand.vmem [shape: f32[1,80], index: 4, kind: input, shape index: {}]   ;;  %s15591_s5 = inlined_call_operand.vmem [shape: f32[64,1], index: 5, kind: input, shape index: {}]   ;;  %s15592_s6 = inlined_call_operand.vmem [shape: f32[1,64], index: 6, kind: input, shape index: {}]   ;;  %s15593_s7 = inlined_call_operand.vmem [shape: f32[16,1], index: 7, kind: input, shape index: {}]   ;;  %s15594_s8 = inlined_call_operand.hbm [shape: bf16[624,128], index: 8, kind: input, shape index: {}]   ;;  %s15595_s9 = inlined_call_operand.vmem [shape: f32[24,128], index: 9, kind: input, shape index: {}]   ;;  %s15596_s10 = inlined_call_operand.hbm [shape: f32[16,128], index: 10, kind: output, shape index: {}]  }
   0x1   :  { %16 = vsyncpa [#allocation5], 0  ;;  %s11191_s13 = smov [#allocation3]  }
   0x2   :  { %s38_s14 = sshll.u32 %s11191_s13, 4  ;;  %s39_s14 = int_to_ptr.vmem [resolvable:$true] %s38_s14 }
   0x3   :  { %s11155_s15 = scalar_lea.vmem %s39_s14, 4992  ;;  %p11160_p1 = scmp.lt.s32.totalorder %s39_s14, %s39_s14 }
   0x4   :  { %p11156_p0 = scmp.ne.s32.totalorder %s39_s14, %s11155_s15  ;;  %p11161_p2 = scmp.lt.s32.totalorder %s11155_s15, %s11155_s15 }
   0x6   :  { %p11162_p3 = por %p11161_p2, %p11160_p1 }
   0x8   :  { %p11163_p4 = pnand %p11162_p3, %p11156_p0 }
   0xa   :  { %11166 = shalt.err (!%p11163_p4)
}
   0xb   :  { %s11192_s16 = smov 64   ;;  %s11193_s17 = smov 4  }
   0xc   :  { %44 = dma.hbm_to_vmem [thread:$0]  %s15594_s8, 4992, %s39_s14, [#allocation4], %s11192_s16, %s11192_s16, %s11193_s17  }
   0xd   :  { %11187 = dma.done.wait [#allocation4], 4992  }
   0xe   :  { %11188 = vsyncadd [#allocation4], 4294962304  ;;  %v15599_v0 = vmov 0.0   ;;  %vm11195_vm0 = vmmov 0   ;;  %vm128_vm1 = vcmask 1041408   ;;  %v10494_v3 = vld [vmem:[%s15587_s1] sm:$0xff]  }
   0xf   :  { %9303 = vmatprep.subr.bf16.mxu0 %v15599_v0  ;;  %9305 = vmatprep.mubr.msk.bf16.mxu0 %vm11195_vm0, %v15599_v0  ;;  %v81_v1 = vld [vmem:[#allocation3] sm:$0x3]  ;;  %vm112_vm2 = vcmask 31744   ;;  %v10499_v4 = vld [vmem:[#allocation3 + $0x30] sm:$0xff]   ;;  %v10500_v5 = vld [vmem:[#allocation3 + $0x28] sm:$0xff]   ;;  %vm286_vm3 = vcmask 261120  }
  0x10   :  { %v130_v2 = vsel %vm128_vm1, %v81_v1, 0  ;;  %9325 = vmatprep.subr.bf16.mxu1 %v10499_v4  ;;  %v10501_v6 = vld [vmem:[#allocation3 + $0x8] sm:$0xff]   ;;  %v10495_v7 = vld [vmem:[%s15587_s1 + $0x8] sm:$0xff]   ;;  %v10502_v8 = vld [vmem:[#allocation3 + $0x10] sm:$0xff]   ;;  %vm382_vm4 = vcmask 130048   ;;  %vm550_vm5 = vcmask 64512  }
  0x11   :  { %9304 = vmatpush3.bf16.msra.mxu0 %v130_v2  ;;  %9326 = vmatpush3.bf16.msra.mxu1 %v10499_v4  ;;  %v10503_v9 = vld [vmem:[#allocation3 + $0x18] sm:$0xff]   ;;  %v10496_v10 = vld [vmem:[%s15587_s1 + $0x10] sm:$0xff]   ;;  %v10497_v12 = vld [vmem:[%s15587_s1 + $0x18] sm:$0xff]   ;;  %s11197_s22 = smov 120   ;;  %s11198_s23 = smov 112   ;;  %vm643_vm9 = vcmask 654336  }
  0x12   :  { %9327 = vmatprep.subr.bf16.mxu1 %v10500_v5  ;;  %9329 = vmatprep.mubr.msk.bf16.mxu1 %vm286_vm3, %v10501_v6  ;;  %v10504_v11 = vld [vmem:[#allocation3 + $0x20] sm:$0xff]   ;;  %v10498_v13 = vld [vmem:[%s15587_s1 + $0x20] sm:$0xff]   ;;  %v10505_v14 = vld [vmem:[#allocation3 + $0x38] sm:$0xff]   ;;  %s11199_s13 = smov 96   ;;  %s11200_s18 = smov 88   ;;  %vm1187_vm15 = vcmask 130112  }
  0x13   :  { %v8846_v15 = vld [vmem:[%s15586_s0] sm:$0xff]   ;;  %v8865_v27 = vld [vmem:[%s15586_s0 + $0x8] sm:$0xff]   ;;  %v8866_v45 = vld [vmem:[%s15586_s0 + $0x10] sm:$0xff]   ;;  %s11201_s21 = smov 80   ;;  %s11203_s8 = smov 104   ;;  %vm1530_vm1 = vcmask 195712  }
  0x14   :  { %9306 = vmatmul.mubr.msk.bf16.vlgmr.msra.gmra.mxu0 %vm112_vm2, %v10494_v3  ;;  %v11312_v16 = vld [vmem:[%s15595_s9] ss:$0 sm:$0xff]  ;;  %v8847_v19 = vunpack.c.l.bf16 %v8846_v15  ;;  %v8848_v21 = vunpack.c.h.bf16 %v8846_v15  ;;  %v11324_v30 = vld [vmem:[%s15595_s9 + $0x1] ss:$0 sm:$0xff]  ;;  %v8851_v32 = vunpack.c.l.bf16 %v8865_v27  ;;  %v8852_v34 = vunpack.c.h.bf16 %v8865_v27  ;;  %v8867_v63 = vld [vmem:[%s15586_s0 + $0x18] sm:$0xff]   ;;  %s11204_s24 = smov 72  }
  0x15   :  { %9309 = vmatprep.mubr.msk.bf16.mxu0 %vm11195_vm0, %v15599_v0  ;;  %9328 = vmatpush3.bf16.msra.mxu1 %v10500_v5  ;;  %v8855_v53 = vunpack.c.l.bf16 %v8866_v45  ;;  %v8856_v55 = vunpack.c.h.bf16 %v8866_v45  ;;  %v8859_v4 = vunpack.c.l.bf16 %v8867_v63  ;;  %v8860_v6 = vunpack.c.h.bf16 %v8867_v63  ;;  %s11205_s25 = smov 8   ;;  %s11206_s26 = smov 16  }
  0x16   :  { %9337 = vmatprep.subr.bf16.mxu1 %v15599_v0  ;;  %s11207_s27 = smov 24  }
  0x18   :  { %9330 = vmatmul.mubr.msk.bf16.vlgmr.msra.gmra.mxu1 %vm286_vm3, %v10502_v8 }
  0x19   :  { %9333 = vmatprep.mubr.msk.bf16.mxu1 %vm286_vm3, %v10503_v9  ;;  %9338 = vmatpush3.bf16.msra.mxu1 %v10505_v14 }
  0x1c   :  { %9310 = vmatmul.mubr.msk.bf16.gmra.mxu0 %vm112_vm2, %v10495_v7 }
  0x1d   :  { %9313 = vmatprep.mubr.msk.bf16.mxu0 %vm11195_vm0, %v15599_v0 }
  0x20   :  { %9334 = vmatmul.mubr.msk.bf16.gmra.mxu1 %vm286_vm3, %v10504_v11 }
  0x21   :  { %9339 = vmatprep.mubr.msk.bf16.mxu1 %vm11195_vm0, %v15599_v0 }
  0x24   :  { %9314 = vmatmul.mubr.msk.bf16.gmra.mxu0 %vm112_vm2, %v10496_v10 }
  0x25   :  { %9317 = vmatprep.mubr.msk.bf16.mxu0 %vm11195_vm0, %v15599_v0 }
  0x2c   :  { %9318 = vmatmul.mubr.msk.bf16.gmra.mxu0 %vm112_vm2, %v10497_v12  ;;  %v8868_v12 = vld [vmem:[%s15586_s0 + $0x20] sm:$0xff]  }
  0x2d   :  { %9321 = vmatprep.mubr.msk.bf16.mxu0 %vm11195_vm0, %v15599_v0 }
  0x34   :  { %9322 = vmatmul.mubr.msk.bf16.gmra.mxu0 %vm112_vm2, %v10498_v13  ;;  %vm1873_vm2 = vcmask 261312  }
  0xd4   :  { %v166_v17 = vpop.f32.mrf.mxu0 }
  0xd5   :  { %v167_v20 = vadd.f32 %v11312_v16, %v166_v17  ;;  %v8863_v17 = vunpack.c.l.bf16 %v8868_v12 }
  0xd6   :  { %v9307_v18 = vpop.f32.mrf.mxu0 }
  0xd7   :  { %v205_v25 = vadd.f32 %v8847_v19, %v167_v20  ;;  %v8864_v19 = vunpack.c.h.bf16 %v8868_v12 }
  0xd8   :  { %v169_v22 = vpop.f32.mrf.mxu0  ;;  %v9331_v35 = vpop.f32.mrf.mxu1 }
  0xd9   :  { %v170_v23 = vadd.f32 %v11312_v16, %v169_v22  ;;  %v11332_v37 = vadd.f32 %v9331_v35, %v11324_v30 }
  0xda   :  { %v9308_v24 = vpop.f32.mrf.mxu0  ;;  %v333_v39 = vpop.f32.mrf.mxu1 }
  0xdb   :  { %v206_v26 = vadd.f32 %v8848_v21, %v170_v23  ;;  %v11336_v41 = vadd.f32 %v11324_v30, %v333_v39 }
  0xdc   :  { %v174_v28 = vpop.f32.mrf.mxu0  ;;  %v9332_v44 = vpop.f32.mrf.mxu1 }
  0xdd   :  { %v11319_v29 = vpack.c.bf16 %v206_v26, %v205_v25  ;;  %v175_v33 = vadd.f32 %v11312_v16, %v174_v28  ;;  %v11342_v47 = vadd.f32 %v9332_v44, %v11324_v30  ;;  %v471_v52 = vmul.f32 0.17677669, %v11336_v41  ;;  %v8585_v44 = vld [vmem:[%s15595_s9 + $0x2] ss:$0 sm:$0xff] }
  0xde   :  { %v9311_v31 = vpop.f32.mrf.mxu0  ;;  %v336_v49 = vpop.f32.mrf.mxu1  ;;  %v11196_v26 = vmov 0  }
  0xdf   :  { %15697 = vst [vmem:[#allocation9_spill] sm:$0xff] %v11319_v29  ;;  %9340 = vmatmul.mubr.msk.bf16.vlgmr.msra.gmra.mxu1 %vm382_vm4, %v11319_v29  ;;  %v207_v42 = vadd.f32 %v8851_v32, %v175_v33  ;;  %15698 = vst [vmem:[#allocation10_spill] sm:$0xff] %v11342_v47  ;;  %v11347_v51 = vadd.f32 %v11324_v30, %v336_v49  ;;  %10493 = vset.pattern.permute.xlu1 %v11196_v26 }
  0xe0   :  { %v177_v36 = vpop.f32.mrf.mxu0  ;;  %9343 = vmatprep.mubr.msk.bf16.mxu1 %vm11195_vm0, %v15599_v0  ;;  %10492 = vset.pattern.permute.xlu0 %v11196_v26  ;;  %v9335_v27 = vpop.f32.mrf.mxu1 }
  0xe1   :  { %v178_v38 = vadd.f32 %v11312_v16, %v177_v36  ;;  %15700 = vst [vmem:[#allocation12_spill] sm:$0xff] %v11347_v51  ;;  %v472_v57 = vmul.f32 0.17677669, %v11347_v51 }
  0xe2   :  { %v9312_v40 = vpop.f32.mrf.mxu0  ;;  %v349_v28 = vpop.f32.mrf.mxu1 }
  0xe3   :  { %v208_v43 = vadd.f32 %v8852_v34, %v178_v38  ;;  %v11357_v60 = vpack.c.bf16 %v472_v57, %v471_v52 }
  0xe4   :  { %v182_v46 = vpop.f32.mrf.mxu0  ;;  %v9336_v31 = vpop.f32.mrf.mxu1 }
  0xe5   :  { %v11344_v48 = vpack.c.bf16 %v208_v43, %v207_v42  ;;  %v183_v54 = vadd.f32 %v11312_v16, %v182_v46  ;;  %9369 = vmatprep.mubr.msk.bf16.mxu0 %vm550_vm5, %v11357_v60 }
  0xe6   :  { %v9315_v50 = vpop.f32.mrf.mxu0  ;;  %v352_v32 = vpop.f32.mrf.mxu1 }
  0xe7   :  { %15699 = vst [vmem:[#allocation11_spill] sm:$0xff] %v11344_v48  ;;  %9344 = vmatmul.mubr.msk.bf16.gmra.mxu1 %vm382_vm4, %v11344_v48  ;;  %v209_v61 = vadd.f32 %v8855_v53, %v183_v54 }
  0xe8   :  { %v185_v56 = vpop.f32.mrf.mxu0  ;;  %9347 = vmatprep.mubr.msk.bf16.mxu1 %vm11195_vm0, %v15599_v0 }
  0xe9   :  { %v186_v58 = vadd.f32 %v11312_v16, %v185_v56 }
  0xea   :  { %v9316_v59 = vpop.f32.mrf.mxu0 }
  0xeb   :  { %v210_v62 = vadd.f32 %v8856_v55, %v186_v58 }
  0xec   :  { %v190_v1 = vpop.f32.mrf.mxu0 }
  0xed   :  { %v11364_v2 = vpack.c.bf16 %v210_v62, %v209_v61  ;;  %v191_v5 = vadd.f32 %v11312_v16, %v190_v1  ;;  %v473_v61 = vmul.f32 0.17677669, %v11332_v37  ;;  %v474_v62 = vmul.f32 0.17677669, %v11342_v47 }
  0xee   :  { %v9319_v3 = vpop.f32.mrf.mxu0 }
  0xef   :  { %15701 = vst [vmem:[#allocation13_spill] sm:$0xff] %v11364_v2  ;;  %9348 = vmatmul.mubr.msk.bf16.gmra.mxu1 %vm382_vm4, %v11364_v2  ;;  %v211_v10 = vadd.f32 %v8859_v4, %v191_v5  ;;  %v11403_v3 = vadd.f32 %v11324_v30, %v349_v28  ;;  %v11406_v4 = vadd.f32 %v11324_v30, %v352_v32  ;;  %v227_v32 = vld [vmem:[%s15591_s5 + $0x8] sm:$0xff] }
  0xf0   :  { %v193_v7 = vpop.f32.mrf.mxu0  ;;  %9351 = vmatprep.mubr.msk.bf16.mxu1 %vm11195_vm0, %v15599_v0  ;;  %v11408_v5 = vpack.c.bf16 %v474_v62, %v473_v61 }
  0xf1   :  { %v194_v8 = vadd.f32 %v11312_v16, %v193_v7  ;;  %15704 = vst [vmem:[#allocation16_spill] sm:$0xff] %v11403_v3  ;;  %15705 = vst [vmem:[#allocation17_spill] sm:$0xff] %v11406_v4  ;;  %v475_v12 = vmul.f32 0.17677669, %v11403_v3 }
  0xf2   :  { %v9320_v9 = vpop.f32.mrf.mxu0 }
  0xf3   :  { %v212_v11 = vadd.f32 %v8860_v6, %v194_v8 }
  0xf4   :  { %v198_v13 = vpop.f32.mrf.mxu0 }
  0xf5   :  { %v11375_v14 = vpack.c.bf16 %v212_v11, %v211_v10  ;;  %v199_v18 = vadd.f32 %v11312_v16, %v198_v13  ;;  %v476_v13 = vmul.f32 0.17677669, %v11406_v4 }
  0xf6   :  { %v9323_v15 = vpop.f32.mrf.mxu0 }
  0xf7   :  { %15702 = vst [vmem:[#allocation14_spill] sm:$0xff] %v11375_v14  ;;  %9352 = vmatmul.mubr.msk.bf16.gmra.mxu1 %vm382_vm4, %v11375_v14  ;;  %v213_v23 = vadd.f32 %v8863_v17, %v199_v18 }
  0xf8   :  { %v201_v20 = vpop.f32.mrf.mxu0  ;;  %9355 = vmatprep.mubr.msk.bf16.mxu1 %vm11195_vm0, %v15599_v0 }
  0xf9   :  { %v202_v21 = vadd.f32 %v11312_v16, %v201_v20  ;;  %v11426_v20 = vpack.c.bf16 %v476_v13, %v475_v12 }
  0xfa   :  { %v9324_v22 = vpop.f32.mrf.mxu0 }
  0xfb   :  { %v214_v24 = vadd.f32 %v8864_v19, %v202_v21  ;;  %v11435_v22 = vadd.f32 %v9335_v27, %v11324_v30 }
  0xfd   :  { %v11383_v25 = vpack.c.bf16 %v214_v24, %v213_v23  ;;  %15706 = vst [vmem:[#allocation18_spill] sm:$0xff] %v11435_v22  ;;  %v11438_v23 = vadd.f32 %v9336_v31, %v11324_v30  ;;  %v477_v28 = vmul.f32 0.17677669, %v11435_v22 }
  0xff   :  { %15703 = vst [vmem:[#allocation15_spill] sm:$0xff] %v11383_v25  ;;  %9356 = vmatmul.mubr.msk.bf16.gmra.mxu1 %vm382_vm4, %v11383_v25  ;;  %15707 = vst [vmem:[#allocation19_spill] sm:$0xff] %v11438_v23  ;;  %v478_v27 = vmul.f32 0.17677669, %v11438_v23 }
 0x101   :  { %v11456_v30 = vpack.c.bf16 %v478_v27, %v477_v28 }
 0x19f   :  { %v432_v33 = vpop.f32.mrf.mxu1 }
 0x1a0   :  { %v433_v21 = vadd.f32 %v8585_v44, %v432_v33  ;;  %v228_v33 = vld [vmem:[%s15591_s5 + $0x10] sm:$0xff] }
 0x1a1   :  { %v9341_v34 = vpop.f32.mrf.mxu1 }
 0x1a3   :  { %v435_v35 = vpop.f32.mrf.mxu1 }
 0x1a4   :  { %v436_v19 = vadd.f32 %v8585_v44, %v435_v35  ;;  %v230_v35 = vld [vmem:[%s15591_s5 + $0x20] sm:$0xff] }
 0x1a5   :  { %v9342_v36 = vpop.f32.mrf.mxu1 }
 0x1a6   :  { %v11440_v24 = vpack.c.bf16 %v436_v19, %v433_v21  ;;  %v232_v36 = vld [vmem:[%s15591_s5 + $0x30] sm:$0xff] }
 0x1a7   :  { %v440_v16 = vpop.f32.mrf.mxu1 }
 0x1a8   :  { %v441_v55 = vadd.f32 %v8585_v44, %v440_v16  ;;  %v564_v16 = vsel %vm550_vm5, %v11440_v24, 0 }
 0x1a9   :  { %v9345_v38 = vpop.f32.mrf.mxu1 }
 0x1aa   :  { %v226_v38 = vld [vmem:[%s15591_s5] sm:$0xff] }
 0x1ab   :  { %v443_v39 = vpop.f32.mrf.mxu1 }
 0x1ac   :  { %v444_v52 = vadd.f32 %v8585_v44, %v443_v39  ;;  %v229_v39 = vld [vmem:[%s15591_s5 + $0x18] sm:$0xff] }
 0x1ad   :  { %v9346_v40 = vpop.f32.mrf.mxu1 }
 0x1ae   :  { %v11394_v57 = vpack.c.bf16 %v444_v52, %v441_v55  ;;  %v231_v40 = vld [vmem:[%s15591_s5 + $0x28] sm:$0xff] }
 0x1af   :  { %v448_v42 = vpop.f32.mrf.mxu1 }
 0x1b0   :  { %v449_v46 = vadd.f32 %v8585_v44, %v448_v42  ;;  %v567_v34 = vsel %vm550_vm5, %v11394_v57, 0  ;;  %v233_v42 = vld [vmem:[%s15591_s5 + $0x38] sm:$0xff] }
 0x1b1   :  { %v9349_v43 = vpop.f32.mrf.mxu1 }
 0x1b3   :  { %v451_v45 = vpop.f32.mrf.mxu1 }
 0x1b4   :  { %v452_v49 = vadd.f32 %v8585_v44, %v451_v45 }
 0x1b5   :  { %v9350_v50 = vpop.f32.mrf.mxu1 }
 0x1b6   :  { %v11390_v53 = vpack.c.bf16 %v452_v49, %v449_v46 }
 0x1b7   :  { %v456_v54 = vpop.f32.mrf.mxu1 }
 0x1b8   :  { %865 = vrot.lane.b32.xlu1 %v11390_v53, %s11197_s22  ;;  %v457_v15 = vadd.f32 %v8585_v44, %v456_v54  ;;  %v570_v31 = vsel %vm550_vm5, %v11390_v53, 0 }
 0x1b9   :  { %v9353_v56 = vpop.f32.mrf.mxu1 }
 0x1bb   :  { %v459_v58 = vpop.f32.mrf.mxu1 }
 0x1bc   :  { %863 = vrot.lane.b32.xlu1 %v11394_v57, %s11197_s22  ;;  %v460_v9 = vadd.f32 %v8585_v44, %v459_v58 }
 0x1bd   :  { %v9354_v59 = vpop.f32.mrf.mxu1 }
 0x1be   :  { %v11422_v18 = vpack.c.bf16 %v460_v9, %v457_v15 }
 0x1bf   :  { %v464_v63 = vpop.f32.mrf.mxu1 }
 0x1c0   :  { %853 = vrot.lane.b32.xlu1 %v11357_v60, %s11197_s22  ;;  %v465_v7 = vadd.f32 %v8585_v44, %v464_v63  ;;  %v573_v26 = vsel %vm550_vm5, %v11422_v18, 0 }
 0x1c1   :  { %v9357_v1 = vpop.f32.mrf.mxu1 }
 0x1c3   :  { %v467_v6 = vpop.f32.mrf.mxu1 }
 0x1c4   :  { %v468_v8 = vadd.f32 %v8585_v44, %v467_v6  ;;  %855 = vrot.lane.b32.xlu1 %v11408_v5, %s11197_s22 }
 0x1c5   :  { %v9358_v10 = vpop.f32.mrf.mxu1 }
 0x1c6   :  { %v11412_v11 = vpack.c.bf16 %v468_v8, %v465_v7 }
 0x1c8   :  { %1208 = vrot.lane.b32.xlu1 %v11390_v53, %s11198_s23  ;;  %869 = vrot.lane.b32.xlu0 %v11412_v11, %s11197_s22  ;;  %v576_v17 = vsel %vm550_vm5, %v11412_v11, 0 }
 0x1c9   :  { %10433 = vmatprep.subr.msk.bf16.mxu0 %vm550_vm5, %v11412_v11 }
 0x1ca   :  { %9360 = vmatpush3.bf16.xpose.msra.mxu0 %v576_v17 }
 0x1cb   :  { %10434 = vmatprep.subr.msk.bf16.mxu0 %vm550_vm5, %v11422_v18 }
 0x1cc   :  { %857 = vrot.lane.b32.xlu1 %v11426_v20, %s11197_s22  ;;  %867 = vrot.lane.b32.xlu0 %v11422_v18, %s11197_s22 }
 0x1d0   :  { %1204 = vrot.lane.b32.xlu1 %v11440_v24, %s11198_s23  ;;  %861 = vrot.lane.b32.xlu0 %v11440_v24, %s11197_s22 }
 0x1d2   :  { %9362 = vmatpush3.bf16.xpose.msra.mxu0 %v573_v26 }
 0x1d3   :  { %10435 = vmatprep.subr.msk.bf16.mxu0 %vm550_vm5, %v11390_v53 }
 0x1d4   :  { %1198 = vrot.lane.b32.xlu1 %v11408_v5, %s11198_s23  ;;  %1212 = vrot.lane.b32.xlu0 %v11412_v11, %s11198_s23 }
 0x1d8   :  { %1202 = vrot.lane.b32.xlu1 %v11456_v30, %s11198_s23  ;;  %1210 = vrot.lane.b32.xlu0 %v11422_v18, %s11198_s23 }
 0x1da   :  { %9364 = vmatpush3.bf16.xpose.msra.mxu0 %v570_v31 }
 0x1db   :  { %10436 = vmatprep.subr.msk.bf16.mxu0 %vm550_vm5, %v11394_v57 }
 0x1dc   :  { %486 = vperm.xlu1 %10493, %v227_v32   ;;  %1206 = vrot.lane.b32.xlu0 %v11394_v57, %s11198_s23 }
 0x1e0   :  { %491 = vperm.xlu1 %10493, %v228_v33   ;;  %859 = vrot.lane.b32.xlu0 %v11456_v30, %s11197_s22 }
 0x1e2   :  { %9366 = vmatpush3.bf16.xpose.msra.mxu0 %v567_v34 }
 0x1e3   :  { %10437 = vmatprep.subr.msk.bf16.mxu0 %vm550_vm5, %v11440_v24 }
 0x1e4   :  { %501 = vperm.xlu1 %10493, %v230_v35   ;;  %1196 = vrot.lane.b32.xlu0 %v11357_v60, %s11198_s23 }
 0x1e8   :  { %511 = vperm.xlu1 %10493, %v232_v36   ;;  %1200 = vrot.lane.b32.xlu0 %v11426_v20, %s11198_s23 }
 0x1ea   :  { %9368 = vmatpush3.bf16.xpose.msra.mxu0 %v564_v16 }
 0x1ec   :  { %739 = vrot.lane.b32.xlu1 %v11422_v18, %s11199_s13  ;;  %481 = vperm.xlu0 %10492, %v226_v38  }
 0x1f0   :  { %735 = vrot.lane.b32.xlu1 %v11394_v57, %s11199_s13  ;;  %496 = vperm.xlu0 %10492, %v229_v39  }
 0x1f1   :  { %9370 = vmatmul.mubr.msk.bf16.vlgmr.msra.gmra.mxu0 %vm550_vm5, %v11408_v5 }
 0x1f2   :  { %9373 = vmatprep.mubr.msk.bf16.mxu0 %vm550_vm5, %v11426_v20 }
 0x1f4   :  { %1051 = vrot.lane.b32.xlu1 %v11390_v53, %s11200_s18  ;;  %506 = vperm.xlu0 %10492, %v231_v40  }
 0x1f8   :  { %1047 = vrot.lane.b32.xlu1 %v11440_v24, %s11200_s18  ;;  %516 = vperm.xlu0 %10492, %v233_v42  }
 0x1f9   :  { %9374 = vmatmul.mubr.msk.bf16.gmra.mxu0 %vm550_vm5, %v11456_v30 }
 0x1fc   :  { %1394 = vrot.lane.b32.xlu1 %v11390_v53, %s11201_s21  ;;  %737 = vrot.lane.b32.xlu0 %v11390_v53, %s11199_s13 }
 0x200   :  { %1055 = vrot.lane.b32.xlu1 %v11412_v11, %s11200_s18  ;;  %733 = vrot.lane.b32.xlu0 %v11440_v24, %s11199_s13 }
 0x204   :  { %1398 = vrot.lane.b32.xlu1 %v11412_v11, %s11201_s21  ;;  %1053 = vrot.lane.b32.xlu0 %v11422_v18, %s11200_s18 }
 0x208   :  { %1049 = vrot.lane.b32.xlu0 %v11394_v57, %s11200_s18 }
 0x20c   :  { %1396 = vrot.lane.b32.xlu0 %v11422_v18, %s11201_s21 }
 0x210   :  { %741 = vrot.lane.b32.xlu0 %v11412_v11, %s11199_s13 }
 0x22a   :  { %v866_v43 = vpop.permute.xlu1 %865 }
 0x22b   :  { %v890_v61 = vsel %vm550_vm5, %v866_v43, 0 }
 0x22e   :  { %v864_v44 = vpop.permute.xlu1 %863 }
 0x22f   :  { %v887_v1 = vsel %vm550_vm5, %v864_v44, 0 }
 0x232   :  { %v854_v45 = vpop.permute.xlu1 %853 }
 0x233   :  { %9405 = vmatprep.mubr.msk.bf16.mxu1 %vm550_vm5, %v854_v45 }
 0x236   :  { %v856_v55 = vpop.permute.xlu1 %855 }
 0x23a   :  { %v870_v46 = vpop.permute.xlu0 %869  ;;  %v1209_v58 = vpop.permute.xlu1 %1208 }
 0x23b   :  { %10438 = vmatprep.subr.msk.bf16.mxu1 %vm550_vm5, %v870_v46  ;;  %v896_v49 = vsel %vm550_vm5, %v870_v46, 0  ;;  %v1233_v33 = vsel %vm550_vm5, %v1209_v58, 0 }
 0x23c   :  { %9396 = vmatpush3.bf16.xpose.msra.mxu1 %v896_v49 }
 0x23e   :  { %v868_v50 = vpop.permute.xlu0 %867  ;;  %v858_v62 = vpop.permute.xlu1 %857 }
 0x23f   :  { %10439 = vmatprep.subr.msk.bf16.mxu1 %vm550_vm5, %v868_v50  ;;  %v893_v54 = vsel %vm550_vm5, %v868_v50, 0 }
 0x242   :  { %v862_v52 = vpop.permute.xlu0 %861  ;;  %v1205_v6 = vpop.permute.xlu1 %1204 }
 0x243   :  { %v884_v8 = vsel %vm550_vm5, %v862_v52, 0  ;;  %v1227_v42 = vsel %vm550_vm5, %v1205_v6, 0 }
 0x244   :  { %9398 = vmatpush3.bf16.xpose.msra.mxu1 %v893_v54  ;;  %v8592_v54 = vld [vmem:[%s15590_s4] ss:$0 sm:$0xff] }
 0x245   :  { %10440 = vmatprep.subr.msk.bf16.mxu1 %vm550_vm5, %v866_v43 }
 0x246   :  { %v1213_v56 = vpop.permute.xlu0 %1212  ;;  %v1199_v9 = vpop.permute.xlu1 %1198 }
 0x247   :  { %v1239_v15 = vsel %vm550_vm5, %v1213_v56, 0 }
 0x24a   :  { %v1211_v59 = vpop.permute.xlu0 %1210  ;;  %v1203_v12 = vpop.permute.xlu1 %1202 }
 0x24b   :  { %v1236_v26 = vsel %vm550_vm5, %v1211_v59, 0 }
 0x24c   :  { %9400 = vmatpush3.bf16.xpose.msra.mxu1 %v890_v61 }
 0x24d   :  { %10441 = vmatprep.subr.msk.bf16.mxu1 %vm550_vm5, %v864_v44 }
 0x24e   :  { %v1207_v63 = vpop.permute.xlu0 %1206 }
 0x24f   :  { %v1230_v16 = vsel %vm550_vm5, %v1207_v63, 0 }
 0x252   :  { %v860_v7 = vpop.permute.xlu0 %859 }
 0x254   :  { %9402 = vmatpush3.bf16.xpose.msra.mxu1 %v887_v1 }
 0x255   :  { %10442 = vmatprep.subr.msk.bf16.mxu1 %vm550_vm5, %v862_v52 }
 0x256   :  { %v1197_v10 = vpop.permute.xlu0 %1196 }
 0x257   :  { %v11552_v17 = vpop.permute.xlu1 %486 }
 0x258   :  { %vm526_vm10 = vcmp.eq.f32.partialorder %v11552_v17, %v8592_v54 }
 0x25a   :  { %v1201_v13 = vpop.permute.xlu0 %1200 }
 0x25b   :  { %v492_v28 = vpop.permute.xlu1 %491 }
 0x25c   :  { %9404 = vmatpush3.bf16.xpose.msra.mxu1 %v884_v8  ;;  %vm527_vm6 = vcmp.eq.f32.partialorder %v492_v28, %v8592_v54 }
 0x25d   :  { %10443 = vmatprep.subr.msk.bf16.mxu1 %vm550_vm5, %v1213_v56 }
 0x25f   :  { %v11560_v31 = vpop.permute.xlu1 %501 }
 0x260   :  { %vm529_vm12 = vcmp.eq.f32.partialorder %v11560_v31, %v8592_v54 }
 0x263   :  { %9406 = vmatmul.mubr.msk.bf16.vlgmr.msra.gmra.mxu1 %vm550_vm5, %v856_v55  ;;  %v512_v35 = vpop.permute.xlu1 %511  ;;  %v15597_v55 = vmov -1e+30  }
 0x264   :  { %9409 = vmatprep.mubr.msk.bf16.mxu1 %vm550_vm5, %v858_v62  ;;  %9432 = vmatpush3.bf16.xpose.msra.mxu1 %v1239_v15  ;;  %v11591_v56 = vsel %vm527_vm6, 0.0, %v15597_v55  ;;  %vm531_vm11 = vcmp.eq.f32.partialorder %v512_v35, %v8592_v54  ;;  %v11625_v17 = vsel %vm529_vm12, 0.0, %v15597_v55  ;;  %vm2391_vm6 = vcmask 523264  }
 0x265   :  { %10444 = vmatprep.subr.msk.bf16.mxu1 %vm550_vm5, %v1211_v59  ;;  %15708 = vst [vmem:[#allocation20_spill] sm:$0xff] %v11591_v56  ;;  %15713 = vst [vmem:[#allocation25_spill] sm:$0xff] %v11625_v17 }
 0x267   :  { %v482_v19 = vpop.permute.xlu0 %481  ;;  %v740_v38 = vpop.permute.xlu1 %739 }
 0x268   :  { %vm525_vm7 = vcmp.eq.f32.partialorder %v482_v19, %v8592_v54 }
 0x26b   :  { %9410 = vmatmul.mubr.msk.bf16.gmra.mxu1 %vm550_vm5, %v860_v7  ;;  %v497_v21 = vpop.permute.xlu0 %496  ;;  %v736_v43 = vpop.permute.xlu1 %735  ;;  %v11609_v7 = vsel %vm526_vm10, 0.0, %v15597_v55 }
 0x26c   :  { %9434 = vmatpush3.bf16.xpose.msra.mxu1 %v1236_v26  ;;  %9441 = vmatprep.mubr.msk.bf16.mxu1 %vm550_vm5, %v1197_v10  ;;  %vm528_vm8 = vcmp.eq.f32.partialorder %v497_v21, %v8592_v54  ;;  %15711 = vst [vmem:[#allocation23_spill] sm:$0xff] %v11609_v7 }
 0x26d   :  { %10445 = vmatprep.subr.msk.bf16.mxu1 %vm550_vm5, %v1209_v58  ;;  %v11594_v58 = vsel %vm525_vm7, 0.0, %v15597_v55  ;;  %v11601_v62 = vsel %vm528_vm8, 0.0, %v15597_v55 }
 0x26e   :  { %15709 = vst [vmem:[#allocation21_spill] sm:$0xff] %v11594_v58  ;;  %15710 = vst [vmem:[#allocation22_spill] sm:$0xff] %v11601_v62 }
 0x26f   :  { %v11558_v27 = vpop.permute.xlu0 %506  ;;  %v11575_v45 = vpop.permute.xlu1 %1051 }
 0x270   :  { %vm530_vm14 = vcmp.eq.f32.partialorder %v11558_v27, %v8592_v54 }
 0x273   :  { %v11562_v32 = vpop.permute.xlu0 %516  ;;  %v11579_v49 = vpop.permute.xlu1 %1047 }
 0x274   :  { %9436 = vmatpush3.bf16.xpose.msra.mxu1 %v1233_v33  ;;  %vm532_vm13 = vcmp.eq.f32.partialorder %v11562_v32, %v8592_v54 }
 0x275   :  { %10446 = vmatprep.subr.msk.bf16.mxu1 %vm550_vm5, %v1207_v63  ;;  %v11635_v31 = vsel %vm532_vm13, 0.0, %v15597_v55 }
 0x276   :  { %15714 = vst [vmem:[#allocation26_spill] sm:$0xff] %v11635_v31 }
 0x277   :  { %v738_v34 = vpop.permute.xlu0 %737  ;;  %v11582_v50 = vpop.permute.xlu1 %1394 }
 0x27b   :  { %v734_v36 = vpop.permute.xlu0 %733  ;;  %v11584_v52 = vpop.permute.xlu1 %1055 }
 0x27c   :  { %9438 = vmatpush3.bf16.xpose.msra.mxu1 %v1230_v16 }
 0x27d   :  { %10447 = vmatprep.subr.msk.bf16.mxu1 %vm550_vm5, %v1205_v6 }
 0x27f   :  { %v11568_v39 = vpop.permute.xlu0 %1053 }
 0x283   :  { %v11570_v40 = vpop.permute.xlu0 %1049 }
 0x284   :  { %9440 = vmatpush3.bf16.xpose.msra.mxu1 %v1227_v42 }
 0x287   :  { %v11573_v44 = vpop.permute.xlu0 %1396 }
 0x28b   :  { %9442 = vmatmul.mubr.msk.bf16.vlgmr.msra.gmra.mxu1 %vm550_vm5, %v1199_v9  ;;  %v742_v46 = vpop.permute.xlu0 %741 }
 0x28c   :  { %9377 = vmatprep.subr.bf16.mxu0 %v742_v46  ;;  %9445 = vmatprep.mubr.msk.bf16.mxu1 %vm550_vm5, %v1201_v13 }
 0x28d   :  { %9378 = vmatpush3.bf16.msra.mxu0 %v742_v46 }
 0x28e   :  { %9379 = vmatprep.subr.bf16.mxu0 %v740_v38 }
 0x291   :  { %9380 = vmatpush3.bf16.msra.mxu0 %v740_v38  ;;  %v11649_v38 = vsel %vm530_vm14, 0.0, %v15597_v55 }
 0x292   :  { %9381 = vmatprep.subr.bf16.mxu0 %v738_v34  ;;  %15715 = vst [vmem:[#allocation27_spill] sm:$0xff] %v11649_v38 }
 0x293   :  { %9446 = vmatmul.mubr.msk.bf16.gmra.mxu1 %vm550_vm5, %v1203_v12  ;;  %v11618_v12 = vsel %vm531_vm11, 0.0, %v15597_v55 }
 0x294   :  { %15712 = vst [vmem:[#allocation24_spill] sm:$0xff] %v11618_v12 }
 0x295   :  { %9382 = vmatpush3.bf16.msra.mxu0 %v738_v34 }
 0x296   :  { %9383 = vmatprep.subr.bf16.mxu0 %v736_v43 }
 0x299   :  { %9384 = vmatpush3.bf16.msra.mxu0 %v736_v43 }
 0x29a   :  { %9385 = vmatprep.subr.bf16.mxu0 %v734_v36 }
 0x29d   :  { %9386 = vmatpush3.bf16.msra.mxu0 %v734_v36 }
 0x29e   :  { %9413 = vmatprep.subr.bf16.mxu0 %v11584_v52 }
 0x2b1   :  { %v9371_v59 = vpop.f32.mrf.mxu0 }
 0x2b2   :  { %v11598_v61 = vadd.f32 %v9371_v59, %v11591_v56 }
 0x2b3   :  { %v612_v63 = vpop.f32.mrf.mxu0 }
 0x2b4   :  { %v11604_v1 = vadd.f32 %v612_v63, %v11594_v58  ;;  %v650_v6 = vsel %vm643_vm9, %v11598_v61, -inf }
 0x2b5   :  { %651 = vmax.xlane.f32.xlu0 %v650_v6  ;;  %v9372_v8 = vpop.f32.mrf.mxu0 }
 0x2b6   :  { %v11613_v9 = vadd.f32 %v9372_v8, %v11601_v62  ;;  %v644_v10 = vsel %vm643_vm9, %v11604_v1, -inf }
 0x2b7   :  { %v615_v13 = vpop.f32.mrf.mxu0  ;;  %645 = vmax.xlane.f32.xlu1 %v644_v10 }
 0x2b8   :  { %v11622_v15 = vadd.f32 %v615_v13, %v11609_v7  ;;  %v653_v28 = vsel %vm643_vm9, %v11613_v9, -inf }
 0x2b9   :  { %v9375_v19 = vpop.f32.mrf.mxu0 }
 0x2ba   :  { %v11628_v21 = vadd.f32 %v9375_v19, %v11618_v12  ;;  %v647_v26 = vsel %vm643_vm9, %v11622_v15, -inf }
 0x2bb   :  { %v628_v32 = vpop.f32.mrf.mxu0  ;;  %648 = vmax.xlane.f32.xlu0 %v647_v26  ;;  %654 = vmax.xlane.f32.xlu1 %v653_v28 }
 0x2bc   :  { %v11639_v33 = vadd.f32 %v628_v32, %v11625_v17  ;;  %v662_v16 = vsel %vm643_vm9, %v11628_v21, -inf }
 0x2bd   :  { %v9376_v34 = vpop.f32.mrf.mxu0 }
 0x2be   :  { %v11642_v35 = vadd.f32 %v9376_v34, %v11635_v31  ;;  %v656_v36 = vsel %vm643_vm9, %v11639_v33, -inf }
 0x2bf   :  { %v631_v42 = vpop.f32.mrf.mxu0  ;;  %657 = vmax.xlane.f32.xlu0 %v656_v36  ;;  %663 = vmax.xlane.f32.xlu1 %v662_v16 }
 0x2c0   :  { %v11652_v27 = vadd.f32 %v631_v42, %v11649_v38  ;;  %v665_v43 = vsel %vm643_vm9, %v11642_v35, -inf }
 0x2c2   :  { %v659_v46 = vsel %vm643_vm9, %v11652_v27, -inf }
 0x2c3   :  { %666 = vmax.xlane.f32.xlu1 %v665_v43 }
 0x2c7   :  { %660 = vmax.xlane.f32.xlu1 %v659_v46 }
 0x323   :  { %v9407_v54 = vpop.f32.mrf.mxu1 }
 0x324   :  { %v11659_v59 = vadd.f32 %v9407_v54, %v11591_v56 }
 0x325   :  { %v932_v63 = vpop.f32.mrf.mxu1 }
 0x326   :  { %v11662_v6 = vadd.f32 %v932_v63, %v11594_v58  ;;  %v969_v8 = vsel %vm643_vm9, %v11659_v59, -inf }
 0x327   :  { %970 = vmax.xlane.f32.xlu0 %v969_v8  ;;  %v9408_v10 = vpop.f32.mrf.mxu1 }
 0x328   :  { %v11667_v19 = vadd.f32 %v9408_v10, %v11601_v62  ;;  %v963_v28 = vsel %vm643_vm9, %v11662_v6, -inf }
 0x329   :  { %v935_v13 = vpop.f32.mrf.mxu1 }
 0x32a   :  { %v11670_v26 = vadd.f32 %v935_v13, %v11609_v7  ;;  %v972_v43 = vsel %vm643_vm9, %v11667_v19, -inf }
 0x32b   :  { %v9411_v32 = vpop.f32.mrf.mxu1  ;;  %964 = vmax.xlane.f32.xlu0 %v963_v28 }
 0x32c   :  { %v966_v34 = vsel %vm643_vm9, %v11670_v26, -inf  ;;  %v11677_v16 = vadd.f32 %v9411_v32, %v11618_v12 }
 0x32d   :  { %v948_v36 = vpop.f32.mrf.mxu1  ;;  %967 = vmax.xlane.f32.xlu1 %v966_v34  ;;  %v11698_v34 = vpop.permute.xlu1 %1398 }
 0x32e   :  { %v11680_v42 = vadd.f32 %v948_v36, %v11625_v17  ;;  %v981_v8 = vsel %vm643_vm9, %v11677_v16, -inf }
 0x32f   :  { %v9412_v46 = vpop.f32.mrf.mxu1  ;;  %973 = vmax.xlane.f32.xlu0 %v972_v43 }
 0x330   :  { %v975_v54 = vsel %vm643_vm9, %v11680_v42, -inf  ;;  %v11687_v63 = vadd.f32 %v9412_v46, %v11635_v31 }
 0x331   :  { %976 = vmax.xlane.f32.xlu1 %v975_v54  ;;  %v951_v10 = vpop.f32.mrf.mxu1 }
 0x332   :  { %v11692_v13 = vadd.f32 %v951_v10, %v11649_v38  ;;  %v984_v28 = vsel %vm643_vm9, %v11687_v63, -inf }
 0x333   :  { %982 = vmax.xlane.f32.xlu0 %v981_v8 }
 0x334   :  { %v978_v32 = vsel %vm643_vm9, %v11692_v13, -inf }
 0x337   :  { %985 = vmax.xlane.f32.xlu0 %v984_v28 }
 0x33b   :  { %979 = vmax.xlane.f32.xlu0 %v978_v32 }
 0x33e   :  { %v652_v36 = vpop.xlane.xlu0 %651 }
 0x33f   :  { %v670_v43 = vsub.f32 %v11598_v61, %v652_v36 }
 0x340   :  { %v646_v46 = vpop.xlane.xlu1 %645 }
 0x341   :  { %v668_v54 = vsub.f32 %v11604_v1, %v646_v46  ;;  %v680_v8 = vmul.f32 1.442695, %v670_v43 }
 0x342   :  { %1390 = vrot.lane.b32.xlu1 %v11440_v24, %s11201_s21 }
 0x343   :  { %v676_v10 = vmul.f32 1.442695, %v668_v54  ;;  %10538 = vpow2.f32 %v680_v8 }
 0x344   :  { %v649_v55 = vpop.xlane.xlu0 %648  ;;  %v655_v0 = vpop.xlane.xlu1 %654 }
 0x345   :  { %v669_v28 = vsub.f32 %v11622_v15, %v649_v55  ;;  %v671_v25 = vsub.f32 %v11613_v9, %v655_v0  ;;  %10540 = vpow2.f32 %v676_v10 }
 0x346   :  { %1555 = vrot.lane.b32.xlu1 %v11412_v11, %s11203_s8 }
 0x347   :  { %v678_v61 = vmul.f32 1.442695, %v669_v28  ;;  %v682_v32 = vmul.f32 1.442695, %v671_v25 }
 0x348   :  { %v658_v1 = vpop.xlane.xlu0 %657  ;;  %v664_v36 = vpop.xlane.xlu1 %663 }
 0x349   :  { %10542 = vpow2.f32 %v678_v61  ;;  %v672_v43 = vsub.f32 %v11639_v33, %v658_v1  ;;  %v674_v55 = vsub.f32 %v11628_v21, %v664_v36 }
 0x34a   :  { %10544 = vpow2.f32 %v682_v32 }
 0x34b   :  { %v684_v0 = vmul.f32 1.442695, %v672_v43  ;;  %v688_v25 = vmul.f32 1.442695, %v674_v55 }
 0x34c   :  { %v667_v46 = vpop.xlane.xlu1 %666 }
 0x34d   :  { %v675_v54 = vsub.f32 %v11642_v35, %v667_v46  ;;  %10546 = vpow2.f32 %v684_v0 }
 0x34f   :  { %v690_v9 = vmul.f32 1.442695, %v675_v54 }
 0x350   :  { %v661_v15 = vpop.xlane.xlu1 %660  ;;  %v11714_v10 = vpop.eup %10538 }
 0x351   :  { %v673_v14 = vsub.f32 %v11652_v27, %v661_v15  ;;  %1392 = vrot.lane.b32.xlu0 %v11394_v57, %s11201_s21  ;;  %10548 = vpow2.f32 %v690_v9 }
 0x352   :  { %v11716_v33 = vpop.eup %10540 }
 0x353   :  { %v686_v8 = vmul.f32 1.442695, %v673_v14  ;;  %v9443_v14 = vpop.f32.mrf.mxu1 }
 0x354   :  { %v11747_v54 = vadd.f32 %v9443_v14, %v11591_v56 }
 0x355   :  { %10550 = vpow2.f32 %v686_v8  ;;  %v1275_v32 = vpop.f32.mrf.mxu1 }
 0x356   :  { %v11718_v35 = vpop.eup %10542  ;;  %10552 = vpow2.f32 %v688_v25  ;;  %v1312_v0 = vsel %vm643_vm9, %v11747_v54, -inf }
 0x357   :  { %v11720_v21 = vpop.eup %10544  ;;  %v724_v27 = vpack.c.bf16 %v11718_v35, %v11716_v33  ;;  %v9444_v46 = vpop.f32.mrf.mxu1 }
 0x358   :  { %v725_v28 = vpack.c.bf16 %v11720_v21, %v11714_v10 }
 0x359   :  { %9387 = vmatprep.mubr.msk.bf16.mxu0 %vm643_vm9, %v724_v27  ;;  %v1278_v55 = vpop.f32.mrf.mxu1 }
 0x35a   :  { %9388 = vmatmul.mubr.msk.bf16.vlgmr.msra.gmra.mxu0 %vm643_vm9, %v725_v28  ;;  %v11731_v61 = vpop.eup %10546  ;;  %v11759_v9 = vadd.f32 %v1278_v55, %v11609_v7 }
 0x35b   :  { %9414 = vmatpush3.bf16.msra.mxu0 %v11584_v52  ;;  %v9447_v15 = vpop.f32.mrf.mxu1 }
 0x35c   :  { %9415 = vmatprep.subr.bf16.mxu0 %v11568_v39  ;;  %v11769_v8 = vadd.f32 %v9447_v15, %v11618_v12  ;;  %v1309_v27 = vsel %vm643_vm9, %v11759_v9, -inf }
 0x35d   :  { %v1291_v28 = vpop.f32.mrf.mxu1 }
 0x35e   :  { %v11734_v1 = vpop.eup %10548  ;;  %v11776_v14 = vadd.f32 %v1291_v28, %v11625_v17 }
 0x35f   :  { %9416 = vmatpush3.bf16.msra.mxu0 %v11568_v39 }
 0x360   :  { %9417 = vmatprep.subr.bf16.mxu0 %v11575_v45 }
 0x362   :  { %v11736_v36 = vpop.eup %10550 }
 0x363   :  { %v11738_v43 = vpop.eup %10552  ;;  %9418 = vmatpush3.bf16.msra.mxu0 %v11575_v45  ;;  %v726_v52 = vpack.c.bf16 %v11736_v36, %v11731_v61  ;;  %v11754_v45 = vadd.f32 %v1275_v32, %v11594_v58  ;;  %v1324_v32 = vsel %vm643_vm9, %v11769_v8, -inf }
 0x364   :  { %9419 = vmatprep.subr.bf16.mxu0 %v11570_v40  ;;  %v727_v39 = vpack.c.bf16 %v11734_v1, %v11738_v43 }
 0x365   :  { %9391 = vmatprep.mubr.msk.bf16.mxu0 %vm643_vm9, %v726_v52  ;;  %v1306_v25 = vsel %vm643_vm9, %v11754_v45, -inf  ;;  %v9448_v52 = vpop.f32.mrf.mxu1 }
 0x366   :  { %9392 = vmatmul.mubr.msk.bf16.gmra.mxu0 %vm643_vm9, %v727_v39  ;;  %v1318_v39 = vsel %vm643_vm9, %v11776_v14, -inf }
 0x367   :  { %9420 = vmatpush3.bf16.msra.mxu0 %v11570_v40  ;;  %v11764_v40 = vadd.f32 %v9444_v46, %v11601_v62  ;;  %v11781_v46 = vadd.f32 %v9448_v52, %v11635_v31 }
 0x368   :  { %9421 = vmatprep.subr.bf16.mxu0 %v11579_v49 }
 0x369   :  { %v1327_v55 = vsel %vm643_vm9, %v11781_v46, -inf }
 0x36a   :  { %1313 = vmax.xlane.f32.xlu1 %v1312_v0  ;;  %v1294_v0 = vpop.f32.mrf.mxu1 }
 0x36b   :  { %9422 = vmatpush3.bf16.msra.mxu0 %v11579_v49  ;;  %v1315_v49 = vsel %vm643_vm9, %v11764_v40, -inf  ;;  %v11798_v15 = vadd.f32 %v1294_v0, %v11649_v38 }
 0x36c   :  { %9449 = vmatprep.subr.bf16.mxu0 %v11698_v34 }
 0x36e   :  { %1307 = vmax.xlane.f32.xlu1 %v1306_v25  ;;  %v1321_v25 = vsel %vm643_vm9, %v11798_v15, -inf }
 0x370   :  { %1310 = vmax.xlane.f32.xlu0 %v1309_v27 }
 0x372   :  { %1316 = vmax.xlane.f32.xlu1 %v1315_v49 }
 0x374   :  { %1325 = vmax.xlane.f32.xlu0 %v1324_v32 }
 0x378   :  { %1319 = vmax.xlane.f32.xlu0 %v1318_v39 }
 0x37c   :  { %1328 = vmax.xlane.f32.xlu0 %v1327_v55 }
 0x383   :  { %1551 = vrot.lane.b32.xlu1 %v11390_v53, %s11203_s8 }
 0x392   :  { %1553 = vrot.lane.b32.xlu0 %v11422_v18, %s11203_s8 }
 0x396   :  { %1547 = vrot.lane.b32.xlu0 %v11440_v24, %s11203_s8 }
 0x39a   :  { %1541 = vrot.lane.b32.xlu0 %v11408_v5, %s11203_s8 }
 0x39e   :  { %1545 = vrot.lane.b32.xlu0 %v11456_v30, %s11203_s8 }
 0x3a2   :  { %1741 = vrot.lane.b32.xlu0 %v11412_v11, %s11204_s24 }
 0x3a7   :  { %1322 = vmax.xlane.f32.xlu1 %v1321_v25 }
 0x3b0   :  { %v971_v27 = vpop.xlane.xlu0 %970 }
 0x3b1   :  { %v989_v28 = vsub.f32 %v11659_v59, %v971_v27 }
 0x3b3   :  { %v999_v39 = vmul.f32 1.442695, %v989_v28 }
 0x3b4   :  { %v965_v49 = vpop.xlane.xlu0 %964 }
 0x3b5   :  { %v987_v5 = vsub.f32 %v11662_v6, %v965_v49 }
 0x3b6   :  { %v968_v32 = vpop.xlane.xlu1 %967 }
 0x3b7   :  { %v995_v30 = vmul.f32 1.442695, %v987_v5  ;;  %v988_v52 = vsub.f32 %v11670_v26, %v968_v32 }
 0x3b8   :  { %1549 = vrot.lane.b32.xlu1 %v11394_v57, %s11203_s8  ;;  %v974_v55 = vpop.xlane.xlu0 %973 }
 0x3b9   :  { %v997_v11 = vmul.f32 1.442695, %v988_v52  ;;  %v990_v0 = vsub.f32 %v11667_v19, %v974_v55  ;;  %10554 = vpow2.f32 %v995_v30 }
 0x3ba   :  { %v977_v59 = vpop.xlane.xlu1 %976 }
 0x3bb   :  { %10556 = vpow2.f32 %v997_v11  ;;  %v1001_v25 = vmul.f32 1.442695, %v990_v0  ;;  %v991_v26 = vsub.f32 %v11680_v42, %v977_v59 }
 0x3bc   :  { %10558 = vpow2.f32 %v999_v39  ;;  %1539 = vrot.lane.b32.xlu1 %v11357_v60, %s11203_s8  ;;  %v983_v6 = vpop.xlane.xlu0 %982 }
 0x3bd   :  { %10560 = vpow2.f32 %v1001_v25  ;;  %v1003_v49 = vmul.f32 1.442695, %v991_v26  ;;  %v993_v19 = vsub.f32 %v11677_v16, %v983_v6 }
 0x3be   :  { %v1391_v25 = vpop.permute.xlu1 %1390 }
 0x3bf   :  { %10562 = vpow2.f32 %v1003_v49  ;;  %v1007_v42 = vmul.f32 1.442695, %v993_v19 }
 0x3c0   :  { %1543 = vrot.lane.b32.xlu1 %v11426_v20, %s11203_s8  ;;  %v986_v27 = vpop.xlane.xlu0 %985 }
 0x3c1   :  { %v994_v28 = vsub.f32 %v11687_v63, %v986_v27 }
 0x3c2   :  { %v1556_v59 = vpop.permute.xlu1 %1555 }
 0x3c3   :  { %v1009_v5 = vmul.f32 1.442695, %v994_v28 }
 0x3c4   :  { %1739 = vrot.lane.b32.xlu1 %v11422_v18, %s11204_s24  ;;  %v980_v32 = vpop.xlane.xlu0 %979 }
 0x3c5   :  { %v992_v60 = vsub.f32 %v11692_v13, %v980_v32  ;;  %10564 = vpow2.f32 %v1009_v5 }
 0x3c6   :  { %v11820_v30 = vpop.eup %10554 }
 0x3c7   :  { %v1005_v52 = vmul.f32 1.442695, %v992_v60 }
 0x3c8   :  { %v11822_v39 = vpop.eup %10556  ;;  %1737 = vrot.lane.b32.xlu1 %v11390_v53, %s11204_s24  ;;  %v1393_v11 = vpop.permute.xlu0 %1392 }
 0x3c9   :  { %v11826_v20 = vpop.eup %10558  ;;  %10566 = vpow2.f32 %v1005_v52  ;;  %v1043_v18 = vpack.c.bf16 %v11822_v39, %v11820_v30 }
 0x3ca   :  { %v11830_v16 = vpop.eup %10560  ;;  %10568 = vpow2.f32 %v1007_v42 }
 0x3cb   :  { %v1044_v63 = vpack.c.bf16 %v11830_v16, %v11826_v20  ;;  %9423 = vmatprep.mubr.msk.bf16.mxu0 %vm643_vm9, %v1043_v18 }
 0x3cc   :  { %v11840_v53 = vpop.eup %10562 }
 0x3cd   :  { %9424 = vmatmul.mubr.msk.bf16.vlgmr.msra.gmra.mxu0 %vm643_vm9, %v1044_v63 }
 0x3ce   :  { %9450 = vmatpush3.bf16.msra.mxu0 %v11698_v34 }
 0x3cf   :  { %9451 = vmatprep.subr.bf16.mxu0 %v11573_v44 }
 0x3d2   :  { %9452 = vmatpush3.bf16.msra.mxu0 %v11573_v44  ;;  %v11842_v13 = vpop.eup %10564 }
 0x3d3   :  { %9453 = vmatprep.subr.bf16.mxu0 %v11582_v50 }
 0x3d6   :  { %v11844_v55 = vpop.eup %10566  ;;  %9454 = vmatpush3.bf16.msra.mxu0 %v11582_v50 }
 0x3d7   :  { %9455 = vmatprep.subr.bf16.mxu0 %v1393_v11  ;;  %v1045_v0 = vpack.c.bf16 %v11844_v55, %v11840_v53  ;;  %v11849_v34 = vpop.eup %10568 }
 0x3d8   :  { %v1046_v44 = vpack.c.bf16 %v11842_v13, %v11849_v34 }
 0x3d9   :  { %9427 = vmatprep.mubr.msk.bf16.mxu0 %vm643_vm9, %v1045_v0 }
 0x3da   :  { %9456 = vmatpush3.bf16.msra.mxu0 %v1393_v11 }
 0x3db   :  { %9428 = vmatmul.mubr.msk.bf16.gmra.mxu0 %vm643_vm9, %v1046_v44  ;;  %9457 = vmatprep.subr.bf16.mxu0 %v1391_v25 }
 0x3de   :  { %9458 = vmatpush3.bf16.msra.mxu0 %v1391_v25 }
 0x3df   :  { %10448 = vmatprep.subr.msk.bf16.mxu0 %vm550_vm5, %v1556_v59 }
 0x3f3   :  { %v1314_v50 = vpop.xlane.xlu1 %1313 }
 0x3f4   :  { %v1332_v6 = vsub.f32 %v11747_v54, %v1314_v50 }
 0x3f6   :  { %v1342_v5 = vmul.f32 1.442695, %v1332_v6  ;;  %v1582_v6 = vsel %vm550_vm5, %v1556_v59, 0 }
 0x3f7   :  { %v1308_v26 = vpop.xlane.xlu1 %1307 }
 0x3f8   :  { %v1330_v27 = vsub.f32 %v11754_v45, %v1308_v26 }
 0x3f9   :  { %v1311_v28 = vpop.xlane.xlu0 %1310 }
 0x3fa   :  { %v1338_v49 = vmul.f32 1.442695, %v1330_v27  ;;  %v1331_v19 = vsub.f32 %v11759_v9, %v1311_v28 }
 0x3fb   :  { %v1317_v32 = vpop.xlane.xlu1 %1316 }
 0x3fc   :  { %v1340_v60 = vmul.f32 1.442695, %v1331_v19  ;;  %v1333_v42 = vsub.f32 %v11764_v40, %v1317_v32  ;;  %10570 = vpow2.f32 %v1338_v49 }
 0x3fd   :  { %v1326_v52 = vpop.xlane.xlu0 %1325 }
 0x3fe   :  { %10572 = vpow2.f32 %v1340_v60  ;;  %v1344_v18 = vmul.f32 1.442695, %v1333_v42  ;;  %v1336_v60 = vsub.f32 %v11769_v8, %v1326_v52 }
 0x3ff   :  { %10574 = vpow2.f32 %v1342_v5  ;;  %v1552_v49 = vpop.permute.xlu1 %1551 }
 0x400   :  { %10576 = vpow2.f32 %v1344_v18  ;;  %v1576_v5 = vsel %vm550_vm5, %v1552_v49, 0 }
 0x401   :  { %v1320_v63 = vpop.xlane.xlu0 %1319 }
 0x402   :  { %v1334_v32 = vsub.f32 %v11776_v14, %v1320_v63 }
 0x404   :  { %v1346_v42 = vmul.f32 1.442695, %v1334_v32 }
 0x405   :  { %v1329_v54 = vpop.xlane.xlu0 %1328 }
 0x406   :  { %v1337_v59 = vsub.f32 %v11781_v46, %v1329_v54  ;;  %10578 = vpow2.f32 %v1346_v42 }
 0x408   :  { %v1352_v18 = vmul.f32 1.442695, %v1337_v59 }
 0x409   :  { %v1554_v11 = vpop.permute.xlu0 %1553  ;;  %v11860_v0 = vpop.eup %10570 }
 0x40a   :  { %v1579_v28 = vsel %vm550_vm5, %v1554_v11, 0  ;;  %10580 = vpow2.f32 %v1352_v18 }
 0x40b   :  { %v11862_v45 = vpop.eup %10572 }
 0x40c   :  { %v11864_v25 = vpop.eup %10574  ;;  %v1386_v9 = vpack.c.bf16 %v11862_v45, %v11860_v0 }
 0x40d   :  { %v11868_v44 = vpop.eup %10576  ;;  %v1548_v40 = vpop.permute.xlu0 %1547 }
 0x40e   :  { %v1387_v50 = vpack.c.bf16 %v11868_v44, %v11864_v25  ;;  %9459 = vmatprep.mubr.msk.bf16.mxu0 %vm643_vm9, %v1386_v9  ;;  %v1570_v46 = vsel %vm550_vm5, %v1548_v40, 0 }
 0x410   :  { %9460 = vmatmul.mubr.msk.bf16.vlgmr.msra.gmra.mxu0 %vm643_vm9, %v1387_v50  ;;  %v1350_v50 = vmul.f32 1.442695, %v1336_v60 }
 0x411   :  { %9468 = vmatpush3.bf16.xpose.msra.mxu0 %v1582_v6  ;;  %v1542_v26 = vpop.permute.xlu0 %1541 }
 0x412   :  { %10449 = vmatprep.subr.msk.bf16.mxu0 %vm550_vm5, %v1554_v11 }
 0x415   :  { %v1546_v27 = vpop.permute.xlu0 %1545 }
 0x419   :  { %9470 = vmatpush3.bf16.xpose.msra.mxu0 %v1579_v28  ;;  %v1742_v19 = vpop.permute.xlu0 %1741 }
 0x41a   :  { %10450 = vmatprep.subr.msk.bf16.mxu0 %vm550_vm5, %v1552_v49  ;;  %9485 = vmatprep.subr.bf16.mxu1 %v1742_v19 }
 0x41b   :  { %9486 = vmatpush3.bf16.msra.mxu1 %v1742_v19 }
 0x421   :  { %9472 = vmatpush3.bf16.xpose.msra.mxu0 %v1576_v5 }
 0x430   :  { %v1323_v9 = vpop.xlane.xlu1 %1322 }
 0x431   :  { %v1335_v11 = vsub.f32 %v11798_v15, %v1323_v9  ;;  %v11887_v15 = vpop.eup %10578 }
 0x432   :  { %v11889_v63 = vpop.eup %10580 }
 0x433   :  { %v1348_v6 = vmul.f32 1.442695, %v1335_v11 }
 0x434   :  { %v1550_v28 = vpop.permute.xlu1 %1549 }
 0x435   :  { %10582 = vpow2.f32 %v1348_v6  ;;  %10451 = vmatprep.subr.msk.bf16.mxu0 %vm550_vm5, %v1550_v28  ;;  %v1573_v49 = vsel %vm550_vm5, %v1550_v28, 0 }
 0x436   :  { %10584 = vpow2.f32 %v1350_v50  ;;  %9474 = vmatpush3.bf16.xpose.msra.mxu0 %v1573_v49 }
 0x437   :  { %10452 = vmatprep.subr.msk.bf16.mxu0 %vm550_vm5, %v1548_v40  ;;  %v11905_v40 = vpop.f32.mrf.mxu0 }
 0x438   :  { %v1540_v8 = vpop.permute.xlu1 %1539 }
 0x439   :  { %v11907_v60 = vpop.f32.mrf.mxu0 }
 0x43b   :  { %v11909_v42 = vpop.f32.mrf.mxu0 }
 0x43c   :  { %v1544_v14 = vpop.permute.xlu1 %1543  ;;  %15716 = vst [vmem:[#allocation28_spill] sm:$0xff] %v11909_v42 }
 0x43d   :  { %v11911_v18 = vpop.f32.mrf.mxu0 }
 0x43e   :  { %9476 = vmatpush3.bf16.xpose.msra.mxu0 %v1570_v46 }
 0x43f   :  { %v11913_v9 = vpop.f32.mrf.mxu0 }
 0x440   :  { %v1740_v52 = vpop.permute.xlu1 %1739  ;;  %15717 = vst [vmem:[#allocation29_spill] sm:$0xff] %v11913_v9 }
 0x441   :  { %9487 = vmatprep.subr.bf16.mxu1 %v1740_v52  ;;  %v11915_v11 = vpop.f32.mrf.mxu0 }
 0x442   :  { %v11891_v54 = vpop.eup %10582  ;;  %9488 = vmatpush3.bf16.msra.mxu1 %v1740_v52 }
 0x443   :  { %v11893_v19 = vpop.eup %10584  ;;  %v1388_v5 = vpack.c.bf16 %v11891_v54, %v11887_v15  ;;  %v11917_v50 = vpop.f32.mrf.mxu0 }
 0x444   :  { %v1738_v32 = vpop.permute.xlu1 %1737  ;;  %v1389_v59 = vpack.c.bf16 %v11889_v63, %v11893_v19  ;;  %15718 = vst [vmem:[#allocation30_spill] sm:$0xff] %v11917_v50 }
 0x445   :  { %9463 = vmatprep.mubr.msk.bf16.mxu0 %vm643_vm9, %v1388_v5  ;;  %9489 = vmatprep.subr.bf16.mxu1 %v1738_v32  ;;  %v11919_v6 = vpop.f32.mrf.mxu0 }
 0x446   :  { %9464 = vmatmul.mubr.msk.bf16.gmra.mxu0 %vm643_vm9, %v1389_v59  ;;  %9490 = vmatpush3.bf16.msra.mxu1 %v1738_v32  ;;  %15719 = vst [vmem:[#allocation31_spill] sm:$0xff] %v11919_v6 }
 0x447   :  { %9477 = vmatprep.mubr.msk.bf16.mxu0 %vm550_vm5, %v1540_v8 }
 0x44e   :  { %9478 = vmatmul.mubr.msk.bf16.vlgmr.msra.gmra.mxu0 %vm550_vm5, %v1542_v26 }
 0x44f   :  { %9481 = vmatprep.mubr.msk.bf16.mxu0 %vm550_vm5, %v1544_v14 }
 0x456   :  { %9482 = vmatmul.mubr.msk.bf16.gmra.mxu0 %vm550_vm5, %v1546_v27 }
 0x48d   :  { %v11921_v26 = vpop.f32.mrf.mxu0 }
 0x48f   :  { %v11923_v28 = vpop.f32.mrf.mxu0 }
 0x491   :  { %v11925_v27 = vpop.f32.mrf.mxu0 }
 0x493   :  { %v11927_v49 = vpop.f32.mrf.mxu0 }
 0x49b   :  { %v11929_v8 = vpop.f32.mrf.mxu0 }
 0x49d   :  { %v11931_v14 = vpop.f32.mrf.mxu0 }
 0x49f   :  { %v11933_v46 = vpop.f32.mrf.mxu0 }
 0x4a1   :  { %v11935_v52 = vpop.f32.mrf.mxu0 }
 0x4d0   :  { %v11937_v5 = vpop.f32.mrf.mxu0 }
 0x4d2   :  { %v11939_v32 = vpop.f32.mrf.mxu0 }
 0x4d4   :  { %v11941_v59 = vpop.f32.mrf.mxu0 }
 0x4d6   :  { %v11943_v2 = vpop.f32.mrf.mxu0 }
 0x506   :  { %v11945_v48 = vpop.f32.mrf.mxu0 }
 0x507   :  { %15720 = vst [vmem:[#allocation32_spill] sm:$0xff] %v11945_v48 }
 0x508   :  { %v11947_v29 = vpop.f32.mrf.mxu0 }
 0x50a   :  { %v11949_v23 = vpop.f32.mrf.mxu0 }
 0x50b   :  { %15721 = vst [vmem:[#allocation33_spill] sm:$0xff] %v11949_v23 }
 0x50c   :  { %v11951_v50 = vpop.f32.mrf.mxu0 }
 0x50e   :  { %v9479_v4 = vpop.f32.mrf.mxu0 }
 0x50f   :  { %v11954_v6 = vadd.f32 %v9479_v4, %v11591_v56 }
 0x510   :  { %v1618_v47 = vpop.f32.mrf.mxu0 }
 0x511   :  { %v11957_v22 = vadd.f32 %v1618_v47, %v11594_v58  ;;  %v1655_v42 = vsel %vm643_vm9, %v11954_v6, -inf }
 0x512   :  { %1656 = vmax.xlane.f32.xlu0 %v1655_v42  ;;  %v9480_v9 = vpop.f32.mrf.mxu0 }
 0x513   :  { %v11962_v48 = vadd.f32 %v9480_v9, %v11601_v62  ;;  %v1649_v23 = vsel %vm643_vm9, %v11957_v22, -inf }
 0x514   :  { %v1621_v51 = vpop.f32.mrf.mxu0  ;;  %1650 = vmax.xlane.f32.xlu1 %v1649_v23 }
 0x515   :  { %v11967_v4 = vadd.f32 %v1621_v51, %v11609_v7  ;;  %v1658_v42 = vsel %vm643_vm9, %v11962_v48, -inf }
 0x516   :  { %v9483_v56 = vpop.f32.mrf.mxu0 }
 0x517   :  { %v11970_v47 = vadd.f32 %v9483_v56, %v11618_v12  ;;  %v1652_v58 = vsel %vm643_vm9, %v11967_v4, -inf }
 0x518   :  { %1653 = vmax.xlane.f32.xlu0 %v1652_v58  ;;  %1659 = vmax.xlane.f32.xlu1 %v1658_v42  ;;  %v1634_v9 = vpop.f32.mrf.mxu0 }
 0x519   :  { %v11977_v3 = vadd.f32 %v1634_v9, %v11625_v17  ;;  %v1667_v23 = vsel %vm643_vm9, %v11970_v47, -inf  ;;  %v1011_v9 = vsel %vm643_vm9, %v11820_v30, 0.0  ;;  %v1357_v30 = vsel %vm643_vm9, %v11862_v45, 0.0 }
 0x51a   :  { %v9484_v62 = vpop.f32.mrf.mxu0  ;;  %v1366_v45 = vsel %vm643_vm9, %v11887_v15, 0.0 }
 0x51b   :  { %v11980_v51 = vadd.f32 %v9484_v62, %v11635_v31  ;;  %v1661_v42 = vsel %vm643_vm9, %v11977_v3, -inf }
 0x51c   :  { %1668 = vmax.xlane.f32.xlu0 %v1667_v23  ;;  %v1637_v56 = vpop.f32.mrf.mxu0  ;;  %v1014_v23 = vsel %vm643_vm9, %v11822_v39, 0.0  ;;  %v1023_v39 = vsel %vm643_vm9, %v11840_v53, 0.0  ;;  %v1032_v53 = vsel %vm643_vm9, %v11842_v13, 0.0 }
 0x51d   :  { %v11985_v12 = vadd.f32 %v1637_v56, %v11649_v38  ;;  %v1670_v58 = vsel %vm643_vm9, %v11980_v51, -inf  ;;  %v1017_v56 = vsel %vm643_vm9, %v11826_v20, 0.0  ;;  %v1363_v20 = vsel %vm643_vm9, %v11868_v44, 0.0 }
 0x51e   :  { %1671 = vmax.xlane.f32.xlu1 %v1670_v58  ;;  %v1354_v58 = vsel %vm643_vm9, %v11860_v0, 0.0  ;;  %v1026_v0 = vsel %vm643_vm9, %v11844_v55, 0.0  ;;  %v692_v55 = vsel %vm643_vm9, %v11716_v33, 0.0  ;;  %v1375_v44 = vsel %vm643_vm9, %v11889_v63, 0.0 }
 0x51f   :  { %v1664_v62 = vsel %vm643_vm9, %v11985_v12, -inf }
 0x520   :  { %1662 = vmax.xlane.f32.xlu0 %v1661_v42 }
 0x522   :  { %1665 = vmax.xlane.f32.xlu1 %v1664_v62 }
 0x533   :  { %1733 = vrot.lane.b32.xlu1 %v11440_v24, %s11204_s24  ;;  %v1020_v24 = vsel %vm643_vm9, %v11830_v16, 0.0  ;;  %v1029_v16 = vsel %vm643_vm9, %v11849_v34, 0.0  ;;  %v1369_v34 = vsel %vm643_vm9, %v11891_v54, 0.0 }
 0x536   :  { %1735 = vrot.lane.b32.xlu0 %v11394_v57, %s11204_s24  ;;  %v1360_v57 = vsel %vm643_vm9, %v11864_v25, 0.0  ;;  %v1372_v25 = vsel %vm643_vm9, %v11893_v19, 0.0 }
 0x555   :  { %1012 = vadd.xlane.f32.xlu0 %v1011_v9 }
 0x557   :  { %1015 = vadd.xlane.f32.xlu1 %v1014_v23 }
 0x559   :  { %1018 = vadd.xlane.f32.xlu0 %v1017_v56 }
 0x55b   :  { %1355 = vadd.xlane.f32.xlu1 %v1354_v58 }
 0x55d   :  { %1021 = vadd.xlane.f32.xlu0 %v1020_v24 }
 0x55f   :  { %1361 = vadd.xlane.f32.xlu1 %v1360_v57 }
 0x561   :  { %1358 = vadd.xlane.f32.xlu0 %v1357_v30 }
 0x563   :  { %1024 = vadd.xlane.f32.xlu1 %v1023_v39 }
 0x565   :  { %1364 = vadd.xlane.f32.xlu0 %v1363_v20 }
 0x567   :  { %1030 = vadd.xlane.f32.xlu1 %v1029_v16 }
 0x569   :  { %1027 = vadd.xlane.f32.xlu0 %v1026_v0 }
 0x56b   :  { %1367 = vadd.xlane.f32.xlu1 %v1366_v45 }
 0x56d   :  { %1033 = vadd.xlane.f32.xlu0 %v1032_v53 }
 0x56f   :  { %1373 = vadd.xlane.f32.xlu1 %v1372_v25 }
 0x571   :  { %1370 = vadd.xlane.f32.xlu0 %v1369_v34 }
 0x573   :  { %693 = vadd.xlane.f32.xlu1 %v692_v55 }
 0x575   :  { %1376 = vadd.xlane.f32.xlu0 %v1375_v44 }
 0x59b   :  { %v1657_v15 = vpop.xlane.xlu0 %1656 }
 0x59c   :  { %v1675_v13 = vsub.f32 %v11954_v6, %v1657_v15 }
 0x59d   :  { %v1651_v42 = vpop.xlane.xlu1 %1650 }
 0x59e   :  { %v1685_v62 = vmul.f32 1.442695, %v1675_v13  ;;  %v1673_v19 = vsub.f32 %v11957_v22, %v1651_v42 }
 0x5a0   :  { %10586 = vpow2.f32 %v1685_v62  ;;  %v1681_v9 = vmul.f32 1.442695, %v1673_v19 }
 0x5a1   :  { %v1660_v23 = vpop.xlane.xlu1 %1659  ;;  %v1654_v54 = vpop.xlane.xlu0 %1653 }
 0x5a2   :  { %10588 = vpow2.f32 %v1681_v9  ;;  %v1676_v56 = vsub.f32 %v11962_v48, %v1660_v23  ;;  %v1674_v33 = vsub.f32 %v11967_v4, %v1654_v54 }
 0x5a4   :  { %v1687_v58 = vmul.f32 1.442695, %v1676_v56  ;;  %v1683_v24 = vmul.f32 1.442695, %v1674_v33 }
 0x5a5   :  { %v1669_v63 = vpop.xlane.xlu0 %1668 }
 0x5a6   :  { %10590 = vpow2.f32 %v1687_v58  ;;  %v1679_v57 = vsub.f32 %v11970_v47, %v1669_v63  ;;  %v698_v63 = vsel %vm643_vm9, %v11714_v10, 0.0  ;;  %v707_v10 = vsel %vm643_vm9, %v11736_v36, 0.0 }
 0x5a7   :  { %10592 = vpow2.f32 %v1683_v24  ;;  %v1672_v6 = vpop.xlane.xlu1 %1671 }
 0x5a8   :  { %v1693_v30 = vmul.f32 1.442695, %v1679_v57  ;;  %v1680_v22 = vsub.f32 %v11980_v51, %v1672_v6  ;;  %v695_v6 = vsel %vm643_vm9, %v11718_v35, 0.0  ;;  %v713_v35 = vsel %vm643_vm9, %v11734_v1, 0.0 }
 0x5a9   :  { %v1663_v39 = vpop.xlane.xlu0 %1662 }
 0x5aa   :  { %10594 = vpow2.f32 %v1693_v30  ;;  %v1695_v20 = vmul.f32 1.442695, %v1680_v22  ;;  %v1677_v16 = vsub.f32 %v11977_v3, %v1663_v39  ;;  %v704_v30 = vsel %vm643_vm9, %v11731_v61, 0.0 }
 0x5ab   :  { %v1666_v0 = vpop.xlane.xlu1 %1665  ;;  %v701_v22 = vsel %vm643_vm9, %v11720_v21, 0.0  ;;  %v710_v39 = vsel %vm643_vm9, %v11738_v43, 0.0 }
 0x5ac   :  { %10596 = vpow2.f32 %v1695_v20  ;;  %v1689_v48 = vmul.f32 1.442695, %v1677_v16  ;;  %v1678_v4 = vsub.f32 %v11985_v12, %v1666_v0 }
 0x5ad   :  { %v10587_v45 = vpop.eup %10586  ;;  %v1736_v53 = vpop.permute.xlu0 %1735 }
 0x5ae   :  { %10598 = vpow2.f32 %v1689_v48  ;;  %v1691_v25 = vmul.f32 1.442695, %v1678_v4  ;;  %9491 = vmatprep.subr.bf16.mxu1 %v1736_v53  ;;  %v1703_v47 = vsel %vm643_vm9, %v10587_v45, 0.0 }
 0x5af   :  { %v10589_v34 = vpop.eup %10588  ;;  %v1734_v55 = vpop.permute.xlu1 %1733  ;;  %1704 = vadd.xlane.f32.xlu1 %v1703_v47  ;;  %9492 = vmatpush3.bf16.msra.mxu1 %v1736_v53 }
 0x5b0   :  { %10600 = vpow2.f32 %v1691_v25  ;;  %9493 = vmatprep.subr.bf16.mxu1 %v1734_v55  ;;  %v1697_v3 = vsel %vm643_vm9, %v10589_v34, 0.0 }
 0x5b3   :  { %v10591_v51 = vpop.eup %10590  ;;  %1698 = vadd.xlane.f32.xlu1 %v1697_v3  ;;  %9494 = vmatpush3.bf16.msra.mxu1 %v1734_v55 }
 0x5b4   :  { %v10593_v44 = vpop.eup %10592  ;;  %v1730_v12 = vpack.c.bf16 %v10591_v51, %v10587_v45  ;;  %v1706_v15 = vsel %vm643_vm9, %v10591_v51, 0.0 }
 0x5b5   :  { %1707 = vadd.xlane.f32.xlu0 %v1706_v15  ;;  %v1729_v13 = vpack.c.bf16 %v10593_v44, %v10589_v34  ;;  %v1700_v62 = vsel %vm643_vm9, %v10593_v44, 0.0 }
 0x5b7   :  { %v10595_v42 = vpop.eup %10594  ;;  %9495 = vmatprep.mubr.msk.bf16.mxu1 %vm643_vm9, %v1729_v13 }
 0x5b8   :  { %9496 = vmatmul.mubr.msk.bf16.vlgmr.msra.gmra.mxu1 %vm643_vm9, %v1730_v12  ;;  %v1715_v19 = vsel %vm643_vm9, %v10595_v42, 0.0 }
 0x5b9   :  { %v10597_v9 = vpop.eup %10596  ;;  %1701 = vadd.xlane.f32.xlu0 %v1700_v62  ;;  %1716 = vadd.xlane.f32.xlu1 %v1715_v19 }
 0x5ba   :  { %v1718_v54 = vsel %vm643_vm9, %v10597_v9, 0.0  ;;  %v1732_v57 = vpack.c.bf16 %v10597_v9, %v10595_v42 }
 0x5bb   :  { %v10599_v23 = vpop.eup %10598 }
 0x5bc   :  { %v1709_v56 = vsel %vm643_vm9, %v10599_v23, 0.0 }
 0x5bd   :  { %v10601_v33 = vpop.eup %10600  ;;  %1719 = vadd.xlane.f32.xlu0 %v1718_v54  ;;  %1710 = vadd.xlane.f32.xlu1 %v1709_v56 }
 0x5be   :  { %v1731_v58 = vpack.c.bf16 %v10601_v33, %v10599_v23  ;;  %v1712_v24 = vsel %vm643_vm9, %v10601_v33, 0.0 }
 0x5c0   :  { %9499 = vmatprep.mubr.msk.bf16.mxu1 %vm643_vm9, %v1731_v58 }
 0x5c1   :  { %1713 = vadd.xlane.f32.xlu0 %v1712_v24  ;;  %699 = vadd.xlane.f32.xlu1 %v698_v63 }
 0x5c2   :  { %9500 = vmatmul.mubr.msk.bf16.gmra.mxu1 %vm643_vm9, %v1732_v57 }
 0x5c5   :  { %696 = vadd.xlane.f32.xlu0 %v695_v6  ;;  %705 = vadd.xlane.f32.xlu1 %v704_v30 }
 0x5c9   :  { %702 = vadd.xlane.f32.xlu0 %v701_v22  ;;  %711 = vadd.xlane.f32.xlu1 %v710_v39 }
 0x5cd   :  { %708 = vadd.xlane.f32.xlu0 %v707_v10 }
 0x5d1   :  { %714 = vadd.xlane.f32.xlu0 %v713_v35 }
 0x5de   :  { %v1013_v20 = vpop.xlane.xlu0 %1012 }
 0x5df   :  { %10602 = vrcp.f32 %v1013_v20 }
 0x5e0   :  { %v1016_v61 = vpop.xlane.xlu1 %1015 }
 0x5e1   :  { %10604 = vrcp.f32 %v1016_v61 }
 0x5e2   :  { %v1019_v16 = vpop.xlane.xlu0 %1018 }
 0x5e3   :  { %10606 = vrcp.f32 %v1019_v16 }
 0x5e4   :  { %v1356_v21 = vpop.xlane.xlu1 %1355 }
 0x5e5   :  { %10608 = vrcp.f32 %v1356_v21 }
 0x5e6   :  { %v1022_v0 = vpop.xlane.xlu0 %1021 }
 0x5e7   :  { %10610 = vrcp.f32 %v1022_v0 }
 0x5e8   :  { %v1362_v43 = vpop.xlane.xlu1 %1361 }
 0x5e9   :  { %10612 = vrcp.f32 %v1362_v43 }
 0x5ea   :  { %v1359_v48 = vpop.xlane.xlu0 %1358 }
 0x5eb   :  { %10614 = vrcp.f32 %v1359_v48 }
 0x5ec   :  { %v10603_v36 = vpop.eup %10602  ;;  %v1025_v4 = vpop.xlane.xlu1 %1024 }
 0x5ed   :  { %10616 = vrcp.f32 %v1025_v4  ;;  %v1139_v1 = vmul.f32 %v10603_v36, %v11923_v28 }
 0x5ee   :  { %v10605_v45 = vpop.eup %10604  ;;  %v1365_v53 = vpop.xlane.xlu0 %1364 }
 0x5ef   :  { %10618 = vrcp.f32 %v1365_v53  ;;  %1155 = vrot.lane.b32.xlu1 %v1139_v1, %s11205_s25  ;;  %v1140_v25 = vmul.f32 %v10605_v45, %v11927_v49 }
 0x5f0   :  { %v10607_v47 = vpop.eup %10606  ;;  %v1031_v34 = vpop.xlane.xlu1 %1030 }
 0x5f1   :  { %10620 = vrcp.f32 %v1031_v34  ;;  %1157 = vrot.lane.b32.xlu0 %v1140_v25, %s11205_s25  ;;  %v1141_v55 = vmul.f32 %v10607_v47, %v11921_v26 }
 0x5f2   :  { %v10609_v3 = vpop.eup %10608  ;;  %v1028_v51 = vpop.xlane.xlu0 %1027 }
 0x5f3   :  { %10622 = vrcp.f32 %v1028_v51  ;;  %1159 = vrot.lane.b32.xlu1 %v1141_v55, %s11205_s25  ;;  %v1482_v28 = vmul.f32 %v10609_v3, %v11939_v32  ;;  %v15722_v55 = vld [vmem:[#allocation16_spill] sm:$0xff] }
 0x5f4   :  { %v10611_v44 = vpop.eup %10610  ;;  %v1368_v12 = vpop.xlane.xlu1 %1367 }
 0x5f5   :  { %10624 = vrcp.f32 %v1368_v12  ;;  %1498 = vrot.lane.b32.xlu0 %v1482_v28, %s11206_s26  ;;  %v1142_v49 = vmul.f32 %v10611_v44, %v11925_v27  ;;  %v15723_v28 = vld [vmem:[#allocation12_spill] sm:$0xff] }
 0x5f6   :  { %v10613_v15 = vpop.eup %10612  ;;  %v1034_v13 = vpop.xlane.xlu0 %1033 }
 0x5f7   :  { %10626 = vrcp.f32 %v1034_v13  ;;  %1161 = vrot.lane.b32.xlu1 %v1142_v49, %s11205_s25  ;;  %v1484_v26 = vmul.f32 %v10613_v15, %v11937_v5  ;;  %v15725_v13 = vld [vmem:[#allocation28_spill] sm:$0xff] }
 0x5f8   :  { %v10615_v42 = vpop.eup %10614  ;;  %v12076_v62 = vpop.xlane.xlu1 %1373 }
 0x5f9   :  { %1502 = vrot.lane.b32.xlu0 %v1484_v26, %s11206_s26  ;;  %v1483_v32 = vmul.f32 %v10615_v42, %v11943_v2  ;;  %v15726_v42 = vld [vmem:[#allocation18_spill] sm:$0xff] }
 0x5fa   :  { %v10617_v19 = vpop.eup %10616  ;;  %v1371_v9 = vpop.xlane.xlu0 %1370 }
 0x5fb   :  { %10628 = vrcp.f32 %v1371_v9  ;;  %1500 = vrot.lane.b32.xlu1 %v1483_v32, %s11206_s26  ;;  %v1143_v27 = vmul.f32 %v10617_v19, %v11931_v14  ;;  %v15727_v9 = vld [vmem:[#allocation10_spill] sm:$0xff] }
 0x5fc   :  { %v10619_v23 = vpop.eup %10618  ;;  %v694_v54 = vpop.xlane.xlu1 %693 }
 0x5fd   :  { %10630 = vrcp.f32 %v694_v54  ;;  %1163 = vrot.lane.b32.xlu0 %v1143_v27, %s11205_s25  ;;  %v1485_v5 = vmul.f32 %v10619_v23, %v11941_v59  ;;  %v15728_v54 = vld [vmem:[#allocation31_spill] sm:$0xff] }
 0x5fe   :  { %v10621_v56 = vpop.eup %10620  ;;  %v12100_v22 = vpop.xlane.xlu0 %1376 }
 0x5ff   :  { %1504 = vrot.lane.b32.xlu1 %v1485_v5, %s11206_s26  ;;  %v1145_v33 = vmul.f32 %v10621_v56, %v11929_v8 }
 0x600   :  { %v10623_v2 = vpop.eup %10622 }
 0x601   :  { %1167 = vrot.lane.b32.xlu0 %v1145_v33, %s11205_s25  ;;  %v1144_v58 = vmul.f32 %v10623_v2, %v11935_v52  ;;  %v15729_v2 = vld [vmem:[#allocation17_spill] sm:$0xff] }
 0x602   :  { %v10625_v24 = vpop.eup %10624 }
 0x603   :  { %1165 = vrot.lane.b32.xlu1 %v1144_v58, %s11205_s25  ;;  %v1486_v14 = vmul.f32 %v10625_v24, %v11947_v29 }
 0x604   :  { %v10627_v63 = vpop.eup %10626 }
 0x605   :  { %1506 = vrot.lane.b32.xlu0 %v1486_v14, %s11206_s26  ;;  %v1146_v59 = vmul.f32 %v10627_v63, %v11933_v46 }
 0x607   :  { %1169 = vrot.lane.b32.xlu1 %v1146_v59, %s11205_s25  ;;  %v15730_v59 = vld [vmem:[#allocation30_spill] sm:$0xff] }
 0x608   :  { %v10629_v57 = vpop.eup %10628 }
 0x609   :  { %v1487_v8 = vmul.f32 %v10629_v57, %v11951_v50 }
 0x60a   :  { %v10631_v6 = vpop.eup %10630 }
 0x60b   :  { %v825_v30 = vmul.f32 %v10631_v6, %v11907_v60  ;;  %1508 = vrot.lane.b32.xlu1 %v1487_v8, %s11206_s26 }
 0x60d   :  { %v833_v52 = vadd.f32 %v825_v30, %v11336_v41  ;;  %v15731_v30 = vld [vmem:[#allocation19_spill] sm:$0xff] }
 0x60f   :  { %841 = vst.msk [vmem:[#allocation2] sm:$0xff] %vm550_vm5, %v833_v52 }
 0x638   :  { %v12098_v29 = vpop.xlane.xlu1 %1704 }
 0x63c   :  { %v12102_v39 = vpop.xlane.xlu1 %1698 }
 0x63e   :  { %v12104_v46 = vpop.xlane.xlu0 %1707 }
 0x642   :  { %v12106_v10 = vpop.xlane.xlu1 %1716  ;;  %v12108_v50 = vpop.xlane.xlu0 %1701 }
 0x646   :  { %v12110_v35 = vpop.xlane.xlu1 %1710  ;;  %v12112_v60 = vpop.xlane.xlu0 %1719 }
 0x64a   :  { %v700_v20 = vpop.xlane.xlu1 %699  ;;  %v12114_v61 = vpop.xlane.xlu0 %1713 }
 0x64b   :  { %10632 = vrcp.f32 %v700_v20 }
 0x64e   :  { %v706_v16 = vpop.xlane.xlu1 %705  ;;  %v697_v21 = vpop.xlane.xlu0 %696 }
 0x64f   :  { %10634 = vrcp.f32 %v706_v16 }
 0x650   :  { %10636 = vrcp.f32 %v697_v21 }
 0x652   :  { %v712_v0 = vpop.xlane.xlu1 %711  ;;  %v703_v43 = vpop.xlane.xlu0 %702 }
 0x653   :  { %10638 = vrcp.f32 %v712_v0 }
 0x654   :  { %10640 = vrcp.f32 %v703_v43 }
 0x656   :  { %v709_v48 = vpop.xlane.xlu0 %708 }
 0x657   :  { %10642 = vrcp.f32 %v709_v48 }
 0x658   :  { %v10633_v36 = vpop.eup %10632 }
 0x659   :  { %v827_v4 = vmul.f32 %v10633_v36, %v11905_v40  ;;  %v15724_v40 = vld [vmem:[#allocation29_spill] sm:$0xff] }
 0x65a   :  { %v715_v1 = vpop.xlane.xlu0 %714 }
 0x65b   :  { %v835_v45 = vadd.f32 %v827_v4, %v11332_v37  ;;  %10644 = vrcp.f32 %v715_v1 }
 0x65c   :  { %v10635_v53 = vpop.eup %10634  ;;  %10646 = vrcp.f32 %v12098_v29 }
 0x65d   :  { %v10637_v25 = vpop.eup %10636  ;;  %843 = vst.msk [vmem:[#allocation2 + $0x10] sm:$0xff] %vm550_vm5, %v835_v45  ;;  %v829_v47 = vmul.f32 %v10635_v53, %v11915_v11  ;;  %10648 = vrcp.f32 %v12102_v39 }
 0x65e   :  { %v826_v34 = vmul.f32 %v10637_v25, %v11911_v18  ;;  %10650 = vrcp.f32 %v12104_v46 }
 0x65f   :  { %v837_v3 = vadd.f32 %v829_v47, %v15722_v55  ;;  %10652 = vrcp.f32 %v12076_v62 }
 0x660   :  { %v10639_v51 = vpop.eup %10638  ;;  %v834_v44 = vadd.f32 %v826_v34, %v15723_v28  ;;  %10654 = vrcp.f32 %v12108_v50 }
 0x661   :  { %v10641_v12 = vpop.eup %10640  ;;  %845 = vst.msk [vmem:[#allocation2 + $0x20] sm:$0xff] %vm550_vm5, %v837_v3  ;;  %v831_v49 = vmul.f32 %v10639_v51, %v15724_v40  ;;  %v1156_v15 = vpop.permute.xlu1 %1155  ;;  %10656 = vrcp.f32 %v12100_v22  ;;  %v10506_v3 = vld [vmem:[#allocation3 + $0x48] sm:$0xff]  }
 0x662   :  { %842 = vst.msk [vmem:[#allocation2 + $0x8] sm:$0xff] %vm550_vm5, %v834_v44  ;;  %v828_v26 = vmul.f32 %v10641_v12, %v15725_v13  ;;  %v1179_v11 = vadd.f32 %v1156_v15, %v11336_v41  ;;  %10658 = vrcp.f32 %v12110_v35  ;;  %9503 = vmatprep.subr.bf16.mxu1 %v10506_v3 }
 0x663   :  { %v839_v18 = vadd.f32 %v831_v49, %v15726_v42  ;;  %v1158_v32 = vpop.permute.xlu0 %1157  ;;  %10660 = vrcp.f32 %v12106_v10  ;;  %9504 = vmatpush3.bf16.msra.mxu1 %v10506_v3 }
 0x664   :  { %v10643_v19 = vpop.eup %10642  ;;  %v836_v27 = vadd.f32 %v828_v26, %v15727_v9  ;;  %1188 = vst.msk [vmem:[#allocation2] sm:$0xff] %vm1187_vm15, %v1179_v11  ;;  %v1180_v23 = vadd.f32 %v1158_v32, %v15723_v28  ;;  %10662 = vrcp.f32 %v12114_v61  ;;  %v10507_v26 = vld [vmem:[#allocation3 + $0x40] sm:$0xff]  }
 0x665   :  { %847 = vst.msk [vmem:[#allocation2 + $0x30] sm:$0xff] %vm550_vm5, %v839_v18  ;;  %v830_v5 = vmul.f32 %v10643_v19, %v15728_v54  ;;  %v1160_v56 = vpop.permute.xlu1 %1159  ;;  %10664 = vrcp.f32 %v12112_v60  ;;  %9505 = vmatprep.subr.bf16.mxu1 %v10507_v26  ;;  %v15732_v18 = vld [vmem:[#allocation32_spill] sm:$0xff] }
 0x666   :  { %844 = vst.msk [vmem:[#allocation2 + $0x18] sm:$0xff] %vm550_vm5, %v836_v27  ;;  %v1181_v33 = vadd.f32 %v1160_v56, %v11332_v37  ;;  %v15734_v56 = vld [vmem:[#allocation33_spill] sm:$0xff] }
 0x667   :  { %1189 = vst.msk [vmem:[#allocation2 + $0x8] sm:$0xff] %vm1187_vm15, %v1180_v23  ;;  %v838_v58 = vadd.f32 %v830_v5, %v15729_v2  ;;  %v1499_v24 = vpop.permute.xlu0 %1498  ;;  %9506 = vmatpush3.bf16.msra.mxu1 %v10507_v26  ;;  %v15733_v23 = vmov 0.0   ;;  %v10510_v26 = vld [vmem:[#allocation3 + $0x58] sm:$0xff]  }
 0x668   :  { %v10645_v14 = vpop.eup %10644  ;;  %1190 = vst.msk [vmem:[#allocation2 + $0x10] sm:$0xff] %vm1187_vm15, %v1181_v33  ;;  %v1522_v63 = vadd.f32 %v1499_v24, %v11336_v41  ;;  %9515 = vmatprep.subr.bf16.mxu1 %v15733_v23 }
 0x669   :  { %846 = vst.msk [vmem:[#allocation2 + $0x28] sm:$0xff] %vm550_vm5, %v838_v58  ;;  %v832_v57 = vmul.f32 %v10645_v14, %v15730_v59  ;;  %v1162_v8 = vpop.permute.xlu1 %1161  ;;  %v10647_v45 = vpop.eup %10646 }
 0x66a   :  { %1531 = vst.msk [vmem:[#allocation2] sm:$0xff] %vm1530_vm1, %v1522_v63  ;;  %v1182_v6 = vadd.f32 %v1162_v8, %v15727_v9  ;;  %v10649_v51 = vpop.eup %10648 }
 0x66b   :  { %v840_v52 = vadd.f32 %v832_v57, %v15731_v30  ;;  %v1503_v20 = vpop.permute.xlu0 %1502  ;;  %v10651_v35 = vpop.eup %10650 }
 0x66c   :  { %1191 = vst.msk [vmem:[#allocation2 + $0x18] sm:$0xff] %vm1187_vm15, %v1182_v6  ;;  %v1524_v16 = vadd.f32 %v1503_v20, %v11332_v37  ;;  %v10653_v49 = vpop.eup %10652 }
 0x66d   :  { %848 = vst.msk [vmem:[#allocation2 + $0x38] sm:$0xff] %vm550_vm5, %v840_v52  ;;  %v1501_v21 = vpop.permute.xlu1 %1500  ;;  %v10655_v61 = vpop.eup %10654  ;;  %v1488_v32 = vmul.f32 %v10653_v49, %v15732_v18  ;;  %v15738_v49 = vld [vmem:[#allocation14_spill] sm:$0xff] }
 0x66e   :  { %1533 = vst.msk [vmem:[#allocation2 + $0x10] sm:$0xff] %vm1530_vm1, %v1524_v16  ;;  %v1523_v0 = vadd.f32 %v1501_v21, %v15723_v28  ;;  %v10657_v19 = vpop.eup %10656 }
 0x66f   :  { %v1164_v43 = vpop.permute.xlu0 %1163  ;;  %v10659_v60 = vpop.eup %10658  ;;  %v1489_v33 = vmul.f32 %v10657_v19, %v15734_v56 }
 0x670   :  { %1532 = vst.msk [vmem:[#allocation2 + $0x8] sm:$0xff] %vm1530_vm1, %v1523_v0  ;;  %v1183_v29 = vadd.f32 %v1164_v43, %v15722_v55  ;;  %v10661_v24 = vpop.eup %10660 }
 0x671   :  { %v1505_v48 = vpop.permute.xlu1 %1504  ;;  %v10663_v14 = vpop.eup %10662 }
 0x672   :  { %1192 = vst.msk [vmem:[#allocation2 + $0x20] sm:$0xff] %vm1187_vm15, %v1183_v29  ;;  %v1525_v36 = vadd.f32 %v1505_v48, %v15727_v9  ;;  %v10665_v8 = vpop.eup %10664 }
 0x673   :  { %v1168_v39 = vpop.permute.xlu0 %1167 }
 0x674   :  { %1534 = vst.msk [vmem:[#allocation2 + $0x18] sm:$0xff] %vm1530_vm1, %v1525_v36  ;;  %v1185_v4 = vadd.f32 %v1168_v39, %v15726_v42 }
 0x675   :  { %v1166_v46 = vpop.permute.xlu1 %1165 }
 0x676   :  { %1194 = vst.msk [vmem:[#allocation2 + $0x30] sm:$0xff] %vm1187_vm15, %v1185_v4  ;;  %v1184_v1 = vadd.f32 %v1166_v46, %v15729_v2 }
 0x677   :  { %v1507_v62 = vpop.permute.xlu0 %1506 }
 0x678   :  { %1193 = vst.msk [vmem:[#allocation2 + $0x28] sm:$0xff] %vm1187_vm15, %v1184_v1  ;;  %v9497_v53 = vpop.f32.mrf.mxu1  ;;  %v1526_v50 = vadd.f32 %v1507_v62, %v15722_v55 }
 0x679   :  { %v1827_v25 = vmul.f32 %v10647_v45, %v9497_v53  ;;  %v1170_v47 = vpop.permute.xlu1 %1169 }
 0x67a   :  { %1535 = vst.msk [vmem:[#allocation2 + $0x20] sm:$0xff] %vm1530_vm1, %v1526_v50  ;;  %v1794_v22 = vpop.f32.mrf.mxu1  ;;  %v1186_v34 = vadd.f32 %v1170_v47, %v15731_v30 }
 0x67b   :  { %1845 = vrot.lane.b32.xlu0 %v1827_v25, %s11207_s27  ;;  %v1825_v12 = vmul.f32 %v10649_v51, %v1794_v22 }
 0x67c   :  { %1195 = vst.msk [vmem:[#allocation2 + $0x38] sm:$0xff] %vm1187_vm15, %v1186_v34  ;;  %v9498_v44 = vpop.f32.mrf.mxu1 }
 0x67d   :  { %v1828_v40 = vmul.f32 %v10651_v35, %v9498_v44  ;;  %v1509_v10 = vpop.permute.xlu1 %1508 }
 0x67e   :  { %v1797_v15 = vpop.f32.mrf.mxu1  ;;  %v1527_v13 = vadd.f32 %v1509_v10, %v15729_v2  ;;  %v15737_v10 = vld [vmem:[#allocation13_spill] sm:$0xff] }
 0x67f   :  { %1841 = vrot.lane.b32.xlu0 %v1825_v12, %s11207_s27  ;;  %1847 = vrot.lane.b32.xlu1 %v1828_v40, %s11207_s27  ;;  %v1826_v11 = vmul.f32 %v10655_v61, %v1797_v15  ;;  %v15736_v40 = vld [vmem:[#allocation11_spill] sm:$0xff] }
 0x680   :  { %1536 = vst.msk [vmem:[#allocation2 + $0x28] sm:$0xff] %vm1530_vm1, %v1527_v13  ;;  %v15739_v15 = vld [vmem:[#allocation15_spill] sm:$0xff]  ;;  %v10509_v13 = vld [vmem:[#allocation3 + $0x60] sm:$0xff]  }
 0x681   :  { %9537 = vmatprep.subr.bf16.mxu0 %v10509_v13 }
 0x682   :  { %v9501_v27 = vpop.f32.mrf.mxu1  ;;  %9538 = vmatpush3.bf16.msra.mxu0 %v10509_v13 }
 0x683   :  { %1510 = vrot.lane.b32.xlu0 %v1488_v32, %s11206_s26  ;;  %1843 = vrot.lane.b32.xlu1 %v1826_v11, %s11207_s27  ;;  %v1831_v59 = vmul.f32 %v10661_v24, %v9501_v27  ;;  %v8625_v11 = vld [vmem:[%s15595_s9 + $0x3] ss:$0 sm:$0xff] }
 0x684   :  { %v1810_v54 = vpop.f32.mrf.mxu1  ;;  %9539 = vmatprep.subr.bf16.mxu0 %v10510_v26 }
 0x685   :  { %v1829_v5 = vmul.f32 %v10659_v60, %v1810_v54 }
 0x686   :  { %v9502_v58 = vpop.f32.mrf.mxu1  ;;  %9540 = vmatpush3.bf16.msra.mxu0 %v10510_v26 }
 0x687   :  { %1849 = vrot.lane.b32.xlu0 %v1829_v5, %s11207_s27  ;;  %1512 = vrot.lane.b32.xlu1 %v1489_v33, %s11206_s26  ;;  %v1832_v6 = vmul.f32 %v10665_v8, %v9502_v58 }
 0x688   :  { %v1813_v63 = vpop.f32.mrf.mxu1  ;;  %9549 = vmatprep.subr.bf16.mxu0 %v15733_v23 }
 0x689   :  { %v1830_v57 = vmul.f32 %v10663_v14, %v1813_v63 }
 0x68b   :  { %1853 = vrot.lane.b32.xlu0 %v1831_v59, %s11207_s27  ;;  %1851 = vrot.lane.b32.xlu1 %v1830_v57, %s11207_s27 }
 0x68f   :  { %1855 = vrot.lane.b32.xlu1 %v1832_v6, %s11207_s27 }
 0x6ed   :  { %v1846_v52 = vpop.permute.xlu0 %1845 }
 0x6ee   :  { %v1867_v20 = vadd.f32 %v1846_v52, %v11332_v37 }
 0x6f0   :  { %1876 = vst.msk [vmem:[#allocation2 + $0x10] sm:$0xff] %vm1873_vm2, %v1867_v20 }
 0x6f1   :  { %v1848_v16 = vpop.permute.xlu1 %1847  ;;  %v1842_v21 = vpop.permute.xlu0 %1841 }
 0x6f2   :  { %v1868_v0 = vadd.f32 %v1848_v16, %v15727_v9  ;;  %v1865_v43 = vadd.f32 %v1842_v21, %v11336_v41 }
 0x6f4   :  { %1877 = vst.msk [vmem:[#allocation2 + $0x18] sm:$0xff] %vm1873_vm2, %v1868_v0  ;;  %1874 = vst.msk [vmem:[#allocation2] sm:$0xff] %vm1873_vm2, %v1865_v43 }
 0x6f5   :  { %v1844_v29 = vpop.permute.xlu1 %1843  ;;  %v1511_v48 = vpop.permute.xlu0 %1510 }
 0x6f6   :  { %v1866_v36 = vadd.f32 %v1844_v29, %v15723_v28  ;;  %v1528_v39 = vadd.f32 %v1511_v48, %v15726_v42 }
 0x6f7   :  { %v1884_v47 = vld [vmem:[#allocation2 + $0x10] sm:$0xff] }
 0x6f8   :  { %1875 = vst.msk [vmem:[#allocation2 + $0x8] sm:$0xff] %vm1873_vm2, %v1866_v36 }
 0x6f9   :  { %1537 = vst.msk [vmem:[#allocation2 + $0x30] sm:$0xff] %vm1530_vm1, %v1528_v39  ;;  %v1513_v37 = vpop.permute.xlu1 %1512  ;;  %v1850_v4 = vpop.permute.xlu0 %1849 }
 0x6fa   :  { %v1529_v9 = vadd.f32 %v1513_v37, %v15731_v30  ;;  %v1869_v41 = vadd.f32 %v1850_v4, %v15722_v55  ;;  %v10508_v55 = vld [vmem:[#allocation3 + $0x50] sm:$0xff]  }
 0x6fb   :  { %v1885_v45 = vld [vmem:[#allocation2 + $0x18] sm:$0xff]  ;;  %v1882_v53 = vld [vmem:[#allocation2] sm:$0xff] }
 0x6fc   :  { %1538 = vst.msk [vmem:[#allocation2 + $0x38] sm:$0xff] %vm1530_vm1, %v1529_v9  ;;  %v1891_v34 = vpack.c.bf16 %v1885_v45, %v1884_v47 }
 0x6fd   :  { %1878 = vst.msk [vmem:[#allocation2 + $0x20] sm:$0xff] %vm1873_vm2, %v1869_v41  ;;  %v1852_v46 = vpop.permute.xlu1 %1851  ;;  %v1854_v1 = vpop.permute.xlu0 %1853 }
 0x6fe   :  { %v1870_v28 = vadd.f32 %v1852_v46, %v15729_v2  ;;  %v1871_v62 = vadd.f32 %v1854_v1, %v15726_v42 }
 0x6ff   :  { %v1883_v50 = vld [vmem:[#allocation2 + $0x8] sm:$0xff] }
 0x700   :  { %1879 = vst.msk [vmem:[#allocation2 + $0x28] sm:$0xff] %vm1873_vm2, %v1870_v28  ;;  %1880 = vst.msk [vmem:[#allocation2 + $0x30] sm:$0xff] %vm1873_vm2, %v1871_v62  ;;  %v1890_v25 = vpack.c.bf16 %v1883_v50, %v1882_v53 }
 0x701   :  { %v1856_v22 = vpop.permute.xlu1 %1855 }
 0x702   :  { %v1872_v3 = vadd.f32 %v1856_v22, %v15731_v30  ;;  %9507 = vmatprep.mubr.msk.bf16.mxu1 %vm286_vm3, %v1890_v25  ;;  %v15735_v30 = vld [vmem:[#allocation9_spill] sm:$0xff] }
 0x703   :  { %9508 = vmatmul.mubr.msk.bf16.vlgmr.msra.gmra.mxu1 %vm286_vm3, %v1891_v34 }
 0x704   :  { %1881 = vst.msk [vmem:[#allocation2 + $0x38] sm:$0xff] %vm1873_vm2, %v1872_v3  ;;  %9516 = vmatpush3.bf16.msra.mxu1 %v10508_v55  ;;  %v1886_v42 = vld [vmem:[#allocation2 + $0x20] sm:$0xff] }
 0x705   :  { %9577 = vmatprep.subr.bf16.mxu1 %v15733_v23 }
 0x707   :  { %v1887_v2 = vld [vmem:[#allocation2 + $0x28] sm:$0xff]  ;;  %v1888_v35 = vld [vmem:[#allocation2 + $0x30] sm:$0xff] }
 0x708   :  { %v1892_v51 = vpack.c.bf16 %v1887_v2, %v1886_v42 }
 0x70a   :  { %9511 = vmatprep.mubr.msk.bf16.mxu1 %vm286_vm3, %v1892_v51 }
 0x70b   :  { %v1889_v44 = vld [vmem:[#allocation2 + $0x38] sm:$0xff] }
 0x70c   :  { %v1893_v12 = vpack.c.bf16 %v1889_v44, %v1888_v35 }
 0x70e   :  { %9512 = vmatmul.mubr.msk.bf16.gmra.mxu1 %vm286_vm3, %v1893_v12 }
 0x70f   :  { %9517 = vmatprep.mubr.msk.bf16.mxu1 %vm11195_vm0, %v15733_v23 }
 0x716   :  { %9518 = vmatmul.mubr.msk.bf16.vlgmr.msra.gmra.mxu1 %vm382_vm4, %v15735_v30 }
 0x717   :  { %9521 = vmatprep.mubr.msk.bf16.mxu1 %vm11195_vm0, %v15733_v23 }
 0x71e   :  { %9522 = vmatmul.mubr.msk.bf16.gmra.mxu1 %vm382_vm4, %v15736_v40 }
 0x71f   :  { %9525 = vmatprep.mubr.msk.bf16.mxu1 %vm11195_vm0, %v15733_v23 }
 0x726   :  { %9526 = vmatmul.mubr.msk.bf16.gmra.mxu1 %vm382_vm4, %v15737_v10 }
 0x727   :  { %9529 = vmatprep.mubr.msk.bf16.mxu1 %vm11195_vm0, %v15733_v23 }
 0x72e   :  { %9530 = vmatmul.mubr.msk.bf16.gmra.mxu1 %vm382_vm4, %v15738_v49 }
 0x72f   :  { %9533 = vmatprep.mubr.msk.bf16.mxu1 %vm11195_vm0, %v15733_v23 }
 0x736   :  { %9534 = vmatmul.mubr.msk.bf16.gmra.mxu1 %vm382_vm4, %v15739_v15 }
 0x737   :  { %9585 = vmatprep.mubr.msk.bf16.mxu1 %vm11195_vm0, %v15733_v23 }
 0x7c3   :  { %v9509_v61 = vpop.f32.mrf.mxu1 }
 0x7c4   :  { %v1970_v19 = vadd.f32 %v9509_v61, %v8625_v11 }
 0x7c5   :  { %v1961_v18 = vpop.f32.mrf.mxu1 }
 0x7c6   :  { %v1962_v32 = vadd.f32 %v8625_v11, %v1961_v18  ;;  %v1994_v58 = vmax.f32 %v1970_v19, 0.0  ;;  %v8639_v19 = vld [vmem:[%s15595_s9 + $0x5] ss:$0 sm:$0xff] }
 0x7c7   :  { %v9510_v27 = vpop.f32.mrf.mxu1 }
 0x7c8   :  { %v1973_v60 = vadd.f32 %v9510_v27, %v8625_v11  ;;  %v1992_v5 = vmax.f32 %v1962_v32, 0.0  ;;  %v2002_v8 = vadd.f32 %v1994_v58, %v1884_v47 }
 0x7c9   :  { %v1964_v54 = vpop.f32.mrf.mxu1 }
 0x7ca   :  { %v1995_v56 = vmax.f32 %v1973_v60, 0.0  ;;  %v1965_v33 = vadd.f32 %v8625_v11, %v1964_v54  ;;  %v2000_v63 = vadd.f32 %v1992_v5, %v1882_v53  ;;  %v8632_v60 = vld [vmem:[%s15595_s9 + $0x4] ss:$0 sm:$0xff] }
 0x7cc   :  { %v1993_v24 = vmax.f32 %v1965_v33, 0.0  ;;  %v2003_v14 = vadd.f32 %v1995_v56, %v1885_v45 }
 0x7ce   :  { %v2001_v59 = vadd.f32 %v1993_v24, %v1883_v50  ;;  %v9513_v57 = vpop.f32.mrf.mxu1  ;;  %v2095_v20 = vpack.c.bf16 %v2003_v14, %v2002_v8 }
 0x7cf   :  { %v1986_v21 = vadd.f32 %v9513_v57, %v8625_v11 }
 0x7d0   :  { %v2094_v6 = vpack.c.bf16 %v2001_v59, %v2000_v63  ;;  %v1977_v52 = vpop.f32.mrf.mxu1 }
 0x7d1   :  { %v1978_v16 = vadd.f32 %v8625_v11, %v1977_v52  ;;  %v1998_v37 = vmax.f32 %v1986_v21, 0.0 }
 0x7d2   :  { %v9514_v0 = vpop.f32.mrf.mxu1  ;;  %9541 = vmatprep.mubr.msk.bf16.mxu0 %vm286_vm3, %v2094_v6 }
 0x7d3   :  { %v1989_v43 = vadd.f32 %v9514_v0, %v8625_v11  ;;  %9542 = vmatmul.mubr.msk.bf16.vlgmr.msra.gmra.mxu0 %vm286_vm3, %v2095_v20  ;;  %v1996_v48 = vmax.f32 %v1978_v16, 0.0  ;;  %v2006_v62 = vadd.f32 %v1998_v37, %v1888_v35 }
 0x7d4   :  { %v1980_v29 = vpop.f32.mrf.mxu1 }
 0x7d5   :  { %v1999_v36 = vmax.f32 %v1989_v43, 0.0  ;;  %v1981_v39 = vadd.f32 %v8625_v11, %v1980_v29  ;;  %v2004_v1 = vadd.f32 %v1996_v48, %v1886_v42 }
 0x7d6   :  { %v2055_v4 = vpop.f32.mrf.mxu1 }
 0x7d7   :  { %v1997_v9 = vmax.f32 %v1981_v39, 0.0  ;;  %v2007_v41 = vadd.f32 %v1999_v36, %v1889_v44  ;;  %v12255_v59 = vadd.f32 %v8632_v60, %v2055_v4 }
 0x7d8   :  { %v9519_v46 = vpop.f32.mrf.mxu1 }
 0x7d9   :  { %v2005_v28 = vadd.f32 %v1997_v9, %v1887_v2  ;;  %v2097_v50 = vpack.c.bf16 %v2007_v41, %v2006_v62  ;;  %v2196_v36 = vmul.f32 0.17677669, %v12255_v59 }
 0x7da   :  { %v2058_v45 = vpop.f32.mrf.mxu1 }
 0x7db   :  { %v2096_v53 = vpack.c.bf16 %v2005_v28, %v2004_v1  ;;  %v12251_v56 = vadd.f32 %v8632_v60, %v2058_v45 }
 0x7dc   :  { %v9520_v25 = vpop.f32.mrf.mxu1 }
 0x7dd   :  { %9545 = vmatprep.mubr.msk.bf16.mxu0 %vm286_vm3, %v2096_v53  ;;  %v2197_v43 = vmul.f32 0.17677669, %v12251_v56 }
 0x7de   :  { %v2063_v47 = vpop.f32.mrf.mxu1  ;;  %9546 = vmatmul.mubr.msk.bf16.gmra.mxu0 %vm286_vm3, %v2097_v50 }
 0x7df   :  { %9557 = vmatprep.mubr.msk.bf16.mxu0 %vm11195_vm0, %v15733_v23  ;;  %v12265_v16 = vadd.f32 %v8632_v60, %v2063_v47  ;;  %v2282_v4 = vpack.c.bf16 %v2197_v43, %v2196_v36 }
 0x7e0   :  { %v9523_v55 = vpop.f32.mrf.mxu1 }
 0x7e1   :  { %v2198_v9 = vmul.f32 0.17677669, %v12265_v16 }
 0x7e2   :  { %v2066_v22 = vpop.f32.mrf.mxu1 }
 0x7e3   :  { %v12257_v57 = vadd.f32 %v8632_v60, %v2066_v22 }
 0x7e4   :  { %v9524_v34 = vpop.f32.mrf.mxu1 }
 0x7e5   :  { %v2199_v39 = vmul.f32 0.17677669, %v12257_v57 }
 0x7e6   :  { %v2071_v3 = vpop.f32.mrf.mxu1 }
 0x7e7   :  { %v12281_v37 = vadd.f32 %v8632_v60, %v2071_v3  ;;  %v2283_v1 = vpack.c.bf16 %v2199_v39, %v2198_v9 }
 0x7e8   :  { %v9527_v51 = vpop.f32.mrf.mxu1 }
 0x7e9   :  { %15741 = vst [vmem:[#allocation12_spill] sm:$0xff] %v12281_v37  ;;  %v2200_v45 = vmul.f32 0.17677669, %v12281_v37 }
 0x7ea   :  { %v2074_v42 = vpop.f32.mrf.mxu1 }
 0x7eb   :  { %v12273_v29 = vadd.f32 %v8632_v60, %v2074_v42 }
 0x7ec   :  { %v9528_v2 = vpop.f32.mrf.mxu1 }
 0x7ed   :  { %15740 = vst [vmem:[#allocation16_spill] sm:$0xff] %v12273_v29  ;;  %v2201_v28 = vmul.f32 0.17677669, %v12273_v29 }
 0x7ee   :  { %v2079_v35 = vpop.f32.mrf.mxu1 }
 0x7ef   :  { %v12292_v62 = vadd.f32 %v8632_v60, %v2079_v35  ;;  %v2284_v50 = vpack.c.bf16 %v2201_v28, %v2200_v45  ;;  %v215_v35 = vld [vmem:[%s15589_s3] sm:$0xff] }
 0x7f0   :  { %v9531_v44 = vpop.f32.mrf.mxu1 }
 0x7f1   :  { %15743 = vst [vmem:[#allocation28_spill] sm:$0xff] %v12292_v62  ;;  %v2202_v55 = vmul.f32 0.17677669, %v12292_v62  ;;  %v216_v44 = vld [vmem:[%s15589_s3 + $0x8] sm:$0xff] }
 0x7f2   :  { %v2082_v12 = vpop.f32.mrf.mxu1 }
 0x7f3   :  { %v12286_v41 = vadd.f32 %v8632_v60, %v2082_v12  ;;  %v217_v12 = vld [vmem:[%s15589_s3 + $0x10] sm:$0xff] }
 0x7f4   :  { %v9532_v30 = vpop.f32.mrf.mxu1 }
 0x7f5   :  { %15742 = vst [vmem:[#allocation29_spill] sm:$0xff] %v12286_v41  ;;  %v2203_v25 = vmul.f32 0.17677669, %v12286_v41  ;;  %v218_v30 = vld [vmem:[%s15589_s3 + $0x18] sm:$0xff] }
 0x7f6   :  { %v2087_v40 = vpop.f32.mrf.mxu1 }
 0x7f7   :  { %v12302_v47 = vadd.f32 %v8632_v60, %v2087_v40  ;;  %v2285_v34 = vpack.c.bf16 %v2203_v25, %v2202_v55  ;;  %v219_v40 = vld [vmem:[%s15589_s3 + $0x20] sm:$0xff] }
 0x7f8   :  { %v9535_v10 = vpop.f32.mrf.mxu1 }
 0x7f9   :  { %15745 = vst [vmem:[#allocation10_spill] sm:$0xff] %v12302_v47  ;;  %v2204_v51 = vmul.f32 0.17677669, %v12302_v47  ;;  %v220_v10 = vld [vmem:[%s15589_s3 + $0x28] sm:$0xff] }
 0x7fa   :  { %v2090_v49 = vpop.f32.mrf.mxu1 }
 0x7fb   :  { %v12297_v53 = vadd.f32 %v8632_v60, %v2090_v49  ;;  %v221_v49 = vld [vmem:[%s15589_s3 + $0x30] sm:$0xff] }
 0x7fc   :  { %v9536_v15 = vpop.f32.mrf.mxu1 }
 0x7fd   :  { %15744 = vst [vmem:[#allocation18_spill] sm:$0xff] %v12297_v53  ;;  %v2205_v3 = vmul.f32 0.17677669, %v12297_v53  ;;  %v222_v15 = vld [vmem:[%s15589_s3 + $0x38] sm:$0xff] }
 0x7ff   :  { %v2286_v42 = vpack.c.bf16 %v2205_v3, %v2204_v51 }
 0x893   :  { %v9543_v13 = vpop.f32.mrf.mxu0 }
 0x894   :  { %v2174_v8 = vadd.f32 %v9543_v13, %v8639_v19  ;;  %v223_v13 = vld [vmem:[%s15589_s3 + $0x40] sm:$0xff] }
 0x895   :  { %v2165_v26 = vpop.f32.mrf.mxu0 }
 0x896   :  { %v2166_v21 = vadd.f32 %v8639_v19, %v2165_v26  ;;  %v224_v26 = vld [vmem:[%s15589_s3 + $0x48] sm:$0xff] }
 0x897   :  { %v9544_v61 = vpop.f32.mrf.mxu0 }
 0x898   :  { %v2177_v58 = vadd.f32 %v9544_v61, %v8639_v19 }
 0x899   :  { %v2168_v11 = vpop.f32.mrf.mxu0 }
 0x89a   :  { %v2169_v6 = vadd.f32 %v8639_v19, %v2168_v11  ;;  %v12267_v0 = vpack.c.bf16 %v2177_v58, %v2174_v8 }
 0x89c   :  { %v12275_v48 = vpack.c.bf16 %v2169_v6, %v2166_v21  ;;  %v2310_v22 = vsel %vm550_vm5, %v12267_v0, 0 }
 0x89e   :  { %v9547_v18 = vpop.f32.mrf.mxu0  ;;  %v2307_v2 = vsel %vm550_vm5, %v12275_v48, 0 }
 0x89f   :  { %v2190_v54 = vadd.f32 %v9547_v18, %v8639_v19 }
 0x8a0   :  { %v2181_v32 = vpop.f32.mrf.mxu0 }
 0x8a1   :  { %v2182_v24 = vadd.f32 %v8639_v19, %v2181_v32 }
 0x8a2   :  { %v9548_v27 = vpop.f32.mrf.mxu0 }
 0x8a3   :  { %v2193_v5 = vadd.f32 %v9548_v27, %v8639_v19 }
 0x8a4   :  { %v2184_v33 = vpop.f32.mrf.mxu0 }
 0x8a5   :  { %v12253_v14 = vpack.c.bf16 %v2193_v5, %v2190_v54  ;;  %v2185_v63 = vadd.f32 %v8639_v19, %v2184_v33 }
 0x8a7   :  { %v12259_v52 = vpack.c.bf16 %v2185_v63, %v2182_v24  ;;  %2652 = vrot.lane.b32.xlu0 %v12253_v14, %s11197_s22  ;;  %v2316_v20 = vsel %vm550_vm5, %v12253_v14, 0 }
 0x8a8   :  { %9550 = vmatpush3.bf16.xpose.msra.mxu0 %v2316_v20 }
 0x8a9   :  { %2650 = vrot.lane.b32.xlu1 %v12259_v52, %s11197_s22  ;;  %9551 = vmatprep.subr.bf16.mxu0 %v15733_v23  ;;  %v2313_v46 = vsel %vm550_vm5, %v12259_v52, 0 }
 0x8ab   :  { %2648 = vrot.lane.b32.xlu0 %v12267_v0, %s11197_s22 }
 0x8ad   :  { %2646 = vrot.lane.b32.xlu1 %v12275_v48, %s11197_s22 }
 0x8af   :  { %2636 = vrot.lane.b32.xlu0 %v2282_v4, %s11197_s22 }
 0x8b0   :  { %9552 = vmatpush3.bf16.xpose.msra.mxu0 %v2313_v46 }
 0x8b1   :  { %2638 = vrot.lane.b32.xlu1 %v2283_v1, %s11197_s22  ;;  %9553 = vmatprep.subr.bf16.mxu0 %v15733_v23 }
 0x8b3   :  { %3045 = vrot.lane.b32.xlu0 %v12253_v14, %s11198_s23 }
 0x8b5   :  { %2640 = vrot.lane.b32.xlu1 %v2284_v50, %s11197_s22 }
 0x8b7   :  { %3043 = vrot.lane.b32.xlu0 %v12259_v52, %s11198_s23 }
 0x8b8   :  { %9554 = vmatpush3.bf16.xpose.msra.mxu0 %v2310_v22 }
 0x8b9   :  { %2642 = vrot.lane.b32.xlu1 %v2285_v34, %s11197_s22  ;;  %9555 = vmatprep.subr.bf16.mxu0 %v15733_v23 }
 0x8bb   :  { %3041 = vrot.lane.b32.xlu0 %v12267_v0, %s11198_s23 }
 0x8bd   :  { %2644 = vrot.lane.b32.xlu1 %v2286_v42, %s11197_s22 }
 0x8bf   :  { %3039 = vrot.lane.b32.xlu0 %v12275_v48, %s11198_s23 }
 0x8c0   :  { %9556 = vmatpush3.bf16.xpose.msra.mxu0 %v2307_v2 }
 0x8c1   :  { %3029 = vrot.lane.b32.xlu1 %v2282_v4, %s11198_s23  ;;  %9605 = vmatprep.subr.bf16.mxu0 %v15733_v23 }
 0x8c3   :  { %3031 = vrot.lane.b32.xlu0 %v2283_v1, %s11198_s23 }
 0x8c5   :  { %3438 = vrot.lane.b32.xlu1 %v12253_v14, %s11203_s8 }
 0x8c7   :  { %3033 = vrot.lane.b32.xlu0 %v2284_v50, %s11198_s23  ;;  %9558 = vmatmul.mubr.msk.bf16.vlgmr.msra.gmra.mxu0 %vm550_vm5, %v2282_v4 }
 0x8c8   :  { %9561 = vmatprep.mubr.msk.bf16.mxu0 %vm11195_vm0, %v15733_v23 }
 0x8c9   :  { %3436 = vrot.lane.b32.xlu1 %v12259_v52, %s11203_s8 }
 0x8cb   :  { %3035 = vrot.lane.b32.xlu0 %v2285_v34, %s11198_s23 }
 0x8cd   :  { %3434 = vrot.lane.b32.xlu1 %v12267_v0, %s11203_s8 }
 0x8cf   :  { %3037 = vrot.lane.b32.xlu0 %v2286_v42, %s11198_s23  ;;  %9562 = vmatmul.mubr.msk.bf16.gmra.mxu0 %vm550_vm5, %v2283_v1 }
 0x8d0   :  { %9565 = vmatprep.mubr.msk.bf16.mxu0 %vm11195_vm0, %v15733_v23 }
 0x8d1   :  { %3432 = vrot.lane.b32.xlu1 %v12275_v48, %s11203_s8 }
 0x8d3   :  { %3422 = vrot.lane.b32.xlu0 %v2282_v4, %s11203_s8 }
 0x8d5   :  { %3424 = vrot.lane.b32.xlu1 %v2283_v1, %s11203_s8 }
 0x8d7   :  { %3426 = vrot.lane.b32.xlu0 %v2284_v50, %s11203_s8  ;;  %9566 = vmatmul.mubr.msk.bf16.gmra.mxu0 %vm550_vm5, %v2284_v50 }
 0x8d8   :  { %9569 = vmatprep.mubr.msk.bf16.mxu0 %vm11195_vm0, %v15733_v23 }
 0x8d9   :  { %3428 = vrot.lane.b32.xlu1 %v2285_v34, %s11203_s8 }
 0x8db   :  { %3430 = vrot.lane.b32.xlu0 %v2286_v42, %s11203_s8 }
 0x8dd   :  { %2208 = vperm.xlu1 %10493, %v215_v35  }
 0x8df   :  { %2213 = vperm.xlu0 %10492, %v216_v44   ;;  %9570 = vmatmul.mubr.msk.bf16.gmra.mxu0 %vm550_vm5, %v2285_v34 }
 0x8e0   :  { %9573 = vmatprep.mubr.msk.bf16.mxu0 %vm11195_vm0, %v15733_v23 }
 0x8e1   :  { %2218 = vperm.xlu1 %10493, %v217_v12  }
 0x8e3   :  { %2223 = vperm.xlu0 %10492, %v218_v30  }
 0x8e5   :  { %2228 = vperm.xlu1 %10493, %v219_v40  }
 0x8e7   :  { %2233 = vperm.xlu0 %10492, %v220_v10   ;;  %9574 = vmatmul.mubr.msk.bf16.gmra.mxu0 %vm550_vm5, %v2286_v42 }
 0x8e8   :  { %9613 = vmatprep.mubr.msk.bf16.mxu0 %vm11195_vm0, %v15733_v23 }
 0x8e9   :  { %2238 = vperm.xlu1 %10493, %v221_v49  }
 0x8eb   :  { %2243 = vperm.xlu0 %10492, %v222_v15  }
 0x8ed   :  { %2248 = vperm.xlu1 %10493, %v223_v13  }
 0x8ef   :  { %2253 = vperm.xlu0 %10492, %v224_v26  }
 0x8f1   :  { %2501 = vrot.lane.b32.xlu1 %v12275_v48, %s11199_s13 }
 0x8f3   :  { %2507 = vrot.lane.b32.xlu0 %v12253_v14, %s11199_s13 }
 0x8f5   :  { %2859 = vrot.lane.b32.xlu1 %v12275_v48, %s11200_s18 }
 0x8f7   :  { %2503 = vrot.lane.b32.xlu0 %v12267_v0, %s11199_s13 }
 0x8f9   :  { %3252 = vrot.lane.b32.xlu1 %v12275_v48, %s11201_s21 }
 0x8fb   :  { %2865 = vrot.lane.b32.xlu0 %v12253_v14, %s11200_s18 }
 0x8fd   :  { %2505 = vrot.lane.b32.xlu1 %v12259_v52, %s11199_s13 }
 0x8ff   :  { %2861 = vrot.lane.b32.xlu0 %v12267_v0, %s11200_s18 }
 0x901   :  { %2863 = vrot.lane.b32.xlu1 %v12259_v52, %s11200_s18 }
 0x903   :  { %3258 = vrot.lane.b32.xlu0 %v12253_v14, %s11201_s21 }
 0x905   :  { %3256 = vrot.lane.b32.xlu1 %v12259_v52, %s11201_s21 }
 0x907   :  { %3254 = vrot.lane.b32.xlu0 %v12267_v0, %s11201_s21 }
 0x919   :  { %v2653_v61 = vpop.permute.xlu0 %2652 }
 0x91a   :  { %v2679_v11 = vsel %vm550_vm5, %v2653_v61, 0 }
 0x91b   :  { %v2651_v18 = vpop.permute.xlu1 %2650  ;;  %9606 = vmatpush3.bf16.xpose.msra.mxu0 %v2679_v11 }
 0x91c   :  { %9607 = vmatprep.subr.bf16.mxu0 %v15733_v23  ;;  %v2676_v60 = vsel %vm550_vm5, %v2651_v18, 0 }
 0x91d   :  { %v2649_v32 = vpop.permute.xlu0 %2648 }
 0x91e   :  { %v2673_v24 = vsel %vm550_vm5, %v2649_v32, 0 }
 0x91f   :  { %v2647_v19 = vpop.permute.xlu1 %2646 }
 0x920   :  { %v2670_v21 = vsel %vm550_vm5, %v2647_v19, 0 }
 0x921   :  { %v2637_v27 = vpop.permute.xlu0 %2636 }
 0x923   :  { %v2639_v54 = vpop.permute.xlu1 %2638  ;;  %9608 = vmatpush3.bf16.xpose.msra.mxu0 %v2676_v60 }
 0x924   :  { %9609 = vmatprep.subr.bf16.mxu0 %v15733_v23 }
 0x925   :  { %v3046_v5 = vpop.permute.xlu0 %3045 }
 0x926   :  { %v3072_v9 = vsel %vm550_vm5, %v3046_v5, 0 }
 0x927   :  { %v2641_v33 = vpop.permute.xlu1 %2640 }
 0x929   :  { %v3044_v58 = vpop.permute.xlu0 %3043 }
 0x92a   :  { %v3069_v28 = vsel %vm550_vm5, %v3044_v58, 0  ;;  %v12498_v58 = vld [vmem:[%s15592_s6] ss:$0 sm:$0xff] }
 0x92b   :  { %v2643_v63 = vpop.permute.xlu1 %2642  ;;  %9610 = vmatpush3.bf16.xpose.msra.mxu0 %v2673_v24  ;;  %v15746_v24 = vmov -1e+30  }
 0x92c   :  { %9611 = vmatprep.subr.bf16.mxu0 %v15733_v23 }
 0x92d   :  { %v3042_v8 = vpop.permute.xlu0 %3041 }
 0x92e   :  { %v3066_v55 = vsel %vm550_vm5, %v3042_v8, 0 }
 0x92f   :  { %v2645_v6 = vpop.permute.xlu1 %2644 }
 0x931   :  { %v3040_v20 = vpop.permute.xlu0 %3039 }
 0x932   :  { %v3063_v51 = vsel %vm550_vm5, %v3040_v20, 0 }
 0x933   :  { %v3030_v43 = vpop.permute.xlu1 %3029  ;;  %9612 = vmatpush3.bf16.xpose.msra.mxu0 %v2670_v21 }
 0x934   :  { %9661 = vmatprep.subr.bf16.mxu0 %v15733_v23 }
 0x935   :  { %v3032_v36 = vpop.permute.xlu0 %3031 }
 0x937   :  { %v3439_v39 = vpop.permute.xlu1 %3438 }
 0x938   :  { %v3465_v10 = vsel %vm550_vm5, %v3439_v39, 0 }
 0x939   :  { %v3034_v4 = vpop.permute.xlu0 %3033 }
 0x93a   :  { %9614 = vmatmul.mubr.msk.bf16.vlgmr.msra.gmra.mxu0 %vm550_vm5, %v2637_v27 }
 0x93b   :  { %9662 = vmatpush3.bf16.xpose.msra.mxu0 %v3072_v9  ;;  %9617 = vmatprep.mubr.msk.bf16.mxu0 %vm11195_vm0, %v15733_v23  ;;  %v3437_v46 = vpop.permute.xlu1 %3436 }
 0x93c   :  { %9663 = vmatprep.subr.bf16.mxu0 %v15733_v23  ;;  %v3462_v61 = vsel %vm550_vm5, %v3437_v46, 0 }
 0x93d   :  { %v3036_v1 = vpop.permute.xlu0 %3035 }
 0x93f   :  { %v3435_v45 = vpop.permute.xlu1 %3434 }
 0x940   :  { %v3459_v27 = vsel %vm550_vm5, %v3435_v45, 0 }
 0x941   :  { %v12426_v50 = vpop.permute.xlu0 %3037 }
 0x942   :  { %9618 = vmatmul.mubr.msk.bf16.gmra.mxu0 %vm550_vm5, %v2639_v54 }
 0x943   :  { %9664 = vmatpush3.bf16.xpose.msra.mxu0 %v3069_v28  ;;  %9621 = vmatprep.mubr.msk.bf16.mxu0 %vm11195_vm0, %v15733_v23  ;;  %v3433_v25 = vpop.permute.xlu1 %3432 }
 0x944   :  { %9665 = vmatprep.subr.bf16.mxu0 %v15733_v23  ;;  %v3456_v5 = vsel %vm550_vm5, %v3433_v25, 0 }
 0x945   :  { %v12430_v22 = vpop.permute.xlu0 %3422 }
 0x947   :  { %v12436_v34 = vpop.permute.xlu1 %3424 }
 0x949   :  { %v12438_v3 = vpop.permute.xlu0 %3426 }
 0x94a   :  { %9622 = vmatmul.mubr.msk.bf16.gmra.mxu0 %vm550_vm5, %v2641_v33 }
 0x94b   :  { %9666 = vmatpush3.bf16.xpose.msra.mxu0 %v3066_v55  ;;  %9625 = vmatprep.mubr.msk.bf16.mxu0 %vm11195_vm0, %v15733_v23  ;;  %v12444_v42 = vpop.permute.xlu1 %3428 }
 0x94c   :  { %9667 = vmatprep.subr.bf16.mxu0 %v15733_v23 }
 0x94d   :  { %v12447_v2 = vpop.permute.xlu0 %3430 }
 0x952   :  { %9626 = vmatmul.mubr.msk.bf16.gmra.mxu0 %vm550_vm5, %v2643_v63 }
 0x953   :  { %9668 = vmatpush3.bf16.xpose.msra.mxu0 %v3063_v51  ;;  %9629 = vmatprep.mubr.msk.bf16.mxu0 %vm11195_vm0, %v15733_v23 }
 0x954   :  { %9717 = vmatprep.subr.bf16.mxu0 %v15733_v23 }
 0x958   :  { %v2209_v35 = vpop.permute.xlu1 %2208 }
 0x959   :  { %vm2262_vm4 = vcmp.eq.f32.partialorder %v2209_v35, %v12498_v58 }
 0x95a   :  { %v2214_v44 = vpop.permute.xlu0 %2213  ;;  %9630 = vmatmul.mubr.msk.bf16.gmra.mxu0 %vm550_vm5, %v2645_v6  ;;  %v12507_v63 = vsel %vm2262_vm4, 0.0, %v15746_v24 }
 0x95b   :  { %9669 = vmatprep.mubr.msk.bf16.mxu0 %vm11195_vm0, %v15733_v23  ;;  %15747 = vst [vmem:[#allocation31_spill] sm:$0xff] %v12507_v63  ;;  %vm2263_vm7 = vcmp.eq.f32.partialorder %v2214_v44, %v12498_v58 }
 0x95c   :  { %v12452_v12 = vpop.permute.xlu1 %2218 }
 0x95d   :  { %vm2264_vm8 = vcmp.eq.f32.partialorder %v12452_v12, %v12498_v58 }
 0x95e   :  { %v12454_v30 = vpop.permute.xlu0 %2223  ;;  %v12530_v46 = vsel %vm2264_vm8, 0.0, %v15746_v24  ;;  %vm7575_vm8 = vcmask 195584  }
 0x95f   :  { %15749 = vst [vmem:[#allocation30_spill] sm:$0xff] %v12530_v46  ;;  %vm2265_vm10 = vcmp.eq.f32.partialorder %v12454_v30, %v12498_v58 }
 0x960   :  { %v12456_v40 = vpop.permute.xlu1 %2228  ;;  %v12542_v25 = vsel %vm2265_vm10, 0.0, %v15746_v24 }
 0x961   :  { %15750 = vst [vmem:[#allocation19_spill] sm:$0xff] %v12542_v25  ;;  %vm2266_vm11 = vcmp.eq.f32.partialorder %v12456_v40, %v12498_v58 }
 0x962   :  { %v12459_v49 = vpop.permute.xlu0 %2233  ;;  %9670 = vmatmul.mubr.msk.bf16.vlgmr.msra.gmra.mxu0 %vm550_vm5, %v3030_v43  ;;  %v12518_v43 = vsel %vm2263_vm7, 0.0, %v15746_v24  ;;  %v12554_v35 = vsel %vm2266_vm11, 0.0, %v15746_v24 }
 0x963   :  { %9718 = vmatpush3.bf16.xpose.msra.mxu0 %v3465_v10  ;;  %9673 = vmatprep.mubr.msk.bf16.mxu0 %vm11195_vm0, %v15733_v23  ;;  %15748 = vst [vmem:[#allocation17_spill] sm:$0xff] %v12518_v43  ;;  %15751 = vst [vmem:[#allocation32_spill] sm:$0xff] %v12554_v35  ;;  %vm2267_vm12 = vcmp.eq.f32.partialorder %v12459_v49, %v12498_v58 }
 0x964   :  { %v12464_v15 = vpop.permute.xlu1 %2238  ;;  %9719 = vmatprep.subr.bf16.mxu0 %v15733_v23  ;;  %v12566_v10 = vsel %vm2267_vm12, 0.0, %v15746_v24 }
 0x965   :  { %15752 = vst [vmem:[#allocation33_spill] sm:$0xff] %v12566_v10  ;;  %vm2268_vm13 = vcmp.eq.f32.partialorder %v12464_v15, %v12498_v58 }
 0x966   :  { %v12467_v13 = vpop.permute.xlu0 %2243 }
 0x967   :  { %vm2269_vm14 = vcmp.eq.f32.partialorder %v12467_v13, %v12498_v58 }
 0x968   :  { %v12469_v26 = vpop.permute.xlu1 %2248 }
 0x969   :  { %vm2270_vm4 = vcmp.eq.f32.partialorder %v12469_v26, %v12498_v58 }
 0x96a   :  { %v12472_v11 = vpop.permute.xlu0 %2253  ;;  %9674 = vmatmul.mubr.msk.bf16.gmra.mxu0 %vm550_vm5, %v3032_v36 }
 0x96b   :  { %9720 = vmatpush3.bf16.xpose.msra.mxu0 %v3462_v61  ;;  %9677 = vmatprep.mubr.msk.bf16.mxu0 %vm11195_vm0, %v15733_v23  ;;  %vm2271_vm7 = vcmp.eq.f32.partialorder %v12472_v11, %v12498_v58 }
 0x96c   :  { %v2502_v18 = vpop.permute.xlu1 %2501  ;;  %9721 = vmatprep.subr.bf16.mxu0 %v15733_v23 }
 0x96e   :  { %v2508_v32 = vpop.permute.xlu0 %2507 }
 0x96f   :  { %9578 = vmatpush3.bf16.msra.mxu1 %v2508_v32  ;;  %v12578_v32 = vsel %vm2268_vm13, 0.0, %v15746_v24 }
 0x970   :  { %v12478_v19 = vpop.permute.xlu1 %2859  ;;  %9579 = vmatprep.subr.bf16.mxu1 %v15733_v23  ;;  %15753 = vst [vmem:[#allocation9_spill] sm:$0xff] %v12578_v32 }
 0x972   :  { %9678 = vmatmul.mubr.msk.bf16.gmra.mxu0 %vm550_vm5, %v3034_v4  ;;  %v2504_v33 = vpop.permute.xlu0 %2503 }
 0x973   :  { %9722 = vmatpush3.bf16.xpose.msra.mxu0 %v3459_v27  ;;  %9681 = vmatprep.mubr.msk.bf16.mxu0 %vm11195_vm0, %v15733_v23 }
 0x974   :  { %v12485_v60 = vpop.permute.xlu1 %3252  ;;  %9723 = vmatprep.subr.bf16.mxu0 %v15733_v23 }
 0x978   :  { %v2506_v54 = vpop.permute.xlu1 %2505 }
 0x979   :  { %9580 = vmatpush3.bf16.msra.mxu1 %v2506_v54 }
 0x97a   :  { %9682 = vmatmul.mubr.msk.bf16.gmra.mxu0 %vm550_vm5, %v3036_v1  ;;  %9581 = vmatprep.subr.bf16.mxu1 %v15733_v23 }
 0x97b   :  { %9724 = vmatpush3.bf16.xpose.msra.mxu0 %v3456_v5  ;;  %9685 = vmatprep.mubr.msk.bf16.mxu0 %vm11195_vm0, %v15733_v23 }
 0x97c   :  { %9773 = vmatprep.subr.bf16.mxu0 %v15733_v23 }
 0x97d   :  { %9582 = vmatpush3.bf16.msra.mxu1 %v2504_v33  ;;  %v12590_v33 = vsel %vm2269_vm14, 0.0, %v15746_v24 }
 0x97e   :  { %9583 = vmatprep.subr.bf16.mxu1 %v15733_v23  ;;  %15754 = vst [vmem:[#allocation11_spill] sm:$0xff] %v12590_v33 }
 0x981   :  { %9584 = vmatpush3.bf16.msra.mxu1 %v2502_v18 }
 0x982   :  { %9686 = vmatmul.mubr.msk.bf16.gmra.mxu0 %vm550_vm5, %v12426_v50  ;;  %9633 = vmatprep.subr.bf16.mxu1 %v15733_v23 }
 0x983   :  { %9725 = vmatprep.mubr.msk.bf16.mxu0 %vm11195_vm0, %v15733_v23 }
 0x987   :  { %v2352_v8 = vpop.f32.mrf.mxu0 }
 0x988   :  { %v12511_v6 = vadd.f32 %v2352_v8, %v12507_v63 }
 0x989   :  { %v9559_v20 = vpop.f32.mrf.mxu0 }
 0x98a   :  { %9726 = vmatmul.mubr.msk.bf16.vlgmr.msra.gmra.mxu0 %vm550_vm5, %v12430_v22  ;;  %v2392_v21 = vsel %vm2391_vm6, %v12511_v6, -inf }
 0x98b   :  { %2393 = vmax.xlane.f32.xlu1 %v2392_v21  ;;  %v2355_v36 = vpop.f32.mrf.mxu0  ;;  %9729 = vmatprep.mubr.msk.bf16.mxu0 %vm11195_vm0, %v15733_v23  ;;  %v12602_v21 = vsel %vm2270_vm4, 0.0, %v15746_v24 }
 0x98c   :  { %v12525_v39 = vadd.f32 %v2355_v36, %v12518_v43  ;;  %15755 = vst [vmem:[#allocation13_spill] sm:$0xff] %v12602_v21 }
 0x98d   :  { %v9560_v4 = vpop.f32.mrf.mxu0 }
 0x98e   :  { %v2395_v9 = vsel %vm2391_vm6, %v12525_v39, -inf }
 0x98f   :  { %2396 = vmax.xlane.f32.xlu0 %v2395_v9  ;;  %v2360_v1 = vpop.f32.mrf.mxu0 }
 0x990   :  { %v12535_v28 = vadd.f32 %v2360_v1, %v12530_v46  ;;  %v12614_v1 = vsel %vm2271_vm7, 0.0, %v15746_v24 }
 0x991   :  { %v9563_v45 = vpop.f32.mrf.mxu0  ;;  %15756 = vst [vmem:[#allocation14_spill] sm:$0xff] %v12614_v1 }
 0x992   :  { %9730 = vmatmul.mubr.msk.bf16.gmra.mxu0 %vm550_vm5, %v12436_v34  ;;  %v2398_v50 = vsel %vm2391_vm6, %v12535_v28, -inf }
 0x993   :  { %2399 = vmax.xlane.f32.xlu0 %v2398_v50  ;;  %v2363_v55 = vpop.f32.mrf.mxu0  ;;  %9733 = vmatprep.mubr.msk.bf16.mxu0 %vm11195_vm0, %v15733_v23 }
 0x994   :  { %v12549_v22 = vadd.f32 %v2363_v55, %v12542_v25 }
 0x995   :  { %v9564_v51 = vpop.f32.mrf.mxu0 }
 0x996   :  { %v2401_v34 = vsel %vm2391_vm6, %v12549_v22, -inf }
 0x997   :  { %2402 = vmax.xlane.f32.xlu1 %v2401_v34  ;;  %v2368_v44 = vpop.f32.mrf.mxu0 }
 0x998   :  { %v12559_v12 = vadd.f32 %v2368_v44, %v12554_v35 }
 0x999   :  { %v9567_v30 = vpop.f32.mrf.mxu0 }
 0x99a   :  { %9734 = vmatmul.mubr.msk.bf16.gmra.mxu0 %vm550_vm5, %v12438_v3  ;;  %v2404_v40 = vsel %vm2391_vm6, %v12559_v12, -inf }
 0x99b   :  { %2405 = vmax.xlane.f32.xlu0 %v2404_v40  ;;  %v2371_v61 = vpop.f32.mrf.mxu0  ;;  %9737 = vmatprep.mubr.msk.bf16.mxu0 %vm11195_vm0, %v15733_v23 }
 0x99c   :  { %v12573_v49 = vadd.f32 %v2371_v61, %v12566_v10  ;;  %v12631_v61 = vpop.permute.xlu0 %2865 }
 0x99d   :  { %v9568_v18 = vpop.f32.mrf.mxu0 }
 0x99e   :  { %v2407_v3 = vsel %vm2391_vm6, %v12573_v49, -inf }
 0x99f   :  { %2408 = vmax.xlane.f32.xlu1 %v2407_v3  ;;  %v2376_v27 = vpop.f32.mrf.mxu0 }
 0x9a0   :  { %v12583_v54 = vadd.f32 %v2376_v27, %v12578_v32 }
 0x9a1   :  { %v9571_v5 = vpop.f32.mrf.mxu0 }
 0x9a2   :  { %9738 = vmatmul.mubr.msk.bf16.gmra.mxu0 %vm550_vm5, %v12444_v42  ;;  %v2410_v15 = vsel %vm2391_vm6, %v12583_v54, -inf }
 0x9a3   :  { %2411 = vmax.xlane.f32.xlu1 %v2410_v15  ;;  %v2379_v8 = vpop.f32.mrf.mxu0  ;;  %9741 = vmatprep.mubr.msk.bf16.mxu0 %vm11195_vm0, %v15733_v23 }
 0x9a4   :  { %v12597_v13 = vadd.f32 %v2379_v8, %v12590_v33 }
 0x9a5   :  { %v9572_v20 = vpop.f32.mrf.mxu0 }
 0x9a6   :  { %v2413_v42 = vsel %vm2391_vm6, %v12597_v13, -inf  ;;  %v12640_v20 = vpop.permute.xlu0 %2861 }
 0x9a7   :  { %2414 = vmax.xlane.f32.xlu0 %v2413_v42  ;;  %v2384_v36 = vpop.f32.mrf.mxu0 }
 0x9a8   :  { %v12607_v4 = vadd.f32 %v2384_v36, %v12602_v21 }
 0x9a9   :  { %v9575_v9 = vpop.f32.mrf.mxu0 }
 0x9aa   :  { %9742 = vmatmul.mubr.msk.bf16.gmra.mxu0 %vm550_vm5, %v12447_v2  ;;  %v2416_v26 = vsel %vm2391_vm6, %v12607_v4, -inf }
 0x9ab   :  { %2417 = vmax.xlane.f32.xlu1 %v2416_v26  ;;  %v2387_v45 = vpop.f32.mrf.mxu0  ;;  %9777 = vmatprep.mubr.msk.bf16.mxu0 %vm11195_vm0, %v15733_v23  ;;  %v12647_v26 = vpop.permute.xlu1 %2863 }
 0x9ac   :  { %v12619_v11 = vadd.f32 %v2387_v45, %v12614_v1 }
 0x9ad   :  { %v9576_v58 = vpop.f32.mrf.mxu0 }
 0x9ae   :  { %v2419_v50 = vsel %vm2391_vm6, %v12619_v11, -inf }
 0x9af   :  { %2420 = vmax.xlane.f32.xlu0 %v2419_v50  ;;  %v12651_v50 = vpop.permute.xlu0 %3258 }
 0x9fa   :  { %v2715_v2 = vpop.f32.mrf.mxu0 }
 0x9fb   :  { %v12624_v55 = vadd.f32 %v2715_v2, %v12507_v63 }
 0x9fc   :  { %v9615_v51 = vpop.f32.mrf.mxu0 }
 0x9fd   :  { %v2754_v34 = vsel %vm2391_vm6, %v12624_v55, -inf  ;;  %v12655_v51 = vpop.permute.xlu1 %3256 }
 0x9fe   :  { %2755 = vmax.xlane.f32.xlu0 %v2754_v34  ;;  %v2718_v44 = vpop.f32.mrf.mxu0 }
 0x9ff   :  { %v12629_v30 = vadd.f32 %v2718_v44, %v12518_v43 }
 0xa00   :  { %v9616_v40 = vpop.f32.mrf.mxu0 }
 0xa01   :  { %v2757_v18 = vsel %vm2391_vm6, %v12629_v30, -inf  ;;  %v12659_v40 = vpop.permute.xlu0 %3254 }
 0xa02   :  { %2758 = vmax.xlane.f32.xlu1 %v2757_v18  ;;  %v2723_v3 = vpop.f32.mrf.mxu0 }
 0xa03   :  { %v12636_v27 = vadd.f32 %v2723_v3, %v12530_v46 }
 0xa04   :  { %v9619_v5 = vpop.f32.mrf.mxu0 }
 0xa05   :  { %v2760_v15 = vsel %vm2391_vm6, %v12636_v27, -inf }
 0xa06   :  { %2761 = vmax.xlane.f32.xlu0 %v2760_v15  ;;  %v2726_v8 = vpop.f32.mrf.mxu0 }
 0xa07   :  { %v12643_v42 = vadd.f32 %v2726_v8, %v12542_v25 }
 0xa08   :  { %v9620_v36 = vpop.f32.mrf.mxu0 }
 0xa09   :  { %v2763_v9 = vsel %vm2391_vm6, %v12643_v42, -inf }
 0xa0a   :  { %2764 = vmax.xlane.f32.xlu1 %v2763_v9  ;;  %v12649_v45 = vpop.f32.mrf.mxu0 }
 0xa0c   :  { %v9623_v58 = vpop.f32.mrf.mxu0 }
 0xa0e   :  { %v12653_v2 = vpop.f32.mrf.mxu0 }
 0xa10   :  { %v9624_v34 = vpop.f32.mrf.mxu0 }
 0xa12   :  { %v12657_v44 = vpop.f32.mrf.mxu0 }
 0xa14   :  { %v2394_v18 = vpop.xlane.xlu1 %2393  ;;  %v9627_v3 = vpop.f32.mrf.mxu0 }
 0xa15   :  { %v2422_v5 = vsub.f32 %v12511_v6, %v2394_v18 }
 0xa16   :  { %v12662_v15 = vpop.f32.mrf.mxu0 }
 0xa17   :  { %v2432_v8 = vmul.f32 1.442695, %v2422_v5 }
 0xa18   :  { %v2397_v36 = vpop.xlane.xlu0 %2396  ;;  %v9628_v9 = vpop.f32.mrf.mxu0 }
 0xa19   :  { %v2423_v58 = vsub.f32 %v12525_v39, %v2397_v36  ;;  %10666 = vpow2.f32 %v2432_v8 }
 0xa1a   :  { %v12665_v24 = vpop.f32.mrf.mxu0 }
 0xa1b   :  { %v2434_v38 = vmul.f32 1.442695, %v2423_v58  ;;  %3649 = vrot.lane.b32.xlu1 %v12259_v52, %s11204_s24 }
 0xa1c   :  { %v2400_v34 = vpop.xlane.xlu0 %2399  ;;  %3651 = vrot.lane.b32.xlu0 %v12253_v14, %s11204_s24  ;;  %v9631_v3 = vpop.f32.mrf.mxu0 }
 0xa1d   :  { %10668 = vpow2.f32 %v2434_v38  ;;  %v2424_v6 = vsub.f32 %v12535_v28, %v2400_v34 }
 0xa1e   :  { %v12672_v18 = vpop.f32.mrf.mxu0 }
 0xa1f   :  { %v2436_v5 = vmul.f32 1.442695, %v2424_v6 }
 0xa20   :  { %v2403_v9 = vpop.xlane.xlu1 %2402  ;;  %v9632_v39 = vpop.f32.mrf.mxu0 }
 0xa21   :  { %v2425_v36 = vsub.f32 %v12549_v22, %v2403_v9  ;;  %10670 = vpow2.f32 %v2436_v5 }
 0xa22   :  { %v12675_v58 = vpop.f32.mrf.mxu0 }
 0xa23   :  { %v2438_v31 = vmul.f32 1.442695, %v2425_v36 }
 0xa24   :  { %v2406_v52 = vpop.xlane.xlu0 %2405  ;;  %v9671_v8 = vpop.f32.mrf.mxu0 }
 0xa25   :  { %10672 = vpow2.f32 %v2438_v31  ;;  %v2426_v14 = vsub.f32 %v12559_v12, %v2406_v52 }
 0xa26   :  { %v12678_v3 = vpop.f32.mrf.mxu0  ;;  %v12680_v17 = vpop.eup %10666 }
 0xa27   :  { %v2440_v38 = vmul.f32 1.442695, %v2426_v14 }
 0xa28   :  { %v2409_v28 = vpop.xlane.xlu1 %2408  ;;  %v9672_v34 = vpop.f32.mrf.mxu0 }
 0xa29   :  { %v2427_v6 = vsub.f32 %v12573_v49, %v2409_v28  ;;  %10674 = vpow2.f32 %v2440_v38 }
 0xa2a   :  { %v12683_v39 = vpop.eup %10668  ;;  %v12685_v22 = vpop.f32.mrf.mxu0 }
 0xa2b   :  { %v2492_v5 = vpack.c.bf16 %v12683_v39, %v12680_v17  ;;  %v2442_v9 = vmul.f32 1.442695, %v2427_v6 }
 0xa2c   :  { %v2412_v31 = vpop.xlane.xlu1 %2411  ;;  %v9675_v12 = vpop.f32.mrf.mxu0 }
 0xa2d   :  { %10676 = vpow2.f32 %v2442_v9  ;;  %v2428_v36 = vsub.f32 %v12583_v54, %v2412_v31  ;;  %9586 = vmatmul.mubr.msk.bf16.vlgmr.msra.gmra.mxu1 %vm2391_vm6, %v2492_v5 }
 0xa2e   :  { %9634 = vmatpush3.bf16.msra.mxu1 %v12631_v61  ;;  %v12692_v52 = vpop.f32.mrf.mxu0  ;;  %9589 = vmatprep.mubr.msk.bf16.mxu1 %vm11195_vm0, %v15733_v23  ;;  %v12697_v38 = vpop.eup %10670 }
 0xa2f   :  { %9635 = vmatprep.subr.bf16.mxu1 %v15733_v23  ;;  %v2444_v49 = vmul.f32 1.442695, %v2428_v36 }
 0xa30   :  { %v2415_v8 = vpop.xlane.xlu0 %2414  ;;  %v9676_v14 = vpop.f32.mrf.mxu0 }
 0xa31   :  { %v2429_v28 = vsub.f32 %v12597_v13, %v2415_v8  ;;  %10678 = vpow2.f32 %v2444_v49  ;;  %v12712_v13 = vadd.f32 %v12649_v45, %v12554_v35  ;;  %v12727_v45 = vadd.f32 %v12653_v2, %v12566_v10 }
 0xa32   :  { %v12700_v34 = vpop.eup %10672  ;;  %9636 = vmatpush3.bf16.msra.mxu1 %v12647_v26  ;;  %v12703_v54 = vpop.f32.mrf.mxu0 }
 0xa33   :  { %v2446_v61 = vmul.f32 1.442695, %v2429_v28  ;;  %9637 = vmatprep.subr.bf16.mxu1 %v15733_v23  ;;  %v2493_v6 = vpack.c.bf16 %v12700_v34, %v12697_v38 }
 0xa34   :  { %v2418_v5 = vpop.xlane.xlu1 %2417  ;;  %v9679_v9 = vpop.f32.mrf.mxu0 }
 0xa35   :  { %10680 = vpow2.f32 %v2446_v61  ;;  %v2430_v31 = vsub.f32 %v12607_v4, %v2418_v5  ;;  %9590 = vmatmul.mubr.msk.bf16.gmra.mxu1 %vm2391_vm6, %v2493_v6  ;;  %v2766_v61 = vsel %vm2391_vm6, %v12712_v13, -inf  ;;  %v2769_v9 = vsel %vm2391_vm6, %v12727_v45, -inf }
 0xa36   :  { %9638 = vmatpush3.bf16.msra.mxu1 %v12640_v20  ;;  %v12715_v26 = vpop.f32.mrf.mxu0  ;;  %9593 = vmatprep.mubr.msk.bf16.mxu1 %vm11195_vm0, %v15733_v23  ;;  %v12720_v8 = vpop.eup %10674  ;;  %v12731_v20 = vadd.f32 %v12662_v15, %v12590_v33  ;;  %v12742_v15 = vadd.f32 %v12657_v44, %v12578_v32 }
 0xa37   :  { %9639 = vmatprep.subr.bf16.mxu1 %v15733_v23  ;;  %v2448_v12 = vmul.f32 1.442695, %v2430_v31 }
 0xa38   :  { %v2421_v36 = vpop.xlane.xlu0 %2420  ;;  %v9680_v49 = vpop.f32.mrf.mxu0  ;;  %v2775_v31 = vsel %vm2391_vm6, %v12731_v20, -inf }
 0xa39   :  { %v2431_v4 = vsub.f32 %v12619_v11, %v2421_v36  ;;  %10682 = vpow2.f32 %v2448_v12  ;;  %v12764_v49 = vadd.f32 %v12675_v58, %v12507_v63  ;;  %v12779_v58 = vadd.f32 %v12685_v22, %v12530_v46 }
 0xa3a   :  { %v12723_v14 = vpop.eup %10676  ;;  %9640 = vmatpush3.bf16.msra.mxu1 %v12478_v19  ;;  %v3132_v28 = vpop.f32.mrf.mxu0  ;;  %v12746_v19 = vadd.f32 %v12672_v18, %v12614_v1  ;;  %v12760_v18 = vadd.f32 %v12665_v24, %v12602_v21  ;;  %v12775_v24 = vadd.f32 %v12678_v3, %v12518_v43  ;;  %v12793_v22 = vadd.f32 %v12692_v52, %v12542_v25 }
 0xa3b   :  { %v2450_v6 = vmul.f32 1.442695, %v2431_v4  ;;  %2767 = vmax.xlane.f32.xlu0 %v2766_v61  ;;  %v2494_v11 = vpack.c.bf16 %v12723_v14, %v12720_v8  ;;  %9689 = vmatprep.subr.bf16.mxu1 %v15733_v23  ;;  %v2772_v61 = vsel %vm2391_vm6, %v12742_v15, -inf  ;;  %v12808_v52 = vadd.f32 %v12715_v26, %v12566_v10 }
 0xa3c   :  { %v9683_v2 = vpop.f32.mrf.mxu0  ;;  %v3150_v7 = vsel %vm2391_vm6, %v12775_v24, -inf  ;;  %v3156_v47 = vsel %vm2391_vm6, %v12793_v22, -inf }
 0xa3d   :  { %10684 = vpow2.f32 %v2450_v6  ;;  %9594 = vmatmul.mubr.msk.bf16.gmra.mxu1 %vm2391_vm6, %v2494_v11  ;;  %v2781_v6 = vsel %vm2391_vm6, %v12746_v19, -inf }
 0xa3e   :  { %v3135_v5 = vpop.f32.mrf.mxu0  ;;  %9597 = vmatprep.mubr.msk.bf16.mxu1 %vm11195_vm0, %v15733_v23  ;;  %v12754_v36 = vpop.eup %10678 }
 0xa3f   :  { %2770 = vmax.xlane.f32.xlu1 %v2769_v9  ;;  %2776 = vmax.xlane.f32.xlu0 %v2775_v31  ;;  %v2778_v31 = vsel %vm2391_vm6, %v12760_v18, -inf }
 0xa40   :  { %v9684_v12 = vpop.f32.mrf.mxu0 }
 0xa41   :  { %v3147_v12 = vsel %vm2391_vm6, %v12764_v49, -inf }
 0xa42   :  { %v12756_v44 = vpop.eup %10680  ;;  %v3140_v4 = vpop.f32.mrf.mxu0 }
 0xa43   :  { %2773 = vmax.xlane.f32.xlu1 %v2772_v61  ;;  %2782 = vmax.xlane.f32.xlu0 %v2781_v6  ;;  %v2495_v11 = vpack.c.bf16 %v12756_v44, %v12754_v36 }
 0xa44   :  { %v9687_v2 = vpop.f32.mrf.mxu0 }
 0xa45   :  { %9598 = vmatmul.mubr.msk.bf16.gmra.mxu1 %vm2391_vm6, %v2495_v11  ;;  %v12797_v11 = vadd.f32 %v12703_v54, %v12554_v35  ;;  %v12811_v54 = vadd.f32 %v3135_v5, %v12590_v33 }
 0xa46   :  { %v3143_v9 = vpop.f32.mrf.mxu0  ;;  %9601 = vmatprep.mubr.msk.bf16.mxu1 %vm11195_vm0, %v15733_v23  ;;  %v12787_v6 = vpop.eup %10682 }
 0xa47   :  { %2779 = vmax.xlane.f32.xlu1 %v2778_v31  ;;  %3148 = vmax.xlane.f32.xlu0 %v3147_v12  ;;  %v3153_v31 = vsel %vm2391_vm6, %v12779_v58, -inf  ;;  %v12823_v26 = vadd.f32 %v3143_v9, %v12614_v1  ;;  %v3168_v62 = vsel %vm2391_vm6, %v12811_v54, -inf }
 0xa48   :  { %v9688_v61 = vpop.f32.mrf.mxu0 }
 0xa4a   :  { %v12789_v3 = vpop.eup %10684  ;;  %v3501_v2 = vpop.f32.mrf.mxu0 }
 0xa4b   :  { %3151 = vmax.xlane.f32.xlu1 %v3150_v7  ;;  %3154 = vmax.xlane.f32.xlu0 %v3153_v31  ;;  %v2496_v12 = vpack.c.bf16 %v12789_v3, %v12787_v6  ;;  %v3159_v7 = vsel %vm2391_vm6, %v12797_v11, -inf }
 0xa4c   :  { %v9727_v61 = vpop.f32.mrf.mxu0 }
 0xa4d   :  { %9602 = vmatmul.mubr.msk.bf16.gmra.mxu1 %vm2391_vm6, %v2496_v12  ;;  %v12820_v12 = vadd.f32 %v3132_v28, %v12578_v32  ;;  %v3162_v61 = vsel %vm2391_vm6, %v12808_v52, -inf }
 0xa4e   :  { %v3504_v53 = vpop.f32.mrf.mxu0  ;;  %9641 = vmatprep.mubr.msk.bf16.mxu1 %vm11195_vm0, %v15733_v23 }
 0xa4f   :  { %3157 = vmax.xlane.f32.xlu1 %v3156_v47  ;;  %3160 = vmax.xlane.f32.xlu0 %v3159_v7  ;;  %v12830_v47 = vadd.f32 %v3140_v4, %v12602_v21  ;;  %v12833_v7 = vadd.f32 %v3501_v2, %v12507_v63  ;;  %v3165_v9 = vsel %vm2391_vm6, %v12820_v12, -inf }
 0xa50   :  { %v9728_v31 = vpop.f32.mrf.mxu0 }
 0xa51   :  { %v3174_v31 = vsel %vm2391_vm6, %v12823_v26, -inf  ;;  %v3171_v4 = vsel %vm2391_vm6, %v12830_v47, -inf  ;;  %v3540_v2 = vsel %vm2391_vm6, %v12833_v7, -inf }
 0xa52   :  { %v3509_v5 = vpop.f32.mrf.mxu0 }
 0xa53   :  { %3163 = vmax.xlane.f32.xlu1 %v3162_v61  ;;  %3169 = vmax.xlane.f32.xlu0 %v3168_v62  ;;  %v12840_v61 = vadd.f32 %v3504_v53, %v12518_v43 }
 0xa54   :  { %v9731_v41 = vpop.f32.mrf.mxu0 }
 0xa55   :  { %v12843_v41 = vadd.f32 %v3509_v5, %v12530_v46  ;;  %v3543_v5 = vsel %vm2391_vm6, %v12840_v61, -inf }
 0xa56   :  { %v3512_v28 = vpop.f32.mrf.mxu0 }
 0xa57   :  { %3166 = vmax.xlane.f32.xlu1 %v3165_v9  ;;  %3175 = vmax.xlane.f32.xlu0 %v3174_v31  ;;  %v12850_v9 = vadd.f32 %v3512_v28, %v12542_v25  ;;  %v3546_v31 = vsel %vm2391_vm6, %v12843_v41, -inf }
 0xa58   :  { %v9732_v37 = vpop.f32.mrf.mxu0 }
 0xa59   :  { %v3549_v28 = vsel %vm2391_vm6, %v12850_v9, -inf }
 0xa5a   :  { %v3517_v62 = vpop.f32.mrf.mxu0 }
 0xa5b   :  { %3172 = vmax.xlane.f32.xlu1 %v3171_v4  ;;  %3541 = vmax.xlane.f32.xlu0 %v3540_v2  ;;  %v12853_v37 = vadd.f32 %v3517_v62, %v12554_v35 }
 0xa5c   :  { %v9735_v63 = vpop.f32.mrf.mxu0 }
 0xa5d   :  { %v3552_v62 = vsel %vm2391_vm6, %v12853_v37, -inf }
 0xa5e   :  { %v3520_v53 = vpop.f32.mrf.mxu0 }
 0xa5f   :  { %3544 = vmax.xlane.f32.xlu1 %v3543_v5  ;;  %3547 = vmax.xlane.f32.xlu0 %v3546_v31  ;;  %v12860_v4 = vadd.f32 %v3520_v53, %v12566_v10 }
 0xa60   :  { %v9736_v46 = vpop.f32.mrf.mxu0 }
 0xa61   :  { %v3555_v46 = vsel %vm2391_vm6, %v12860_v4, -inf }
 0xa62   :  { %v3525_v63 = vpop.f32.mrf.mxu0 }
 0xa63   :  { %3550 = vmax.xlane.f32.xlu1 %v3549_v28  ;;  %3553 = vmax.xlane.f32.xlu0 %v3552_v62  ;;  %v12867_v35 = vadd.f32 %v3525_v63, %v12578_v32 }
 0xa64   :  { %v9739_v2 = vpop.f32.mrf.mxu0 }
 0xa65   :  { %v3558_v28 = vsel %vm2391_vm6, %v12867_v35, -inf }
 0xa66   :  { %v3528_v25 = vpop.f32.mrf.mxu0 }
 0xa67   :  { %v12872_v53 = vadd.f32 %v3528_v25, %v12590_v33  ;;  %3556 = vmax.xlane.f32.xlu1 %v3555_v46 }
 0xa68   :  { %v9740_v5 = vpop.f32.mrf.mxu0 }
 0xa69   :  { %v3561_v31 = vsel %vm2391_vm6, %v12872_v53, -inf }
 0xa6a   :  { %3562 = vmax.xlane.f32.xlu0 %v3561_v31  ;;  %v3533_v10 = vpop.f32.mrf.mxu0 }
 0xa6b   :  { %3559 = vmax.xlane.f32.xlu1 %v3558_v28 }
 0xa6c   :  { %v9743_v63 = vpop.f32.mrf.mxu0 }
 0xa6e   :  { %v3536_v62 = vpop.f32.mrf.mxu0 }
 0xa70   :  { %v9744_v2 = vpop.f32.mrf.mxu0 }
 0xa7c   :  { %3645 = vrot.lane.b32.xlu1 %v12275_v48, %s11204_s24 }
 0xa80   :  { %3647 = vrot.lane.b32.xlu0 %v12267_v0, %s11204_s24  ;;  %v12887_v0 = vadd.f32 %v3536_v62, %v12614_v1 }
 0xa87   :  { %v2756_v25 = vpop.xlane.xlu0 %2755 }
 0xa88   :  { %v2784_v46 = vsub.f32 %v12624_v55, %v2756_v25  ;;  %v12890_v55 = vadd.f32 %v3533_v10, %v12602_v21  ;;  %v2455_v10 = vsel %vm2391_vm6, %v12683_v39, 0.0 }
 0xa8a   :  { %v2794_v5 = vmul.f32 1.442695, %v2784_v46 }
 0xa8b   :  { %v2759_v33 = vpop.xlane.xlu1 %2758 }
 0xa8c   :  { %v2785_v31 = vsub.f32 %v12629_v30, %v2759_v33  ;;  %10686 = vpow2.f32 %v2794_v5 }
 0xa8e   :  { %v2796_v32 = vmul.f32 1.442695, %v2785_v31 }
 0xa8f   :  { %v2762_v43 = vpop.xlane.xlu0 %2761 }
 0xa90   :  { %10688 = vpow2.f32 %v2796_v32  ;;  %v2786_v28 = vsub.f32 %v12636_v27, %v2762_v43  ;;  %v3567_v32 = vsel %vm2391_vm6, %v12887_v0, -inf  ;;  %v3564_v43 = vsel %vm2391_vm6, %v12890_v55, -inf }
 0xa92   :  { %v2798_v63 = vmul.f32 1.442695, %v2786_v28 }
 0xa93   :  { %v2765_v2 = vpop.xlane.xlu1 %2764  ;;  %v12918_v39 = vpop.permute.xlu0 %3651 }
 0xa94   :  { %v2787_v48 = vsub.f32 %v12643_v42, %v2765_v2  ;;  %10690 = vpow2.f32 %v2798_v63 }
 0xa96   :  { %v2800_v29 = vmul.f32 1.442695, %v2787_v48 }
 0xa97   :  { %v12920_v5 = vpop.permute.xlu1 %3649 }
 0xa98   :  { %10692 = vpow2.f32 %v2800_v29  ;;  %v2452_v29 = vsel %vm2391_vm6, %v12680_v17, 0.0 }
 0xa99   :  { %v10687_v33 = vpop.eup %10686 }
 0xa9d   :  { %v10689_v30 = vpop.eup %10688 }
 0xa9e   :  { %v2854_v25 = vpack.c.bf16 %v10689_v30, %v10687_v33  ;;  %v2817_v46 = vsel %vm2391_vm6, %v10689_v30, 0.0 }
 0xa9f   :  { %3568 = vmax.xlane.f32.xlu0 %v3567_v32 }
 0xaa0   :  { %9642 = vmatmul.mubr.msk.bf16.vlgmr.msra.gmra.mxu1 %vm2391_vm6, %v2854_v25  ;;  %3565 = vmax.xlane.f32.xlu1 %v3564_v43 }
 0xaa1   :  { %9690 = vmatpush3.bf16.msra.mxu1 %v12651_v50  ;;  %9645 = vmatprep.mubr.msk.bf16.mxu1 %vm11195_vm0, %v15733_v23  ;;  %v10691_v27 = vpop.eup %10690  ;;  %v2814_v50 = vsel %vm2391_vm6, %v10687_v33, 0.0 }
 0xaa2   :  { %9691 = vmatprep.subr.bf16.mxu1 %v15733_v23  ;;  %v2820_v17 = vsel %vm2391_vm6, %v10691_v27, 0.0 }
 0xaa3   :  { %2453 = vadd.xlane.f32.xlu0 %v2452_v29 }
 0xaa4   :  { %2456 = vadd.xlane.f32.xlu1 %v2455_v10 }
 0xaa5   :  { %v10693_v42 = vpop.eup %10692  ;;  %9692 = vmatpush3.bf16.msra.mxu1 %v12655_v51 }
 0xaa6   :  { %9693 = vmatprep.subr.bf16.mxu1 %v15733_v23  ;;  %v2855_v62 = vpack.c.bf16 %v10693_v42, %v10691_v27  ;;  %v2823_v51 = vsel %vm2391_vm6, %v10693_v42, 0.0 }
 0xaa7   :  { %2815 = vadd.xlane.f32.xlu0 %v2814_v50 }
 0xaa8   :  { %9646 = vmatmul.mubr.msk.bf16.gmra.mxu1 %vm2391_vm6, %v2855_v62  ;;  %2818 = vadd.xlane.f32.xlu1 %v2817_v46 }
 0xaa9   :  { %9694 = vmatpush3.bf16.msra.mxu1 %v12659_v40  ;;  %9649 = vmatprep.mubr.msk.bf16.mxu1 %vm11195_vm0, %v15733_v23 }
 0xaaa   :  { %9695 = vmatprep.subr.bf16.mxu1 %v15733_v23 }
 0xaab   :  { %2821 = vadd.xlane.f32.xlu0 %v2820_v17 }
 0xaac   :  { %2824 = vadd.xlane.f32.xlu1 %v2823_v51 }
 0xaad   :  { %9696 = vmatpush3.bf16.msra.mxu1 %v12485_v60 }
 0xaae   :  { %9745 = vmatprep.subr.bf16.mxu1 %v15733_v23 }
 0xac4   :  { %v2768_v40 = vpop.xlane.xlu0 %2767 }
 0xac5   :  { %v2788_v31 = vsub.f32 %v12712_v13, %v2768_v40 }
 0xac7   :  { %v2802_v28 = vmul.f32 1.442695, %v2788_v31 }
 0xac8   :  { %v2771_v63 = vpop.xlane.xlu1 %2770  ;;  %v2777_v2 = vpop.xlane.xlu0 %2776 }
 0xac9   :  { %10694 = vpow2.f32 %v2802_v28  ;;  %v2789_v48 = vsub.f32 %v12727_v45, %v2771_v63  ;;  %v2791_v33 = vsub.f32 %v12731_v20, %v2777_v2 }
 0xacb   :  { %v2804_v30 = vmul.f32 1.442695, %v2789_v48  ;;  %v2808_v25 = vmul.f32 1.442695, %v2791_v33 }
 0xacc   :  { %v2774_v60 = vpop.xlane.xlu1 %2773  ;;  %v2783_v32 = vpop.xlane.xlu0 %2782 }
 0xacd   :  { %10696 = vpow2.f32 %v2804_v30  ;;  %v2790_v43 = vsub.f32 %v12742_v15, %v2774_v60  ;;  %v2793_v29 = vsub.f32 %v12746_v19, %v2783_v32 }
 0xace   :  { %10698 = vpow2.f32 %v2808_v25 }
 0xacf   :  { %v2806_v10 = vmul.f32 1.442695, %v2790_v43  ;;  %v2812_v13 = vmul.f32 1.442695, %v2793_v29 }
 0xad0   :  { %v2780_v27 = vpop.xlane.xlu1 %2779  ;;  %v3149_v42 = vpop.xlane.xlu0 %3148 }
 0xad1   :  { %10700 = vpow2.f32 %v2806_v10  ;;  %v2792_v50 = vsub.f32 %v12760_v18, %v2780_v27  ;;  %v3177_v45 = vsub.f32 %v12764_v49, %v3149_v42 }
 0xad2   :  { %10702 = vpow2.f32 %v2812_v13 }
 0xad3   :  { %v2810_v20 = vmul.f32 1.442695, %v2792_v50  ;;  %v3187_v62 = vmul.f32 1.442695, %v3177_v45 }
 0xad4   :  { %v3152_v46 = vpop.xlane.xlu1 %3151  ;;  %v3155_v17 = vpop.xlane.xlu0 %3154 }
 0xad5   :  { %10704 = vpow2.f32 %v2810_v20  ;;  %v3178_v15 = vsub.f32 %v12775_v24, %v3152_v46  ;;  %v3179_v19 = vsub.f32 %v12779_v58, %v3155_v17 }
 0xad6   :  { %v10695_v51 = vpop.eup %10694  ;;  %10706 = vpow2.f32 %v3187_v62 }
 0xad7   :  { %v3189_v40 = vmul.f32 1.442695, %v3178_v15  ;;  %v3191_v31 = vmul.f32 1.442695, %v3179_v19  ;;  %v2826_v28 = vsel %vm2391_vm6, %v10695_v51, 0.0 }
 0xad8   :  { %v3158_v63 = vpop.xlane.xlu1 %3157  ;;  %v3161_v18 = vpop.xlane.xlu0 %3160  ;;  %2827 = vadd.xlane.f32.xlu0 %v2826_v28 }
 0xad9   :  { %10708 = vpow2.f32 %v3189_v40  ;;  %v3180_v49 = vsub.f32 %v12793_v22, %v3158_v63  ;;  %v3181_v2 = vsub.f32 %v12797_v11, %v3161_v18 }
 0xada   :  { %v10697_v48 = vpop.eup %10696  ;;  %10710 = vpow2.f32 %v3191_v31 }
 0xadb   :  { %v10699_v33 = vpop.eup %10698  ;;  %v3193_v24 = vmul.f32 1.442695, %v3180_v49  ;;  %v3195_v30 = vmul.f32 1.442695, %v3181_v2  ;;  %v2829_v58 = vsel %vm2391_vm6, %v10697_v48, 0.0  ;;  %v2856_v25 = vpack.c.bf16 %v10697_v48, %v10695_v51 }
 0xadc   :  { %v3164_v60 = vpop.xlane.xlu1 %3163  ;;  %v3170_v32 = vpop.xlane.xlu0 %3169  ;;  %2830 = vadd.xlane.f32.xlu1 %v2829_v58  ;;  %v2835_v11 = vsel %vm2391_vm6, %v10699_v33, 0.0 }
 0xadd   :  { %10712 = vpow2.f32 %v3193_v24  ;;  %v3182_v43 = vsub.f32 %v12808_v52, %v3164_v60  ;;  %v3184_v29 = vsub.f32 %v12811_v54, %v3170_v32  ;;  %9650 = vmatmul.mubr.msk.bf16.gmra.mxu1 %vm2391_vm6, %v2856_v25 }
 0xade   :  { %v10701_v22 = vpop.eup %10700  ;;  %9653 = vmatprep.mubr.msk.bf16.mxu1 %vm11195_vm0, %v15733_v23  ;;  %10714 = vpow2.f32 %v3195_v30 }
 0xadf   :  { %v10703_v10 = vpop.eup %10702  ;;  %v3197_v13 = vmul.f32 1.442695, %v3182_v43  ;;  %v3201_v27 = vmul.f32 1.442695, %v3184_v29  ;;  %v2832_v42 = vsel %vm2391_vm6, %v10701_v22, 0.0  ;;  %v2857_v46 = vpack.c.bf16 %v10699_v33, %v10701_v22 }
 0xae0   :  { %v3167_v50 = vpop.xlane.xlu1 %3166  ;;  %v3176_v45 = vpop.xlane.xlu0 %3175  ;;  %2836 = vadd.xlane.f32.xlu1 %v2835_v11  ;;  %2833 = vadd.xlane.f32.xlu0 %v2832_v42  ;;  %v2841_v62 = vsel %vm2391_vm6, %v10703_v10, 0.0 }
 0xae1   :  { %10716 = vpow2.f32 %v3197_v13  ;;  %v3183_v52 = vsub.f32 %v12820_v12, %v3167_v50  ;;  %v3186_v54 = vsub.f32 %v12823_v26, %v3176_v45 }
 0xae2   :  { %v10705_v20 = vpop.eup %10704  ;;  %10718 = vpow2.f32 %v3201_v27 }
 0xae3   :  { %v12945_v17 = vpop.eup %10706  ;;  %v3199_v15 = vmul.f32 1.442695, %v3183_v52  ;;  %v3205_v19 = vmul.f32 1.442695, %v3186_v54  ;;  %v2838_v51 = vsel %vm2391_vm6, %v10705_v20, 0.0  ;;  %v2858_v58 = vpack.c.bf16 %v10703_v10, %v10705_v20 }
 0xae4   :  { %v3173_v40 = vpop.xlane.xlu1 %3172  ;;  %v3542_v31 = vpop.xlane.xlu0 %3541  ;;  %2842 = vadd.xlane.f32.xlu1 %v2841_v62  ;;  %2839 = vadd.xlane.f32.xlu0 %v2838_v51  ;;  %v3207_v63 = vsel %vm2391_vm6, %v12945_v17, 0.0 }
 0xae5   :  { %10720 = vpow2.f32 %v3199_v15  ;;  %v3185_v12 = vsub.f32 %v12830_v47, %v3173_v40  ;;  %v3570_v26 = vsub.f32 %v12833_v7, %v3542_v31  ;;  %9654 = vmatmul.mubr.msk.bf16.gmra.mxu1 %vm2391_vm6, %v2857_v46 }
 0xae6   :  { %v10709_v28 = vpop.eup %10708  ;;  %9657 = vmatprep.mubr.msk.bf16.mxu1 %vm11195_vm0, %v15733_v23  ;;  %10722 = vpow2.f32 %v3205_v19 }
 0xae7   :  { %v12955_v18 = vpop.eup %10710  ;;  %v3203_v49 = vmul.f32 1.442695, %v3185_v12  ;;  %v3580_v2 = vmul.f32 1.442695, %v3570_v26  ;;  %v3210_v48 = vsel %vm2391_vm6, %v10709_v28, 0.0  ;;  %v3247_v54 = vpack.c.bf16 %v10709_v28, %v12945_v17 }
 0xae8   :  { %v3545_v33 = vpop.xlane.xlu1 %3544  ;;  %v3548_v47 = vpop.xlane.xlu0 %3547  ;;  %3211 = vadd.xlane.f32.xlu1 %v3210_v48  ;;  %3208 = vadd.xlane.f32.xlu0 %v3207_v63  ;;  %v3213_v32 = vsel %vm2391_vm6, %v12955_v18, 0.0 }
 0xae9   :  { %10724 = vpow2.f32 %v3203_v49  ;;  %v3571_v7 = vsub.f32 %v12840_v61, %v3545_v33  ;;  %v3572_v30 = vsub.f32 %v12843_v41, %v3548_v47 }
 0xaea   :  { %v12959_v24 = vpop.eup %10712  ;;  %10726 = vpow2.f32 %v3580_v2 }
 0xaeb   :  { %v3582_v25 = vmul.f32 1.442695, %v3571_v7  ;;  %v3216_v60 = vsel %vm2391_vm6, %v12959_v24, 0.0  ;;  %v12966_v43 = vpop.eup %10714  ;;  %v3584_v41 = vmul.f32 1.442695, %v3572_v30  ;;  %v3248_v48 = vpack.c.bf16 %v12959_v24, %v12955_v18 }
 0xaec   :  { %v3551_v29 = vpop.xlane.xlu1 %3550  ;;  %3217 = vadd.xlane.f32.xlu1 %v3216_v60  ;;  %3214 = vadd.xlane.f32.xlu0 %v3213_v32  ;;  %v3554_v10 = vpop.xlane.xlu0 %3553  ;;  %v3219_v42 = vsel %vm2391_vm6, %v12966_v43, 0.0 }
 0xaed   :  { %v12968_v22 = vpop.f32.mrf.mxu1  ;;  %9658 = vmatmul.mubr.msk.bf16.gmra.mxu1 %vm2391_vm6, %v2858_v58  ;;  %10728 = vpow2.f32 %v3582_v25  ;;  %v3573_v11 = vsub.f32 %v12850_v9, %v3551_v29  ;;  %v3574_v9 = vsub.f32 %v12853_v37, %v3554_v10 }
 0xaee   :  { %v12971_v61 = vpop.eup %10716  ;;  %9697 = vmatprep.mubr.msk.bf16.mxu1 %vm11195_vm0, %v15733_v23  ;;  %10730 = vpow2.f32 %v3584_v41 }
 0xaef   :  { %v9587_v13 = vpop.f32.mrf.mxu1  ;;  %v3222_v27 = vsel %vm2391_vm6, %v12971_v61, 0.0  ;;  %v12980_v50 = vpop.eup %10718  ;;  %v3586_v62 = vmul.f32 1.442695, %v3573_v11  ;;  %v3588_v37 = vmul.f32 1.442695, %v3574_v9  ;;  %v2464_v9 = vsel %vm2391_vm6, %v12720_v8, 0.0 }
 0xaf0   :  { %3223 = vadd.xlane.f32.xlu1 %v3222_v27  ;;  %3220 = vadd.xlane.f32.xlu0 %v3219_v42  ;;  %v3557_v20 = vpop.xlane.xlu1 %3556  ;;  %v3228_v15 = vsel %vm2391_vm6, %v12980_v50, 0.0  ;;  %v3249_v13 = vpack.c.bf16 %v12971_v61, %v12966_v43 }
 0xaf1   :  { %v12982_v45 = vpop.f32.mrf.mxu1  ;;  %10732 = vpow2.f32 %v3586_v62  ;;  %v3575_v31 = vsub.f32 %v12860_v4, %v3557_v20  ;;  %v2461_v4 = vsel %vm2391_vm6, %v12700_v34, 0.0  ;;  %v2458_v34 = vsel %vm2391_vm6, %v12697_v38, 0.0 }
 0xaf2   :  { %v12984_v52 = vpop.eup %10720  ;;  %10734 = vpow2.f32 %v3588_v37  ;;  %v2467_v38 = vsel %vm2391_vm6, %v12723_v14, 0.0  ;;  %v2473_v62 = vsel %vm2391_vm6, %v12756_v44, 0.0  ;;  %v2470_v44 = vsel %vm2391_vm6, %v12754_v36, 0.0 }
 0xaf3   :  { %v9588_v46 = vpop.f32.mrf.mxu1  ;;  %v3225_v19 = vsel %vm2391_vm6, %v12984_v52, 0.0  ;;  %v12992_v51 = vpop.eup %10722  ;;  %v3590_v33 = vmul.f32 1.442695, %v3575_v31 }
 0xaf4   :  { %3229 = vadd.xlane.f32.xlu1 %v3228_v15  ;;  %3226 = vadd.xlane.f32.xlu0 %v3225_v19  ;;  %v3563_v12 = vpop.xlane.xlu0 %3562  ;;  %v3234_v28 = vsel %vm2391_vm6, %v12992_v51, 0.0  ;;  %v3560_v2 = vpop.xlane.xlu1 %3559  ;;  %v3250_v15 = vpack.c.bf16 %v12980_v50, %v12984_v52 }
 0xaf5   :  { %v12994_v40 = vpop.f32.mrf.mxu1  ;;  %9698 = vmatmul.mubr.msk.bf16.vlgmr.msra.gmra.mxu1 %vm2391_vm6, %v3247_v54  ;;  %v3576_v47 = vsub.f32 %v12867_v35, %v3560_v2  ;;  %10736 = vpow2.f32 %v3590_v33  ;;  %v3577_v35 = vsub.f32 %v12872_v53, %v3563_v12 }
 0xaf6   :  { %v12997_v17 = vpop.eup %10724  ;;  %9746 = vmatpush3.bf16.msra.mxu1 %v12918_v39  ;;  %9701 = vmatprep.mubr.msk.bf16.mxu1 %vm11195_vm0, %v15733_v23 }
 0xaf7   :  { %v9591_v26 = vpop.f32.mrf.mxu1  ;;  %9747 = vmatprep.subr.bf16.mxu1 %v15733_v23  ;;  %v3231_v63 = vsel %vm2391_vm6, %v12997_v17, 0.0  ;;  %v13008_v49 = vpop.eup %10726  ;;  %v3592_v18 = vmul.f32 1.442695, %v3576_v47  ;;  %v3594_v11 = vmul.f32 1.442695, %v3577_v35 }
 0xaf8   :  { %3235 = vadd.xlane.f32.xlu1 %v3234_v28  ;;  %3232 = vadd.xlane.f32.xlu0 %v3231_v63  ;;  %v3600_v30 = vsel %vm2391_vm6, %v13008_v49, 0.0  ;;  %v3646_v29 = vpop.permute.xlu1 %3645  ;;  %v2476_v26 = vsel %vm2391_vm6, %v12787_v6, 0.0  ;;  %v3251_v63 = vpack.c.bf16 %v12992_v51, %v12997_v17 }
 0xaf9   :  { %v13010_v39 = vpop.f32.mrf.mxu1  ;;  %10738 = vpow2.f32 %v3592_v18 }
 0xafa   :  { %9748 = vmatpush3.bf16.msra.mxu1 %v12920_v5  ;;  %v13021_v58 = vpop.eup %10728  ;;  %v3648_v5 = vpop.permute.xlu0 %3647  ;;  %10740 = vpow2.f32 %v3594_v11 }
 0xafb   :  { %v9592_v7 = vpop.f32.mrf.mxu1  ;;  %9749 = vmatprep.subr.bf16.mxu1 %v15733_v23  ;;  %v3603_v60 = vsel %vm2391_vm6, %v13021_v58, 0.0  ;;  %v10731_v32 = vpop.eup %10730  ;;  %v3640_v6 = vpack.c.bf16 %v13021_v58, %v13008_v49 }
 0xafc   :  { %2462 = vadd.xlane.f32.xlu1 %v2461_v4  ;;  %3601 = vadd.xlane.f32.xlu0 %v3600_v30  ;;  %v3606_v10 = vsel %vm2391_vm6, %v10731_v32, 0.0  ;;  %v2479_v4 = vsel %vm2391_vm6, %v12789_v3, 0.0 }
 0xafd   :  { %v13023_v25 = vpop.f32.mrf.mxu1  ;;  %9702 = vmatmul.mubr.msk.bf16.gmra.mxu1 %vm2391_vm6, %v3248_v48 }
 0xafe   :  { %9750 = vmatpush3.bf16.msra.mxu1 %v3648_v5  ;;  %9705 = vmatprep.mubr.msk.bf16.mxu1 %vm11195_vm0, %v15733_v23  ;;  %v10733_v27 = vpop.eup %10732 }
 0xaff   :  { %v9595_v24 = vpop.f32.mrf.mxu1  ;;  %9751 = vmatprep.subr.bf16.mxu1 %v15733_v23  ;;  %v3609_v54 = vsel %vm2391_vm6, %v10733_v27, 0.0  ;;  %v10735_v20 = vpop.eup %10734  ;;  %v3641_v51 = vpack.c.bf16 %v10733_v27, %v10731_v32 }
 0xb00   :  { %3604 = vadd.xlane.f32.xlu1 %v3603_v60  ;;  %2459 = vadd.xlane.f32.xlu0 %v2458_v34  ;;  %v3612_v46 = vsel %vm2391_vm6, %v10735_v20, 0.0 }
 0xb01   :  { %v13034_v41 = vpop.f32.mrf.mxu1 }
 0xb02   :  { %9752 = vmatpush3.bf16.msra.mxu1 %v3646_v29  ;;  %v10737_v19 = vpop.eup %10736 }
 0xb03   :  { %v9596_v53 = vpop.f32.mrf.mxu1  ;;  %v3615_v31 = vsel %vm2391_vm6, %v10737_v19, 0.0  ;;  %v3642_v7 = vpack.c.bf16 %v10737_v19, %v10735_v20 }
 0xb04   :  { %2468 = vadd.xlane.f32.xlu1 %v2467_v38  ;;  %3607 = vadd.xlane.f32.xlu0 %v3606_v10 }
 0xb05   :  { %v13041_v42 = vpop.f32.mrf.mxu1  ;;  %9706 = vmatmul.mubr.msk.bf16.gmra.mxu1 %vm2391_vm6, %v3249_v13 }
 0xb06   :  { %9709 = vmatprep.mubr.msk.bf16.mxu1 %vm11195_vm0, %v15733_v23  ;;  %v10739_v12 = vpop.eup %10738 }
 0xb07   :  { %v9599_v14 = vpop.f32.mrf.mxu1  ;;  %v3618_v28 = vsel %vm2391_vm6, %v10739_v12, 0.0  ;;  %v10741_v2 = vpop.eup %10740 }
 0xb08   :  { %3610 = vadd.xlane.f32.xlu1 %v3609_v54  ;;  %2465 = vadd.xlane.f32.xlu0 %v2464_v9  ;;  %v3621_v36 = vsel %vm2391_vm6, %v10741_v2, 0.0  ;;  %v3643_v5 = vpack.c.bf16 %v10741_v2, %v10739_v12 }
 0xb09   :  { %v13049_v43 = vpop.f32.mrf.mxu1 }
 0xb0b   :  { %v9600_v61 = vpop.f32.mrf.mxu1 }
 0xb0c   :  { %2474 = vadd.xlane.f32.xlu1 %v2473_v62  ;;  %3613 = vadd.xlane.f32.xlu0 %v3612_v46 }
 0xb0d   :  { %v13056_v37 = vpop.f32.mrf.mxu1  ;;  %9710 = vmatmul.mubr.msk.bf16.gmra.mxu1 %vm2391_vm6, %v3250_v15 }
 0xb0e   :  { %9713 = vmatprep.mubr.msk.bf16.mxu1 %vm11195_vm0, %v15733_v23 }
 0xb0f   :  { %v9603_v8 = vpop.f32.mrf.mxu1 }
 0xb10   :  { %3616 = vadd.xlane.f32.xlu1 %v3615_v31  ;;  %2471 = vadd.xlane.f32.xlu0 %v2470_v44 }
 0xb11   :  { %v13064_v50 = vpop.f32.mrf.mxu1 }
 0xb13   :  { %v9604_v52 = vpop.f32.mrf.mxu1 }
 0xb14   :  { %2477 = vadd.xlane.f32.xlu1 %v2476_v26  ;;  %3619 = vadd.xlane.f32.xlu0 %v3618_v28 }
 0xb15   :  { %9714 = vmatmul.mubr.msk.bf16.gmra.mxu1 %vm2391_vm6, %v3251_v63 }
 0xb16   :  { %9753 = vmatprep.mubr.msk.bf16.mxu1 %vm11195_vm0, %v15733_v23 }
 0xb18   :  { %3622 = vadd.xlane.f32.xlu1 %v3621_v36  ;;  %2480 = vadd.xlane.f32.xlu0 %v2479_v4 }
 0xb1d   :  { %9754 = vmatmul.mubr.msk.bf16.vlgmr.msra.gmra.mxu1 %vm2391_vm6, %v3640_v6 }
 0xb1e   :  { %9757 = vmatprep.mubr.msk.bf16.mxu1 %vm11195_vm0, %v15733_v23 }
 0xb25   :  { %9758 = vmatmul.mubr.msk.bf16.gmra.mxu1 %vm2391_vm6, %v3641_v51 }
 0xb26   :  { %9761 = vmatprep.mubr.msk.bf16.mxu1 %vm11195_vm0, %v15733_v23 }
 0xb28   :  { %v3569_v17 = vpop.xlane.xlu0 %3568 }
 0xb29   :  { %v3579_v48 = vsub.f32 %v12887_v0, %v3569_v17  ;;  %v3566_v3 = vpop.xlane.xlu1 %3565 }
 0xb2a   :  { %v3578_v33 = vsub.f32 %v12890_v55, %v3566_v3 }
 0xb2b   :  { %v3598_v47 = vmul.f32 1.442695, %v3579_v48 }
 0xb2c   :  { %v3596_v49 = vmul.f32 1.442695, %v3578_v33  ;;  %v2454_v30 = vpop.xlane.xlu0 %2453 }
 0xb2d   :  { %10742 = vpow2.f32 %v3598_v47  ;;  %9762 = vmatmul.mubr.msk.bf16.gmra.mxu1 %vm2391_vm6, %v3642_v7  ;;  %v2457_v58 = vpop.xlane.xlu1 %2456 }
 0xb2e   :  { %10744 = vpow2.f32 %v3596_v49  ;;  %9765 = vmatprep.mubr.msk.bf16.mxu1 %vm11195_vm0, %v15733_v23 }
 0xb2f   :  { %10746 = vrcp.f32 %v2454_v30 }
 0xb30   :  { %10748 = vrcp.f32 %v2457_v58  ;;  %v2816_v53 = vpop.xlane.xlu0 %2815 }
 0xb31   :  { %10750 = vrcp.f32 %v2816_v53  ;;  %v2819_v10 = vpop.xlane.xlu1 %2818 }
 0xb32   :  { %10752 = vrcp.f32 %v2819_v10 }
 0xb34   :  { %v2822_v13 = vpop.xlane.xlu0 %2821 }
 0xb35   :  { %9766 = vmatmul.mubr.msk.bf16.gmra.mxu1 %vm2391_vm6, %v3643_v5  ;;  %10754 = vrcp.f32 %v2822_v13 }
 0xb36   :  { %9769 = vmatprep.mubr.msk.bf16.mxu1 %vm11195_vm0, %v15733_v23 }
 0xb3a   :  { %v10743_v0 = vpop.eup %10742 }
 0xb3b   :  { %v10745_v55 = vpop.eup %10744  ;;  %v3627_v34 = vsel %vm2391_vm6, %v10743_v0, 0.0 }
 0xb3c   :  { %v10747_v35 = vpop.eup %10746  ;;  %3628 = vadd.xlane.f32.xlu1 %v3627_v34  ;;  %v3624_v18 = vsel %vm2391_vm6, %v10745_v55, 0.0  ;;  %v3644_v24 = vpack.c.bf16 %v10743_v0, %v10745_v55 }
 0xb3d   :  { %v10749_v60 = vpop.eup %10748  ;;  %v2601_v32 = vmul.f32 %v10747_v35, %v12968_v22  ;;  %3625 = vadd.xlane.f32.xlu0 %v3624_v18  ;;  %v2825_v22 = vpop.xlane.xlu1 %2824 }
 0xb3e   :  { %v2602_v29 = vmul.f32 %v10749_v60, %v12982_v45  ;;  %9770 = vmatmul.mubr.msk.bf16.gmra.mxu1 %vm2391_vm6, %v3644_v24  ;;  %10756 = vrcp.f32 %v2825_v22  ;;  %v10751_v27 = vpop.eup %10750 }
 0xb3f   :  { %v2611_v38 = vadd.f32 %v2601_v32, %v12255_v59  ;;  %v10753_v9 = vpop.eup %10752 }
 0xb40   :  { %v2612_v11 = vadd.f32 %v2602_v29, %v12251_v56 }
 0xb41   :  { %2621 = vst.msk [vmem:[#allocation2] sm:$0xff] %vm550_vm5, %v2611_v38 }
 0xb42   :  { %2622 = vst.msk [vmem:[#allocation2 + $0x8] sm:$0xff] %vm550_vm5, %v2612_v11  ;;  %v10755_v19 = vpop.eup %10754 }
 0xb4b   :  { %v10757_v26 = vpop.eup %10756 }
 0xb60   :  { %v2920_v45 = vpop.f32.mrf.mxu1 }
 0xb61   :  { %v2959_v14 = vmul.f32 %v10751_v27, %v2920_v45  ;;  %v2828_v61 = vpop.xlane.xlu0 %2827 }
 0xb62   :  { %v9643_v54 = vpop.f32.mrf.mxu1 }
 0xb63   :  { %2979 = vrot.lane.b32.xlu0 %v2959_v14, %s11205_s25 }
 0xb64   :  { %v2923_v20 = vpop.f32.mrf.mxu1 }
 0xb65   :  { %v2960_v62 = vmul.f32 %v10753_v9, %v2923_v20  ;;  %v2831_v46 = vpop.xlane.xlu1 %2830  ;;  %v15757_v20 = vld [vmem:[#allocation16_spill] sm:$0xff] }
 0xb66   :  { %v9644_v15 = vpop.f32.mrf.mxu1 }
 0xb67   :  { %2981 = vrot.lane.b32.xlu1 %v2960_v62, %s11205_s25 }
 0xb68   :  { %v2928_v8 = vpop.f32.mrf.mxu1 }
 0xb69   :  { %v2961_v31 = vmul.f32 %v10755_v19, %v2928_v8  ;;  %v13104_v44 = vpop.xlane.xlu1 %2836  ;;  %v13106_v12 = vpop.xlane.xlu0 %2833 }
 0xb6a   :  { %v9647_v52 = vpop.f32.mrf.mxu1 }
 0xb6b   :  { %2983 = vrot.lane.b32.xlu0 %v2961_v31, %s11205_s25 }
 0xb6c   :  { %v2931_v28 = vpop.f32.mrf.mxu1 }
 0xb6d   :  { %v2962_v63 = vmul.f32 %v10757_v26, %v2931_v28  ;;  %v13109_v2 = vpop.xlane.xlu1 %2842  ;;  %v13111_v36 = vpop.xlane.xlu0 %2839  ;;  %v15758_v28 = vld [vmem:[#allocation12_spill] sm:$0xff] }
 0xb6e   :  { %v9648_v4 = vpop.f32.mrf.mxu1 }
 0xb6f   :  { %2985 = vrot.lane.b32.xlu1 %v2962_v63, %s11205_s25 }
 0xb71   :  { %v13114_v6 = vpop.xlane.xlu1 %3211  ;;  %v13116_v51 = vpop.xlane.xlu0 %3208 }
 0xb75   :  { %v13118_v17 = vpop.xlane.xlu1 %3217  ;;  %v13120_v48 = vpop.xlane.xlu0 %3214 }
 0xb79   :  { %v13122_v3 = vpop.xlane.xlu1 %3223  ;;  %v13124_v33 = vpop.xlane.xlu0 %3220 }
 0xb7d   :  { %v13126_v47 = vpop.xlane.xlu1 %3229  ;;  %v13128_v7 = vpop.xlane.xlu0 %3226 }
 0xb81   :  { %v13130_v49 = vpop.xlane.xlu1 %3235  ;;  %v13132_v30 = vpop.xlane.xlu0 %3232 }
 0xb85   :  { %v2463_v58 = vpop.xlane.xlu1 %2462  ;;  %v13134_v5 = vpop.xlane.xlu0 %3601 }
 0xb86   :  { %10758 = vrcp.f32 %v2463_v58 }
 0xb89   :  { %v13136_v0 = vpop.xlane.xlu1 %3604  ;;  %v2460_v55 = vpop.xlane.xlu0 %2459 }
 0xb8a   :  { %10760 = vrcp.f32 %v2460_v55 }
 0xb8d   :  { %v2469_v34 = vpop.xlane.xlu1 %2468  ;;  %v13138_v35 = vpop.xlane.xlu0 %3607 }
 0xb8e   :  { %10762 = vrcp.f32 %v2469_v34  ;;  %v15759_v34 = vld [vmem:[#allocation29_spill] sm:$0xff] }
 0xb8f   :  { %10764 = vrcp.f32 %v2828_v61 }
 0xb91   :  { %v13140_v18 = vpop.xlane.xlu1 %3610  ;;  %v2466_v24 = vpop.xlane.xlu0 %2465 }
 0xb92   :  { %10766 = vrcp.f32 %v2466_v24 }
 0xb93   :  { %v10759_v60 = vpop.eup %10758  ;;  %10768 = vrcp.f32 %v2831_v46 }
 0xb94   :  { %v2604_v32 = vmul.f32 %v10759_v60, %v13010_v39 }
 0xb95   :  { %v2475_v29 = vpop.xlane.xlu1 %2474  ;;  %v13143_v38 = vpop.xlane.xlu0 %3613 }
 0xb96   :  { %v2614_v11 = vadd.f32 %v2604_v32, %v12257_v57  ;;  %10770 = vrcp.f32 %v2475_v29 }
 0xb97   :  { %v10761_v53 = vpop.eup %10760 }
 0xb98   :  { %2624 = vst.msk [vmem:[#allocation2 + $0x18] sm:$0xff] %vm550_vm5, %v2614_v11  ;;  %v2603_v10 = vmul.f32 %v10761_v53, %v12994_v40 }
 0xb99   :  { %v13148_v13 = vpop.xlane.xlu1 %3616  ;;  %v2472_v22 = vpop.xlane.xlu0 %2471 }
 0xb9a   :  { %v2613_v45 = vadd.f32 %v2603_v10, %v12265_v16  ;;  %10772 = vrcp.f32 %v2472_v22 }
 0xb9b   :  { %v10763_v27 = vpop.eup %10762 }
 0xb9c   :  { %v2606_v39 = vmul.f32 %v10763_v27, %v13034_v41  ;;  %v10765_v14 = vpop.eup %10764  ;;  %2623 = vst.msk [vmem:[#allocation2 + $0x10] sm:$0xff] %vm550_vm5, %v2613_v45  ;;  %v15761_v45 = vld [vmem:[#allocation10_spill] sm:$0xff] }
 0xb9d   :  { %v2936_v54 = vpop.f32.mrf.mxu1  ;;  %v2478_v9 = vpop.xlane.xlu1 %2477 }
 0xb9e   :  { %v2616_v61 = vadd.f32 %v2606_v39, %v15757_v20  ;;  %v2963_v62 = vmul.f32 %v10765_v14, %v2936_v54  ;;  %10774 = vrcp.f32 %v2478_v9  ;;  %v13154_v46 = vpop.xlane.xlu0 %3619  ;;  %v15762_v9 = vld [vmem:[#allocation18_spill] sm:$0xff] }
 0xb9f   :  { %v9651_v40 = vpop.f32.mrf.mxu1  ;;  %v10767_v15 = vpop.eup %10766 }
 0xba0   :  { %2626 = vst.msk [vmem:[#allocation2 + $0x28] sm:$0xff] %vm550_vm5, %v2616_v61  ;;  %2987 = vrot.lane.b32.xlu1 %v2963_v62, %s11205_s25  ;;  %v10769_v19 = vpop.eup %10768  ;;  %v2605_v41 = vmul.f32 %v10767_v15, %v13023_v25 }
 0xba1   :  { %v2939_v8 = vpop.f32.mrf.mxu1 }
 0xba2   :  { %v2964_v31 = vmul.f32 %v10769_v19, %v2939_v8  ;;  %v2481_v52 = vpop.xlane.xlu0 %2480  ;;  %v2615_v63 = vadd.f32 %v2605_v41, %v15758_v28 }
 0xba3   :  { %v10771_v26 = vpop.eup %10770  ;;  %10776 = vrcp.f32 %v2481_v52  ;;  %v9652_v4 = vpop.f32.mrf.mxu1 }
 0xba4   :  { %v2608_v58 = vmul.f32 %v10771_v26, %v13049_v43  ;;  %2989 = vrot.lane.b32.xlu0 %v2964_v31, %s11205_s25  ;;  %2625 = vst.msk [vmem:[#allocation2 + $0x20] sm:$0xff] %vm550_vm5, %v2615_v63  ;;  %10778 = vrcp.f32 %v13116_v51  ;;  %v15760_v43 = vld [vmem:[#allocation28_spill] sm:$0xff]  ;;  %v10511_v4 = vld [vmem:[#allocation3 + $0x70] sm:$0xff]  }
 0xba5   :  { %v13163_v55 = vpop.f32.mrf.mxu1  ;;  %10780 = vrcp.f32 %v13114_v6  ;;  %9774 = vmatpush3.bf16.msra.mxu0 %v10511_v4 }
 0xba6   :  { %v2618_v24 = vadd.f32 %v2608_v58, %v15759_v34  ;;  %10782 = vrcp.f32 %v13120_v48  ;;  %9775 = vmatprep.subr.bf16.mxu0 %v15733_v23 }
 0xba7   :  { %v9655_v60 = vpop.f32.mrf.mxu1  ;;  %v10773_v25 = vpop.eup %10772  ;;  %10784 = vrcp.f32 %v13118_v17 }
 0xba8   :  { %2628 = vst.msk [vmem:[#allocation2 + $0x38] sm:$0xff] %vm550_vm5, %v2618_v24  ;;  %v2607_v32 = vmul.f32 %v10773_v25, %v13041_v42  ;;  %10786 = vrcp.f32 %v13124_v33 }
 0xba9   :  { %v13169_v29 = vpop.f32.mrf.mxu1  ;;  %10788 = vrcp.f32 %v13122_v3 }
 0xbaa   :  { %v2617_v53 = vadd.f32 %v2607_v32, %v15760_v43  ;;  %10790 = vrcp.f32 %v13134_v5 }
 0xbab   :  { %v10775_v11 = vpop.eup %10774  ;;  %v9656_v10 = vpop.f32.mrf.mxu1  ;;  %10792 = vrcp.f32 %v13106_v12 }
 0xbac   :  { %v2609_v22 = vmul.f32 %v10775_v11, %v13056_v37  ;;  %2627 = vst.msk [vmem:[#allocation2 + $0x30] sm:$0xff] %vm550_vm5, %v2617_v53  ;;  %10794 = vrcp.f32 %v13136_v0 }
 0xbad   :  { %v13175_v27 = vpop.f32.mrf.mxu1  ;;  %10796 = vrcp.f32 %v13104_v44 }
 0xbae   :  { %v2619_v51 = vadd.f32 %v2609_v22, %v15761_v45  ;;  %10798 = vrcp.f32 %v13138_v35 }
 0xbaf   :  { %v9659_v39 = vpop.f32.mrf.mxu1  ;;  %10800 = vrcp.f32 %v13128_v7 }
 0xbb0   :  { %v10777_v14 = vpop.eup %10776  ;;  %2629 = vst.msk [vmem:[#allocation2 + $0x40] sm:$0xff] %vm550_vm5, %v2619_v51  ;;  %v13196_v39 = vpop.xlane.xlu1 %3622  ;;  %10802 = vrcp.f32 %v13140_v18 }
 0xbb1   :  { %v2610_v42 = vmul.f32 %v10777_v14, %v13064_v50  ;;  %v13181_v54 = vpop.f32.mrf.mxu1  ;;  %v10779_v37 = vpop.eup %10778  ;;  %10804 = vrcp.f32 %v13126_v47 }
 0xbb2   :  { %v10781_v48 = vpop.eup %10780  ;;  %10806 = vrcp.f32 %v13143_v38 }
 0xbb3   :  { %v2620_v6 = vadd.f32 %v2610_v42, %v15762_v9  ;;  %v9660_v61 = vpop.f32.mrf.mxu1  ;;  %v10783_v8 = vpop.eup %10782  ;;  %10808 = vrcp.f32 %v13111_v36 }
 0xbb4   :  { %v10785_v26 = vpop.eup %10784  ;;  %10810 = vrcp.f32 %v13148_v13 }
 0xbb5   :  { %2630 = vst.msk [vmem:[#allocation2 + $0x48] sm:$0xff] %vm550_vm5, %v2620_v6  ;;  %v3313_v62 = vpop.f32.mrf.mxu1  ;;  %v10787_v24 = vpop.eup %10786  ;;  %10812 = vrcp.f32 %v13109_v2 }
 0xbb6   :  { %v3352_v40 = vmul.f32 %v10779_v37, %v3313_v62  ;;  %v10789_v32 = vpop.eup %10788  ;;  %10814 = vrcp.f32 %v13154_v46 }
 0xbb7   :  { %v9699_v15 = vpop.f32.mrf.mxu1  ;;  %v10791_v44 = vpop.eup %10790  ;;  %10816 = vrcp.f32 %v13132_v30 }
 0xbb8   :  { %3372 = vrot.lane.b32.xlu1 %v3352_v40, %s11206_s26  ;;  %10818 = vrcp.f32 %v13196_v39 }
 0xbb9   :  { %v3316_v19 = vpop.f32.mrf.mxu1  ;;  %10820 = vrcp.f32 %v13130_v49 }
 0xbba   :  { %v3353_v50 = vmul.f32 %v10781_v48, %v3316_v19  ;;  %v10512_v48 = vld [vmem:[#allocation3 + $0x68] sm:$0xff]  }
 0xbbb   :  { %v9700_v41 = vpop.f32.mrf.mxu1  ;;  %9776 = vmatpush3.bf16.msra.mxu0 %v10512_v48 }
 0xbbc   :  { %3374 = vrot.lane.b32.xlu0 %v3353_v50, %s11206_s26 }
 0xbbd   :  { %v3321_v17 = vpop.f32.mrf.mxu1 }
 0xbbe   :  { %v3354_v31 = vmul.f32 %v10783_v8, %v3321_v17 }
 0xbbf   :  { %v9703_v52 = vpop.f32.mrf.mxu1 }
 0xbc0   :  { %3376 = vrot.lane.b32.xlu1 %v3354_v31, %s11206_s26  ;;  %v10793_v31 = vpop.eup %10792 }
 0xbc1   :  { %v3324_v63 = vpop.f32.mrf.mxu1  ;;  %v10795_v7 = vpop.eup %10794 }
 0xbc2   :  { %v3355_v33 = vmul.f32 %v10785_v26, %v3324_v63  ;;  %v2965_v26 = vmul.f32 %v10793_v31, %v13163_v55  ;;  %v10797_v47 = vpop.eup %10796 }
 0xbc3   :  { %v9704_v58 = vpop.f32.mrf.mxu1  ;;  %v10799_v38 = vpop.eup %10798 }
 0xbc4   :  { %3378 = vrot.lane.b32.xlu0 %v3355_v33, %s11206_s26 }
 0xbc5   :  { %v3329_v3 = vpop.f32.mrf.mxu1  ;;  %v13204_v61 = vpop.xlane.xlu1 %3628 }
 0xbc6   :  { %v3356_v60 = vmul.f32 %v10787_v24, %v3329_v3  ;;  %v13198_v14 = vpop.xlane.xlu0 %3625  ;;  %v2966_v24 = vmul.f32 %v10797_v47, %v13169_v29 }
 0xbc7   :  { %v9707_v25 = vpop.f32.mrf.mxu1  ;;  %10822 = vrcp.f32 %v13198_v14 }
 0xbc8   :  { %3380 = vrot.lane.b32.xlu1 %v3356_v60, %s11206_s26  ;;  %v10801_v60 = vpop.eup %10800  ;;  %10824 = vrcp.f32 %v13204_v61 }
 0xbc9   :  { %v3332_v11 = vpop.f32.mrf.mxu1  ;;  %v10803_v36 = vpop.eup %10802 }
 0xbca   :  { %v3357_v53 = vmul.f32 %v10789_v32, %v3332_v11 }
 0xbcb   :  { %v9708_v10 = vpop.f32.mrf.mxu1 }
 0xbcc   :  { %3382 = vrot.lane.b32.xlu0 %v3357_v53, %s11206_s26  ;;  %v10805_v53 = vpop.eup %10804 }
 0xbcd   :  { %v3337_v22 = vpop.f32.mrf.mxu1  ;;  %v10807_v2 = vpop.eup %10806 }
 0xbce   :  { %v3358_v25 = vmul.f32 %v10801_v60, %v3337_v22 }
 0xbcf   :  { %v9711_v51 = vpop.f32.mrf.mxu1 }
 0xbd1   :  { %v13200_v42 = vpop.f32.mrf.mxu1 }
 0xbd2   :  { %v3359_v29 = vmul.f32 %v10805_v53, %v13200_v42 }
 0xbd3   :  { %v9712_v6 = vpop.f32.mrf.mxu1 }
 0xbd4   :  { %v10809_v6 = vpop.eup %10808 }
 0xbd5   :  { %v13206_v37 = vpop.f32.mrf.mxu1  ;;  %v2980_v62 = vpop.permute.xlu0 %2979  ;;  %v2967_v39 = vmul.f32 %v10809_v6, %v13175_v27 }
 0xbd6   :  { %v3009_v40 = vadd.f32 %v2980_v62, %v12255_v59  ;;  %v10811_v30 = vpop.eup %10810 }
 0xbd7   :  { %v9715_v5 = vpop.f32.mrf.mxu1 }
 0xbd8   :  { %3019 = vst.msk [vmem:[#allocation2] sm:$0xff] %vm1187_vm15, %v3009_v40  ;;  %v10813_v5 = vpop.eup %10812 }
 0xbd9   :  { %v13212_v15 = vpop.f32.mrf.mxu1  ;;  %v2982_v12 = vpop.permute.xlu1 %2981 }
 0xbda   :  { %v3010_v0 = vadd.f32 %v2982_v12, %v12251_v56  ;;  %v10815_v42 = vpop.eup %10814  ;;  %v2968_v12 = vmul.f32 %v10813_v5, %v13181_v54 }
 0xbdb   :  { %v9716_v19 = vpop.f32.mrf.mxu1 }
 0xbdc   :  { %3020 = vst.msk [vmem:[#allocation2 + $0x8] sm:$0xff] %vm1187_vm15, %v3010_v0  ;;  %v10817_v19 = vpop.eup %10816 }
 0xbdd   :  { %v3706_v50 = vpop.f32.mrf.mxu1  ;;  %v2984_v41 = vpop.permute.xlu0 %2983 }
 0xbde   :  { %v3745_v35 = vmul.f32 %v10791_v44, %v3706_v50  ;;  %v3011_v8 = vadd.f32 %v2984_v41, %v12265_v16  ;;  %v10819_v27 = vpop.eup %10818  ;;  %v3360_v44 = vmul.f32 %v10817_v19, %v13206_v37 }
 0xbdf   :  { %v9755_v17 = vpop.f32.mrf.mxu1  ;;  %v10821_v61 = vpop.eup %10820 }
 0xbe0   :  { %3021 = vst.msk [vmem:[#allocation2 + $0x10] sm:$0xff] %vm1187_vm15, %v3011_v8  ;;  %3765 = vrot.lane.b32.xlu1 %v3745_v35, %s11207_s27  ;;  %v10823_v35 = vpop.eup %10822  ;;  %v3361_v54 = vmul.f32 %v10821_v61, %v13212_v15  ;;  %v10516_v15 = vld [vmem:[#allocation3 + $0x80] sm:$0xff]  }
 0xbe1   :  { %v3709_v18 = vpop.f32.mrf.mxu1  ;;  %v2986_v52 = vpop.permute.xlu1 %2985 }
 0xbe2   :  { %v3746_v63 = vmul.f32 %v10795_v7, %v3709_v18  ;;  %v3012_v4 = vadd.f32 %v2986_v52, %v12257_v57  ;;  %v10825_v7 = vpop.eup %10824 }
 0xbe3   :  { %v9756_v33 = vpop.f32.mrf.mxu1 }
 0xbe4   :  { %3022 = vst.msk [vmem:[#allocation2 + $0x18] sm:$0xff] %vm1187_vm15, %v3012_v4  ;;  %3767 = vrot.lane.b32.xlu0 %v3746_v63, %s11207_s27  ;;  %2991 = vrot.lane.b32.xlu1 %v2965_v26, %s11205_s25  ;;  %v10513_v26 = vld [vmem:[#allocation3 + $0xa0] sm:$0xff]   ;;  %v10514_v63 = vld [vmem:[#allocation3 + $0x98] sm:$0xff]   ;;  %v10517_v33 = vld [vmem:[#allocation3 + $0x88] sm:$0xff]  }
 0xbe5   :  { %v3714_v58 = vpop.f32.mrf.mxu1  ;;  %v10515_v4 = vld [vmem:[#allocation3 + $0x78] sm:$0xff]   ;;  %9797 = vmatprep.subr.bf16.mxu1 %v10513_v26 }
 0xbe6   :  { %v3747_v55 = vmul.f32 %v10799_v38, %v3714_v58  ;;  %9801 = vmatprep.mubr.msk.bf16.mxu1 %vm286_vm3, %v10515_v4  ;;  %9798 = vmatpush3.bf16.msra.mxu1 %v10513_v26 }
 0xbe7   :  { %v9759_v3 = vpop.f32.mrf.mxu1  ;;  %9799 = vmatprep.subr.bf16.mxu1 %v10514_v63 }
 0xbe8   :  { %2993 = vrot.lane.b32.xlu0 %v2966_v24, %s11205_s25  ;;  %3769 = vrot.lane.b32.xlu1 %v3747_v55, %s11207_s27 }
 0xbe9   :  { %v3717_v13 = vpop.f32.mrf.mxu1 }
 0xbea   :  { %v3748_v32 = vmul.f32 %v10803_v36, %v3717_v13  ;;  %9800 = vmatpush3.bf16.msra.mxu1 %v10514_v63 }
 0xbeb   :  { %v9760_v11 = vpop.f32.mrf.mxu1  ;;  %9809 = vmatprep.subr.bf16.mxu1 %v15733_v23 }
 0xbec   :  { %3771 = vrot.lane.b32.xlu0 %v3748_v32, %s11207_s27  ;;  %3384 = vrot.lane.b32.xlu1 %v3358_v25, %s11206_s26 }
 0xbed   :  { %v3722_v46 = vpop.f32.mrf.mxu1  ;;  %9802 = vmatmul.mubr.msk.bf16.vlgmr.msra.gmra.mxu1 %vm286_vm3, %v10516_v15 }
 0xbee   :  { %v3749_v10 = vmul.f32 %v10807_v2, %v3722_v46  ;;  %9805 = vmatprep.mubr.msk.bf16.mxu1 %vm286_vm3, %v10517_v33 }
 0xbef   :  { %v9763_v51 = vpop.f32.mrf.mxu1 }
 0xbf0   :  { %3386 = vrot.lane.b32.xlu0 %v3359_v29, %s11206_s26  ;;  %3773 = vrot.lane.b32.xlu1 %v3749_v10, %s11207_s27 }
 0xbf1   :  { %v3725_v22 = vpop.f32.mrf.mxu1 }
 0xbf2   :  { %v3750_v62 = vmul.f32 %v10811_v30, %v3725_v22 }
 0xbf3   :  { %v9764_v40 = vpop.f32.mrf.mxu1 }
 0xbf4   :  { %3775 = vrot.lane.b32.xlu0 %v3750_v62, %s11207_s27  ;;  %2995 = vrot.lane.b32.xlu1 %v2967_v39, %s11205_s25 }
 0xbf5   :  { %v3730_v49 = vpop.f32.mrf.mxu1 }
 0xbf6   :  { %v3751_v48 = vmul.f32 %v10815_v42, %v3730_v49 }
 0xbf7   :  { %v9767_v0 = vpop.f32.mrf.mxu1 }
 0xbf8   :  { %2997 = vrot.lane.b32.xlu0 %v2968_v12, %s11205_s25  ;;  %3777 = vrot.lane.b32.xlu1 %v3751_v48, %s11207_s27 }
 0xbf9   :  { %v3733_v14 = vpop.f32.mrf.mxu1 }
 0xbfa   :  { %v3752_v50 = vmul.f32 %v10819_v27, %v3733_v14 }
 0xbfb   :  { %v9768_v41 = vpop.f32.mrf.mxu1 }
 0xbfc   :  { %3779 = vrot.lane.b32.xlu0 %v3752_v50, %s11207_s27  ;;  %3388 = vrot.lane.b32.xlu1 %v3360_v44, %s11206_s26 }
 0xbfe   :  { %v3738_v8 = vpop.f32.mrf.mxu1 }
 0xbff   :  { %v3753_v17 = vmul.f32 %v10823_v35, %v3738_v8 }
 0xc00   :  { %v9771_v31 = vpop.f32.mrf.mxu1  ;;  %3390 = vrot.lane.b32.xlu0 %v3361_v54, %s11206_s26 }
 0xc01   :  { %3781 = vrot.lane.b32.xlu1 %v3753_v17, %s11207_s27 }
 0xc02   :  { %v3741_v18 = vpop.f32.mrf.mxu1 }
 0xc03   :  { %v3754_v37 = vmul.f32 %v10825_v7, %v3741_v18 }
 0xc04   :  { %v9772_v52 = vpop.f32.mrf.mxu1 }
 0xc05   :  { %3783 = vrot.lane.b32.xlu0 %v3754_v37, %s11207_s27 }
 0xc12   :  { %v2988_v47 = vpop.permute.xlu1 %2987 }
 0xc13   :  { %v3013_v38 = vadd.f32 %v2988_v47, %v15758_v28 }
 0xc15   :  { %3023 = vst.msk [vmem:[#allocation2 + $0x20] sm:$0xff] %vm1187_vm15, %v3013_v38 }
 0xc16   :  { %v2990_v58 = vpop.permute.xlu0 %2989 }
 0xc17   :  { %v3014_v24 = vadd.f32 %v2990_v58, %v15757_v20 }
 0xc19   :  { %3024 = vst.msk [vmem:[#allocation2 + $0x28] sm:$0xff] %vm1187_vm15, %v3014_v24 }
 0xc2a   :  { %v3373_v55 = vpop.permute.xlu1 %3372 }
 0xc2b   :  { %v3402_v3 = vadd.f32 %v3373_v55, %v12255_v59 }
 0xc2d   :  { %3412 = vst.msk [vmem:[#allocation2] sm:$0xff] %vm1530_vm1, %v3402_v3 }
 0xc2e   :  { %v3375_v60 = vpop.permute.xlu0 %3374 }
 0xc2f   :  { %v3403_v36 = vadd.f32 %v3375_v60, %v12251_v56  ;;  %v10518_v60 = vld [vmem:[#allocation3 + $0x90] sm:$0xff]  }
 0xc30   :  { %9806 = vmatmul.mubr.msk.bf16.gmra.mxu1 %vm286_vm3, %v10518_v60 }
 0xc31   :  { %3413 = vst.msk [vmem:[#allocation2 + $0x8] sm:$0xff] %vm1530_vm1, %v3403_v36  ;;  %9813 = vmatprep.mubr.msk.bf16.mxu1 %vm11195_vm0, %v15733_v23  ;;  %v10519_v36 = vld [vmem:[#allocation3 + $0xb0] sm:$0xff]  }
 0xc32   :  { %v3377_v13 = vpop.permute.xlu1 %3376  ;;  %9810 = vmatpush3.bf16.msra.mxu1 %v10519_v36 }
 0xc33   :  { %v3404_v25 = vadd.f32 %v3377_v13, %v12265_v16  ;;  %9811 = vmatprep.subr.bf16.mxu1 %v15733_v23  ;;  %v10520_v13 = vld [vmem:[#allocation3 + $0xa8] sm:$0xff]  }
 0xc35   :  { %3414 = vst.msk [vmem:[#allocation2 + $0x10] sm:$0xff] %vm1530_vm1, %v3404_v25 }
 0xc36   :  { %v3379_v32 = vpop.permute.xlu0 %3378  ;;  %9812 = vmatpush3.bf16.msra.mxu1 %v10520_v13 }
 0xc37   :  { %v3405_v11 = vadd.f32 %v3379_v32, %v12257_v57 }
 0xc39   :  { %3415 = vst.msk [vmem:[#allocation2 + $0x18] sm:$0xff] %vm1530_vm1, %v3405_v11 }
 0xc3a   :  { %v3381_v53 = vpop.permute.xlu1 %3380 }
 0xc3b   :  { %v3406_v2 = vadd.f32 %v3381_v53, %v15758_v28  ;;  %v13368_v53 = vld [vmem:[%s15595_s9 + $0x7] ss:$0 sm:$0xff] }
 0xc3d   :  { %3416 = vst.msk [vmem:[#allocation2 + $0x20] sm:$0xff] %vm1530_vm1, %v3406_v2 }
 0xc3e   :  { %v3383_v46 = vpop.permute.xlu0 %3382 }
 0xc3f   :  { %v3407_v29 = vadd.f32 %v3383_v46, %v15757_v20 }
 0xc41   :  { %3417 = vst.msk [vmem:[#allocation2 + $0x28] sm:$0xff] %vm1530_vm1, %v3407_v29 }
 0xc52   :  { %v3766_v10 = vpop.permute.xlu1 %3765 }
 0xc53   :  { %v3795_v51 = vadd.f32 %v3766_v10, %v12255_v59 }
 0xc55   :  { %3805 = vst.msk [vmem:[#allocation2] sm:$0xff] %vm1873_vm2, %v3795_v51 }
 0xc56   :  { %v2992_v6 = vpop.permute.xlu1 %2991  ;;  %v3768_v30 = vpop.permute.xlu0 %3767 }
 0xc57   :  { %v3015_v22 = vadd.f32 %v2992_v6, %v15760_v43  ;;  %v3796_v39 = vadd.f32 %v3768_v30, %v12251_v56  ;;  %v8687_v30 = vld [vmem:[%s15595_s9 + $0x6] ss:$0 sm:$0xff] }
 0xc59   :  { %3025 = vst.msk [vmem:[#allocation2 + $0x30] sm:$0xff] %vm1187_vm15, %v3015_v22 }
 0xc5a   :  { %3806 = vst.msk [vmem:[#allocation2 + $0x8] sm:$0xff] %vm1873_vm2, %v3796_v39  ;;  %v3770_v62 = vpop.permute.xlu1 %3769  ;;  %v2994_v40 = vpop.permute.xlu0 %2993 }
 0xc5b   :  { %v3797_v5 = vadd.f32 %v3770_v62, %v12265_v16  ;;  %v3016_v42 = vadd.f32 %v2994_v40, %v15759_v34 }
 0xc5c   :  { %v13290_v48 = vld [vmem:[#allocation2] sm:$0xff] }
 0xc5d   :  { %3807 = vst.msk [vmem:[#allocation2 + $0x10] sm:$0xff] %vm1873_vm2, %v3797_v5 }
 0xc5e   :  { %3026 = vst.msk [vmem:[#allocation2 + $0x38] sm:$0xff] %vm1187_vm15, %v3016_v42  ;;  %v3385_v59 = vpop.permute.xlu1 %3384  ;;  %v3772_v49 = vpop.permute.xlu0 %3771 }
 0xc5f   :  { %v3408_v12 = vadd.f32 %v3385_v59, %v15760_v43  ;;  %v3798_v56 = vadd.f32 %v3772_v49, %v12257_v57 }
 0xc61   :  { %v13292_v0 = vld [vmem:[#allocation2 + $0x8] sm:$0xff]  ;;  %3418 = vst.msk [vmem:[#allocation2 + $0x30] sm:$0xff] %vm1530_vm1, %v3408_v12 }
 0xc62   :  { %3808 = vst.msk [vmem:[#allocation2 + $0x18] sm:$0xff] %vm1873_vm2, %v3798_v56  ;;  %v3825_v16 = vpack.c.bf16 %v13292_v0, %v13290_v48  ;;  %v3774_v19 = vpop.permute.xlu1 %3773  ;;  %v3387_v27 = vpop.permute.xlu0 %3386 }
 0xc63   :  { %v3799_v14 = vadd.f32 %v3774_v19, %v15758_v28  ;;  %v3409_v44 = vadd.f32 %v3387_v27, %v15759_v34 }
 0xc64   :  { %9778 = vmatmul.mubr.msk.bf16.vlgmr.msra.gmra.mxu0 %vm286_vm3, %v3825_v16  ;;  %v13307_v35 = vld [vmem:[#allocation2 + $0x10] sm:$0xff] }
 0xc65   :  { %9781 = vmatprep.mubr.msk.bf16.mxu0 %vm11195_vm0, %v15733_v23  ;;  %3809 = vst.msk [vmem:[#allocation2 + $0x20] sm:$0xff] %vm1873_vm2, %v3799_v14 }
 0xc66   :  { %3419 = vst.msk [vmem:[#allocation2 + $0x38] sm:$0xff] %vm1530_vm1, %v3409_v44  ;;  %v2996_v57 = vpop.permute.xlu1 %2995  ;;  %v3776_v50 = vpop.permute.xlu0 %3775 }
 0xc67   :  { %v3017_v41 = vadd.f32 %v2996_v57, %v15761_v45  ;;  %v3800_v61 = vadd.f32 %v3776_v50, %v15757_v20 }
 0xc69   :  { %v13309_v28 = vld [vmem:[#allocation2 + $0x18] sm:$0xff]  ;;  %3027 = vst.msk [vmem:[#allocation2 + $0x40] sm:$0xff] %vm1187_vm15, %v3017_v41 }
 0xc6a   :  { %3810 = vst.msk [vmem:[#allocation2 + $0x28] sm:$0xff] %vm1873_vm2, %v3800_v61  ;;  %v3826_v54 = vpack.c.bf16 %v13309_v28, %v13307_v35  ;;  %v3778_v8 = vpop.permute.xlu1 %3777  ;;  %v2998_v17 = vpop.permute.xlu0 %2997 }
 0xc6b   :  { %v3801_v31 = vadd.f32 %v3778_v8, %v15760_v43  ;;  %v3018_v7 = vadd.f32 %v2998_v17, %v15762_v9 }
 0xc6c   :  { %9782 = vmatmul.mubr.msk.bf16.gmra.mxu0 %vm286_vm3, %v3826_v54  ;;  %v13324_v26 = vld [vmem:[#allocation2 + $0x20] sm:$0xff] }
 0xc6d   :  { %9785 = vmatprep.mubr.msk.bf16.mxu0 %vm11195_vm0, %v15733_v23  ;;  %3811 = vst.msk [vmem:[#allocation2 + $0x30] sm:$0xff] %vm1873_vm2, %v3801_v31 }
 0xc6e   :  { %3028 = vst.msk [vmem:[#allocation2 + $0x48] sm:$0xff] %vm1187_vm15, %v3018_v7  ;;  %v3389_v20 = vpop.permute.xlu1 %3388  ;;  %v3780_v18 = vpop.permute.xlu0 %3779 }
 0xc6f   :  { %v3410_v37 = vadd.f32 %v3389_v20, %v15761_v45  ;;  %v3802_v52 = vadd.f32 %v3780_v18, %v15759_v34 }
 0xc71   :  { %v13326_v43 = vld [vmem:[#allocation2 + $0x28] sm:$0xff]  ;;  %3420 = vst.msk [vmem:[#allocation2 + $0x40] sm:$0xff] %vm1530_vm1, %v3410_v37 }
 0xc72   :  { %3812 = vst.msk [vmem:[#allocation2 + $0x38] sm:$0xff] %vm1873_vm2, %v3802_v52  ;;  %v3827_v63 = vpack.c.bf16 %v13326_v43, %v13324_v26  ;;  %v3391_v4 = vpop.permute.xlu0 %3390 }
 0xc73   :  { %v3411_v15 = vadd.f32 %v3391_v4, %v15762_v9  ;;  %v3782_v33 = vpop.permute.xlu1 %3781 }
 0xc74   :  { %9786 = vmatmul.mubr.msk.bf16.gmra.mxu0 %vm286_vm3, %v3827_v63  ;;  %v3803_v47 = vadd.f32 %v3782_v33, %v15761_v45  ;;  %v13340_v58 = vld [vmem:[#allocation2 + $0x30] sm:$0xff] }
 0xc75   :  { %9789 = vmatprep.mubr.msk.bf16.mxu0 %vm11195_vm0, %v15733_v23  ;;  %3421 = vst.msk [vmem:[#allocation2 + $0x48] sm:$0xff] %vm1530_vm1, %v3411_v15 }
 0xc76   :  { %3813 = vst.msk [vmem:[#allocation2 + $0x40] sm:$0xff] %vm1873_vm2, %v3803_v47 }
 0xc77   :  { %v3784_v34 = vpop.permute.xlu0 %3783 }
 0xc78   :  { %v3804_v38 = vadd.f32 %v3784_v34, %v15762_v9 }
 0xc79   :  { %v13342_v24 = vld [vmem:[#allocation2 + $0x38] sm:$0xff] }
 0xc7a   :  { %v3828_v55 = vpack.c.bf16 %v13342_v24, %v13340_v58  ;;  %3814 = vst.msk [vmem:[#allocation2 + $0x48] sm:$0xff] %vm1873_vm2, %v3804_v38 }
 0xc7c   :  { %9790 = vmatmul.mubr.msk.bf16.gmra.mxu0 %vm286_vm3, %v3828_v55 }
 0xc7d   :  { %9793 = vmatprep.mubr.msk.bf16.mxu0 %vm11195_vm0, %v15733_v23  ;;  %v13350_v45 = vld [vmem:[#allocation2 + $0x40] sm:$0xff] }
 0xc81   :  { %v13352_v3 = vld [vmem:[#allocation2 + $0x48] sm:$0xff] }
 0xc82   :  { %v3829_v9 = vpack.c.bf16 %v13352_v3, %v13350_v45 }
 0xc84   :  { %9794 = vmatmul.mubr.msk.bf16.gmra.mxu0 %vm286_vm3, %v3829_v9 }
 0xcad   :  { %v13361_v25 = vpop.f32.mrf.mxu1 }
 0xcaf   :  { %v4054_v32 = vpop.f32.mrf.mxu1 }
 0xcb0   :  { %v13371_v46 = vadd.f32 %v13368_v53, %v4054_v32 }
 0xcb1   :  { %v13363_v11 = vpop.f32.mrf.mxu1 }
 0xcb2   :  { %v4199_v10 = vmul.f32 0.17677669, %v13371_v46 }
 0xcb3   :  { %v4057_v2 = vpop.f32.mrf.mxu1 }
 0xcb4   :  { %v13374_v29 = vadd.f32 %v13368_v53, %v4057_v2 }
 0xcb6   :  { %15763 = vst [vmem:[#allocation15_spill] sm:$0xff] %v13374_v29  ;;  %v4200_v51 = vmul.f32 0.17677669, %v13374_v29 }
 0xcb8   :  { %v13378_v6 = vpack.c.bf16 %v4200_v51, %v4199_v10 }
 0xcba   :  { %9843 = vmatprep.mubr.msk.bf16.mxu0 %vm550_vm5, %v13378_v6 }
 0xd24   :  { %v3900_v22 = vpop.f32.mrf.mxu0 }
 0xd25   :  { %v3901_v39 = vadd.f32 %v8687_v30, %v3900_v22 }
 0xd26   :  { %v9779_v62 = vpop.f32.mrf.mxu0 }
 0xd27   :  { %v3939_v5 = vmax.f32 %v3901_v39, 0.0 }
 0xd28   :  { %v3903_v40 = vpop.f32.mrf.mxu0 }
 0xd29   :  { %v3904_v42 = vadd.f32 %v8687_v30, %v3903_v40  ;;  %v3949_v56 = vadd.f32 %v3939_v5, %v13290_v48  ;;  %v13423_v40 = vpop.f32.mrf.mxu1 }
 0xd2a   :  { %v9780_v59 = vpop.f32.mrf.mxu0 }
 0xd2b   :  { %v3940_v49 = vmax.f32 %v3904_v42, 0.0  ;;  %v4070_v5 = vpop.f32.mrf.mxu1 }
 0xd2c   :  { %v3908_v12 = vpop.f32.mrf.mxu0 }
 0xd2d   :  { %v3950_v16 = vadd.f32 %v3940_v49, %v13292_v0  ;;  %v3909_v19 = vadd.f32 %v8687_v30, %v3908_v12  ;;  %v13425_v42 = vpop.f32.mrf.mxu1 }
 0xd2e   :  { %v9783_v27 = vpop.f32.mrf.mxu0 }
 0xd2f   :  { %v13387_v14 = vpack.c.bf16 %v3950_v16, %v3949_v56  ;;  %v3941_v57 = vmax.f32 %v3909_v19, 0.0 }
 0xd30   :  { %v3911_v44 = vpop.f32.mrf.mxu0 }
 0xd31   :  { %15764 = vst [vmem:[#allocation16_spill] sm:$0xff] %v13387_v14  ;;  %v3912_v50 = vadd.f32 %v8687_v30, %v3911_v44  ;;  %9814 = vmatmul.mubr.msk.bf16.vlgmr.msra.gmra.mxu1 %vm286_vm3, %v13387_v14  ;;  %v3951_v48 = vadd.f32 %v3941_v57, %v13307_v35 }
 0xd32   :  { %v9784_v41 = vpop.f32.mrf.mxu0  ;;  %9817 = vmatprep.mubr.msk.bf16.mxu1 %vm11195_vm0, %v15733_v23 }
 0xd33   :  { %v3942_v61 = vmax.f32 %v3912_v50, 0.0 }
 0xd34   :  { %v3916_v54 = vpop.f32.mrf.mxu0 }
 0xd35   :  { %v3952_v0 = vadd.f32 %v3942_v61, %v13309_v28  ;;  %v3917_v8 = vadd.f32 %v8687_v30, %v3916_v54  ;;  %v8706_v54 = vld [vmem:[%s15595_s9 + $0x8] ss:$0 sm:$0xff] }
 0xd36   :  { %v9787_v17 = vpop.f32.mrf.mxu0 }
 0xd37   :  { %v13395_v31 = vpack.c.bf16 %v3952_v0, %v3951_v48  ;;  %v3943_v20 = vmax.f32 %v3917_v8, 0.0 }
 0xd38   :  { %v3919_v7 = vpop.f32.mrf.mxu0 }
 0xd39   :  { %15765 = vst [vmem:[#allocation12_spill] sm:$0xff] %v13395_v31  ;;  %v3920_v18 = vadd.f32 %v8687_v30, %v3919_v7  ;;  %9818 = vmatmul.mubr.msk.bf16.gmra.mxu1 %vm286_vm3, %v13395_v31  ;;  %v3953_v35 = vadd.f32 %v3943_v20, %v13324_v26 }
 0xd3a   :  { %v9788_v37 = vpop.f32.mrf.mxu0  ;;  %9821 = vmatprep.mubr.msk.bf16.mxu1 %vm11195_vm0, %v15733_v23 }
 0xd3b   :  { %v3944_v52 = vmax.f32 %v3920_v18, 0.0 }
 0xd3c   :  { %v3924_v63 = vpop.f32.mrf.mxu0 }
 0xd3d   :  { %v3954_v28 = vadd.f32 %v3944_v52, %v13326_v43  ;;  %v3925_v4 = vadd.f32 %v8687_v30, %v3924_v63  ;;  %v13436_v52 = vadd.f32 %v13361_v25, %v13368_v53  ;;  %v13440_v63 = vadd.f32 %v13363_v11, %v13368_v53 }
 0xd3e   :  { %v9791_v15 = vpop.f32.mrf.mxu0 }
 0xd3f   :  { %v13403_v33 = vpack.c.bf16 %v3954_v28, %v3953_v35  ;;  %v3945_v34 = vmax.f32 %v3925_v4, 0.0  ;;  %15769 = vst [vmem:[#allocation18_spill] sm:$0xff] %v13440_v63 }
 0xd40   :  { %v3927_v47 = vpop.f32.mrf.mxu0 }
 0xd41   :  { %15766 = vst [vmem:[#allocation29_spill] sm:$0xff] %v13403_v33  ;;  %v3928_v38 = vadd.f32 %v8687_v30, %v3927_v47  ;;  %9822 = vmatmul.mubr.msk.bf16.gmra.mxu1 %vm286_vm3, %v13403_v33  ;;  %v3955_v60 = vadd.f32 %v3945_v34, %v13340_v58 }
 0xd42   :  { %v9792_v55 = vpop.f32.mrf.mxu0  ;;  %9825 = vmatprep.mubr.msk.bf16.mxu1 %vm11195_vm0, %v15733_v23 }
 0xd43   :  { %v3946_v9 = vmax.f32 %v3928_v38, 0.0  ;;  %v4201_v38 = vmul.f32 0.17677669, %v13436_v52  ;;  %v4202_v55 = vmul.f32 0.17677669, %v13440_v63 }
 0xd44   :  { %v3932_v43 = vpop.f32.mrf.mxu0 }
 0xd45   :  { %v3956_v26 = vadd.f32 %v3946_v9, %v13342_v24  ;;  %v3933_v36 = vadd.f32 %v8687_v30, %v3932_v43 }
 0xd46   :  { %v9795_v32 = vpop.f32.mrf.mxu0 }
 0xd47   :  { %v13411_v13 = vpack.c.bf16 %v3956_v26, %v3955_v60  ;;  %v3947_v10 = vmax.f32 %v3933_v36, 0.0  ;;  %v13459_v26 = vadd.f32 %v13368_v53, %v4070_v5  ;;  %v13464_v36 = vpack.c.bf16 %v4202_v55, %v4201_v38 }
 0xd48   :  { %v3935_v2 = vpop.f32.mrf.mxu0  ;;  %v13494_v5 = vadd.f32 %v13423_v40, %v13368_v53 }
 0xd49   :  { %15767 = vst [vmem:[#allocation28_spill] sm:$0xff] %v13411_v13  ;;  %9826 = vmatmul.mubr.msk.bf16.gmra.mxu1 %vm286_vm3, %v13411_v13  ;;  %v3936_v51 = vadd.f32 %v8687_v30, %v3935_v2  ;;  %v3957_v58 = vadd.f32 %v3947_v10, %v13350_v45  ;;  %v4073_v30 = vpop.f32.mrf.mxu1  ;;  %15770 = vst [vmem:[#allocation34_spill] sm:$0xff] %v13459_v26 }
 0xd4a   :  { %9829 = vmatprep.mubr.msk.bf16.mxu1 %vm11195_vm0, %v15733_v23  ;;  %v9796_v22 = vpop.f32.mrf.mxu0  ;;  %v13462_v43 = vadd.f32 %v13368_v53, %v4073_v30  ;;  %15772 = vst [vmem:[#allocation36_spill] sm:$0xff] %v13494_v5  ;;  %v13498_v30 = vadd.f32 %v13425_v42, %v13368_v53 }
 0xd4b   :  { %v3948_v39 = vmax.f32 %v3936_v51, 0.0  ;;  %v4203_v51 = vmul.f32 0.17677669, %v13459_v26 }
 0xd4c   :  { %15771 = vst [vmem:[#allocation35_spill] sm:$0xff] %v13462_v43  ;;  %v4204_v22 = vmul.f32 0.17677669, %v13462_v43  ;;  %15773 = vst [vmem:[#allocation37_spill] sm:$0xff] %v13498_v30 }
 0xd4d   :  { %v3958_v24 = vadd.f32 %v3948_v39, %v13352_v3 }
 0xd4f   :  { %v13419_v62 = vpack.c.bf16 %v3958_v24, %v3957_v58  ;;  %v13484_v24 = vpack.c.bf16 %v4204_v22, %v4203_v51 }
 0xd51   :  { %15768 = vst [vmem:[#allocation10_spill] sm:$0xff] %v13419_v62  ;;  %9830 = vmatmul.mubr.msk.bf16.gmra.mxu1 %vm286_vm3, %v13419_v62 }
 0xdf1   :  { %v4160_v59 = vpop.f32.mrf.mxu1 }
 0xdf2   :  { %v4161_v10 = vadd.f32 %v8706_v54, %v4160_v59 }
 0xdf3   :  { %v9815_v49 = vpop.f32.mrf.mxu1 }
 0xdf4   :  { %v4205_v49 = vmul.f32 0.17677669, %v13494_v5 }
 0xdf5   :  { %v4163_v12 = vpop.f32.mrf.mxu1 }
 0xdf6   :  { %v4164_v32 = vadd.f32 %v8706_v54, %v4163_v12  ;;  %v4206_v12 = vmul.f32 0.17677669, %v13498_v30 }
 0xdf7   :  { %v9816_v56 = vpop.f32.mrf.mxu1 }
 0xdf8   :  { %v13476_v39 = vpack.c.bf16 %v4164_v32, %v4161_v10  ;;  %v13514_v53 = vpack.c.bf16 %v4206_v12, %v4205_v49 }
 0xdf9   :  { %v4168_v16 = vpop.f32.mrf.mxu1 }
 0xdfa   :  { %v4169_v18 = vadd.f32 %v8706_v54, %v4168_v16  ;;  %v4229_v42 = vsel %vm550_vm5, %v13476_v39, 0 }
 0xdfb   :  { %v9819_v19 = vpop.f32.mrf.mxu1 }
 0xdfd   :  { %v4171_v45 = vpop.f32.mrf.mxu1 }
 0xdfe   :  { %v4172_v7 = vadd.f32 %v8706_v54, %v4171_v45 }
 0xdff   :  { %v9820_v27 = vpop.f32.mrf.mxu1 }
 0xe00   :  { %v13442_v35 = vpack.c.bf16 %v4172_v7, %v4169_v18 }
 0xe01   :  { %v4176_v3 = vpop.f32.mrf.mxu1 }
 0xe02   :  { %v4177_v11 = vadd.f32 %v8706_v54, %v4176_v3  ;;  %v4232_v40 = vsel %vm550_vm5, %v13442_v35, 0 }
 0xe03   :  { %v9823_v44 = vpop.f32.mrf.mxu1 }
 0xe05   :  { %v4179_v57 = vpop.f32.mrf.mxu1 }
 0xe06   :  { %v4180_v25 = vadd.f32 %v8706_v54, %v4179_v57 }
 0xe07   :  { %v9824_v50 = vpop.f32.mrf.mxu1 }
 0xe08   :  { %v13466_v2 = vpack.c.bf16 %v4180_v25, %v4177_v11 }
 0xe09   :  { %v4184_v41 = vpop.f32.mrf.mxu1 }
 0xe0a   :  { %v4185_v0 = vadd.f32 %v8706_v54, %v4184_v41  ;;  %v4235_v59 = vsel %vm550_vm5, %v13466_v2, 0 }
 0xe0b   :  { %v9827_v61 = vpop.f32.mrf.mxu1 }
 0xe0d   :  { %v4187_v48 = vpop.f32.mrf.mxu1 }
 0xe0e   :  { %v4188_v8 = vadd.f32 %v8706_v54, %v4187_v48 }
 0xe0f   :  { %v9828_v17 = vpop.f32.mrf.mxu1 }
 0xe10   :  { %v13430_v20 = vpack.c.bf16 %v4188_v8, %v4185_v0 }
 0xe11   :  { %v4192_v37 = vpop.f32.mrf.mxu1 }
 0xe12   :  { %4531 = vrot.lane.b32.xlu0 %v13430_v20, %s11197_s22  ;;  %v4193_v15 = vadd.f32 %v8706_v54, %v4192_v37  ;;  %v4238_v58 = vsel %vm550_vm5, %v13430_v20, 0 }
 0xe13   :  { %v9831_v28 = vpop.f32.mrf.mxu1 }
 0xe15   :  { %v4195_v4 = vpop.f32.mrf.mxu1 }
 0xe16   :  { %4527 = vrot.lane.b32.xlu0 %v13442_v35, %s11197_s22  ;;  %v4196_v47 = vadd.f32 %v8706_v54, %v4195_v4 }
 0xe17   :  { %v9832_v34 = vpop.f32.mrf.mxu1 }
 0xe18   :  { %v13448_v9 = vpack.c.bf16 %v4196_v47, %v4193_v15 }
 0xe1a   :  { %4517 = vrot.lane.b32.xlu0 %v13378_v6, %s11197_s22  ;;  %4533 = vrot.lane.b32.xlu1 %v13448_v9, %s11197_s22  ;;  %v4241_v60 = vsel %vm550_vm5, %v13448_v9, 0 }
 0xe1b   :  { %10453 = vmatprep.subr.msk.bf16.mxu0 %vm550_vm5, %v13448_v9 }
 0xe1c   :  { %9834 = vmatpush3.bf16.xpose.msra.mxu0 %v4241_v60 }
 0xe1d   :  { %10454 = vmatprep.subr.msk.bf16.mxu0 %vm550_vm5, %v13430_v20 }
 0xe1e   :  { %4519 = vrot.lane.b32.xlu0 %v13464_v36, %s11197_s22  ;;  %4529 = vrot.lane.b32.xlu1 %v13466_v2, %s11197_s22 }
 0xe22   :  { %4871 = vrot.lane.b32.xlu0 %v13466_v2, %s11198_s23  ;;  %4525 = vrot.lane.b32.xlu1 %v13476_v39, %s11197_s22 }
 0xe24   :  { %9836 = vmatpush3.bf16.xpose.msra.mxu0 %v4238_v58 }
 0xe25   :  { %10455 = vmatprep.subr.msk.bf16.mxu0 %vm550_vm5, %v13466_v2 }
 0xe26   :  { %4521 = vrot.lane.b32.xlu0 %v13484_v24, %s11197_s22  ;;  %4875 = vrot.lane.b32.xlu1 %v13448_v9, %s11198_s23 }
 0xe2a   :  { %4867 = vrot.lane.b32.xlu0 %v13476_v39, %s11198_s23  ;;  %4873 = vrot.lane.b32.xlu1 %v13430_v20, %s11198_s23 }
 0xe2c   :  { %9838 = vmatpush3.bf16.xpose.msra.mxu0 %v4235_v59 }
 0xe2d   :  { %10456 = vmatprep.subr.msk.bf16.mxu0 %vm550_vm5, %v13442_v35 }
 0xe2e   :  { %4861 = vrot.lane.b32.xlu0 %v13464_v36, %s11198_s23  ;;  %4869 = vrot.lane.b32.xlu1 %v13442_v35, %s11198_s23 }
 0xe32   :  { %4865 = vrot.lane.b32.xlu0 %v13514_v53, %s11198_s23  ;;  %4523 = vrot.lane.b32.xlu1 %v13514_v53, %s11197_s22 }
 0xe34   :  { %9840 = vmatpush3.bf16.xpose.msra.mxu0 %v4232_v40 }
 0xe35   :  { %10457 = vmatprep.subr.msk.bf16.mxu0 %vm550_vm5, %v13476_v39 }
 0xe36   :  { %4401 = vrot.lane.b32.xlu0 %v13466_v2, %s11199_s13  ;;  %4859 = vrot.lane.b32.xlu1 %v13378_v6, %s11198_s23 }
 0xe3a   :  { %4397 = vrot.lane.b32.xlu0 %v13476_v39, %s11199_s13  ;;  %4863 = vrot.lane.b32.xlu1 %v13484_v24, %s11198_s23 }
 0xe3c   :  { %9842 = vmatpush3.bf16.xpose.msra.mxu0 %v4229_v42 }
 0xe3e   :  { %4717 = vrot.lane.b32.xlu0 %v13430_v20, %s11200_s18  ;;  %4403 = vrot.lane.b32.xlu1 %v13430_v20, %s11199_s13 }
 0xe42   :  { %4713 = vrot.lane.b32.xlu0 %v13442_v35, %s11200_s18  ;;  %4399 = vrot.lane.b32.xlu1 %v13442_v35, %s11199_s13 }
 0xe43   :  { %9844 = vmatmul.mubr.msk.bf16.vlgmr.msra.gmra.mxu0 %vm550_vm5, %v13464_v36 }
 0xe44   :  { %9847 = vmatprep.mubr.msk.bf16.mxu0 %vm550_vm5, %v13484_v24 }
 0xe46   :  { %5059 = vrot.lane.b32.xlu0 %v13430_v20, %s11201_s21  ;;  %4715 = vrot.lane.b32.xlu1 %v13466_v2, %s11200_s18 }
 0xe4a   :  { %4405 = vrot.lane.b32.xlu0 %v13448_v9, %s11199_s13  ;;  %4711 = vrot.lane.b32.xlu1 %v13476_v39, %s11200_s18 }
 0xe4b   :  { %9848 = vmatmul.mubr.msk.bf16.gmra.mxu0 %vm550_vm5, %v13514_v53 }
 0xe4e   :  { %5057 = vrot.lane.b32.xlu1 %v13466_v2, %s11201_s21 }
 0xe52   :  { %4719 = vrot.lane.b32.xlu1 %v13448_v9, %s11200_s18 }
 0xe56   :  { %5061 = vrot.lane.b32.xlu1 %v13448_v9, %s11201_s21 }
 0xe84   :  { %v4532_v56 = vpop.permute.xlu0 %4531 }
 0xe85   :  { %v4557_v41 = vsel %vm550_vm5, %v4532_v56, 0 }
 0xe88   :  { %v4528_v16 = vpop.permute.xlu0 %4527 }
 0xe89   :  { %v4551_v28 = vsel %vm550_vm5, %v4528_v16, 0 }
 0xe8c   :  { %v4518_v19 = vpop.permute.xlu0 %4517  ;;  %v4534_v45 = vpop.permute.xlu1 %4533 }
 0xe8d   :  { %9879 = vmatprep.mubr.msk.bf16.mxu1 %vm550_vm5, %v4518_v19  ;;  %10458 = vmatprep.subr.msk.bf16.mxu1 %vm550_vm5, %v4534_v45  ;;  %v4560_v27 = vsel %vm550_vm5, %v4534_v45, 0  ;;  %v15774_v19 = vld [vmem:[#allocation20_spill] sm:$0xff] }
 0xe8e   :  { %9870 = vmatpush3.bf16.xpose.msra.mxu1 %v4560_v27 }
 0xe8f   :  { %10459 = vmatprep.subr.msk.bf16.mxu1 %vm550_vm5, %v4532_v56 }
 0xe90   :  { %v4520_v3 = vpop.permute.xlu0 %4519  ;;  %v4530_v44 = vpop.permute.xlu1 %4529 }
 0xe91   :  { %v4554_v8 = vsel %vm550_vm5, %v4530_v44, 0 }
 0xe94   :  { %v4872_v57 = vpop.permute.xlu0 %4871  ;;  %v4526_v50 = vpop.permute.xlu1 %4525 }
 0xe95   :  { %v4548_v38 = vsel %vm550_vm5, %v4526_v50, 0  ;;  %v4896_v49 = vsel %vm550_vm5, %v4872_v57, 0 }
 0xe96   :  { %9872 = vmatpush3.bf16.xpose.msra.mxu1 %v4557_v41  ;;  %v15776_v41 = vld [vmem:[#allocation22_spill] sm:$0xff] }
 0xe97   :  { %10460 = vmatprep.subr.msk.bf16.mxu1 %vm550_vm5, %v4530_v44 }
 0xe98   :  { %v4522_v61 = vpop.permute.xlu0 %4521  ;;  %v4876_v54 = vpop.permute.xlu1 %4875 }
 0xe99   :  { %v4902_v32 = vsel %vm550_vm5, %v4876_v54, 0 }
 0xe9c   :  { %v4868_v48 = vpop.permute.xlu0 %4867  ;;  %v4874_v0 = vpop.permute.xlu1 %4873 }
 0xe9d   :  { %v4899_v58 = vsel %vm550_vm5, %v4874_v0, 0  ;;  %v4890_v56 = vsel %vm550_vm5, %v4868_v48, 0 }
 0xe9e   :  { %9874 = vmatpush3.bf16.xpose.msra.mxu1 %v4554_v8 }
 0xe9f   :  { %10461 = vmatprep.subr.msk.bf16.mxu1 %vm550_vm5, %v4528_v16 }
 0xea0   :  { %v4862_v17 = vpop.permute.xlu0 %4861  ;;  %v4870_v7 = vpop.permute.xlu1 %4869 }
 0xea1   :  { %v4893_v42 = vsel %vm550_vm5, %v4870_v7, 0 }
 0xea4   :  { %v4866_v18 = vpop.permute.xlu0 %4865  ;;  %v4524_v37 = vpop.permute.xlu1 %4523 }
 0xea6   :  { %9876 = vmatpush3.bf16.xpose.msra.mxu1 %v4551_v28 }
 0xea7   :  { %10462 = vmatprep.subr.msk.bf16.mxu1 %vm550_vm5, %v4526_v50 }
 0xea8   :  { %v4402_v4 = vpop.permute.xlu0 %4401  ;;  %v4860_v15 = vpop.permute.xlu1 %4859 }
 0xeac   :  { %v4398_v47 = vpop.permute.xlu0 %4397  ;;  %v4864_v34 = vpop.permute.xlu1 %4863 }
 0xeae   :  { %9878 = vmatpush3.bf16.xpose.msra.mxu1 %v4548_v38  ;;  %v15780_v38 = vld [vmem:[#allocation26_spill] sm:$0xff] }
 0xeaf   :  { %10463 = vmatprep.subr.msk.bf16.mxu1 %vm550_vm5, %v4876_v54 }
 0xeb0   :  { %v13573_v55 = vpop.permute.xlu0 %4717  ;;  %v4404_v25 = vpop.permute.xlu1 %4403 }
 0xeb4   :  { %v13576_v11 = vpop.permute.xlu0 %4713  ;;  %v4400_v60 = vpop.permute.xlu1 %4399 }
 0xeb5   :  { %9880 = vmatmul.mubr.msk.bf16.vlgmr.msra.gmra.mxu1 %vm550_vm5, %v4520_v3  ;;  %v15775_v3 = vld [vmem:[#allocation21_spill] sm:$0xff] }
 0xeb6   :  { %9883 = vmatprep.mubr.msk.bf16.mxu1 %vm550_vm5, %v4522_v61  ;;  %9906 = vmatpush3.bf16.xpose.msra.mxu1 %v4902_v32 }
 0xeb7   :  { %10464 = vmatprep.subr.msk.bf16.mxu1 %vm550_vm5, %v4874_v0  ;;  %v15777_v0 = vld [vmem:[#allocation23_spill] sm:$0xff] }
 0xeb8   :  { %v13581_v10 = vpop.permute.xlu0 %5059  ;;  %v13584_v51 = vpop.permute.xlu1 %4715 }
 0xebc   :  { %v4406_v22 = vpop.permute.xlu0 %4405  ;;  %v13590_v59 = vpop.permute.xlu1 %4711 }
 0xebd   :  { %9851 = vmatprep.subr.bf16.mxu0 %v4406_v22  ;;  %9884 = vmatmul.mubr.msk.bf16.gmra.mxu1 %vm550_vm5, %v4524_v37 }
 0xebe   :  { %9852 = vmatpush3.bf16.msra.mxu0 %v4406_v22  ;;  %9908 = vmatpush3.bf16.xpose.msra.mxu1 %v4899_v58  ;;  %v15781_v58 = vld [vmem:[#allocation27_spill] sm:$0xff] }
 0xebf   :  { %9853 = vmatprep.subr.bf16.mxu0 %v4404_v25  ;;  %9915 = vmatprep.mubr.msk.bf16.mxu1 %vm550_vm5, %v4860_v15  ;;  %v15779_v15 = vld [vmem:[#allocation25_spill] sm:$0xff] }
 0xec0   :  { %10465 = vmatprep.subr.msk.bf16.mxu1 %vm550_vm5, %v4872_v57  ;;  %v13593_v12 = vpop.permute.xlu1 %5057 }
 0xec2   :  { %9854 = vmatpush3.bf16.msra.mxu0 %v4404_v25 }
 0xec3   :  { %9855 = vmatprep.subr.bf16.mxu0 %v4402_v4 }
 0xec4   :  { %v13596_v40 = vpop.permute.xlu1 %4719 }
 0xec6   :  { %9856 = vmatpush3.bf16.msra.mxu0 %v4402_v4  ;;  %9910 = vmatpush3.bf16.xpose.msra.mxu1 %v4896_v49 }
 0xec7   :  { %9857 = vmatprep.subr.bf16.mxu0 %v4400_v60  ;;  %10466 = vmatprep.subr.msk.bf16.mxu1 %vm550_vm5, %v4870_v7  ;;  %v15778_v7 = vld [vmem:[#allocation24_spill] sm:$0xff] }
 0xeca   :  { %9858 = vmatpush3.bf16.msra.mxu0 %v4400_v60 }
 0xecb   :  { %9859 = vmatprep.subr.bf16.mxu0 %v4398_v47 }
 0xece   :  { %9860 = vmatpush3.bf16.msra.mxu0 %v4398_v47  ;;  %9912 = vmatpush3.bf16.xpose.msra.mxu1 %v4893_v42 }
 0xecf   :  { %9887 = vmatprep.subr.bf16.mxu0 %v13596_v40  ;;  %10467 = vmatprep.subr.msk.bf16.mxu1 %vm550_vm5, %v4868_v48 }
 0xed6   :  { %9914 = vmatpush3.bf16.xpose.msra.mxu1 %v4890_v56 }
 0xedd   :  { %9916 = vmatmul.mubr.msk.bf16.vlgmr.msra.gmra.mxu1 %vm550_vm5, %v4862_v17 }
 0xede   :  { %9919 = vmatprep.mubr.msk.bf16.mxu1 %vm550_vm5, %v4864_v34 }
 0xee5   :  { %9920 = vmatmul.mubr.msk.bf16.gmra.mxu1 %vm550_vm5, %v4866_v18 }
 0xf03   :  { %v9845_v16 = vpop.f32.mrf.mxu0 }
 0xf04   :  { %v13606_v45 = vadd.f32 %v9845_v16, %v15774_v19 }
 0xf05   :  { %v4277_v27 = vpop.f32.mrf.mxu0 }
 0xf06   :  { %v13609_v44 = vadd.f32 %v4277_v27, %v15775_v3  ;;  %v4314_v57 = vsel %vm643_vm9, %v13606_v45, -inf }
 0xf07   :  { %4315 = vmax.xlane.f32.xlu0 %v4314_v57  ;;  %v9846_v50 = vpop.f32.mrf.mxu0 }
 0xf08   :  { %v13614_v61 = vadd.f32 %v9846_v50, %v15776_v41  ;;  %v4308_v54 = vsel %vm643_vm9, %v13609_v44, -inf }
 0xf09   :  { %v4280_v48 = vpop.f32.mrf.mxu0  ;;  %4309 = vmax.xlane.f32.xlu1 %v4308_v54 }
 0xf0a   :  { %v13619_v8 = vadd.f32 %v4280_v48, %v15777_v0  ;;  %v4317_v28 = vsel %vm643_vm9, %v13614_v61, -inf }
 0xf0b   :  { %v9849_v17 = vpop.f32.mrf.mxu0 }
 0xf0c   :  { %v13622_v18 = vadd.f32 %v9849_v17, %v15778_v7  ;;  %v4311_v37 = vsel %vm643_vm9, %v13619_v8, -inf }
 0xf0d   :  { %v4293_v4 = vpop.f32.mrf.mxu0  ;;  %4312 = vmax.xlane.f32.xlu0 %v4311_v37  ;;  %4318 = vmax.xlane.f32.xlu1 %v4317_v28 }
 0xf0e   :  { %v13629_v47 = vadd.f32 %v4293_v4, %v15779_v15  ;;  %v4326_v32 = vsel %vm643_vm9, %v13622_v18, -inf }
 0xf0f   :  { %v9850_v34 = vpop.f32.mrf.mxu0 }
 0xf10   :  { %v13632_v25 = vadd.f32 %v9850_v34, %v15780_v38  ;;  %v4320_v60 = vsel %vm643_vm9, %v13629_v47, -inf }
 0xf11   :  { %v4296_v22 = vpop.f32.mrf.mxu0  ;;  %4321 = vmax.xlane.f32.xlu0 %v4320_v60  ;;  %4327 = vmax.xlane.f32.xlu1 %v4326_v32 }
 0xf12   :  { %v13639_v49 = vadd.f32 %v4296_v22, %v15781_v58  ;;  %v4329_v42 = vsel %vm643_vm9, %v13632_v25, -inf }
 0xf14   :  { %v4323_v56 = vsel %vm643_vm9, %v13639_v49, -inf }
 0xf15   :  { %4330 = vmax.xlane.f32.xlu1 %v4329_v42 }
 0xf19   :  { %4324 = vmax.xlane.f32.xlu1 %v4323_v56 }
 0xf75   :  { %v9881_v16 = vpop.f32.mrf.mxu1 }
 0xf76   :  { %v13646_v27 = vadd.f32 %v9881_v16, %v15774_v19 }
 0xf77   :  { %v4596_v57 = vpop.f32.mrf.mxu1 }
 0xf78   :  { %v13649_v50 = vadd.f32 %v4596_v57, %v15775_v3  ;;  %v4633_v54 = vsel %vm643_vm9, %v13646_v27, -inf }
 0xf79   :  { %v9882_v48 = vpop.f32.mrf.mxu1  ;;  %4634 = vmax.xlane.f32.xlu0 %v4633_v54 }
 0xf7a   :  { %v13654_v37 = vadd.f32 %v9882_v48, %v15776_v41  ;;  %v4627_v4 = vsel %vm643_vm9, %v13649_v50, -inf }
 0xf7b   :  { %v4599_v17 = vpop.f32.mrf.mxu1 }
 0xf7c   :  { %v13657_v28 = vadd.f32 %v4599_v17, %v15777_v0  ;;  %v4636_v56 = vsel %vm643_vm9, %v13654_v37, -inf }
 0xf7d   :  { %v9885_v34 = vpop.f32.mrf.mxu1  ;;  %4628 = vmax.xlane.f32.xlu0 %v4627_v4 }
 0xf7e   :  { %v4630_v60 = vsel %vm643_vm9, %v13657_v28, -inf  ;;  %v13664_v22 = vadd.f32 %v9885_v34, %v15778_v7 }
 0xf7f   :  { %v4612_v32 = vpop.f32.mrf.mxu1  ;;  %4631 = vmax.xlane.f32.xlu1 %v4630_v60 }
 0xf80   :  { %v13667_v42 = vadd.f32 %v4612_v32, %v15779_v15  ;;  %v4645_v48 = vsel %vm643_vm9, %v13664_v22, -inf  ;;  %v13685_v32 = vpop.permute.xlu1 %5061 }
 0xf81   :  { %v9886_v16 = vpop.f32.mrf.mxu1  ;;  %4637 = vmax.xlane.f32.xlu0 %v4636_v56 }
 0xf82   :  { %v4639_v57 = vsel %vm643_vm9, %v13667_v42, -inf  ;;  %v13674_v54 = vadd.f32 %v9886_v16, %v15780_v38 }
 0xf83   :  { %4640 = vmax.xlane.f32.xlu1 %v4639_v57  ;;  %v4615_v17 = vpop.f32.mrf.mxu1 }
 0xf84   :  { %v13679_v4 = vadd.f32 %v4615_v17, %v15781_v58  ;;  %v4648_v34 = vsel %vm643_vm9, %v13674_v54, -inf }
 0xf85   :  { %4646 = vmax.xlane.f32.xlu0 %v4645_v48 }
 0xf86   :  { %v4642_v60 = vsel %vm643_vm9, %v13679_v4, -inf }
 0xf89   :  { %4649 = vmax.xlane.f32.xlu0 %v4648_v34 }
 0xf8d   :  { %4643 = vmax.xlane.f32.xlu0 %v4642_v60 }
 0xf90   :  { %v4316_v56 = vpop.xlane.xlu0 %4315 }
 0xf91   :  { %v4334_v16 = vsub.f32 %v13606_v45, %v4316_v56 }
 0xf92   :  { %v4310_v57 = vpop.xlane.xlu1 %4309 }
 0xf93   :  { %v4332_v1 = vsub.f32 %v13609_v44, %v4310_v57  ;;  %v4344_v48 = vmul.f32 1.442695, %v4334_v16 }
 0xf94   :  { %5053 = vrot.lane.b32.xlu1 %v13476_v39, %s11201_s21 }
 0xf95   :  { %v4340_v17 = vmul.f32 1.442695, %v4332_v1  ;;  %10826 = vpow2.f32 %v4344_v48 }
 0xf96   :  { %v4313_v21 = vpop.xlane.xlu0 %4312  ;;  %v4319_v62 = vpop.xlane.xlu1 %4318 }
 0xf97   :  { %v4333_v34 = vsub.f32 %v13619_v8, %v4313_v21  ;;  %v4335_v13 = vsub.f32 %v13614_v61, %v4319_v62  ;;  %10828 = vpow2.f32 %v4340_v17 }
 0xf98   :  { %5217 = vrot.lane.b32.xlu1 %v13448_v9, %s11203_s8 }
 0xf99   :  { %v4342_v33 = vmul.f32 1.442695, %v4333_v34  ;;  %v4346_v60 = vmul.f32 1.442695, %v4335_v13 }
 0xf9a   :  { %v4322_v45 = vpop.xlane.xlu0 %4321  ;;  %v4328_v44 = vpop.xlane.xlu1 %4327 }
 0xf9b   :  { %10830 = vpow2.f32 %v4342_v33  ;;  %v4336_v56 = vsub.f32 %v13629_v47, %v4322_v45  ;;  %v4338_v21 = vsub.f32 %v13622_v18, %v4328_v44 }
 0xf9c   :  { %10832 = vpow2.f32 %v4346_v60 }
 0xf9d   :  { %v4348_v8 = vmul.f32 1.442695, %v4336_v56  ;;  %v4352_v57 = vmul.f32 1.442695, %v4338_v21  ;;  %v9917_v34 = vpop.f32.mrf.mxu1 }
 0xf9e   :  { %v4331_v1 = vpop.xlane.xlu1 %4330  ;;  %v13735_v21 = vadd.f32 %v9917_v34, %v15774_v19 }
 0xf9f   :  { %v4339_v16 = vsub.f32 %v13632_v25, %v4331_v1  ;;  %10834 = vpow2.f32 %v4348_v8  ;;  %v4938_v44 = vpop.f32.mrf.mxu1 }
 0xfa0   :  { %v13741_v8 = vadd.f32 %v4938_v44, %v15775_v3 }
 0xfa1   :  { %v4354_v62 = vmul.f32 1.442695, %v4339_v16  ;;  %v9918_v16 = vpop.f32.mrf.mxu1 }
 0xfa2   :  { %v4325_v61 = vpop.xlane.xlu1 %4324  ;;  %v13701_v33 = vpop.eup %10826 }
 0xfa3   :  { %v4337_v13 = vsub.f32 %v13639_v49, %v4325_v61  ;;  %5055 = vrot.lane.b32.xlu0 %v13442_v35, %s11201_s21  ;;  %10836 = vpow2.f32 %v4354_v62  ;;  %v4975_v62 = vsel %vm643_vm9, %v13735_v21, -inf }
 0xfa4   :  { %v13703_v47 = vpop.eup %10828 }
 0xfa5   :  { %v4350_v48 = vmul.f32 1.442695, %v4337_v13 }
 0xfa7   :  { %10838 = vpow2.f32 %v4350_v48 }
 0xfa8   :  { %v13705_v25 = vpop.eup %10830  ;;  %10840 = vpow2.f32 %v4352_v57  ;;  %v4969_v57 = vsel %vm643_vm9, %v13741_v8, -inf }
 0xfa9   :  { %v13707_v18 = vpop.eup %10832  ;;  %v4388_v49 = vpack.c.bf16 %v13705_v25, %v13703_v47 }
 0xfaa   :  { %v4389_v17 = vpack.c.bf16 %v13707_v18, %v13701_v33 }
 0xfab   :  { %9861 = vmatprep.mubr.msk.bf16.mxu0 %vm643_vm9, %v4388_v49 }
 0xfac   :  { %9862 = vmatmul.mubr.msk.bf16.vlgmr.msra.gmra.mxu0 %vm643_vm9, %v4389_v17  ;;  %v13718_v60 = vpop.eup %10834 }
 0xfad   :  { %9888 = vmatpush3.bf16.msra.mxu0 %v13596_v40 }
 0xfae   :  { %9889 = vmatprep.subr.bf16.mxu0 %v13573_v55 }
 0xfb0   :  { %v13721_v45 = vpop.eup %10836 }
 0xfb1   :  { %9890 = vmatpush3.bf16.msra.mxu0 %v13573_v55 }
 0xfb2   :  { %9891 = vmatprep.subr.bf16.mxu0 %v13584_v51 }
 0xfb4   :  { %v13723_v56 = vpop.eup %10838 }
 0xfb5   :  { %v13725_v1 = vpop.eup %10840  ;;  %9892 = vmatpush3.bf16.msra.mxu0 %v13584_v51  ;;  %v4390_v40 = vpack.c.bf16 %v13723_v56, %v13718_v60  ;;  %v4941_v51 = vpop.f32.mrf.mxu1 }
 0xfb6   :  { %9893 = vmatprep.subr.bf16.mxu0 %v13576_v11  ;;  %v4391_v55 = vpack.c.bf16 %v13721_v45, %v13725_v1  ;;  %v13747_v61 = vadd.f32 %v4941_v51, %v15777_v0 }
 0xfb7   :  { %9865 = vmatprep.mubr.msk.bf16.mxu0 %vm643_vm9, %v4390_v40  ;;  %v9921_v13 = vpop.f32.mrf.mxu1 }
 0xfb8   :  { %9866 = vmatmul.mubr.msk.bf16.gmra.mxu0 %vm643_vm9, %v4391_v55  ;;  %v13756_v48 = vadd.f32 %v9921_v13, %v15778_v7 }
 0xfb9   :  { %9894 = vmatpush3.bf16.msra.mxu0 %v13576_v11  ;;  %v13751_v11 = vadd.f32 %v9918_v16, %v15776_v41  ;;  %v4954_v49 = vpop.f32.mrf.mxu1 }
 0xfba   :  { %9895 = vmatprep.subr.bf16.mxu0 %v13590_v59  ;;  %v13763_v34 = vadd.f32 %v4954_v49, %v15779_v15  ;;  %v4987_v44 = vsel %vm643_vm9, %v13756_v48, -inf }
 0xfbb   :  { %v4978_v17 = vsel %vm643_vm9, %v13751_v11, -inf  ;;  %v9922_v40 = vpop.f32.mrf.mxu1 }
 0xfbc   :  { %4976 = vmax.xlane.f32.xlu1 %v4975_v62  ;;  %v13768_v55 = vadd.f32 %v9922_v40, %v15780_v38  ;;  %v4981_v16 = vsel %vm643_vm9, %v13763_v34, -inf }
 0xfbd   :  { %9896 = vmatpush3.bf16.msra.mxu0 %v13590_v59  ;;  %v4972_v59 = vsel %vm643_vm9, %v13747_v61, -inf  ;;  %v4957_v62 = vpop.f32.mrf.mxu1 }
 0xfbe   :  { %9923 = vmatprep.subr.bf16.mxu0 %v13685_v32  ;;  %v4990_v51 = vsel %vm643_vm9, %v13768_v55, -inf  ;;  %v13785_v13 = vadd.f32 %v4957_v62, %v15781_v58 }
 0xfc0   :  { %4970 = vmax.xlane.f32.xlu1 %v4969_v57  ;;  %v4984_v57 = vsel %vm643_vm9, %v13785_v13, -inf }
 0xfc2   :  { %4973 = vmax.xlane.f32.xlu0 %v4972_v59 }
 0xfc4   :  { %4979 = vmax.xlane.f32.xlu1 %v4978_v17 }
 0xfc6   :  { %4988 = vmax.xlane.f32.xlu0 %v4987_v44 }
 0xfca   :  { %4982 = vmax.xlane.f32.xlu0 %v4981_v16 }
 0xfce   :  { %4991 = vmax.xlane.f32.xlu0 %v4990_v51 }
 0xfd5   :  { %5213 = vrot.lane.b32.xlu1 %v13466_v2, %s11203_s8 }
 0xfe4   :  { %5215 = vrot.lane.b32.xlu0 %v13430_v20, %s11203_s8 }
 0xfe8   :  { %5209 = vrot.lane.b32.xlu0 %v13476_v39, %s11203_s8 }
 0xfec   :  { %5203 = vrot.lane.b32.xlu0 %v13464_v36, %s11203_s8 }
 0xff0   :  { %5207 = vrot.lane.b32.xlu0 %v13514_v53, %s11203_s8 }
 0xff4   :  { %5403 = vrot.lane.b32.xlu0 %v13448_v9, %s11204_s24 }
 0xff9   :  { %4985 = vmax.xlane.f32.xlu1 %v4984_v57 }
0x1002   :  { %v4635_v59 = vpop.xlane.xlu0 %4634 }
0x1003   :  { %v4653_v49 = vsub.f32 %v13646_v27, %v4635_v59 }
0x1005   :  { %v4663_v16 = vmul.f32 1.442695, %v4653_v49 }
0x1006   :  { %v4629_v17 = vpop.xlane.xlu0 %4628 }
0x1007   :  { %v4651_v36 = vsub.f32 %v13649_v50, %v4629_v17 }
0x1008   :  { %v4632_v44 = vpop.xlane.xlu1 %4631 }
0x1009   :  { %v4659_v40 = vmul.f32 1.442695, %v4651_v36  ;;  %v4652_v53 = vsub.f32 %v13657_v28, %v4632_v44 }
0x100a   :  { %v4638_v51 = vpop.xlane.xlu0 %4637  ;;  %5211 = vrot.lane.b32.xlu1 %v13442_v35, %s11203_s8 }
0x100b   :  { %v4661_v9 = vmul.f32 1.442695, %v4652_v53  ;;  %v4654_v62 = vsub.f32 %v13654_v37, %v4638_v51  ;;  %10842 = vpow2.f32 %v4659_v40 }
0x100c   :  { %v4641_v27 = vpop.xlane.xlu1 %4640 }
0x100d   :  { %10844 = vpow2.f32 %v4661_v9  ;;  %v4665_v57 = vmul.f32 1.442695, %v4654_v62  ;;  %v4655_v50 = vsub.f32 %v13667_v42, %v4641_v27 }
0x100e   :  { %10846 = vpow2.f32 %v4663_v16  ;;  %v4647_v59 = vpop.xlane.xlu0 %4646  ;;  %5201 = vrot.lane.b32.xlu1 %v13378_v6, %s11203_s8 }
0x100f   :  { %10848 = vpow2.f32 %v4665_v57  ;;  %v4667_v17 = vmul.f32 1.442695, %v4655_v50  ;;  %v4657_v37 = vsub.f32 %v13664_v22, %v4647_v59 }
0x1010   :  { %v5054_v57 = vpop.permute.xlu1 %5053 }
0x1011   :  { %10850 = vpow2.f32 %v4667_v17  ;;  %v4671_v42 = vmul.f32 1.442695, %v4657_v37 }
0x1012   :  { %v4650_v28 = vpop.xlane.xlu0 %4649  ;;  %5205 = vrot.lane.b32.xlu1 %v13484_v24, %s11203_s8 }
0x1013   :  { %v4658_v49 = vsub.f32 %v13674_v54, %v4650_v28 }
0x1014   :  { %v5218_v27 = vpop.permute.xlu1 %5217 }
0x1015   :  { %v4673_v36 = vmul.f32 1.442695, %v4658_v49 }
0x1016   :  { %v4644_v44 = vpop.xlane.xlu0 %4643  ;;  %5401 = vrot.lane.b32.xlu1 %v13430_v20, %s11204_s24 }
0x1017   :  { %v4656_v40 = vsub.f32 %v13679_v4, %v4644_v44  ;;  %10852 = vpow2.f32 %v4673_v36 }
0x1018   :  { %v13807_v6 = vpop.eup %10842 }
0x1019   :  { %v4669_v53 = vmul.f32 1.442695, %v4656_v40 }
0x101a   :  { %v13809_v16 = vpop.eup %10844  ;;  %5399 = vrot.lane.b32.xlu1 %v13466_v2, %s11204_s24  ;;  %v5056_v9 = vpop.permute.xlu0 %5055 }
0x101b   :  { %v13813_v24 = vpop.eup %10846  ;;  %10854 = vpow2.f32 %v4669_v53  ;;  %v4707_v22 = vpack.c.bf16 %v13809_v16, %v13807_v6 }
0x101c   :  { %v13817_v20 = vpop.eup %10848  ;;  %10856 = vpow2.f32 %v4671_v42 }
0x101d   :  { %v4708_v54 = vpack.c.bf16 %v13817_v20, %v13813_v24  ;;  %9897 = vmatprep.mubr.msk.bf16.mxu0 %vm643_vm9, %v4707_v22 }
0x101e   :  { %v13827_v2 = vpop.eup %10850 }
0x101f   :  { %9898 = vmatmul.mubr.msk.bf16.vlgmr.msra.gmra.mxu0 %vm643_vm9, %v4708_v54 }
0x1020   :  { %9924 = vmatpush3.bf16.msra.mxu0 %v13685_v32 }
0x1021   :  { %9925 = vmatprep.subr.bf16.mxu0 %v13581_v10 }
0x1024   :  { %9926 = vmatpush3.bf16.msra.mxu0 %v13581_v10  ;;  %v13829_v4 = vpop.eup %10852 }
0x1025   :  { %9927 = vmatprep.subr.bf16.mxu0 %v13593_v12 }
0x1028   :  { %v13831_v51 = vpop.eup %10854  ;;  %9928 = vmatpush3.bf16.msra.mxu0 %v13593_v12 }
0x1029   :  { %9929 = vmatprep.subr.bf16.mxu0 %v5056_v9  ;;  %v4709_v62 = vpack.c.bf16 %v13831_v51, %v13827_v2  ;;  %v13836_v32 = vpop.eup %10856 }
0x102a   :  { %v4710_v10 = vpack.c.bf16 %v13829_v4, %v13836_v32 }
0x102b   :  { %9901 = vmatprep.mubr.msk.bf16.mxu0 %vm643_vm9, %v4709_v62 }
0x102c   :  { %9930 = vmatpush3.bf16.msra.mxu0 %v5056_v9 }
0x102d   :  { %9902 = vmatmul.mubr.msk.bf16.gmra.mxu0 %vm643_vm9, %v4710_v10  ;;  %9931 = vmatprep.subr.bf16.mxu0 %v5054_v57 }
0x1030   :  { %9932 = vmatpush3.bf16.msra.mxu0 %v5054_v57 }
0x1031   :  { %10468 = vmatprep.subr.msk.bf16.mxu0 %vm550_vm5, %v5218_v27 }
0x1045   :  { %v4977_v12 = vpop.xlane.xlu1 %4976 }
0x1046   :  { %v4995_v59 = vsub.f32 %v13735_v21, %v4977_v12 }
0x1048   :  { %v5005_v36 = vmul.f32 1.442695, %v4995_v59  ;;  %v5244_v59 = vsel %vm550_vm5, %v5218_v27, 0 }
0x1049   :  { %v4971_v50 = vpop.xlane.xlu1 %4970 }
0x104a   :  { %v4993_v28 = vsub.f32 %v13741_v8, %v4971_v50 }
0x104b   :  { %v4974_v49 = vpop.xlane.xlu0 %4973 }
0x104c   :  { %v5001_v17 = vmul.f32 1.442695, %v4993_v28  ;;  %v4994_v37 = vsub.f32 %v13747_v61, %v4974_v49 }
0x104d   :  { %v4980_v44 = vpop.xlane.xlu1 %4979 }
0x104e   :  { %v5003_v40 = vmul.f32 1.442695, %v4994_v37  ;;  %v4996_v42 = vsub.f32 %v13751_v11, %v4980_v44  ;;  %10858 = vpow2.f32 %v5001_v17 }
0x104f   :  { %v4989_v53 = vpop.xlane.xlu0 %4988 }
0x1050   :  { %10860 = vpow2.f32 %v5003_v40  ;;  %v5007_v22 = vmul.f32 1.442695, %v4996_v42  ;;  %v4999_v40 = vsub.f32 %v13756_v48, %v4989_v53 }
0x1051   :  { %10862 = vpow2.f32 %v5005_v36  ;;  %v5214_v17 = vpop.permute.xlu1 %5213 }
0x1052   :  { %10864 = vpow2.f32 %v5007_v22  ;;  %v5238_v36 = vsel %vm550_vm5, %v5214_v17, 0 }
0x1053   :  { %v4983_v54 = vpop.xlane.xlu0 %4982 }
0x1054   :  { %v4997_v44 = vsub.f32 %v13763_v34, %v4983_v54 }
0x1056   :  { %v5009_v42 = vmul.f32 1.442695, %v4997_v44 }
0x1057   :  { %v4992_v21 = vpop.xlane.xlu0 %4991 }
0x1058   :  { %v5000_v27 = vsub.f32 %v13768_v55, %v4992_v21  ;;  %10866 = vpow2.f32 %v5009_v42 }
0x105a   :  { %v5015_v22 = vmul.f32 1.442695, %v5000_v27 }
0x105b   :  { %v5216_v9 = vpop.permute.xlu0 %5215  ;;  %v13847_v62 = vpop.eup %10858 }
0x105c   :  { %v5241_v49 = vsel %vm550_vm5, %v5216_v9, 0  ;;  %10868 = vpow2.f32 %v5015_v22 }
0x105d   :  { %v13849_v8 = vpop.eup %10860 }
0x105e   :  { %v13851_v57 = vpop.eup %10862  ;;  %v5049_v61 = vpack.c.bf16 %v13849_v8, %v13847_v62 }
0x105f   :  { %v13855_v10 = vpop.eup %10864  ;;  %v5210_v11 = vpop.permute.xlu0 %5209 }
0x1060   :  { %v5050_v12 = vpack.c.bf16 %v13855_v10, %v13851_v57  ;;  %9933 = vmatprep.mubr.msk.bf16.mxu0 %vm643_vm9, %v5049_v61  ;;  %v5232_v55 = vsel %vm550_vm5, %v5210_v11, 0 }
0x1062   :  { %9934 = vmatmul.mubr.msk.bf16.vlgmr.msra.gmra.mxu0 %vm643_vm9, %v5050_v12  ;;  %v5013_v12 = vmul.f32 1.442695, %v4999_v40 }
0x1063   :  { %9942 = vmatpush3.bf16.xpose.msra.mxu0 %v5244_v59  ;;  %v5204_v50 = vpop.permute.xlu0 %5203 }
0x1064   :  { %10469 = vmatprep.subr.msk.bf16.mxu0 %vm550_vm5, %v5216_v9 }
0x1067   :  { %v5208_v28 = vpop.permute.xlu0 %5207 }
0x106b   :  { %9944 = vmatpush3.bf16.xpose.msra.mxu0 %v5241_v49  ;;  %v5404_v37 = vpop.permute.xlu0 %5403 }
0x106c   :  { %10470 = vmatprep.subr.msk.bf16.mxu0 %vm550_vm5, %v5214_v17  ;;  %9959 = vmatprep.subr.bf16.mxu1 %v5404_v37 }
0x106d   :  { %9960 = vmatpush3.bf16.msra.mxu1 %v5404_v37 }
0x1073   :  { %9946 = vmatpush3.bf16.xpose.msra.mxu0 %v5238_v36 }
0x1082   :  { %v4986_v61 = vpop.xlane.xlu1 %4985 }
0x1083   :  { %v4998_v9 = vsub.f32 %v13785_v13, %v4986_v61  ;;  %v13874_v13 = vpop.eup %10866 }
0x1084   :  { %v13876_v54 = vpop.eup %10868 }
0x1085   :  { %v5011_v59 = vmul.f32 1.442695, %v4998_v9 }
0x1086   :  { %v5212_v49 = vpop.permute.xlu1 %5211 }
0x1087   :  { %10870 = vpow2.f32 %v5011_v59  ;;  %10471 = vmatprep.subr.msk.bf16.mxu0 %vm550_vm5, %v5212_v49  ;;  %v5235_v17 = vsel %vm550_vm5, %v5212_v49, 0 }
0x1088   :  { %10872 = vpow2.f32 %v5013_v12  ;;  %9948 = vmatpush3.bf16.xpose.msra.mxu0 %v5235_v17 }
0x1089   :  { %10472 = vmatprep.subr.msk.bf16.mxu0 %vm550_vm5, %v5210_v11  ;;  %v13892_v11 = vpop.f32.mrf.mxu0 }
0x108a   :  { %v5202_v48 = vpop.permute.xlu1 %5201 }
0x108b   :  { %v13894_v40 = vpop.f32.mrf.mxu0 }
0x108d   :  { %v13896_v42 = vpop.f32.mrf.mxu0 }
0x108e   :  { %v5206_v34 = vpop.permute.xlu1 %5205  ;;  %15782 = vst [vmem:[#allocation20_spill] sm:$0xff] %v13896_v42 }
0x108f   :  { %v13898_v22 = vpop.f32.mrf.mxu0 }
0x1090   :  { %9950 = vmatpush3.bf16.xpose.msra.mxu0 %v5232_v55 }
0x1091   :  { %v13900_v61 = vpop.f32.mrf.mxu0 }
0x1092   :  { %v5402_v53 = vpop.permute.xlu1 %5401  ;;  %15783 = vst [vmem:[#allocation21_spill] sm:$0xff] %v13900_v61 }
0x1093   :  { %9961 = vmatprep.subr.bf16.mxu1 %v5402_v53  ;;  %v13902_v9 = vpop.f32.mrf.mxu0 }
0x1094   :  { %v13878_v21 = vpop.eup %10870  ;;  %9962 = vmatpush3.bf16.msra.mxu1 %v5402_v53 }
0x1095   :  { %v13880_v37 = vpop.eup %10872  ;;  %v5051_v36 = vpack.c.bf16 %v13878_v21, %v13874_v13  ;;  %v13904_v12 = vpop.f32.mrf.mxu0 }
0x1096   :  { %v5400_v44 = vpop.permute.xlu1 %5399  ;;  %v5052_v27 = vpack.c.bf16 %v13876_v54, %v13880_v37  ;;  %15784 = vst [vmem:[#allocation22_spill] sm:$0xff] %v13904_v12 }
0x1097   :  { %9937 = vmatprep.mubr.msk.bf16.mxu0 %vm643_vm9, %v5051_v36  ;;  %9963 = vmatprep.subr.bf16.mxu1 %v5400_v44  ;;  %v13906_v59 = vpop.f32.mrf.mxu0 }
0x1098   :  { %9938 = vmatmul.mubr.msk.bf16.gmra.mxu0 %vm643_vm9, %v5052_v27  ;;  %9964 = vmatpush3.bf16.msra.mxu1 %v5400_v44  ;;  %15785 = vst [vmem:[#allocation23_spill] sm:$0xff] %v13906_v59 }
0x1099   :  { %9951 = vmatprep.mubr.msk.bf16.mxu0 %vm550_vm5, %v5202_v48 }
0x10a0   :  { %9952 = vmatmul.mubr.msk.bf16.vlgmr.msra.gmra.mxu0 %vm550_vm5, %v5204_v50 }
0x10a1   :  { %9955 = vmatprep.mubr.msk.bf16.mxu0 %vm550_vm5, %v5206_v34 }
0x10a8   :  { %9956 = vmatmul.mubr.msk.bf16.gmra.mxu0 %vm550_vm5, %v5208_v28 }
0x10df   :  { %v13908_v50 = vpop.f32.mrf.mxu0 }
0x10e1   :  { %v13910_v49 = vpop.f32.mrf.mxu0 }
0x10e3   :  { %v13912_v28 = vpop.f32.mrf.mxu0 }
0x10e5   :  { %v13914_v17 = vpop.f32.mrf.mxu0 }
0x10ed   :  { %v13916_v48 = vpop.f32.mrf.mxu0 }
0x10ef   :  { %v13918_v34 = vpop.f32.mrf.mxu0 }
0x10f1   :  { %v13920_v55 = vpop.f32.mrf.mxu0 }
0x10f3   :  { %v13922_v53 = vpop.f32.mrf.mxu0 }
0x1122   :  { %v13924_v36 = vpop.f32.mrf.mxu0 }
0x1124   :  { %v13926_v44 = vpop.f32.mrf.mxu0 }
0x1126   :  { %v13928_v27 = vpop.f32.mrf.mxu0 }
0x1128   :  { %v13930_v31 = vpop.f32.mrf.mxu0 }
0x1158   :  { %v13932_v14 = vpop.f32.mrf.mxu0 }
0x1159   :  { %15786 = vst [vmem:[#allocation24_spill] sm:$0xff] %v13932_v14 }
0x115a   :  { %v13934_v23 = vpop.f32.mrf.mxu0 }
0x115c   :  { %v13936_v30 = vpop.f32.mrf.mxu0 }
0x115d   :  { %15787 = vst [vmem:[#allocation25_spill] sm:$0xff] %v13936_v30 }
0x115e   :  { %v13938_v12 = vpop.f32.mrf.mxu0 }
0x1160   :  { %v9953_v43 = vpop.f32.mrf.mxu0 }
0x1161   :  { %v13941_v59 = vadd.f32 %v9953_v43, %v15774_v19 }
0x1162   :  { %v5280_v63 = vpop.f32.mrf.mxu0 }
0x1163   :  { %v13944_v5 = vadd.f32 %v5280_v63, %v15775_v3  ;;  %v5317_v42 = vsel %vm643_vm9, %v13941_v59, -inf }
0x1164   :  { %5318 = vmax.xlane.f32.xlu0 %v5317_v42  ;;  %v9954_v61 = vpop.f32.mrf.mxu0 }
0x1165   :  { %v13949_v14 = vadd.f32 %v9954_v61, %v15776_v41  ;;  %v5311_v30 = vsel %vm643_vm9, %v13944_v5, -inf }
0x1166   :  { %v5283_v29 = vpop.f32.mrf.mxu0  ;;  %5312 = vmax.xlane.f32.xlu1 %v5311_v30 }
0x1167   :  { %v13954_v43 = vadd.f32 %v5283_v29, %v15777_v0  ;;  %v5320_v42 = vsel %vm643_vm9, %v13949_v14, -inf }
0x1168   :  { %v9957_v19 = vpop.f32.mrf.mxu0 }
0x1169   :  { %v13957_v63 = vadd.f32 %v9957_v19, %v15778_v7  ;;  %v5314_v3 = vsel %vm643_vm9, %v13954_v43, -inf }
0x116a   :  { %5315 = vmax.xlane.f32.xlu0 %v5314_v3  ;;  %5321 = vmax.xlane.f32.xlu1 %v5320_v42  ;;  %v5296_v41 = vpop.f32.mrf.mxu0  ;;  %v4681_v42 = vsel %vm643_vm9, %v13813_v24, 0.0  ;;  %v5026_v24 = vsel %vm643_vm9, %v13855_v10, 0.0  ;;  %v5038_v10 = vsel %vm643_vm9, %v13876_v54, 0.0 }
0x116b   :  { %v13964_v26 = vadd.f32 %v5296_v41, %v15779_v15  ;;  %v5329_v30 = vsel %vm643_vm9, %v13957_v63, -inf  ;;  %v5017_v41 = vsel %vm643_vm9, %v13847_v62, 0.0  ;;  %v4690_v62 = vsel %vm643_vm9, %v13831_v51, 0.0 }
0x116c   :  { %v9958_v61 = vpop.f32.mrf.mxu0  ;;  %v4356_v51 = vsel %vm643_vm9, %v13703_v47, 0.0 }
0x116d   :  { %v13967_v29 = vadd.f32 %v9958_v61, %v15780_v38  ;;  %v5323_v3 = vsel %vm643_vm9, %v13964_v26, -inf  ;;  %v4675_v38 = vsel %vm643_vm9, %v13807_v6, 0.0  ;;  %v5020_v6 = vsel %vm643_vm9, %v13849_v8, 0.0 }
0x116e   :  { %5330 = vmax.xlane.f32.xlu0 %v5329_v30  ;;  %v5299_v0 = vpop.f32.mrf.mxu0  ;;  %v5029_v8 = vsel %vm643_vm9, %v13874_v13, 0.0 }
0x116f   :  { %v13972_v7 = vadd.f32 %v5299_v0, %v15781_v58  ;;  %v5332_v19 = vsel %vm643_vm9, %v13967_v29, -inf  ;;  %v4678_v58 = vsel %vm643_vm9, %v13809_v16, 0.0  ;;  %v4687_v16 = vsel %vm643_vm9, %v13827_v2, 0.0 }
0x1170   :  { %5333 = vmax.xlane.f32.xlu1 %v5332_v19  ;;  %v4696_v2 = vsel %vm643_vm9, %v13829_v4, 0.0 }
0x1171   :  { %v5326_v15 = vsel %vm643_vm9, %v13972_v7, -inf }
0x1172   :  { %5324 = vmax.xlane.f32.xlu0 %v5323_v3 }
0x1174   :  { %5327 = vmax.xlane.f32.xlu1 %v5326_v15 }
0x1185   :  { %5395 = vrot.lane.b32.xlu1 %v13476_v39, %s11204_s24  ;;  %v4684_v39 = vsel %vm643_vm9, %v13817_v20, 0.0  ;;  %v4693_v20 = vsel %vm643_vm9, %v13836_v32, 0.0  ;;  %v5032_v32 = vsel %vm643_vm9, %v13878_v21, 0.0 }
0x1188   :  { %5397 = vrot.lane.b32.xlu0 %v13442_v35, %s11204_s24  ;;  %v5023_v35 = vsel %vm643_vm9, %v13851_v57, 0.0  ;;  %v5035_v57 = vsel %vm643_vm9, %v13880_v37, 0.0 }
0x11a7   :  { %4676 = vadd.xlane.f32.xlu0 %v4675_v38 }
0x11a9   :  { %4679 = vadd.xlane.f32.xlu1 %v4678_v58 }
0x11ab   :  { %4682 = vadd.xlane.f32.xlu0 %v4681_v42 }
0x11ad   :  { %5018 = vadd.xlane.f32.xlu1 %v5017_v41 }
0x11af   :  { %4685 = vadd.xlane.f32.xlu0 %v4684_v39 }
0x11b1   :  { %5024 = vadd.xlane.f32.xlu1 %v5023_v35 }
0x11b3   :  { %5021 = vadd.xlane.f32.xlu0 %v5020_v6 }
0x11b5   :  { %4688 = vadd.xlane.f32.xlu1 %v4687_v16 }
0x11b7   :  { %5027 = vadd.xlane.f32.xlu0 %v5026_v24 }
0x11b9   :  { %4694 = vadd.xlane.f32.xlu1 %v4693_v20 }
0x11bb   :  { %4691 = vadd.xlane.f32.xlu0 %v4690_v62 }
0x11bd   :  { %5030 = vadd.xlane.f32.xlu1 %v5029_v8 }
0x11bf   :  { %4697 = vadd.xlane.f32.xlu0 %v4696_v2 }
0x11c1   :  { %5036 = vadd.xlane.f32.xlu1 %v5035_v57 }
0x11c3   :  { %5033 = vadd.xlane.f32.xlu0 %v5032_v32 }
0x11c5   :  { %4357 = vadd.xlane.f32.xlu1 %v4356_v51 }
0x11c7   :  { %5039 = vadd.xlane.f32.xlu0 %v5038_v10 }
0x11ed   :  { %v5319_v13 = vpop.xlane.xlu0 %5318 }
0x11ee   :  { %v5337_v4 = vsub.f32 %v13941_v59, %v5319_v13 }
0x11ef   :  { %v5313_v61 = vpop.xlane.xlu1 %5312 }
0x11f0   :  { %v5347_v30 = vmul.f32 1.442695, %v5337_v4  ;;  %v5335_v37 = vsub.f32 %v13944_v5, %v5313_v61 }
0x11f2   :  { %10874 = vpow2.f32 %v5347_v30  ;;  %v5343_v0 = vmul.f32 1.442695, %v5335_v37 }
0x11f3   :  { %v5316_v19 = vpop.xlane.xlu0 %5315  ;;  %v5322_v21 = vpop.xlane.xlu1 %5321 }
0x11f4   :  { %10876 = vpow2.f32 %v5343_v0  ;;  %v5336_v3 = vsub.f32 %v13954_v43, %v5316_v19  ;;  %v5338_v47 = vsub.f32 %v13949_v14, %v5322_v21 }
0x11f6   :  { %v5345_v15 = vmul.f32 1.442695, %v5336_v3  ;;  %v5349_v38 = vmul.f32 1.442695, %v5338_v47  ;;  %v4362_v3 = vsel %vm643_vm9, %v13701_v33, 0.0  ;;  %v4365_v33 = vsel %vm643_vm9, %v13707_v18, 0.0 }
0x11f7   :  { %v5331_v54 = vpop.xlane.xlu0 %5330 }
0x11f8   :  { %10878 = vpow2.f32 %v5345_v15  ;;  %v5341_v58 = vsub.f32 %v13957_v63, %v5331_v54  ;;  %v4368_v15 = vsel %vm643_vm9, %v13718_v60, 0.0  ;;  %v4374_v54 = vsel %vm643_vm9, %v13725_v1, 0.0 }
0x11f9   :  { %10880 = vpow2.f32 %v5349_v38  ;;  %v5334_v59 = vpop.xlane.xlu1 %5333  ;;  %v4359_v38 = vsel %vm643_vm9, %v13705_v25, 0.0  ;;  %v4377_v60 = vsel %vm643_vm9, %v13721_v45, 0.0 }
0x11fa   :  { %v5355_v42 = vmul.f32 1.442695, %v5341_v58  ;;  %v5342_v5 = vsub.f32 %v13967_v29, %v5334_v59  ;;  %v4371_v58 = vsel %vm643_vm9, %v13723_v56, 0.0 }
0x11fb   :  { %v5325_v41 = vpop.xlane.xlu0 %5324 }
0x11fc   :  { %10882 = vpow2.f32 %v5355_v42  ;;  %v5357_v39 = vmul.f32 1.442695, %v5342_v5  ;;  %v5339_v35 = vsub.f32 %v13964_v26, %v5325_v41 }
0x11fd   :  { %v5328_v6 = vpop.xlane.xlu1 %5327 }
0x11fe   :  { %v5351_v43 = vmul.f32 1.442695, %v5339_v35  ;;  %v5340_v14 = vsub.f32 %v13972_v7, %v5328_v6  ;;  %10884 = vpow2.f32 %v5357_v39 }
0x11ff   :  { %v10875_v16 = vpop.eup %10874  ;;  %v5398_v24 = vpop.permute.xlu0 %5397 }
0x1200   :  { %10886 = vpow2.f32 %v5351_v43  ;;  %v5353_v20 = vmul.f32 1.442695, %v5340_v14  ;;  %9965 = vmatprep.subr.bf16.mxu1 %v5398_v24  ;;  %v5365_v63 = vsel %vm643_vm9, %v10875_v16, 0.0 }
0x1201   :  { %v10877_v62 = vpop.eup %10876  ;;  %5366 = vadd.xlane.f32.xlu1 %v5365_v63  ;;  %9966 = vmatpush3.bf16.msra.mxu1 %v5398_v24  ;;  %v5396_v29 = vpop.permute.xlu1 %5395 }
0x1202   :  { %10888 = vpow2.f32 %v5353_v20  ;;  %9967 = vmatprep.subr.bf16.mxu1 %v5396_v29  ;;  %v5359_v26 = vsel %vm643_vm9, %v10877_v62, 0.0 }
0x1205   :  { %v10879_v8 = vpop.eup %10878  ;;  %5360 = vadd.xlane.f32.xlu1 %v5359_v26  ;;  %9968 = vmatpush3.bf16.msra.mxu1 %v5396_v29 }
0x1206   :  { %v10881_v7 = vpop.eup %10880  ;;  %v5391_v2 = vpack.c.bf16 %v10879_v8, %v10877_v62  ;;  %v5362_v13 = vsel %vm643_vm9, %v10879_v8, 0.0 }
0x1207   :  { %v5392_v57 = vpack.c.bf16 %v10881_v7, %v10875_v16  ;;  %v5368_v32 = vsel %vm643_vm9, %v10881_v7, 0.0 }
0x1208   :  { %5369 = vadd.xlane.f32.xlu0 %v5368_v32  ;;  %9969 = vmatprep.mubr.msk.bf16.mxu1 %vm643_vm9, %v5391_v2 }
0x1209   :  { %v10883_v51 = vpop.eup %10882  ;;  %9970 = vmatmul.mubr.msk.bf16.vlgmr.msra.gmra.mxu1 %vm643_vm9, %v5392_v57 }
0x120a   :  { %v5377_v10 = vsel %vm643_vm9, %v10883_v51, 0.0 }
0x120b   :  { %5378 = vadd.xlane.f32.xlu1 %v5377_v10  ;;  %v10885_v4 = vpop.eup %10884 }
0x120c   :  { %5363 = vadd.xlane.f32.xlu0 %v5362_v13  ;;  %v5380_v0 = vsel %vm643_vm9, %v10885_v4, 0.0  ;;  %v5394_v21 = vpack.c.bf16 %v10885_v4, %v10883_v51 }
0x120d   :  { %v10887_v61 = vpop.eup %10886 }
0x120e   :  { %v5371_v30 = vsel %vm643_vm9, %v10887_v61, 0.0 }
0x120f   :  { %v10889_v37 = vpop.eup %10888  ;;  %5372 = vadd.xlane.f32.xlu1 %v5371_v30 }
0x1210   :  { %5381 = vadd.xlane.f32.xlu0 %v5380_v0  ;;  %v5393_v19 = vpack.c.bf16 %v10889_v37, %v10887_v61  ;;  %v5374_v47 = vsel %vm643_vm9, %v10889_v37, 0.0 }
0x1212   :  { %9973 = vmatprep.mubr.msk.bf16.mxu1 %vm643_vm9, %v5393_v19 }
0x1213   :  { %4363 = vadd.xlane.f32.xlu1 %v4362_v3  ;;  %9974 = vmatmul.mubr.msk.bf16.gmra.mxu1 %vm643_vm9, %v5394_v21 }
0x1214   :  { %5375 = vadd.xlane.f32.xlu0 %v5374_v47 }
0x1217   :  { %4369 = vadd.xlane.f32.xlu1 %v4368_v15 }
0x1218   :  { %4360 = vadd.xlane.f32.xlu0 %v4359_v38 }
0x121b   :  { %4375 = vadd.xlane.f32.xlu1 %v4374_v54 }
0x121c   :  { %4366 = vadd.xlane.f32.xlu0 %v4365_v33 }
0x1220   :  { %4372 = vadd.xlane.f32.xlu0 %v4371_v58 }
0x1224   :  { %4378 = vadd.xlane.f32.xlu0 %v4377_v60 }
0x1230   :  { %v4677_v59 = vpop.xlane.xlu0 %4676 }
0x1231   :  { %10890 = vrcp.f32 %v4677_v59 }
0x1232   :  { %v4680_v25 = vpop.xlane.xlu1 %4679 }
0x1233   :  { %10892 = vrcp.f32 %v4680_v25 }
0x1234   :  { %v4683_v42 = vpop.xlane.xlu0 %4682 }
0x1235   :  { %10894 = vrcp.f32 %v4683_v42 }
0x1236   :  { %v5019_v1 = vpop.xlane.xlu1 %5018 }
0x1237   :  { %10896 = vrcp.f32 %v5019_v1 }
0x1238   :  { %v4686_v5 = vpop.xlane.xlu0 %4685 }
0x1239   :  { %10898 = vrcp.f32 %v4686_v5 }
0x123a   :  { %v5025_v18 = vpop.xlane.xlu1 %5024 }
0x123b   :  { %10900 = vrcp.f32 %v5025_v18 }
0x123c   :  { %v5022_v41 = vpop.xlane.xlu0 %5021 }
0x123d   :  { %10902 = vrcp.f32 %v5022_v41 }
0x123e   :  { %v10891_v56 = vpop.eup %10890  ;;  %v4689_v39 = vpop.xlane.xlu1 %4688 }
0x123f   :  { %10904 = vrcp.f32 %v4689_v39  ;;  %v4803_v45 = vmul.f32 %v10891_v56, %v13910_v49 }
0x1240   :  { %v10893_v35 = vpop.eup %10892  ;;  %v5028_v6 = vpop.xlane.xlu0 %5027 }
0x1241   :  { %10906 = vrcp.f32 %v5028_v6  ;;  %4819 = vrot.lane.b32.xlu1 %v4803_v45, %s11205_s25  ;;  %v4804_v43 = vmul.f32 %v10893_v35, %v13914_v17  ;;  %v15788_v6 = vld [vmem:[#allocation34_spill] sm:$0xff] }
0x1242   :  { %v10895_v14 = vpop.eup %10894  ;;  %v4695_v16 = vpop.xlane.xlu1 %4694 }
0x1243   :  { %10908 = vrcp.f32 %v4695_v16  ;;  %4821 = vrot.lane.b32.xlu0 %v4804_v43, %s11205_s25  ;;  %v4805_v24 = vmul.f32 %v10895_v14, %v13908_v50  ;;  %v15789_v16 = vld [vmem:[#allocation15_spill] sm:$0xff] }
0x1244   :  { %v10897_v20 = vpop.eup %10896  ;;  %v4692_v63 = vpop.xlane.xlu0 %4691 }
0x1245   :  { %10910 = vrcp.f32 %v4692_v63  ;;  %4823 = vrot.lane.b32.xlu1 %v4805_v24, %s11205_s25  ;;  %v5145_v49 = vmul.f32 %v10897_v20, %v13926_v44 }
0x1246   :  { %v10899_v62 = vpop.eup %10898  ;;  %v5031_v29 = vpop.xlane.xlu1 %5030 }
0x1247   :  { %10912 = vrcp.f32 %v5031_v29  ;;  %5161 = vrot.lane.b32.xlu0 %v5145_v49, %s11206_s26  ;;  %v4806_v17 = vmul.f32 %v10899_v62, %v13912_v28  ;;  %v15791_v62 = vld [vmem:[#allocation20_spill] sm:$0xff] }
0x1248   :  { %v10901_v26 = vpop.eup %10900  ;;  %v4698_v8 = vpop.xlane.xlu0 %4697 }
0x1249   :  { %10914 = vrcp.f32 %v4698_v8  ;;  %4825 = vrot.lane.b32.xlu1 %v4806_v17, %s11205_s25  ;;  %v5147_v50 = vmul.f32 %v10901_v26, %v13924_v36  ;;  %v15793_v8 = vld [vmem:[#allocation18_spill] sm:$0xff] }
0x124a   :  { %v10903_v7 = vpop.eup %10902  ;;  %v14063_v2 = vpop.xlane.xlu1 %5036 }
0x124b   :  { %5165 = vrot.lane.b32.xlu0 %v5147_v50, %s11206_s26  ;;  %v5146_v44 = vmul.f32 %v10903_v7, %v13930_v31 }
0x124c   :  { %v10905_v57 = vpop.eup %10904  ;;  %v5034_v32 = vpop.xlane.xlu0 %5033 }
0x124d   :  { %10916 = vrcp.f32 %v5034_v32  ;;  %5163 = vrot.lane.b32.xlu1 %v5146_v44, %s11206_s26  ;;  %v4807_v28 = vmul.f32 %v10905_v57, %v13918_v34  ;;  %v15794_v32 = vld [vmem:[#allocation23_spill] sm:$0xff] }
0x124e   :  { %v10907_v51 = vpop.eup %10906  ;;  %v4358_v10 = vpop.xlane.xlu1 %4357 }
0x124f   :  { %10918 = vrcp.f32 %v4358_v10  ;;  %4827 = vrot.lane.b32.xlu0 %v4807_v28, %s11205_s25  ;;  %v5148_v36 = vmul.f32 %v10907_v51, %v13928_v27 }
0x1250   :  { %v10909_v13 = vpop.eup %10908  ;;  %v14085_v3 = vpop.xlane.xlu0 %5039 }
0x1251   :  { %5167 = vrot.lane.b32.xlu1 %v5148_v36, %s11206_s26  ;;  %v4809_v4 = vmul.f32 %v10909_v13, %v13916_v48  ;;  %v15795_v36 = vld [vmem:[#allocation35_spill] sm:$0xff] }
0x1252   :  { %v10911_v31 = vpop.eup %10910 }
0x1253   :  { %4831 = vrot.lane.b32.xlu0 %v4809_v4, %s11205_s25  ;;  %v4808_v61 = vmul.f32 %v10911_v31, %v13922_v53 }
0x1254   :  { %v10913_v30 = vpop.eup %10912 }
0x1255   :  { %4829 = vrot.lane.b32.xlu1 %v4808_v61, %s11205_s25  ;;  %v5149_v34 = vmul.f32 %v10913_v30, %v13934_v23  ;;  %v15796_v30 = vld [vmem:[#allocation22_spill] sm:$0xff] }
0x1256   :  { %v10915_v37 = vpop.eup %10914 }
0x1257   :  { %5169 = vrot.lane.b32.xlu0 %v5149_v34, %s11206_s26  ;;  %v4810_v27 = vmul.f32 %v10915_v37, %v13920_v55 }
0x1259   :  { %4833 = vrot.lane.b32.xlu1 %v4810_v27, %s11205_s25 }
0x125a   :  { %v10917_v0 = vpop.eup %10916 }
0x125b   :  { %v5150_v48 = vmul.f32 %v10917_v0, %v13938_v12  ;;  %v15797_v0 = vld [vmem:[#allocation37_spill] sm:$0xff] }
0x125c   :  { %v10919_v19 = vpop.eup %10918 }
0x125d   :  { %v4489_v21 = vmul.f32 %v10919_v19, %v13894_v40  ;;  %5171 = vrot.lane.b32.xlu1 %v5150_v48, %s11206_s26 }
0x125f   :  { %v4497_v53 = vadd.f32 %v4489_v21, %v13371_v46 }
0x1261   :  { %4505 = vst.msk [vmem:[#allocation2] sm:$0xff] %vm550_vm5, %v4497_v53 }
0x128a   :  { %v5367_v23 = vpop.xlane.xlu1 %5366 }
0x128e   :  { %v14087_v47 = vpop.xlane.xlu1 %5360 }
0x1291   :  { %v14089_v55 = vpop.xlane.xlu0 %5369 }
0x1294   :  { %v14091_v15 = vpop.xlane.xlu1 %5378 }
0x1295   :  { %v14093_v38 = vpop.xlane.xlu0 %5363 }
0x1298   :  { %v14095_v12 = vpop.xlane.xlu1 %5372 }
0x1299   :  { %v14097_v40 = vpop.xlane.xlu0 %5381 }
0x129c   :  { %v4364_v54 = vpop.xlane.xlu1 %4363 }
0x129d   :  { %v14099_v33 = vpop.xlane.xlu0 %5375  ;;  %10920 = vrcp.f32 %v4364_v54 }
0x12a0   :  { %v4370_v58 = vpop.xlane.xlu1 %4369 }
0x12a1   :  { %v4361_v60 = vpop.xlane.xlu0 %4360  ;;  %10922 = vrcp.f32 %v4370_v58 }
0x12a2   :  { %10924 = vrcp.f32 %v4361_v60 }
0x12a4   :  { %v4376_v59 = vpop.xlane.xlu1 %4375 }
0x12a5   :  { %v4367_v25 = vpop.xlane.xlu0 %4366  ;;  %10926 = vrcp.f32 %v4376_v59 }
0x12a6   :  { %10928 = vrcp.f32 %v4367_v25 }
0x12a9   :  { %v4373_v42 = vpop.xlane.xlu0 %4372 }
0x12aa   :  { %v10921_v1 = vpop.eup %10920  ;;  %10930 = vrcp.f32 %v4373_v42 }
0x12ab   :  { %v4491_v5 = vmul.f32 %v10921_v1, %v13892_v11  ;;  %v15790_v11 = vld [vmem:[#allocation21_spill] sm:$0xff] }
0x12ad   :  { %v4499_v18 = vadd.f32 %v4491_v5, %v13436_v52  ;;  %v4379_v41 = vpop.xlane.xlu0 %4378 }
0x12ae   :  { %v10923_v56 = vpop.eup %10922  ;;  %10932 = vrcp.f32 %v4379_v41 }
0x12af   :  { %v10925_v39 = vpop.eup %10924  ;;  %4507 = vst.msk [vmem:[#allocation2 + $0x10] sm:$0xff] %vm550_vm5, %v4499_v18  ;;  %v4493_v45 = vmul.f32 %v10923_v56, %v13902_v9  ;;  %v15792_v9 = vld [vmem:[#allocation36_spill] sm:$0xff]  ;;  %10934 = vrcp.f32 %v5367_v23 }
0x12b0   :  { %v4490_v35 = vmul.f32 %v10925_v39, %v13898_v22  ;;  %10936 = vrcp.f32 %v14087_v47  ;;  %v10521_v56 = vld [vmem:[#allocation3 + $0xc0] sm:$0xff]  }
0x12b1   :  { %v4501_v43 = vadd.f32 %v4493_v45, %v15788_v6  ;;  %10938 = vrcp.f32 %v14089_v55  ;;  %9977 = vmatprep.subr.bf16.mxu1 %v10521_v56 }
0x12b2   :  { %v10927_v14 = vpop.eup %10926  ;;  %v4498_v24 = vadd.f32 %v4490_v35, %v15789_v16  ;;  %10940 = vrcp.f32 %v14063_v2  ;;  %9978 = vmatpush3.bf16.msra.mxu1 %v10521_v56  ;;  %v15801_v56 = vld [vmem:[#allocation16_spill] sm:$0xff] }
0x12b3   :  { %v10929_v20 = vpop.eup %10928  ;;  %4509 = vst.msk [vmem:[#allocation2 + $0x20] sm:$0xff] %vm550_vm5, %v4501_v43  ;;  %v4495_v63 = vmul.f32 %v10927_v14, %v15790_v11  ;;  %v4820_v49 = vpop.permute.xlu1 %4819  ;;  %10942 = vrcp.f32 %v14093_v38 }
0x12b4   :  { %4506 = vst.msk [vmem:[#allocation2 + $0x8] sm:$0xff] %vm550_vm5, %v4498_v24  ;;  %v4492_v29 = vmul.f32 %v10929_v20, %v15791_v62  ;;  %v4843_v17 = vadd.f32 %v4820_v49, %v13371_v46  ;;  %10944 = vrcp.f32 %v14085_v3  ;;  %v10522_v20 = vld [vmem:[#allocation3 + $0xb8] sm:$0xff]   ;;  %v15798_v49 = vld [vmem:[#allocation24_spill] sm:$0xff] }
0x12b5   :  { %v4503_v26 = vadd.f32 %v4495_v63, %v15792_v9  ;;  %v4822_v22 = vpop.permute.xlu0 %4821  ;;  %10946 = vrcp.f32 %v14095_v12  ;;  %9979 = vmatprep.subr.bf16.mxu1 %v10522_v20 }
0x12b6   :  { %v4500_v50 = vadd.f32 %v4492_v29, %v15793_v8  ;;  %4851 = vst.msk [vmem:[#allocation2] sm:$0xff] %vm1187_vm15, %v4843_v17  ;;  %v4844_v7 = vadd.f32 %v4822_v22, %v15789_v16  ;;  %10948 = vrcp.f32 %v14091_v15  ;;  %9980 = vmatpush3.bf16.msra.mxu1 %v10522_v20  ;;  %v15799_v22 = vmov 0.0  }
0x12b7   :  { %v10931_v44 = vpop.eup %10930  ;;  %4511 = vst.msk [vmem:[#allocation2 + $0x30] sm:$0xff] %vm550_vm5, %v4503_v26  ;;  %v4824_v57 = vpop.permute.xlu1 %4823  ;;  %10950 = vrcp.f32 %v14099_v33  ;;  %9989 = vmatprep.subr.bf16.mxu1 %v15799_v22 }
0x12b8   :  { %4508 = vst.msk [vmem:[#allocation2 + $0x18] sm:$0xff] %vm550_vm5, %v4500_v50  ;;  %v4494_v28 = vmul.f32 %v10931_v44, %v15794_v32  ;;  %v4845_v51 = vadd.f32 %v4824_v57, %v13436_v52  ;;  %10952 = vrcp.f32 %v14097_v40 }
0x12b9   :  { %4852 = vst.msk [vmem:[#allocation2 + $0x8] sm:$0xff] %vm1187_vm15, %v4844_v7  ;;  %v5162_v10 = vpop.permute.xlu0 %5161  ;;  %v15800_v7 = vld [vmem:[#allocation25_spill] sm:$0xff] }
0x12ba   :  { %v4502_v13 = vadd.f32 %v4494_v28, %v15795_v36  ;;  %4853 = vst.msk [vmem:[#allocation2 + $0x10] sm:$0xff] %vm1187_vm15, %v4845_v51  ;;  %v5185_v4 = vadd.f32 %v5162_v10, %v13371_v46 }
0x12bb   :  { %v10933_v31 = vpop.eup %10932  ;;  %v4826_v61 = vpop.permute.xlu1 %4825 }
0x12bc   :  { %4510 = vst.msk [vmem:[#allocation2 + $0x28] sm:$0xff] %vm550_vm5, %v4502_v13  ;;  %v4496_v34 = vmul.f32 %v10933_v31, %v15796_v30  ;;  %v4846_v37 = vadd.f32 %v4826_v61, %v15793_v8  ;;  %v10935_v25 = vpop.eup %10934 }
0x12bd   :  { %5193 = vst.msk [vmem:[#allocation2] sm:$0xff] %vm1530_vm1, %v5185_v4  ;;  %v5166_v27 = vpop.permute.xlu0 %5165  ;;  %v10937_v41 = vpop.eup %10936 }
0x12be   :  { %v4504_v48 = vadd.f32 %v4496_v34, %v15797_v0  ;;  %4854 = vst.msk [vmem:[#allocation2 + $0x18] sm:$0xff] %vm1187_vm15, %v4846_v37  ;;  %v5187_v19 = vadd.f32 %v5166_v27, %v13436_v52  ;;  %v10939_v39 = vpop.eup %10938 }
0x12bf   :  { %v5164_v21 = vpop.permute.xlu1 %5163  ;;  %v10941_v15 = vpop.eup %10940 }
0x12c0   :  { %4512 = vst.msk [vmem:[#allocation2 + $0x38] sm:$0xff] %vm550_vm5, %v4504_v48  ;;  %v5186_v53 = vadd.f32 %v5164_v21, %v15789_v16  ;;  %v10943_v11 = vpop.eup %10942  ;;  %v5151_v62 = vmul.f32 %v10941_v15, %v15798_v49  ;;  %v10525_v15 = vld [vmem:[#allocation3 + $0xe0] sm:$0xff]  }
0x12c1   :  { %5195 = vst.msk [vmem:[#allocation2 + $0x10] sm:$0xff] %vm1530_vm1, %v5187_v19  ;;  %v4828_v23 = vpop.permute.xlu0 %4827  ;;  %v10945_v29 = vpop.eup %10944  ;;  %10013 = vmatprep.subr.bf16.mxu0 %v10525_v15 }
0x12c2   :  { %5194 = vst.msk [vmem:[#allocation2 + $0x8] sm:$0xff] %vm1530_vm1, %v5186_v53  ;;  %v4847_v54 = vadd.f32 %v4828_v23, %v15788_v6  ;;  %v10947_v40 = vpop.eup %10946  ;;  %v5152_v44 = vmul.f32 %v10945_v29, %v15800_v7  ;;  %10014 = vmatpush3.bf16.msra.mxu0 %v10525_v15 }
0x12c3   :  { %v5168_v58 = vpop.permute.xlu1 %5167  ;;  %v10949_v32 = vpop.eup %10948 }
0x12c4   :  { %4855 = vst.msk [vmem:[#allocation2 + $0x20] sm:$0xff] %vm1187_vm15, %v4847_v54  ;;  %v5188_v47 = vadd.f32 %v5168_v58, %v15793_v8  ;;  %v10951_v28 = vpop.eup %10950 }
0x12c5   :  { %v4832_v55 = vpop.permute.xlu0 %4831  ;;  %v10953_v4 = vpop.eup %10952 }
0x12c6   :  { %5196 = vst.msk [vmem:[#allocation2 + $0x18] sm:$0xff] %vm1530_vm1, %v5188_v47  ;;  %v4849_v60 = vadd.f32 %v4832_v55, %v15792_v9 }
0x12c7   :  { %v4830_v59 = vpop.permute.xlu1 %4829 }
0x12c8   :  { %4857 = vst.msk [vmem:[#allocation2 + $0x30] sm:$0xff] %vm1187_vm15, %v4849_v60  ;;  %v4848_v2 = vadd.f32 %v4830_v59, %v15795_v36 }
0x12c9   :  { %v9971_v38 = vpop.f32.mrf.mxu1  ;;  %v5170_v42 = vpop.permute.xlu0 %5169 }
0x12ca   :  { %4856 = vst.msk [vmem:[#allocation2 + $0x28] sm:$0xff] %vm1187_vm15, %v4848_v2  ;;  %v5489_v1 = vmul.f32 %v10935_v25, %v9971_v38  ;;  %v5189_v5 = vadd.f32 %v5170_v42, %v15788_v6  ;;  %v10523_v38 = vld [vmem:[#allocation3 + $0xd0] sm:$0xff]  }
0x12cb   :  { %v5456_v3 = vpop.f32.mrf.mxu1  ;;  %v4834_v18 = vpop.permute.xlu1 %4833 }
0x12cc   :  { %5197 = vst.msk [vmem:[#allocation2 + $0x20] sm:$0xff] %vm1530_vm1, %v5189_v5  ;;  %v4850_v12 = vadd.f32 %v4834_v18, %v15797_v0  ;;  %5507 = vrot.lane.b32.xlu0 %v5489_v1, %s11207_s27  ;;  %v5487_v35 = vmul.f32 %v10937_v41, %v5456_v3 }
0x12cd   :  { %v9972_v45 = vpop.f32.mrf.mxu1 }
0x12ce   :  { %4858 = vst.msk [vmem:[#allocation2 + $0x38] sm:$0xff] %vm1187_vm15, %v4850_v12  ;;  %v5490_v43 = vmul.f32 %v10939_v39, %v9972_v45  ;;  %v15802_v39 = vld [vmem:[#allocation12_spill] sm:$0xff]  ;;  %v15803_v45 = vld [vmem:[#allocation29_spill] sm:$0xff] }
0x12cf   :  { %v5459_v14 = vpop.f32.mrf.mxu1  ;;  %v5172_v24 = vpop.permute.xlu1 %5171 }
0x12d0   :  { %v5190_v33 = vadd.f32 %v5172_v24, %v15795_v36  ;;  %5509 = vrot.lane.b32.xlu1 %v5490_v43, %s11207_s27  ;;  %5503 = vrot.lane.b32.xlu0 %v5487_v35, %s11207_s27  ;;  %v5488_v63 = vmul.f32 %v10943_v11, %v5459_v14  ;;  %v15804_v35 = vld [vmem:[#allocation28_spill] sm:$0xff]  ;;  %v15805_v43 = vld [vmem:[#allocation10_spill] sm:$0xff]  ;;  %v10526_v14 = vld [vmem:[#allocation3 + $0xd8] sm:$0xff]  }
0x12d1   :  { %10015 = vmatprep.subr.bf16.mxu0 %v10526_v14 }
0x12d2   :  { %5198 = vst.msk [vmem:[#allocation2 + $0x28] sm:$0xff] %vm1530_vm1, %v5190_v33  ;;  %10016 = vmatpush3.bf16.msra.mxu0 %v10526_v14  ;;  %v8746_v33 = vld [vmem:[%s15595_s9 + $0x9] ss:$0 sm:$0xff] }
0x12d3   :  { %v9975_v17 = vpop.f32.mrf.mxu1  ;;  %10025 = vmatprep.subr.bf16.mxu0 %v15799_v22 }
0x12d4   :  { %5505 = vrot.lane.b32.xlu1 %v5488_v63, %s11207_s27  ;;  %5173 = vrot.lane.b32.xlu0 %v5151_v62, %s11206_s26  ;;  %v5493_v10 = vmul.f32 %v10949_v32, %v9975_v17 }
0x12d5   :  { %v5472_v26 = vpop.f32.mrf.mxu1 }
0x12d6   :  { %v5491_v50 = vmul.f32 %v10947_v40, %v5472_v26 }
0x12d7   :  { %v9976_v57 = vpop.f32.mrf.mxu1 }
0x12d8   :  { %5175 = vrot.lane.b32.xlu1 %v5152_v44, %s11206_s26  ;;  %5511 = vrot.lane.b32.xlu0 %v5491_v50, %s11207_s27  ;;  %v5494_v31 = vmul.f32 %v10953_v4, %v9976_v57 }
0x12d9   :  { %v5475_v51 = vpop.f32.mrf.mxu1 }
0x12da   :  { %v5492_v13 = vmul.f32 %v10951_v28, %v5475_v51 }
0x12dc   :  { %5513 = vrot.lane.b32.xlu1 %v5492_v13, %s11207_s27  ;;  %5515 = vrot.lane.b32.xlu0 %v5493_v10, %s11207_s27 }
0x12e0   :  { %5517 = vrot.lane.b32.xlu1 %v5494_v31, %s11207_s27 }
0x133e   :  { %v5508_v61 = vpop.permute.xlu0 %5507 }
0x133f   :  { %v5529_v30 = vadd.f32 %v5508_v61, %v13436_v52 }
0x1341   :  { %5537 = vst.msk [vmem:[#allocation2 + $0x10] sm:$0xff] %vm1873_vm2, %v5529_v30 }
0x1342   :  { %v5504_v34 = vpop.permute.xlu0 %5503  ;;  %v5510_v37 = vpop.permute.xlu1 %5509 }
0x1343   :  { %v5527_v27 = vadd.f32 %v5504_v34, %v13371_v46  ;;  %v5530_v48 = vadd.f32 %v5510_v37, %v15793_v8 }
0x1345   :  { %5535 = vst.msk [vmem:[#allocation2] sm:$0xff] %vm1873_vm2, %v5527_v27  ;;  %5538 = vst.msk [vmem:[#allocation2 + $0x18] sm:$0xff] %vm1873_vm2, %v5530_v48 }
0x1346   :  { %v5174_v19 = vpop.permute.xlu0 %5173  ;;  %v5506_v21 = vpop.permute.xlu1 %5505 }
0x1347   :  { %v5191_v53 = vadd.f32 %v5174_v19, %v15792_v9  ;;  %v5528_v23 = vadd.f32 %v5506_v21, %v15789_v16 }
0x1348   :  { %v5545_v25 = vld [vmem:[#allocation2 + $0x10] sm:$0xff] }
0x1349   :  { %5199 = vst.msk [vmem:[#allocation2 + $0x30] sm:$0xff] %vm1530_vm1, %v5191_v53 }
0x134a   :  { %5536 = vst.msk [vmem:[#allocation2 + $0x8] sm:$0xff] %vm1873_vm2, %v5528_v23  ;;  %v5512_v52 = vpop.permute.xlu0 %5511  ;;  %v5176_v54 = vpop.permute.xlu1 %5175 }
0x134b   :  { %v5531_v46 = vadd.f32 %v5512_v52, %v15788_v6  ;;  %v5192_v8 = vadd.f32 %v5176_v54, %v15797_v0 }
0x134c   :  { %v5546_v60 = vld [vmem:[#allocation2 + $0x18] sm:$0xff]  ;;  %v5543_v59 = vld [vmem:[#allocation2] sm:$0xff] }
0x134d   :  { %5539 = vst.msk [vmem:[#allocation2 + $0x20] sm:$0xff] %vm1873_vm2, %v5531_v46  ;;  %v5552_v1 = vpack.c.bf16 %v5546_v60, %v5545_v25 }
0x134e   :  { %5200 = vst.msk [vmem:[#allocation2 + $0x38] sm:$0xff] %vm1530_vm1, %v5192_v8  ;;  %v5516_v58 = vpop.permute.xlu0 %5515  ;;  %v5514_v47 = vpop.permute.xlu1 %5513 }
0x134f   :  { %v5533_v55 = vadd.f32 %v5516_v58, %v15792_v9  ;;  %v5532_v16 = vadd.f32 %v5514_v47, %v15795_v36  ;;  %v10524_v9 = vld [vmem:[#allocation3 + $0xc8] sm:$0xff]  }
0x1351   :  { %v5544_v2 = vld [vmem:[#allocation2 + $0x8] sm:$0xff]  ;;  %5541 = vst.msk [vmem:[#allocation2 + $0x30] sm:$0xff] %vm1873_vm2, %v5533_v55  ;;  %5540 = vst.msk [vmem:[#allocation2 + $0x28] sm:$0xff] %vm1873_vm2, %v5532_v16 }
0x1352   :  { %v5551_v6 = vpack.c.bf16 %v5544_v2, %v5543_v59  ;;  %v5518_v42 = vpop.permute.xlu1 %5517 }
0x1353   :  { %v5534_v5 = vadd.f32 %v5518_v42, %v15797_v0 }
0x1354   :  { %9981 = vmatprep.mubr.msk.bf16.mxu1 %vm286_vm3, %v5551_v6  ;;  %v14195_v36 = vld [vmem:[#allocation2 + $0x20] sm:$0xff] }
0x1355   :  { %9982 = vmatmul.mubr.msk.bf16.vlgmr.msra.gmra.mxu1 %vm286_vm3, %v5552_v1  ;;  %5542 = vst.msk [vmem:[#allocation2 + $0x38] sm:$0xff] %vm1873_vm2, %v5534_v5 }
0x1356   :  { %9990 = vmatpush3.bf16.msra.mxu1 %v10523_v38 }
0x1357   :  { %9991 = vmatprep.subr.bf16.mxu1 %v15799_v22 }
0x1358   :  { %v14197_v3 = vld [vmem:[#allocation2 + $0x28] sm:$0xff]  ;;  %v5549_v0 = vld [vmem:[#allocation2 + $0x30] sm:$0xff] }
0x1359   :  { %v5553_v18 = vpack.c.bf16 %v14197_v3, %v14195_v36 }
0x135a   :  { %9992 = vmatpush3.bf16.msra.mxu1 %v10524_v9 }
0x135b   :  { %10053 = vmatprep.subr.bf16.mxu1 %v15799_v22  ;;  %9985 = vmatprep.mubr.msk.bf16.mxu1 %vm286_vm3, %v5553_v18 }
0x135c   :  { %v5550_v41 = vld [vmem:[#allocation2 + $0x38] sm:$0xff] }
0x135d   :  { %v5554_v12 = vpack.c.bf16 %v5550_v41, %v5549_v0 }
0x135f   :  { %9986 = vmatmul.mubr.msk.bf16.gmra.mxu1 %vm286_vm3, %v5554_v12 }
0x1360   :  { %9993 = vmatprep.mubr.msk.bf16.mxu1 %vm11195_vm0, %v15799_v22 }
0x1367   :  { %9994 = vmatmul.mubr.msk.bf16.vlgmr.msra.gmra.mxu1 %vm286_vm3, %v15801_v56 }
0x1368   :  { %9997 = vmatprep.mubr.msk.bf16.mxu1 %vm11195_vm0, %v15799_v22 }
0x136f   :  { %9998 = vmatmul.mubr.msk.bf16.gmra.mxu1 %vm286_vm3, %v15802_v39 }
0x1370   :  { %10001 = vmatprep.mubr.msk.bf16.mxu1 %vm11195_vm0, %v15799_v22 }
0x1377   :  { %10002 = vmatmul.mubr.msk.bf16.gmra.mxu1 %vm286_vm3, %v15803_v45 }
0x1378   :  { %10005 = vmatprep.mubr.msk.bf16.mxu1 %vm11195_vm0, %v15799_v22 }
0x137f   :  { %10006 = vmatmul.mubr.msk.bf16.gmra.mxu1 %vm286_vm3, %v15804_v35 }
0x1380   :  { %10009 = vmatprep.mubr.msk.bf16.mxu1 %vm11195_vm0, %v15799_v22 }
0x1387   :  { %10010 = vmatmul.mubr.msk.bf16.gmra.mxu1 %vm286_vm3, %v15805_v43 }
0x1388   :  { %10061 = vmatprep.mubr.msk.bf16.mxu1 %vm11195_vm0, %v15799_v22 }
0x1415   :  { %v9983_v24 = vpop.f32.mrf.mxu1 }
0x1416   :  { %v5631_v63 = vadd.f32 %v9983_v24, %v8746_v33  ;;  %v8761_v24 = vld [vmem:[%s15595_s9 + $0xb] ss:$0 sm:$0xff] }
0x1417   :  { %v5622_v20 = vpop.f32.mrf.mxu1 }
0x1418   :  { %v5623_v11 = vadd.f32 %v8746_v33, %v5622_v20  ;;  %v5655_v50 = vmax.f32 %v5631_v63, 0.0  ;;  %v8753_v20 = vld [vmem:[%s15595_s9 + $0xa] ss:$0 sm:$0xff] }
0x1419   :  { %v9984_v49 = vpop.f32.mrf.mxu1 }
0x141a   :  { %v5634_v62 = vadd.f32 %v9984_v49, %v8746_v33  ;;  %v5653_v17 = vmax.f32 %v5623_v11, 0.0  ;;  %v5663_v51 = vadd.f32 %v5655_v50, %v5545_v25 }
0x141b   :  { %v5625_v29 = vpop.f32.mrf.mxu1 }
0x141c   :  { %v5656_v40 = vmax.f32 %v5634_v62, 0.0  ;;  %v5626_v26 = vadd.f32 %v8746_v33, %v5625_v29  ;;  %v5661_v57 = vadd.f32 %v5653_v17, %v5543_v59 }
0x141e   :  { %v5654_v7 = vmax.f32 %v5626_v26, 0.0  ;;  %v5664_v44 = vadd.f32 %v5656_v40, %v5546_v60 }
0x141f   :  { %v9987_v28 = vpop.f32.mrf.mxu1 }
0x1420   :  { %v5662_v32 = vadd.f32 %v5654_v7, %v5544_v2  ;;  %v5764_v4 = vpack.c.bf16 %v5664_v44, %v5663_v51  ;;  %v5647_v61 = vadd.f32 %v9987_v28, %v8746_v33 }
0x1421   :  { %v5638_v13 = vpop.f32.mrf.mxu1 }
0x1422   :  { %v5763_v10 = vpack.c.bf16 %v5662_v32, %v5661_v57  ;;  %v5639_v31 = vadd.f32 %v8746_v33, %v5638_v13  ;;  %v5659_v21 = vmax.f32 %v5647_v61, 0.0 }
0x1423   :  { %v9988_v30 = vpop.f32.mrf.mxu1 }
0x1424   :  { %10017 = vmatprep.mubr.msk.bf16.mxu0 %vm286_vm3, %v5763_v10  ;;  %v5650_v34 = vadd.f32 %v9988_v30, %v8746_v33  ;;  %v5657_v27 = vmax.f32 %v5639_v31, 0.0  ;;  %v5667_v58 = vadd.f32 %v5659_v21, %v5549_v0 }
0x1425   :  { %10018 = vmatmul.mubr.msk.bf16.vlgmr.msra.gmra.mxu0 %vm286_vm3, %v5764_v4  ;;  %v5641_v37 = vpop.f32.mrf.mxu1 }
0x1426   :  { %v5660_v48 = vmax.f32 %v5650_v34, 0.0  ;;  %v5642_v19 = vadd.f32 %v8746_v33, %v5641_v37  ;;  %v5665_v46 = vadd.f32 %v5657_v27, %v14195_v36 }
0x1427   :  { %v5724_v53 = vpop.f32.mrf.mxu1 }
0x1428   :  { %v5658_v23 = vmax.f32 %v5642_v19, 0.0  ;;  %v5668_v52 = vadd.f32 %v5660_v48, %v5550_v41  ;;  %v14248_v50 = vadd.f32 %v8753_v20, %v5724_v53 }
0x1429   :  { %v9995_v54 = vpop.f32.mrf.mxu1 }
0x142a   :  { %v5666_v8 = vadd.f32 %v5658_v23, %v14197_v3  ;;  %v5766_v16 = vpack.c.bf16 %v5668_v52, %v5667_v58  ;;  %v5865_v30 = vmul.f32 0.17677669, %v14248_v50 }
0x142b   :  { %v5727_v47 = vpop.f32.mrf.mxu1 }
0x142c   :  { %v5765_v55 = vpack.c.bf16 %v5666_v8, %v5665_v46  ;;  %v14244_v49 = vadd.f32 %v8753_v20, %v5727_v47 }
0x142d   :  { %v9996_v60 = vpop.f32.mrf.mxu1 }
0x142e   :  { %10021 = vmatprep.mubr.msk.bf16.mxu0 %vm286_vm3, %v5765_v55  ;;  %v5866_v4 = vmul.f32 0.17677669, %v14244_v49 }
0x142f   :  { %v5732_v59 = vpop.f32.mrf.mxu1  ;;  %10022 = vmatmul.mubr.msk.bf16.gmra.mxu0 %vm286_vm3, %v5766_v16 }
0x1430   :  { %10033 = vmatprep.mubr.msk.bf16.mxu0 %vm11195_vm0, %v15799_v22  ;;  %v14258_v51 = vadd.f32 %v8753_v20, %v5732_v59  ;;  %v5875_v27 = vpack.c.bf16 %v5866_v4, %v5865_v30 }
0x1431   :  { %v9999_v2 = vpop.f32.mrf.mxu1 }
0x1432   :  { %v5867_v48 = vmul.f32 0.17677669, %v14258_v51 }
0x1433   :  { %v5735_v6 = vpop.f32.mrf.mxu1 }
0x1434   :  { %v14250_v7 = vadd.f32 %v8753_v20, %v5735_v6 }
0x1435   :  { %v10000_v25 = vpop.f32.mrf.mxu1 }
0x1436   :  { %v5868_v34 = vmul.f32 0.17677669, %v14250_v7 }
0x1437   :  { %v5740_v38 = vpop.f32.mrf.mxu1 }
0x1438   :  { %v14274_v37 = vadd.f32 %v8753_v20, %v5740_v38  ;;  %v5876_v53 = vpack.c.bf16 %v5868_v34, %v5867_v48 }
0x1439   :  { %v10003_v42 = vpop.f32.mrf.mxu1 }
0x143a   :  { %15807 = vst [vmem:[#allocation27_spill] sm:$0xff] %v14274_v37  ;;  %v5869_v54 = vmul.f32 0.17677669, %v14274_v37 }
0x143b   :  { %v5743_v1 = vpop.f32.mrf.mxu1 }
0x143c   :  { %v14266_v31 = vadd.f32 %v8753_v20, %v5743_v1 }
0x143d   :  { %v10004_v5 = vpop.f32.mrf.mxu1 }
0x143e   :  { %15806 = vst [vmem:[#allocation26_spill] sm:$0xff] %v14266_v31  ;;  %v5870_v23 = vmul.f32 0.17677669, %v14266_v31 }
0x143f   :  { %v5748_v9 = vpop.f32.mrf.mxu1 }
0x1440   :  { %v14285_v52 = vadd.f32 %v8753_v20, %v5748_v9  ;;  %v5877_v8 = vpack.c.bf16 %v5870_v23, %v5869_v54 }
0x1441   :  { %v10007_v36 = vpop.f32.mrf.mxu1 }
0x1442   :  { %15809 = vst [vmem:[#allocation15_spill] sm:$0xff] %v14285_v52  ;;  %v5871_v55 = vmul.f32 0.17677669, %v14285_v52 }
0x1443   :  { %v5751_v3 = vpop.f32.mrf.mxu1 }
0x1444   :  { %v14279_v19 = vadd.f32 %v8753_v20, %v5751_v3 }
0x1445   :  { %v10008_v18 = vpop.f32.mrf.mxu1 }
0x1446   :  { %15808 = vst [vmem:[#allocation34_spill] sm:$0xff] %v14279_v19  ;;  %v5872_v58 = vmul.f32 0.17677669, %v14279_v19 }
0x1447   :  { %v5756_v0 = vpop.f32.mrf.mxu1 }
0x1448   :  { %v14295_v47 = vadd.f32 %v8753_v20, %v5756_v0  ;;  %v5878_v60 = vpack.c.bf16 %v5872_v58, %v5871_v55 }
0x1449   :  { %v10011_v41 = vpop.f32.mrf.mxu1 }
0x144a   :  { %15811 = vst [vmem:[#allocation20_spill] sm:$0xff] %v14295_v47  ;;  %v5873_v2 = vmul.f32 0.17677669, %v14295_v47 }
0x144b   :  { %v5759_v12 = vpop.f32.mrf.mxu1 }
0x144c   :  { %v14290_v46 = vadd.f32 %v8753_v20, %v5759_v12 }
0x144d   :  { %v10012_v56 = vpop.f32.mrf.mxu1 }
0x144e   :  { %15810 = vst [vmem:[#allocation21_spill] sm:$0xff] %v14290_v46  ;;  %v5874_v59 = vmul.f32 0.17677669, %v14290_v46 }
0x1450   :  { %v5879_v6 = vpack.c.bf16 %v5874_v59, %v5873_v2  ;;  %v15812_v2 = vld [vmem:[#allocation31_spill] sm:$0xff] }
0x14e5   :  { %v10019_v39 = vpop.f32.mrf.mxu0 }
0x14e6   :  { %v5843_v44 = vadd.f32 %v10019_v39, %v8761_v24 }
0x14e7   :  { %v5834_v45 = vpop.f32.mrf.mxu0 }
0x14e8   :  { %v5835_v10 = vadd.f32 %v8761_v24, %v5834_v45 }
0x14e9   :  { %v10020_v35 = vpop.f32.mrf.mxu0 }
0x14ea   :  { %v5846_v29 = vadd.f32 %v10020_v35, %v8761_v24 }
0x14eb   :  { %v5837_v43 = vpop.f32.mrf.mxu0 }
0x14ec   :  { %v5838_v57 = vadd.f32 %v8761_v24, %v5837_v43  ;;  %v14260_v13 = vpack.c.bf16 %v5846_v29, %v5843_v44 }
0x14ee   :  { %v14268_v61 = vpack.c.bf16 %v5838_v57, %v5835_v10  ;;  %v5903_v16 = vsel %vm550_vm5, %v14260_v13, 0 }
0x14ef   :  { %v10023_v15 = vpop.f32.mrf.mxu0 }
0x14f0   :  { %v5859_v11 = vadd.f32 %v10023_v15, %v8761_v24  ;;  %v5900_v25 = vsel %vm550_vm5, %v14268_v61, 0 }
0x14f1   :  { %v5850_v14 = vpop.f32.mrf.mxu0 }
0x14f2   :  { %v5851_v17 = vadd.f32 %v8761_v24, %v5850_v14 }
0x14f3   :  { %v10024_v33 = vpop.f32.mrf.mxu0 }
0x14f4   :  { %v5862_v63 = vadd.f32 %v10024_v33, %v8761_v24 }
0x14f5   :  { %v5853_v62 = vpop.f32.mrf.mxu0 }
0x14f6   :  { %v14246_v40 = vpack.c.bf16 %v5862_v63, %v5859_v11  ;;  %v5854_v26 = vadd.f32 %v8761_v24, %v5853_v62 }
0x14f8   :  { %v14252_v32 = vpack.c.bf16 %v5854_v26, %v5851_v17  ;;  %6244 = vrot.lane.b32.xlu0 %v14246_v40, %s11197_s22  ;;  %v5909_v28 = vsel %vm550_vm5, %v14246_v40, 0 }
0x14f9   :  { %10026 = vmatpush3.bf16.xpose.msra.mxu0 %v5909_v28 }
0x14fa   :  { %6242 = vrot.lane.b32.xlu1 %v14252_v32, %s11197_s22  ;;  %10027 = vmatprep.subr.bf16.mxu0 %v15799_v22  ;;  %v5906_v21 = vsel %vm550_vm5, %v14252_v32, 0 }
0x14fc   :  { %6240 = vrot.lane.b32.xlu0 %v14260_v13, %s11197_s22 }
0x14fe   :  { %6238 = vrot.lane.b32.xlu1 %v14268_v61, %s11197_s22 }
0x1500   :  { %6228 = vrot.lane.b32.xlu0 %v5875_v27, %s11197_s22 }
0x1501   :  { %10028 = vmatpush3.bf16.xpose.msra.mxu0 %v5906_v21 }
0x1502   :  { %6230 = vrot.lane.b32.xlu1 %v5876_v53, %s11197_s22  ;;  %10029 = vmatprep.subr.bf16.mxu0 %v15799_v22 }
0x1504   :  { %6637 = vrot.lane.b32.xlu0 %v14246_v40, %s11198_s23 }
0x1506   :  { %6232 = vrot.lane.b32.xlu1 %v5877_v8, %s11197_s22 }
0x1508   :  { %6635 = vrot.lane.b32.xlu0 %v14252_v32, %s11198_s23 }
0x1509   :  { %10030 = vmatpush3.bf16.xpose.msra.mxu0 %v5903_v16 }
0x150a   :  { %6234 = vrot.lane.b32.xlu1 %v5878_v60, %s11197_s22  ;;  %10031 = vmatprep.subr.bf16.mxu0 %v15799_v22 }
0x150c   :  { %6633 = vrot.lane.b32.xlu0 %v14260_v13, %s11198_s23 }
0x150e   :  { %6236 = vrot.lane.b32.xlu1 %v5879_v6, %s11197_s22 }
0x1510   :  { %6631 = vrot.lane.b32.xlu0 %v14268_v61, %s11198_s23 }
0x1511   :  { %10032 = vmatpush3.bf16.xpose.msra.mxu0 %v5900_v25 }
0x1512   :  { %6621 = vrot.lane.b32.xlu1 %v5875_v27, %s11198_s23  ;;  %10081 = vmatprep.subr.bf16.mxu0 %v15799_v22 }
0x1514   :  { %6623 = vrot.lane.b32.xlu0 %v5876_v53, %s11198_s23 }
0x1516   :  { %7030 = vrot.lane.b32.xlu1 %v14246_v40, %s11203_s8 }
0x1518   :  { %6625 = vrot.lane.b32.xlu0 %v5877_v8, %s11198_s23  ;;  %10034 = vmatmul.mubr.msk.bf16.vlgmr.msra.gmra.mxu0 %vm550_vm5, %v5875_v27 }
0x1519   :  { %10037 = vmatprep.mubr.msk.bf16.mxu0 %vm11195_vm0, %v15799_v22 }
0x151a   :  { %7028 = vrot.lane.b32.xlu1 %v14252_v32, %s11203_s8 }
0x151c   :  { %6627 = vrot.lane.b32.xlu0 %v5878_v60, %s11198_s23 }
0x151e   :  { %7026 = vrot.lane.b32.xlu1 %v14260_v13, %s11203_s8 }
0x1520   :  { %6629 = vrot.lane.b32.xlu0 %v5879_v6, %s11198_s23  ;;  %10038 = vmatmul.mubr.msk.bf16.gmra.mxu0 %vm550_vm5, %v5876_v53 }
0x1521   :  { %10041 = vmatprep.mubr.msk.bf16.mxu0 %vm11195_vm0, %v15799_v22 }
0x1522   :  { %7024 = vrot.lane.b32.xlu1 %v14268_v61, %s11203_s8 }
0x1524   :  { %7014 = vrot.lane.b32.xlu0 %v5875_v27, %s11203_s8 }
0x1526   :  { %7016 = vrot.lane.b32.xlu1 %v5876_v53, %s11203_s8 }
0x1528   :  { %7018 = vrot.lane.b32.xlu0 %v5877_v8, %s11203_s8  ;;  %10042 = vmatmul.mubr.msk.bf16.gmra.mxu0 %vm550_vm5, %v5877_v8 }
0x1529   :  { %10045 = vmatprep.mubr.msk.bf16.mxu0 %vm11195_vm0, %v15799_v22 }
0x152a   :  { %7020 = vrot.lane.b32.xlu1 %v5878_v60, %s11203_s8 }
0x152c   :  { %7022 = vrot.lane.b32.xlu0 %v5879_v6, %s11203_s8 }
0x152e   :  { %6093 = vrot.lane.b32.xlu1 %v14268_v61, %s11199_s13 }
0x1530   :  { %6099 = vrot.lane.b32.xlu0 %v14246_v40, %s11199_s13  ;;  %10046 = vmatmul.mubr.msk.bf16.gmra.mxu0 %vm550_vm5, %v5878_v60 }
0x1531   :  { %10049 = vmatprep.mubr.msk.bf16.mxu0 %vm11195_vm0, %v15799_v22 }
0x1532   :  { %6451 = vrot.lane.b32.xlu1 %v14268_v61, %s11200_s18 }
0x1534   :  { %6095 = vrot.lane.b32.xlu0 %v14260_v13, %s11199_s13 }
0x1536   :  { %6844 = vrot.lane.b32.xlu1 %v14268_v61, %s11201_s21 }
0x1538   :  { %6457 = vrot.lane.b32.xlu0 %v14246_v40, %s11200_s18  ;;  %10050 = vmatmul.mubr.msk.bf16.gmra.mxu0 %vm550_vm5, %v5879_v6 }
0x1539   :  { %10089 = vmatprep.mubr.msk.bf16.mxu0 %vm11195_vm0, %v15799_v22 }
0x153a   :  { %6097 = vrot.lane.b32.xlu1 %v14252_v32, %s11199_s13 }
0x153c   :  { %6453 = vrot.lane.b32.xlu0 %v14260_v13, %s11200_s18 }
0x153e   :  { %6455 = vrot.lane.b32.xlu1 %v14252_v32, %s11200_s18 }
0x1540   :  { %6850 = vrot.lane.b32.xlu0 %v14246_v40, %s11201_s21 }
0x1542   :  { %6848 = vrot.lane.b32.xlu1 %v14252_v32, %s11201_s21 }
0x1544   :  { %6846 = vrot.lane.b32.xlu0 %v14260_v13, %s11201_s21 }
0x156a   :  { %v6245_v38 = vpop.permute.xlu0 %6244 }
0x156b   :  { %v6271_v42 = vsel %vm550_vm5, %v6245_v38, 0 }
0x156c   :  { %v6243_v1 = vpop.permute.xlu1 %6242  ;;  %10082 = vmatpush3.bf16.xpose.msra.mxu0 %v6271_v42 }
0x156d   :  { %10083 = vmatprep.subr.bf16.mxu0 %v15799_v22  ;;  %v6268_v3 = vsel %vm550_vm5, %v6243_v1, 0  ;;  %v15813_v1 = vld [vmem:[#allocation17_spill] sm:$0xff] }
0x156e   :  { %v6241_v5 = vpop.permute.xlu0 %6240 }
0x156f   :  { %v6265_v56 = vsel %vm550_vm5, %v6241_v5, 0 }
0x1570   :  { %v6239_v9 = vpop.permute.xlu1 %6238 }
0x1571   :  { %v6262_v15 = vsel %vm550_vm5, %v6239_v9, 0 }
0x1572   :  { %v6229_v36 = vpop.permute.xlu0 %6228 }
0x1574   :  { %v6231_v18 = vpop.permute.xlu1 %6230  ;;  %10084 = vmatpush3.bf16.xpose.msra.mxu0 %v6268_v3 }
0x1575   :  { %10085 = vmatprep.subr.bf16.mxu0 %v15799_v22 }
0x1576   :  { %v6638_v0 = vpop.permute.xlu0 %6637 }
0x1577   :  { %v6664_v11 = vsel %vm550_vm5, %v6638_v0, 0 }
0x1578   :  { %v6233_v41 = vpop.permute.xlu1 %6232 }
0x157a   :  { %v6636_v12 = vpop.permute.xlu0 %6635 }
0x157b   :  { %v6661_v26 = vsel %vm550_vm5, %v6636_v12, 0 }
0x157c   :  { %v6235_v39 = vpop.permute.xlu1 %6234  ;;  %10086 = vmatpush3.bf16.xpose.msra.mxu0 %v6265_v56 }
0x157d   :  { %10087 = vmatprep.subr.bf16.mxu0 %v15799_v22 }
0x157e   :  { %v6634_v45 = vpop.permute.xlu0 %6633 }
0x157f   :  { %v6658_v4 = vsel %vm550_vm5, %v6634_v45, 0 }
0x1580   :  { %v6237_v35 = vpop.permute.xlu1 %6236 }
0x1582   :  { %v6632_v43 = vpop.permute.xlu0 %6631 }
0x1583   :  { %v6655_v21 = vsel %vm550_vm5, %v6632_v43, 0 }
0x1584   :  { %v6622_v14 = vpop.permute.xlu1 %6621  ;;  %10088 = vmatpush3.bf16.xpose.msra.mxu0 %v6262_v15 }
0x1585   :  { %10137 = vmatprep.subr.bf16.mxu0 %v15799_v22 }
0x1586   :  { %v6624_v24 = vpop.permute.xlu0 %6623 }
0x1588   :  { %v7031_v33 = vpop.permute.xlu1 %7030 }
0x1589   :  { %v7057_v58 = vsel %vm550_vm5, %v7031_v33, 0 }
0x158a   :  { %v6626_v20 = vpop.permute.xlu0 %6625 }
0x158b   :  { %10090 = vmatmul.mubr.msk.bf16.vlgmr.msra.gmra.mxu0 %vm550_vm5, %v6229_v36 }
0x158c   :  { %v7029_v63 = vpop.permute.xlu1 %7028  ;;  %10138 = vmatpush3.bf16.xpose.msra.mxu0 %v6664_v11  ;;  %10093 = vmatprep.mubr.msk.bf16.mxu0 %vm11195_vm0, %v15799_v22 }
0x158d   :  { %10139 = vmatprep.subr.bf16.mxu0 %v15799_v22  ;;  %v7054_v55 = vsel %vm550_vm5, %v7029_v63, 0  ;;  %v15817_v63 = vld [vmem:[#allocation33_spill] sm:$0xff] }
0x158e   :  { %v6628_v62 = vpop.permute.xlu0 %6627 }
0x1590   :  { %v7027_v29 = vpop.permute.xlu1 %7026 }
0x1591   :  { %v7051_v16 = vsel %vm550_vm5, %v7027_v29, 0 }
0x1592   :  { %v6630_v17 = vpop.permute.xlu0 %6629 }
0x1593   :  { %10094 = vmatmul.mubr.msk.bf16.gmra.mxu0 %vm550_vm5, %v6231_v18  ;;  %v15814_v18 = vld [vmem:[#allocation30_spill] sm:$0xff] }
0x1594   :  { %v7025_v44 = vpop.permute.xlu1 %7024  ;;  %10140 = vmatpush3.bf16.xpose.msra.mxu0 %v6661_v26  ;;  %10097 = vmatprep.mubr.msk.bf16.mxu0 %vm11195_vm0, %v15799_v22 }
0x1595   :  { %10141 = vmatprep.subr.bf16.mxu0 %v15799_v22  ;;  %v7048_v60 = vsel %vm550_vm5, %v7025_v44, 0  ;;  %v15818_v44 = vld [vmem:[#allocation9_spill] sm:$0xff] }
0x1596   :  { %v7015_v57 = vpop.permute.xlu0 %7014 }
0x1598   :  { %v14390_v28 = vpop.permute.xlu1 %7016 }
0x159a   :  { %v14392_v10 = vpop.permute.xlu0 %7018 }
0x159b   :  { %10098 = vmatmul.mubr.msk.bf16.gmra.mxu0 %vm550_vm5, %v6233_v41 }
0x159c   :  { %v14396_v30 = vpop.permute.xlu1 %7020  ;;  %10142 = vmatpush3.bf16.xpose.msra.mxu0 %v6658_v4  ;;  %10101 = vmatprep.mubr.msk.bf16.mxu0 %vm11195_vm0, %v15799_v22 }
0x159d   :  { %10143 = vmatprep.subr.bf16.mxu0 %v15799_v22 }
0x159e   :  { %v14401_v34 = vpop.permute.xlu0 %7022 }
0x15a0   :  { %v6094_v27 = vpop.permute.xlu1 %6093 }
0x15a2   :  { %v6100_v48 = vpop.permute.xlu0 %6099 }
0x15a3   :  { %10054 = vmatpush3.bf16.msra.mxu1 %v6100_v48  ;;  %10102 = vmatmul.mubr.msk.bf16.gmra.mxu0 %vm550_vm5, %v6235_v39  ;;  %v15815_v39 = vld [vmem:[#allocation19_spill] sm:$0xff] }
0x15a4   :  { %v14405_v53 = vpop.permute.xlu1 %6451  ;;  %10144 = vmatpush3.bf16.xpose.msra.mxu0 %v6655_v21  ;;  %10105 = vmatprep.mubr.msk.bf16.mxu0 %vm11195_vm0, %v15799_v22 }
0x15a5   :  { %10055 = vmatprep.subr.bf16.mxu1 %v15799_v22  ;;  %10193 = vmatprep.subr.bf16.mxu0 %v15799_v22 }
0x15a6   :  { %v6096_v8 = vpop.permute.xlu0 %6095 }
0x15a8   :  { %v14411_v23 = vpop.permute.xlu1 %6844 }
0x15ab   :  { %10106 = vmatmul.mubr.msk.bf16.gmra.mxu0 %vm550_vm5, %v6237_v35 }
0x15ac   :  { %v6098_v54 = vpop.permute.xlu1 %6097  ;;  %10145 = vmatprep.mubr.msk.bf16.mxu0 %vm11195_vm0, %v15799_v22 }
0x15ad   :  { %10056 = vmatpush3.bf16.msra.mxu1 %v6098_v54 }
0x15ae   :  { %10057 = vmatprep.subr.bf16.mxu1 %v15799_v22 }
0x15b1   :  { %10058 = vmatpush3.bf16.msra.mxu1 %v6096_v8 }
0x15b2   :  { %10059 = vmatprep.subr.bf16.mxu1 %v15799_v22 }
0x15b3   :  { %10146 = vmatmul.mubr.msk.bf16.vlgmr.msra.gmra.mxu0 %vm550_vm5, %v6622_v14  ;;  %v15816_v14 = vld [vmem:[#allocation32_spill] sm:$0xff] }
0x15b4   :  { %10194 = vmatpush3.bf16.xpose.msra.mxu0 %v7057_v58  ;;  %10149 = vmatprep.mubr.msk.bf16.mxu0 %vm11195_vm0, %v15799_v22  ;;  %v15820_v58 = vld [vmem:[#allocation13_spill] sm:$0xff] }
0x15b5   :  { %10060 = vmatpush3.bf16.msra.mxu1 %v6094_v27  ;;  %10195 = vmatprep.subr.bf16.mxu0 %v15799_v22  ;;  %v15819_v27 = vld [vmem:[#allocation11_spill] sm:$0xff] }
0x15b6   :  { %10109 = vmatprep.subr.bf16.mxu1 %v15799_v22 }
0x15bb   :  { %10150 = vmatmul.mubr.msk.bf16.gmra.mxu0 %vm550_vm5, %v6624_v24 }
0x15bc   :  { %10196 = vmatpush3.bf16.xpose.msra.mxu0 %v7054_v55  ;;  %10153 = vmatprep.mubr.msk.bf16.mxu0 %vm11195_vm0, %v15799_v22 }
0x15bd   :  { %10197 = vmatprep.subr.bf16.mxu0 %v15799_v22 }
0x15c3   :  { %10154 = vmatmul.mubr.msk.bf16.gmra.mxu0 %vm550_vm5, %v6626_v20 }
0x15c4   :  { %10198 = vmatpush3.bf16.xpose.msra.mxu0 %v7051_v16  ;;  %10157 = vmatprep.mubr.msk.bf16.mxu0 %vm11195_vm0, %v15799_v22 }
0x15c5   :  { %10199 = vmatprep.subr.bf16.mxu0 %v15799_v22 }
0x15cb   :  { %10158 = vmatmul.mubr.msk.bf16.gmra.mxu0 %vm550_vm5, %v6628_v62 }
0x15cc   :  { %10200 = vmatpush3.bf16.xpose.msra.mxu0 %v7048_v60  ;;  %10161 = vmatprep.mubr.msk.bf16.mxu0 %vm11195_vm0, %v15799_v22 }
0x15cd   :  { %10249 = vmatprep.subr.bf16.mxu0 %v15799_v22 }
0x15d3   :  { %10162 = vmatmul.mubr.msk.bf16.gmra.mxu0 %vm550_vm5, %v6630_v17 }
0x15d4   :  { %10201 = vmatprep.mubr.msk.bf16.mxu0 %vm11195_vm0, %v15799_v22 }
0x15d8   :  { %v5945_v59 = vpop.f32.mrf.mxu0 }
0x15d9   :  { %v14443_v6 = vadd.f32 %v5945_v59, %v15812_v2  ;;  %v15821_v59 = vld [vmem:[#allocation14_spill] sm:$0xff] }
0x15da   :  { %v10035_v25 = vpop.f32.mrf.mxu0 }
0x15db   :  { %10202 = vmatmul.mubr.msk.bf16.vlgmr.msra.gmra.mxu0 %vm550_vm5, %v7015_v57  ;;  %v5984_v38 = vsel %vm2391_vm6, %v14443_v6, -inf }
0x15dc   :  { %5985 = vmax.xlane.f32.xlu1 %v5984_v38  ;;  %v5948_v42 = vpop.f32.mrf.mxu0  ;;  %10205 = vmatprep.mubr.msk.bf16.mxu0 %vm11195_vm0, %v15799_v22 }
0x15dd   :  { %v14451_v5 = vadd.f32 %v5948_v42, %v15813_v1 }
0x15de   :  { %v10036_v9 = vpop.f32.mrf.mxu0 }
0x15df   :  { %v5987_v36 = vsel %vm2391_vm6, %v14451_v5, -inf }
0x15e0   :  { %5988 = vmax.xlane.f32.xlu0 %v5987_v36  ;;  %v5953_v3 = vpop.f32.mrf.mxu0 }
0x15e1   :  { %v14456_v0 = vadd.f32 %v5953_v3, %v15814_v18 }
0x15e2   :  { %v10039_v41 = vpop.f32.mrf.mxu0 }
0x15e3   :  { %10206 = vmatmul.mubr.msk.bf16.gmra.mxu0 %vm550_vm5, %v14390_v28  ;;  %v5990_v12 = vsel %vm2391_vm6, %v14456_v0, -inf }
0x15e4   :  { %5991 = vmax.xlane.f32.xlu0 %v5990_v12  ;;  %v5956_v56 = vpop.f32.mrf.mxu0  ;;  %10209 = vmatprep.mubr.msk.bf16.mxu0 %vm11195_vm0, %v15799_v22 }
0x15e5   :  { %v14465_v45 = vadd.f32 %v5956_v56, %v15815_v39 }
0x15e6   :  { %v10040_v35 = vpop.f32.mrf.mxu0 }
0x15e7   :  { %v5993_v43 = vsel %vm2391_vm6, %v14465_v45, -inf  ;;  %v14519_v35 = vpop.permute.xlu0 %6457 }
0x15e8   :  { %5994 = vmax.xlane.f32.xlu1 %v5993_v43  ;;  %v5961_v15 = vpop.f32.mrf.mxu0 }
0x15e9   :  { %v14470_v24 = vadd.f32 %v5961_v15, %v15816_v14 }
0x15ea   :  { %v10043_v33 = vpop.f32.mrf.mxu0 }
0x15eb   :  { %10210 = vmatmul.mubr.msk.bf16.gmra.mxu0 %vm550_vm5, %v14392_v10  ;;  %v5996_v20 = vsel %vm2391_vm6, %v14470_v24, -inf }
0x15ec   :  { %5997 = vmax.xlane.f32.xlu0 %v5996_v20  ;;  %v5964_v11 = vpop.f32.mrf.mxu0  ;;  %10213 = vmatprep.mubr.msk.bf16.mxu0 %vm11195_vm0, %v15799_v22 }
0x15ed   :  { %v14479_v62 = vadd.f32 %v5964_v11, %v15817_v63 }
0x15ee   :  { %v10044_v29 = vpop.f32.mrf.mxu0 }
0x15ef   :  { %v5999_v17 = vsel %vm2391_vm6, %v14479_v62, -inf }
0x15f0   :  { %6000 = vmax.xlane.f32.xlu1 %v5999_v17  ;;  %v5969_v26 = vpop.f32.mrf.mxu0  ;;  %v14528_v17 = vpop.permute.xlu0 %6453 }
0x15f1   :  { %v14484_v57 = vadd.f32 %v5969_v26, %v15818_v44 }
0x15f2   :  { %v10047_v28 = vpop.f32.mrf.mxu0 }
0x15f3   :  { %10214 = vmatmul.mubr.msk.bf16.gmra.mxu0 %vm550_vm5, %v14396_v30  ;;  %v6002_v10 = vsel %vm2391_vm6, %v14484_v57, -inf }
0x15f4   :  { %6003 = vmax.xlane.f32.xlu1 %v6002_v10  ;;  %v5972_v4 = vpop.f32.mrf.mxu0  ;;  %10217 = vmatprep.mubr.msk.bf16.mxu0 %vm11195_vm0, %v15799_v22 }
0x15f5   :  { %v14493_v48 = vadd.f32 %v5972_v4, %v15819_v27  ;;  %v14535_v4 = vpop.permute.xlu1 %6455 }
0x15f6   :  { %v10048_v21 = vpop.f32.mrf.mxu0 }
0x15f7   :  { %v6005_v54 = vsel %vm2391_vm6, %v14493_v48, -inf }
0x15f8   :  { %6006 = vmax.xlane.f32.xlu0 %v6005_v54  ;;  %v5977_v8 = vpop.f32.mrf.mxu0 }
0x15f9   :  { %v14498_v55 = vadd.f32 %v5977_v8, %v15820_v58  ;;  %v14539_v8 = vpop.permute.xlu0 %6850 }
0x15fa   :  { %v10051_v30 = vpop.f32.mrf.mxu0 }
0x15fb   :  { %10218 = vmatmul.mubr.msk.bf16.gmra.mxu0 %vm550_vm5, %v14401_v34  ;;  %v6008_v16 = vsel %vm2391_vm6, %v14498_v55, -inf }
0x15fc   :  { %6009 = vmax.xlane.f32.xlu1 %v6008_v16  ;;  %v5980_v60 = vpop.f32.mrf.mxu0  ;;  %10253 = vmatprep.mubr.msk.bf16.mxu0 %vm11195_vm0, %v15799_v22  ;;  %v14543_v16 = vpop.permute.xlu1 %6848 }
0x15fd   :  { %v14507_v25 = vadd.f32 %v5980_v60, %v15821_v59 }
0x15fe   :  { %v10052_v38 = vpop.f32.mrf.mxu0 }
0x15ff   :  { %v6011_v42 = vsel %vm2391_vm6, %v14507_v25, -inf }
0x1600   :  { %6012 = vmax.xlane.f32.xlu0 %v6011_v42  ;;  %v14547_v42 = vpop.permute.xlu0 %6846 }
0x164b   :  { %v6307_v9 = vpop.f32.mrf.mxu0 }
0x164c   :  { %v14512_v36 = vadd.f32 %v6307_v9, %v15812_v2 }
0x164d   :  { %v10091_v34 = vpop.f32.mrf.mxu0 }
0x164e   :  { %v6346_v3 = vsel %vm2391_vm6, %v14512_v36, -inf }
0x164f   :  { %6347 = vmax.xlane.f32.xlu0 %v6346_v3  ;;  %v6310_v41 = vpop.f32.mrf.mxu0 }
0x1650   :  { %v14517_v12 = vadd.f32 %v6310_v41, %v15813_v1 }
0x1651   :  { %v10092_v56 = vpop.f32.mrf.mxu0 }
0x1652   :  { %v6349_v43 = vsel %vm2391_vm6, %v14517_v12, -inf }
0x1653   :  { %6350 = vmax.xlane.f32.xlu1 %v6349_v43  ;;  %v6315_v15 = vpop.f32.mrf.mxu0 }
0x1654   :  { %v14524_v33 = vadd.f32 %v6315_v15, %v15814_v18 }
0x1655   :  { %v10095_v20 = vpop.f32.mrf.mxu0 }
0x1656   :  { %v6352_v11 = vsel %vm2391_vm6, %v14524_v33, -inf }
0x1657   :  { %6353 = vmax.xlane.f32.xlu0 %v6352_v11  ;;  %v6318_v29 = vpop.f32.mrf.mxu0 }
0x1658   :  { %v14531_v26 = vadd.f32 %v6318_v29, %v15815_v39 }
0x1659   :  { %v10096_v28 = vpop.f32.mrf.mxu0 }
0x165a   :  { %v6355_v10 = vsel %vm2391_vm6, %v14531_v26, -inf }
0x165b   :  { %6356 = vmax.xlane.f32.xlu1 %v6355_v10  ;;  %v14537_v21 = vpop.f32.mrf.mxu0 }
0x165d   :  { %v10099_v54 = vpop.f32.mrf.mxu0 }
0x165f   :  { %v14541_v30 = vpop.f32.mrf.mxu0 }
0x1661   :  { %v10100_v60 = vpop.f32.mrf.mxu0 }
0x1663   :  { %v14545_v38 = vpop.f32.mrf.mxu0 }
0x1665   :  { %v5986_v9 = vpop.xlane.xlu1 %5985  ;;  %v10103_v34 = vpop.f32.mrf.mxu0 }
0x1666   :  { %v6014_v3 = vsub.f32 %v14443_v6, %v5986_v9 }
0x1667   :  { %v14550_v41 = vpop.f32.mrf.mxu0 }
0x1668   :  { %v6024_v56 = vmul.f32 1.442695, %v6014_v3 }
0x1669   :  { %v5989_v43 = vpop.xlane.xlu0 %5988  ;;  %v10104_v15 = vpop.f32.mrf.mxu0 }
0x166a   :  { %v6015_v20 = vsub.f32 %v14451_v5, %v5989_v43  ;;  %10954 = vpow2.f32 %v6024_v56 }
0x166b   :  { %v14553_v11 = vpop.f32.mrf.mxu0 }
0x166c   :  { %v6026_v29 = vmul.f32 1.442695, %v6015_v20  ;;  %7241 = vrot.lane.b32.xlu1 %v14252_v32, %s11204_s24 }
0x166d   :  { %v5992_v28 = vpop.xlane.xlu0 %5991  ;;  %7243 = vrot.lane.b32.xlu0 %v14246_v40, %s11204_s24  ;;  %v10107_v10 = vpop.f32.mrf.mxu0 }
0x166e   :  { %10956 = vpow2.f32 %v6026_v29  ;;  %v6016_v6 = vsub.f32 %v14456_v0, %v5992_v28 }
0x166f   :  { %v14560_v54 = vpop.f32.mrf.mxu0 }
0x1670   :  { %v6028_v60 = vmul.f32 1.442695, %v6016_v6 }
0x1671   :  { %v5995_v9 = vpop.xlane.xlu1 %5994  ;;  %v10108_v5 = vpop.f32.mrf.mxu0 }
0x1672   :  { %v6017_v34 = vsub.f32 %v14465_v45, %v5995_v9  ;;  %10958 = vpow2.f32 %v6028_v60 }
0x1673   :  { %v14563_v3 = vpop.f32.mrf.mxu0 }
0x1674   :  { %v6030_v43 = vmul.f32 1.442695, %v6017_v34 }
0x1675   :  { %v5998_v32 = vpop.xlane.xlu0 %5997  ;;  %v10147_v56 = vpop.f32.mrf.mxu0 }
0x1676   :  { %10960 = vpow2.f32 %v6030_v43  ;;  %v6018_v40 = vsub.f32 %v14470_v24, %v5998_v32 }
0x1677   :  { %v14566_v15 = vpop.f32.mrf.mxu0  ;;  %v14568_v28 = vpop.eup %10954 }
0x1678   :  { %v6032_v20 = vmul.f32 1.442695, %v6018_v40 }
0x1679   :  { %v6001_v0 = vpop.xlane.xlu1 %6000  ;;  %v10148_v29 = vpop.f32.mrf.mxu0 }
0x167a   :  { %v6019_v10 = vsub.f32 %v14479_v62, %v6001_v0  ;;  %10962 = vpow2.f32 %v6032_v20 }
0x167b   :  { %v14571_v6 = vpop.eup %10956  ;;  %v14573_v45 = vpop.f32.mrf.mxu0 }
0x167c   :  { %v6084_v60 = vpack.c.bf16 %v14571_v6, %v14568_v28  ;;  %v6034_v9 = vmul.f32 1.442695, %v6019_v10 }
0x167d   :  { %v6004_v5 = vpop.xlane.xlu1 %6003  ;;  %v10151_v24 = vpop.f32.mrf.mxu0 }
0x167e   :  { %10964 = vpow2.f32 %v6034_v9  ;;  %v6020_v34 = vsub.f32 %v14484_v57, %v6004_v5  ;;  %10062 = vmatmul.mubr.msk.bf16.vlgmr.msra.gmra.mxu1 %vm2391_vm6, %v6084_v60 }
0x167f   :  { %10110 = vmatpush3.bf16.msra.mxu1 %v14519_v35  ;;  %v14580_v43 = vpop.f32.mrf.mxu0  ;;  %10065 = vmatprep.mubr.msk.bf16.mxu1 %vm11195_vm0, %v15799_v22  ;;  %v14585_v40 = vpop.eup %10958 }
0x1680   :  { %10111 = vmatprep.subr.bf16.mxu1 %v15799_v22  ;;  %v6036_v62 = vmul.f32 1.442695, %v6020_v34 }
0x1681   :  { %v6007_v32 = vpop.xlane.xlu0 %6006  ;;  %v10152_v56 = vpop.f32.mrf.mxu0 }
0x1682   :  { %v6021_v20 = vsub.f32 %v14493_v48, %v6007_v32  ;;  %10966 = vpow2.f32 %v6036_v62  ;;  %v14600_v48 = vadd.f32 %v14537_v21, %v15816_v14  ;;  %v14615_v21 = vadd.f32 %v14541_v30, %v15817_v63 }
0x1683   :  { %v14588_v0 = vpop.eup %10960  ;;  %10112 = vmatpush3.bf16.msra.mxu1 %v14535_v4  ;;  %v14591_v57 = vpop.f32.mrf.mxu0 }
0x1684   :  { %v6038_v35 = vmul.f32 1.442695, %v6021_v20  ;;  %10113 = vmatprep.subr.bf16.mxu1 %v15799_v22  ;;  %v6085_v29 = vpack.c.bf16 %v14588_v0, %v14585_v40  ;;  %v6358_v20 = vsel %vm2391_vm6, %v14600_v48, -inf }
0x1685   :  { %v6010_v10 = vpop.xlane.xlu1 %6009  ;;  %v10155_v60 = vpop.f32.mrf.mxu0 }
0x1686   :  { %10968 = vpow2.f32 %v6038_v35  ;;  %v6022_v9 = vsub.f32 %v14498_v55, %v6010_v10  ;;  %10066 = vmatmul.mubr.msk.bf16.gmra.mxu1 %vm2391_vm6, %v6085_v29  ;;  %v6361_v10 = vsel %vm2391_vm6, %v14615_v21, -inf }
0x1687   :  { %10114 = vmatpush3.bf16.msra.mxu1 %v14528_v17  ;;  %v14603_v4 = vpop.f32.mrf.mxu0  ;;  %10069 = vmatprep.mubr.msk.bf16.mxu1 %vm11195_vm0, %v15799_v22  ;;  %v14608_v62 = vpop.eup %10962  ;;  %v14619_v17 = vadd.f32 %v14550_v41, %v15819_v27  ;;  %v14630_v41 = vadd.f32 %v14545_v38, %v15818_v44 }
0x1688   :  { %10115 = vmatprep.subr.bf16.mxu1 %v15799_v22  ;;  %v6040_v5 = vmul.f32 1.442695, %v6022_v9 }
0x1689   :  { %v6013_v24 = vpop.xlane.xlu0 %6012  ;;  %v10156_v34 = vpop.f32.mrf.mxu0  ;;  %v6367_v60 = vsel %vm2391_vm6, %v14619_v17, -inf }
0x168a   :  { %v6023_v55 = vsub.f32 %v14507_v25, %v6013_v24  ;;  %10970 = vpow2.f32 %v6040_v5  ;;  %v14652_v24 = vadd.f32 %v14563_v3, %v15812_v2  ;;  %v14667_v3 = vadd.f32 %v14573_v45, %v15814_v18 }
0x168b   :  { %v14611_v32 = vpop.eup %10964  ;;  %10116 = vmatpush3.bf16.msra.mxu1 %v14405_v53  ;;  %v6724_v56 = vpop.f32.mrf.mxu0  ;;  %v14634_v53 = vadd.f32 %v14560_v54, %v15821_v59  ;;  %v14648_v54 = vadd.f32 %v14553_v11, %v15820_v58  ;;  %v14663_v11 = vadd.f32 %v14566_v15, %v15813_v1  ;;  %v14681_v45 = vadd.f32 %v14580_v43, %v15815_v39 }
0x168c   :  { %v6042_v35 = vmul.f32 1.442695, %v6023_v55  ;;  %6359 = vmax.xlane.f32.xlu0 %v6358_v20  ;;  %v6086_v25 = vpack.c.bf16 %v14611_v32, %v14608_v62  ;;  %10165 = vmatprep.subr.bf16.mxu1 %v15799_v22  ;;  %v6364_v55 = vsel %vm2391_vm6, %v14630_v41, -inf  ;;  %v14696_v43 = vadd.f32 %v14603_v4, %v15817_v63 }
0x168d   :  { %v10159_v30 = vpop.f32.mrf.mxu0  ;;  %v6373_v20 = vsel %vm2391_vm6, %v14634_v53, -inf  ;;  %v6748_v47 = vsel %vm2391_vm6, %v14681_v45, -inf }
0x168e   :  { %10972 = vpow2.f32 %v6042_v35  ;;  %10070 = vmatmul.mubr.msk.bf16.gmra.mxu1 %vm2391_vm6, %v6086_v25 }
0x168f   :  { %v6727_v29 = vpop.f32.mrf.mxu0  ;;  %10073 = vmatprep.mubr.msk.bf16.mxu1 %vm11195_vm0, %v15799_v22  ;;  %v14642_v5 = vpop.eup %10966 }
0x1690   :  { %6362 = vmax.xlane.f32.xlu1 %v6361_v10  ;;  %6368 = vmax.xlane.f32.xlu0 %v6367_v60  ;;  %v6370_v10 = vsel %vm2391_vm6, %v14648_v54, -inf  ;;  %v6739_v60 = vsel %vm2391_vm6, %v14652_v24, -inf }
0x1691   :  { %v10160_v9 = vpop.f32.mrf.mxu0 }
0x1693   :  { %v14644_v38 = vpop.eup %10968  ;;  %v6732_v34 = vpop.f32.mrf.mxu0 }
0x1694   :  { %6365 = vmax.xlane.f32.xlu1 %v6364_v55  ;;  %6374 = vmax.xlane.f32.xlu0 %v6373_v20  ;;  %v6087_v35 = vpack.c.bf16 %v14644_v38, %v14642_v5  ;;  %v14685_v20 = vadd.f32 %v14591_v57, %v15816_v14  ;;  %v14699_v57 = vadd.f32 %v6727_v29, %v15819_v27 }
0x1695   :  { %v10163_v25 = vpop.f32.mrf.mxu0 }
0x1696   :  { %10074 = vmatmul.mubr.msk.bf16.gmra.mxu1 %vm2391_vm6, %v6087_v35  ;;  %v6742_v25 = vsel %vm2391_vm6, %v14663_v11, -inf  ;;  %v6760_v52 = vsel %vm2391_vm6, %v14699_v57, -inf }
0x1697   :  { %v6735_v30 = vpop.f32.mrf.mxu0  ;;  %10077 = vmatprep.mubr.msk.bf16.mxu1 %vm11195_vm0, %v15799_v22  ;;  %v14675_v55 = vpop.eup %10970 }
0x1698   :  { %6371 = vmax.xlane.f32.xlu1 %v6370_v10  ;;  %6740 = vmax.xlane.f32.xlu0 %v6739_v60  ;;  %v6745_v10 = vsel %vm2391_vm6, %v14667_v3, -inf  ;;  %v14711_v4 = vadd.f32 %v6735_v30, %v15821_v59 }
0x1699   :  { %v10164_v9 = vpop.f32.mrf.mxu0 }
0x169b   :  { %v14677_v15 = vpop.eup %10972  ;;  %v7093_v35 = vpop.f32.mrf.mxu0 }
0x169c   :  { %6743 = vmax.xlane.f32.xlu1 %v6742_v25  ;;  %6746 = vmax.xlane.f32.xlu0 %v6745_v10  ;;  %v6088_v60 = vpack.c.bf16 %v14677_v15, %v14675_v55  ;;  %v6751_v25 = vsel %vm2391_vm6, %v14685_v20, -inf }
0x169d   :  { %v10203_v9 = vpop.f32.mrf.mxu0 }
0x169e   :  { %10078 = vmatmul.mubr.msk.bf16.gmra.mxu1 %vm2391_vm6, %v6088_v60  ;;  %v14708_v60 = vadd.f32 %v6724_v56, %v15818_v44  ;;  %v6754_v9 = vsel %vm2391_vm6, %v14696_v43, -inf }
0x169f   :  { %v7096_v46 = vpop.f32.mrf.mxu0  ;;  %10117 = vmatprep.mubr.msk.bf16.mxu1 %vm11195_vm0, %v15799_v22 }
0x16a0   :  { %6749 = vmax.xlane.f32.xlu1 %v6748_v47  ;;  %6752 = vmax.xlane.f32.xlu0 %v6751_v25  ;;  %v14718_v47 = vadd.f32 %v6732_v34, %v15820_v58  ;;  %v14721_v25 = vadd.f32 %v7093_v35, %v15812_v2  ;;  %v6757_v30 = vsel %vm2391_vm6, %v14708_v60, -inf }
0x16a1   :  { %v10204_v10 = vpop.f32.mrf.mxu0 }
0x16a2   :  { %v6766_v10 = vsel %vm2391_vm6, %v14711_v4, -inf  ;;  %v6763_v2 = vsel %vm2391_vm6, %v14718_v47, -inf  ;;  %v7132_v34 = vsel %vm2391_vm6, %v14721_v25, -inf }
0x16a3   :  { %v7101_v29 = vpop.f32.mrf.mxu0 }
0x16a4   :  { %6755 = vmax.xlane.f32.xlu1 %v6754_v9  ;;  %6761 = vmax.xlane.f32.xlu0 %v6760_v52  ;;  %v14728_v9 = vadd.f32 %v7096_v46, %v15813_v1 }
0x16a5   :  { %v10207_v19 = vpop.f32.mrf.mxu0 }
0x16a6   :  { %v14731_v19 = vadd.f32 %v7101_v29, %v15814_v18  ;;  %v7135_v1 = vsel %vm2391_vm6, %v14728_v9, -inf }
0x16a7   :  { %v7104_v56 = vpop.f32.mrf.mxu0 }
0x16a8   :  { %6758 = vmax.xlane.f32.xlu1 %v6757_v30  ;;  %6767 = vmax.xlane.f32.xlu0 %v6766_v10  ;;  %v14738_v30 = vadd.f32 %v7104_v56, %v15815_v39  ;;  %v7138_v18 = vsel %vm2391_vm6, %v14731_v19, -inf }
0x16a9   :  { %v10208_v37 = vpop.f32.mrf.mxu0 }
0x16aa   :  { %v7141_v39 = vsel %vm2391_vm6, %v14738_v30, -inf }
0x16ab   :  { %v7109_v52 = vpop.f32.mrf.mxu0 }
0x16ac   :  { %6764 = vmax.xlane.f32.xlu1 %v6763_v2  ;;  %7133 = vmax.xlane.f32.xlu0 %v7132_v34  ;;  %v14741_v37 = vadd.f32 %v7109_v52, %v15816_v14 }
0x16ad   :  { %v10211_v35 = vpop.f32.mrf.mxu0 }
0x16ae   :  { %v7144_v14 = vsel %vm2391_vm6, %v14741_v37, -inf }
0x16af   :  { %v7112_v46 = vpop.f32.mrf.mxu0 }
0x16b0   :  { %7136 = vmax.xlane.f32.xlu1 %v7135_v1  ;;  %7139 = vmax.xlane.f32.xlu0 %v7138_v18  ;;  %v14748_v10 = vadd.f32 %v7112_v46, %v15817_v63 }
0x16b1   :  { %v10212_v29 = vpop.f32.mrf.mxu0 }
0x16b2   :  { %v7147_v35 = vsel %vm2391_vm6, %v14748_v10, -inf }
0x16b3   :  { %v7117_v2 = vpop.f32.mrf.mxu0 }
0x16b4   :  { %7142 = vmax.xlane.f32.xlu1 %v7141_v39  ;;  %7145 = vmax.xlane.f32.xlu0 %v7144_v14  ;;  %v14755_v52 = vadd.f32 %v7117_v2, %v15818_v44 }
0x16b5   :  { %v10215_v56 = vpop.f32.mrf.mxu0 }
0x16b6   :  { %v7150_v29 = vsel %vm2391_vm6, %v14755_v52, -inf }
0x16b7   :  { %v7120_v34 = vpop.f32.mrf.mxu0 }
0x16b8   :  { %v14760_v63 = vadd.f32 %v7120_v34, %v15819_v27  ;;  %7148 = vmax.xlane.f32.xlu1 %v7147_v35 }
0x16b9   :  { %v10216_v46 = vpop.f32.mrf.mxu0 }
0x16ba   :  { %v7153_v1 = vsel %vm2391_vm6, %v14760_v63, -inf }
0x16bb   :  { %7154 = vmax.xlane.f32.xlu0 %v7153_v1  ;;  %v7125_v18 = vpop.f32.mrf.mxu0 }
0x16bc   :  { %7151 = vmax.xlane.f32.xlu1 %v7150_v29 }
0x16bd   :  { %v10219_v44 = vpop.f32.mrf.mxu0 }
0x16bf   :  { %v7128_v2 = vpop.f32.mrf.mxu0 }
0x16c1   :  { %v10220_v39 = vpop.f32.mrf.mxu0 }
0x16cd   :  { %7237 = vrot.lane.b32.xlu1 %v14268_v61, %s11204_s24 }
0x16d1   :  { %7239 = vrot.lane.b32.xlu0 %v14260_v13, %s11204_s24  ;;  %v14775_v13 = vadd.f32 %v7128_v2, %v15821_v59 }
0x16d8   :  { %v6348_v27 = vpop.xlane.xlu0 %6347 }
0x16d9   :  { %v6376_v14 = vsub.f32 %v14512_v36, %v6348_v27  ;;  %v14778_v36 = vadd.f32 %v7125_v18, %v15820_v58  ;;  %v6047_v58 = vsel %vm2391_vm6, %v14571_v6, 0.0 }
0x16db   :  { %v6386_v56 = vmul.f32 1.442695, %v6376_v14 }
0x16dc   :  { %v6351_v34 = vpop.xlane.xlu1 %6350 }
0x16dd   :  { %v6377_v35 = vsub.f32 %v14517_v12, %v6351_v34  ;;  %10974 = vpow2.f32 %v6386_v56  ;;  %v7159_v56 = vsel %vm2391_vm6, %v14775_v13, -inf }
0x16df   :  { %v6388_v46 = vmul.f32 1.442695, %v6377_v35 }
0x16e0   :  { %v6354_v1 = vpop.xlane.xlu0 %6353 }
0x16e1   :  { %10976 = vpow2.f32 %v6388_v46  ;;  %v6378_v29 = vsub.f32 %v14524_v33, %v6354_v1  ;;  %v7156_v33 = vsel %vm2391_vm6, %v14778_v36, -inf }
0x16e3   :  { %v6390_v44 = vmul.f32 1.442695, %v6378_v29 }
0x16e4   :  { %v6357_v39 = vpop.xlane.xlu1 %6356  ;;  %v14806_v6 = vpop.permute.xlu0 %7243 }
0x16e5   :  { %v6379_v61 = vsub.f32 %v14531_v26, %v6357_v39  ;;  %10978 = vpow2.f32 %v6390_v44 }
0x16e7   :  { %v6392_v31 = vmul.f32 1.442695, %v6379_v61 }
0x16e8   :  { %v14808_v34 = vpop.permute.xlu1 %7241 }
0x16e9   :  { %10980 = vpow2.f32 %v6392_v31  ;;  %v6044_v31 = vsel %vm2391_vm6, %v14568_v28, 0.0 }
0x16ea   :  { %v10975_v12 = vpop.eup %10974 }
0x16ee   :  { %v10977_v27 = vpop.eup %10976 }
0x16ef   :  { %v6446_v14 = vpack.c.bf16 %v10977_v27, %v10975_v12  ;;  %v6409_v2 = vsel %vm2391_vm6, %v10977_v27, 0.0 }
0x16f0   :  { %7160 = vmax.xlane.f32.xlu0 %v7159_v56 }
0x16f1   :  { %10118 = vmatmul.mubr.msk.bf16.vlgmr.msra.gmra.mxu1 %vm2391_vm6, %v6446_v14  ;;  %7157 = vmax.xlane.f32.xlu1 %v7156_v33 }
0x16f2   :  { %10166 = vmatpush3.bf16.msra.mxu1 %v14539_v8  ;;  %10121 = vmatprep.mubr.msk.bf16.mxu1 %vm11195_vm0, %v15799_v22  ;;  %v10979_v59 = vpop.eup %10978  ;;  %v6406_v8 = vsel %vm2391_vm6, %v10975_v12, 0.0 }
0x16f3   :  { %10167 = vmatprep.subr.bf16.mxu1 %v15799_v22 }
0x16f4   :  { %6045 = vadd.xlane.f32.xlu0 %v6044_v31 }
0x16f5   :  { %6048 = vadd.xlane.f32.xlu1 %v6047_v58 }
0x16f6   :  { %v10981_v26 = vpop.eup %10980  ;;  %10168 = vmatpush3.bf16.msra.mxu1 %v14543_v16  ;;  %v6412_v16 = vsel %vm2391_vm6, %v10979_v59, 0.0 }
0x16f7   :  { %10169 = vmatprep.subr.bf16.mxu1 %v15799_v22  ;;  %v6447_v18 = vpack.c.bf16 %v10981_v26, %v10979_v59  ;;  %v6415_v28 = vsel %vm2391_vm6, %v10981_v26, 0.0 }
0x16f8   :  { %6407 = vadd.xlane.f32.xlu0 %v6406_v8 }
0x16f9   :  { %10122 = vmatmul.mubr.msk.bf16.gmra.mxu1 %vm2391_vm6, %v6447_v18  ;;  %6410 = vadd.xlane.f32.xlu1 %v6409_v2 }
0x16fa   :  { %10170 = vmatpush3.bf16.msra.mxu1 %v14547_v42  ;;  %10125 = vmatprep.mubr.msk.bf16.mxu1 %vm11195_vm0, %v15799_v22 }
0x16fb   :  { %10171 = vmatprep.subr.bf16.mxu1 %v15799_v22 }
0x16fc   :  { %6413 = vadd.xlane.f32.xlu0 %v6412_v16 }
0x16fd   :  { %6416 = vadd.xlane.f32.xlu1 %v6415_v28 }
0x16fe   :  { %10172 = vmatpush3.bf16.msra.mxu1 %v14411_v23 }
0x16ff   :  { %10221 = vmatprep.subr.bf16.mxu1 %v15799_v22 }
0x1715   :  { %v6360_v42 = vpop.xlane.xlu0 %6359 }
0x1716   :  { %v6380_v35 = vsub.f32 %v14600_v48, %v6360_v42 }
0x1718   :  { %v6394_v46 = vmul.f32 1.442695, %v6380_v35 }
0x1719   :  { %v6363_v1 = vpop.xlane.xlu1 %6362  ;;  %v6369_v29 = vpop.xlane.xlu0 %6368 }
0x171a   :  { %10982 = vpow2.f32 %v6394_v46  ;;  %v6381_v44 = vsub.f32 %v14615_v21, %v6363_v1  ;;  %v6383_v39 = vsub.f32 %v14619_v17, %v6369_v29 }
0x171c   :  { %v6396_v61 = vmul.f32 1.442695, %v6381_v44  ;;  %v6400_v12 = vmul.f32 1.442695, %v6383_v39 }
0x171d   :  { %v6366_v23 = vpop.xlane.xlu1 %6365  ;;  %v6375_v27 = vpop.xlane.xlu0 %6374 }
0x171e   :  { %10984 = vpow2.f32 %v6396_v61  ;;  %v6382_v14 = vsub.f32 %v14630_v41, %v6366_v23  ;;  %v6385_v56 = vsub.f32 %v14634_v53, %v6375_v27 }
0x171f   :  { %10986 = vpow2.f32 %v6400_v12 }
0x1720   :  { %v6398_v33 = vmul.f32 1.442695, %v6382_v14  ;;  %v6404_v48 = vmul.f32 1.442695, %v6385_v56 }
0x1721   :  { %v6372_v31 = vpop.xlane.xlu1 %6371  ;;  %v6741_v58 = vpop.xlane.xlu0 %6740 }
0x1722   :  { %10988 = vpow2.f32 %v6398_v33  ;;  %v6384_v59 = vsub.f32 %v14648_v54, %v6372_v31  ;;  %v6769_v21 = vsub.f32 %v14652_v24, %v6741_v58 }
0x1723   :  { %10990 = vpow2.f32 %v6404_v48 }
0x1724   :  { %v6402_v17 = vmul.f32 1.442695, %v6384_v59  ;;  %v6779_v26 = vmul.f32 1.442695, %v6769_v21 }
0x1725   :  { %v6744_v8 = vpop.xlane.xlu1 %6743  ;;  %v6747_v18 = vpop.xlane.xlu0 %6746 }
0x1726   :  { %10992 = vpow2.f32 %v6402_v17  ;;  %v6770_v41 = vsub.f32 %v14663_v11, %v6744_v8  ;;  %v6771_v53 = vsub.f32 %v14667_v3, %v6747_v18 }
0x1727   :  { %v10983_v2 = vpop.eup %10982  ;;  %10994 = vpow2.f32 %v6779_v26 }
0x1728   :  { %v6781_v16 = vmul.f32 1.442695, %v6770_v41  ;;  %v6783_v28 = vmul.f32 1.442695, %v6771_v53  ;;  %v6418_v42 = vsel %vm2391_vm6, %v10983_v2, 0.0 }
0x1729   :  { %v6750_v35 = vpop.xlane.xlu1 %6749  ;;  %v6753_v54 = vpop.xlane.xlu0 %6752  ;;  %6419 = vadd.xlane.f32.xlu0 %v6418_v42 }
0x172a   :  { %10996 = vpow2.f32 %v6781_v16  ;;  %v6772_v24 = vsub.f32 %v14681_v45, %v6750_v35  ;;  %v6773_v46 = vsub.f32 %v14685_v20, %v6753_v54 }
0x172b   :  { %v10985_v1 = vpop.eup %10984  ;;  %10998 = vpow2.f32 %v6783_v28 }
0x172c   :  { %v10987_v29 = vpop.eup %10986  ;;  %v6785_v11 = vmul.f32 1.442695, %v6772_v24  ;;  %v6787_v44 = vmul.f32 1.442695, %v6773_v46  ;;  %v6421_v3 = vsel %vm2391_vm6, %v10985_v1, 0.0  ;;  %v6448_v39 = vpack.c.bf16 %v10985_v1, %v10983_v2 }
0x172d   :  { %v6756_v61 = vpop.xlane.xlu1 %6755  ;;  %v6762_v12 = vpop.xlane.xlu0 %6761  ;;  %6422 = vadd.xlane.f32.xlu1 %v6421_v3  ;;  %v6427_v20 = vsel %vm2391_vm6, %v10987_v29, 0.0 }
0x172e   :  { %11000 = vpow2.f32 %v6785_v11  ;;  %v6774_v23 = vsub.f32 %v14696_v43, %v6756_v61  ;;  %v6776_v27 = vsub.f32 %v14699_v57, %v6762_v12  ;;  %10126 = vmatmul.mubr.msk.bf16.gmra.mxu1 %vm2391_vm6, %v6448_v39 }
0x172f   :  { %v10989_v45 = vpop.eup %10988  ;;  %10129 = vmatprep.mubr.msk.bf16.mxu1 %vm11195_vm0, %v15799_v22  ;;  %11002 = vpow2.f32 %v6787_v44 }
0x1730   :  { %v10991_v14 = vpop.eup %10990  ;;  %v6789_v56 = vmul.f32 1.442695, %v6774_v23  ;;  %v6793_v33 = vmul.f32 1.442695, %v6776_v27  ;;  %v6424_v48 = vsel %vm2391_vm6, %v10989_v45, 0.0  ;;  %v6449_v17 = vpack.c.bf16 %v10987_v29, %v10989_v45 }
0x1731   :  { %v6759_v31 = vpop.xlane.xlu1 %6758  ;;  %v6768_v58 = vpop.xlane.xlu0 %6767  ;;  %6428 = vadd.xlane.f32.xlu1 %v6427_v20  ;;  %6425 = vadd.xlane.f32.xlu0 %v6424_v48  ;;  %v6433_v21 = vsel %vm2391_vm6, %v10991_v14, 0.0 }
0x1732   :  { %11004 = vpow2.f32 %v6789_v56  ;;  %v6775_v43 = vsub.f32 %v14708_v60, %v6759_v31  ;;  %v6778_v57 = vsub.f32 %v14711_v4, %v6768_v58 }
0x1733   :  { %v10993_v59 = vpop.eup %10992  ;;  %11006 = vpow2.f32 %v6793_v33 }
0x1734   :  { %v14833_v26 = vpop.eup %10994  ;;  %v6791_v8 = vmul.f32 1.442695, %v6775_v43  ;;  %v6797_v18 = vmul.f32 1.442695, %v6778_v57  ;;  %v6430_v41 = vsel %vm2391_vm6, %v10993_v59, 0.0  ;;  %v6450_v11 = vpack.c.bf16 %v10991_v14, %v10993_v59 }
0x1735   :  { %v6765_v53 = vpop.xlane.xlu1 %6764  ;;  %v7134_v2 = vpop.xlane.xlu0 %7133  ;;  %6434 = vadd.xlane.f32.xlu1 %v6433_v21  ;;  %6431 = vadd.xlane.f32.xlu0 %v6430_v41  ;;  %v6799_v28 = vsel %vm2391_vm6, %v14833_v26, 0.0 }
0x1736   :  { %11008 = vpow2.f32 %v6791_v8  ;;  %v6777_v60 = vsub.f32 %v14718_v47, %v6765_v53  ;;  %v7162_v4 = vsub.f32 %v14721_v25, %v7134_v2  ;;  %10130 = vmatmul.mubr.msk.bf16.gmra.mxu1 %vm2391_vm6, %v6449_v17 }
0x1737   :  { %v10997_v16 = vpop.eup %10996  ;;  %10133 = vmatprep.mubr.msk.bf16.mxu1 %vm11195_vm0, %v15799_v22  ;;  %11010 = vpow2.f32 %v6797_v18 }
0x1738   :  { %v14843_v42 = vpop.eup %10998  ;;  %v6795_v35 = vmul.f32 1.442695, %v6777_v60  ;;  %v7172_v54 = vmul.f32 1.442695, %v7162_v4  ;;  %v6802_v24 = vsel %vm2391_vm6, %v10997_v16, 0.0  ;;  %v6839_v58 = vpack.c.bf16 %v10997_v16, %v14833_v26 }
0x1739   :  { %v7137_v46 = vpop.xlane.xlu1 %7136  ;;  %v7140_v47 = vpop.xlane.xlu0 %7139  ;;  %6803 = vadd.xlane.f32.xlu1 %v6802_v24  ;;  %6800 = vadd.xlane.f32.xlu0 %v6799_v28  ;;  %v6805_v39 = vsel %vm2391_vm6, %v14843_v42, 0.0 }
0x173a   :  { %11012 = vpow2.f32 %v6795_v35  ;;  %v7163_v25 = vsub.f32 %v14728_v9, %v7137_v46  ;;  %v7164_v29 = vsub.f32 %v14731_v19, %v7140_v47 }
0x173b   :  { %v14847_v1 = vpop.eup %11000  ;;  %11014 = vpow2.f32 %v7172_v54 }
0x173c   :  { %v7174_v44 = vmul.f32 1.442695, %v7163_v25  ;;  %v6808_v3 = vsel %vm2391_vm6, %v14847_v1, 0.0  ;;  %v14854_v61 = vpop.eup %11002  ;;  %v7176_v19 = vmul.f32 1.442695, %v7164_v29  ;;  %v6840_v35 = vpack.c.bf16 %v14847_v1, %v14843_v42 }
0x173d   :  { %v7143_v12 = vpop.xlane.xlu1 %7142  ;;  %6809 = vadd.xlane.f32.xlu1 %v6808_v3  ;;  %6806 = vadd.xlane.f32.xlu0 %v6805_v39  ;;  %v7146_v45 = vpop.xlane.xlu0 %7145  ;;  %v6811_v56 = vsel %vm2391_vm6, %v14854_v61, 0.0 }
0x173e   :  { %v14856_v23 = vpop.f32.mrf.mxu1  ;;  %10134 = vmatmul.mubr.msk.bf16.gmra.mxu1 %vm2391_vm6, %v6450_v11  ;;  %11016 = vpow2.f32 %v7174_v44  ;;  %v7165_v27 = vsub.f32 %v14738_v30, %v7143_v12  ;;  %v7166_v30 = vsub.f32 %v14741_v37, %v7146_v45 }
0x173f   :  { %v14859_v9 = vpop.eup %11004  ;;  %10173 = vmatprep.mubr.msk.bf16.mxu1 %vm11195_vm0, %v15799_v22  ;;  %11018 = vpow2.f32 %v7176_v19 }
0x1740   :  { %v10063_v20 = vpop.f32.mrf.mxu1  ;;  %v6814_v14 = vsel %vm2391_vm6, %v14859_v9, 0.0  ;;  %v14868_v33 = vpop.eup %11006  ;;  %v7178_v57 = vmul.f32 1.442695, %v7165_v27  ;;  %v7180_v37 = vmul.f32 1.442695, %v7166_v30  ;;  %v6841_v27 = vpack.c.bf16 %v14859_v9, %v14854_v61 }
0x1741   :  { %6815 = vadd.xlane.f32.xlu1 %v6814_v14  ;;  %6812 = vadd.xlane.f32.xlu0 %v6811_v56  ;;  %v7149_v43 = vpop.xlane.xlu1 %7148  ;;  %v6820_v21 = vsel %vm2391_vm6, %v14868_v33, 0.0  ;;  %v6056_v56 = vsel %vm2391_vm6, %v14608_v62, 0.0  ;;  %v6065_v30 = vsel %vm2391_vm6, %v14644_v38, 0.0  ;;  %v6062_v38 = vsel %vm2391_vm6, %v14642_v5, 0.0 }
0x1742   :  { %v14870_v48 = vpop.f32.mrf.mxu1  ;;  %11020 = vpow2.f32 %v7178_v57  ;;  %v7167_v41 = vsub.f32 %v14748_v10, %v7149_v43  ;;  %v6053_v10 = vsel %vm2391_vm6, %v14588_v0, 0.0  ;;  %v6050_v0 = vsel %vm2391_vm6, %v14585_v40, 0.0 }
0x1743   :  { %v14872_v31 = vpop.eup %11008  ;;  %11022 = vpow2.f32 %v7180_v37  ;;  %v6059_v40 = vsel %vm2391_vm6, %v14611_v32, 0.0 }
0x1744   :  { %v10064_v59 = vpop.f32.mrf.mxu1  ;;  %v6817_v17 = vsel %vm2391_vm6, %v14872_v31, 0.0  ;;  %v14880_v8 = vpop.eup %11010  ;;  %v7182_v54 = vmul.f32 1.442695, %v7167_v41  ;;  %v6842_v57 = vpack.c.bf16 %v14868_v33, %v14872_v31  ;;  %v6068_v41 = vsel %vm2391_vm6, %v14675_v55, 0.0 }
0x1745   :  { %6821 = vadd.xlane.f32.xlu1 %v6820_v21  ;;  %6818 = vadd.xlane.f32.xlu0 %v6817_v17  ;;  %v7155_v53 = vpop.xlane.xlu0 %7154  ;;  %v6826_v60 = vsel %vm2391_vm6, %v14880_v8, 0.0  ;;  %v7152_v28 = vpop.xlane.xlu1 %7151 }
0x1746   :  { %v14882_v18 = vpop.f32.mrf.mxu1  ;;  %10174 = vmatmul.mubr.msk.bf16.vlgmr.msra.gmra.mxu1 %vm2391_vm6, %v6839_v58  ;;  %v7168_v24 = vsub.f32 %v14755_v52, %v7152_v28  ;;  %11024 = vpow2.f32 %v7182_v54  ;;  %v7169_v52 = vsub.f32 %v14760_v63, %v7155_v53 }
0x1747   :  { %v14885_v26 = vpop.eup %11012  ;;  %10222 = vmatpush3.bf16.msra.mxu1 %v14806_v6  ;;  %10177 = vmatprep.mubr.msk.bf16.mxu1 %vm11195_vm0, %v15799_v22 }
0x1748   :  { %v10067_v2 = vpop.f32.mrf.mxu1  ;;  %10223 = vmatprep.subr.bf16.mxu1 %v15799_v22  ;;  %v6823_v4 = vsel %vm2391_vm6, %v14885_v26, 0.0  ;;  %v14896_v16 = vpop.eup %11014  ;;  %v7184_v42 = vmul.f32 1.442695, %v7168_v24  ;;  %v7186_v12 = vmul.f32 1.442695, %v7169_v52 }
0x1749   :  { %6827 = vadd.xlane.f32.xlu1 %v6826_v60  ;;  %6824 = vadd.xlane.f32.xlu0 %v6823_v4  ;;  %v7192_v47 = vsel %vm2391_vm6, %v14896_v16, 0.0  ;;  %v7238_v3 = vpop.permute.xlu1 %7237  ;;  %v6843_v2 = vpack.c.bf16 %v14880_v8, %v14885_v26  ;;  %v6071_v4 = vsel %vm2391_vm6, %v14677_v15, 0.0 }
0x174a   :  { %v14898_v6 = vpop.f32.mrf.mxu1  ;;  %11026 = vpow2.f32 %v7184_v42 }
0x174b   :  { %10224 = vmatpush3.bf16.msra.mxu1 %v14808_v34  ;;  %v14909_v25 = vpop.eup %11016  ;;  %v7240_v34 = vpop.permute.xlu0 %7239  ;;  %11028 = vpow2.f32 %v7186_v12 }
0x174c   :  { %v10068_v46 = vpop.f32.mrf.mxu1  ;;  %10225 = vmatprep.subr.bf16.mxu1 %v15799_v22  ;;  %v7195_v11 = vsel %vm2391_vm6, %v14909_v25, 0.0  ;;  %v11019_v44 = vpop.eup %11018  ;;  %v7232_v55 = vpack.c.bf16 %v14909_v25, %v14896_v16 }
0x174d   :  { %6054 = vadd.xlane.f32.xlu1 %v6053_v10  ;;  %7193 = vadd.xlane.f32.xlu0 %v7192_v47  ;;  %v7198_v19 = vsel %vm2391_vm6, %v11019_v44, 0.0 }
0x174e   :  { %v14911_v29 = vpop.f32.mrf.mxu1  ;;  %10178 = vmatmul.mubr.msk.bf16.gmra.mxu1 %vm2391_vm6, %v6840_v35 }
0x174f   :  { %10226 = vmatpush3.bf16.msra.mxu1 %v7240_v34  ;;  %10181 = vmatprep.mubr.msk.bf16.mxu1 %vm11195_vm0, %v15799_v22  ;;  %v11021_v45 = vpop.eup %11020 }
0x1750   :  { %v10071_v1 = vpop.f32.mrf.mxu1  ;;  %10227 = vmatprep.subr.bf16.mxu1 %v15799_v22  ;;  %v7201_v14 = vsel %vm2391_vm6, %v11021_v45, 0.0  ;;  %v11023_v61 = vpop.eup %11022  ;;  %v7233_v8 = vpack.c.bf16 %v11021_v45, %v11019_v44 }
0x1751   :  { %7196 = vadd.xlane.f32.xlu1 %v7195_v11  ;;  %6051 = vadd.xlane.f32.xlu0 %v6050_v0  ;;  %v7204_v43 = vsel %vm2391_vm6, %v11023_v61, 0.0 }
0x1752   :  { %v14922_v39 = vpop.f32.mrf.mxu1 }
0x1753   :  { %10228 = vmatpush3.bf16.msra.mxu1 %v7238_v3  ;;  %v11025_v59 = vpop.eup %11024 }
0x1754   :  { %v10072_v63 = vpop.f32.mrf.mxu1  ;;  %10273 = vmatprep.subr.bf16.mxu1 %v15799_v22  ;;  %v7207_v17 = vsel %vm2391_vm6, %v11025_v59, 0.0  ;;  %v7234_v54 = vpack.c.bf16 %v11025_v59, %v11023_v61 }
0x1755   :  { %6060 = vadd.xlane.f32.xlu1 %v6059_v40  ;;  %7199 = vadd.xlane.f32.xlu0 %v7198_v19 }
0x1756   :  { %v14930_v20 = vpop.f32.mrf.mxu1  ;;  %10182 = vmatmul.mubr.msk.bf16.gmra.mxu1 %vm2391_vm6, %v6841_v27 }
0x1757   :  { %10185 = vmatprep.mubr.msk.bf16.mxu1 %vm11195_vm0, %v15799_v22  ;;  %v11027_v37 = vpop.eup %11026 }
0x1758   :  { %v10075_v32 = vpop.f32.mrf.mxu1  ;;  %v7210_v53 = vsel %vm2391_vm6, %v11027_v37, 0.0  ;;  %v11029_v60 = vpop.eup %11028 }
0x1759   :  { %7202 = vadd.xlane.f32.xlu1 %v7201_v14  ;;  %6057 = vadd.xlane.f32.xlu0 %v6056_v56  ;;  %v7213_v5 = vsel %vm2391_vm6, %v11029_v60, 0.0  ;;  %v7235_v47 = vpack.c.bf16 %v11029_v60, %v11027_v37 }
0x175a   :  { %v14938_v9 = vpop.f32.mrf.mxu1 }
0x175c   :  { %v10076_v58 = vpop.f32.mrf.mxu1 }
0x175d   :  { %6066 = vadd.xlane.f32.xlu1 %v6065_v30  ;;  %7205 = vadd.xlane.f32.xlu0 %v7204_v43 }
0x175e   :  { %v14945_v21 = vpop.f32.mrf.mxu1  ;;  %10186 = vmatmul.mubr.msk.bf16.gmra.mxu1 %vm2391_vm6, %v6842_v57 }
0x175f   :  { %10189 = vmatprep.mubr.msk.bf16.mxu1 %vm11195_vm0, %v15799_v22 }
0x1760   :  { %v10079_v62 = vpop.f32.mrf.mxu1 }
0x1761   :  { %7208 = vadd.xlane.f32.xlu1 %v7207_v17  ;;  %6063 = vadd.xlane.f32.xlu0 %v6062_v38 }
0x1762   :  { %v14953_v33 = vpop.f32.mrf.mxu1 }
0x1764   :  { %v10080_v31 = vpop.f32.mrf.mxu1 }
0x1765   :  { %6069 = vadd.xlane.f32.xlu1 %v6068_v41  ;;  %7211 = vadd.xlane.f32.xlu0 %v7210_v53 }
0x1766   :  { %10190 = vmatmul.mubr.msk.bf16.gmra.mxu1 %vm2391_vm6, %v6843_v2 }
0x1767   :  { %10229 = vmatprep.mubr.msk.bf16.mxu1 %vm11195_vm0, %v15799_v22 }
0x1769   :  { %7214 = vadd.xlane.f32.xlu1 %v7213_v5  ;;  %6072 = vadd.xlane.f32.xlu0 %v6071_v4 }
0x176e   :  { %10230 = vmatmul.mubr.msk.bf16.vlgmr.msra.gmra.mxu1 %vm2391_vm6, %v7232_v55 }
0x176f   :  { %10233 = vmatprep.mubr.msk.bf16.mxu1 %vm11195_vm0, %v15799_v22 }
0x1776   :  { %10234 = vmatmul.mubr.msk.bf16.gmra.mxu1 %vm2391_vm6, %v7233_v8 }
0x1777   :  { %10237 = vmatprep.mubr.msk.bf16.mxu1 %vm11195_vm0, %v15799_v22 }
0x1779   :  { %v7161_v26 = vpop.xlane.xlu0 %7160 }
0x177a   :  { %v7171_v28 = vsub.f32 %v14775_v13, %v7161_v26  ;;  %v7158_v15 = vpop.xlane.xlu1 %7157 }
0x177b   :  { %v7170_v10 = vsub.f32 %v14778_v36, %v7158_v15 }
0x177c   :  { %v7190_v35 = vmul.f32 1.442695, %v7171_v28 }
0x177d   :  { %v7188_v16 = vmul.f32 1.442695, %v7170_v10  ;;  %v6046_v24 = vpop.xlane.xlu0 %6045 }
0x177e   :  { %11030 = vpow2.f32 %v7190_v35  ;;  %10238 = vmatmul.mubr.msk.bf16.gmra.mxu1 %vm2391_vm6, %v7234_v54  ;;  %v6049_v46 = vpop.xlane.xlu1 %6048 }
0x177f   :  { %11032 = vpow2.f32 %v7188_v16  ;;  %10241 = vmatprep.mubr.msk.bf16.mxu1 %vm11195_vm0, %v15799_v22 }
0x1780   :  { %11034 = vrcp.f32 %v6046_v24 }
0x1781   :  { %11036 = vrcp.f32 %v6049_v46  ;;  %v6408_v40 = vpop.xlane.xlu0 %6407 }
0x1782   :  { %11038 = vrcp.f32 %v6408_v40  ;;  %v6411_v12 = vpop.xlane.xlu1 %6410 }
0x1783   :  { %11040 = vrcp.f32 %v6411_v12 }
0x1786   :  { %10242 = vmatmul.mubr.msk.bf16.gmra.mxu1 %vm2391_vm6, %v7235_v47 }
0x1787   :  { %10245 = vmatprep.mubr.msk.bf16.mxu1 %vm11195_vm0, %v15799_v22 }
0x178b   :  { %v11031_v13 = vpop.eup %11030 }
0x178c   :  { %v11033_v36 = vpop.eup %11032  ;;  %v7219_v25 = vsel %vm2391_vm6, %v11031_v13, 0.0 }
0x178d   :  { %v11035_v34 = vpop.eup %11034  ;;  %7220 = vadd.xlane.f32.xlu1 %v7219_v25  ;;  %v7216_v0 = vsel %vm2391_vm6, %v11033_v36, 0.0  ;;  %v7236_v52 = vpack.c.bf16 %v11031_v13, %v11033_v36 }
0x178e   :  { %v11037_v42 = vpop.eup %11036  ;;  %v6193_v1 = vmul.f32 %v11035_v34, %v14856_v23  ;;  %7217 = vadd.xlane.f32.xlu0 %v7216_v0  ;;  %v6414_v23 = vpop.xlane.xlu0 %6413 }
0x178f   :  { %v6194_v11 = vmul.f32 %v11037_v42, %v14870_v48  ;;  %10246 = vmatmul.mubr.msk.bf16.gmra.mxu1 %vm2391_vm6, %v7236_v52  ;;  %11042 = vrcp.f32 %v6414_v23  ;;  %v6417_v48 = vpop.xlane.xlu1 %6416  ;;  %v11039_v63 = vpop.eup %11038  ;;  %vm7579_vm6 = vcmask 1043456  }
0x1790   :  { %v6203_v44 = vadd.f32 %v6193_v1, %v14248_v50  ;;  %10277 = vmatprep.mubr.msk.bf16.mxu1 %vm11195_vm0, %v15799_v22  ;;  %11044 = vrcp.f32 %v6417_v48  ;;  %v11041_v32 = vpop.eup %11040 }
0x1791   :  { %v6204_v3 = vadd.f32 %v6194_v11, %v14244_v49 }
0x1792   :  { %6213 = vst.msk [vmem:[#allocation2] sm:$0xff] %vm550_vm5, %v6203_v44 }
0x1793   :  { %6214 = vst.msk [vmem:[#allocation2 + $0x8] sm:$0xff] %vm550_vm5, %v6204_v3 }
0x179c   :  { %v11043_v43 = vpop.eup %11042 }
0x179d   :  { %v11045_v37 = vpop.eup %11044 }
0x17b1   :  { %v6512_v19 = vpop.f32.mrf.mxu1 }
0x17b2   :  { %v6551_v27 = vmul.f32 %v11039_v63, %v6512_v19  ;;  %v6420_v56 = vpop.xlane.xlu0 %6419 }
0x17b3   :  { %v10119_v45 = vpop.f32.mrf.mxu1 }
0x17b4   :  { %6571 = vrot.lane.b32.xlu0 %v6551_v27, %s11205_s25  ;;  %v15822_v45 = vld [vmem:[#allocation26_spill] sm:$0xff] }
0x17b5   :  { %v6515_v14 = vpop.f32.mrf.mxu1 }
0x17b6   :  { %v6552_v61 = vmul.f32 %v11041_v32, %v6515_v14  ;;  %v6423_v58 = vpop.xlane.xlu1 %6422 }
0x17b7   :  { %v10120_v30 = vpop.f32.mrf.mxu1 }
0x17b8   :  { %6573 = vrot.lane.b32.xlu1 %v6552_v61, %s11205_s25 }
0x17b9   :  { %v6520_v57 = vpop.f32.mrf.mxu1 }
0x17ba   :  { %v6553_v59 = vmul.f32 %v11043_v43, %v6520_v57  ;;  %v14995_v62 = vpop.xlane.xlu1 %6428  ;;  %v14997_v17 = vpop.xlane.xlu0 %6425 }
0x17bb   :  { %v10123_v38 = vpop.f32.mrf.mxu1 }
0x17bc   :  { %6575 = vrot.lane.b32.xlu0 %v6553_v59, %s11205_s25  ;;  %v15823_v38 = vld [vmem:[#allocation27_spill] sm:$0xff] }
0x17bd   :  { %v6523_v31 = vpop.f32.mrf.mxu1 }
0x17be   :  { %v6554_v41 = vmul.f32 %v11045_v37, %v6523_v31  ;;  %v15000_v53 = vpop.xlane.xlu1 %6434  ;;  %v15002_v2 = vpop.xlane.xlu0 %6431 }
0x17bf   :  { %v10124_v60 = vpop.f32.mrf.mxu1 }
0x17c0   :  { %6577 = vrot.lane.b32.xlu1 %v6554_v41, %s11205_s25 }
0x17c2   :  { %v15005_v5 = vpop.xlane.xlu1 %6803  ;;  %v15007_v4 = vpop.xlane.xlu0 %6800 }
0x17c6   :  { %v15009_v55 = vpop.xlane.xlu1 %6809  ;;  %v15011_v8 = vpop.xlane.xlu0 %6806 }
0x17ca   :  { %v15013_v26 = vpop.xlane.xlu1 %6815  ;;  %v15015_v28 = vpop.xlane.xlu0 %6812 }
0x17ce   :  { %v15017_v15 = vpop.xlane.xlu1 %6821  ;;  %v15019_v10 = vpop.xlane.xlu0 %6818 }
0x17d2   :  { %v15021_v35 = vpop.xlane.xlu1 %6827  ;;  %v15023_v54 = vpop.xlane.xlu0 %6824 }
0x17d6   :  { %v6055_v16 = vpop.xlane.xlu1 %6054  ;;  %v15025_v24 = vpop.xlane.xlu0 %7193 }
0x17d7   :  { %11046 = vrcp.f32 %v6055_v16  ;;  %v15824_v16 = vld [vmem:[#allocation34_spill] sm:$0xff] }
0x17da   :  { %v15027_v46 = vpop.xlane.xlu1 %7196  ;;  %v6052_v47 = vpop.xlane.xlu0 %6051 }
0x17db   :  { %11048 = vrcp.f32 %v6052_v47 }
0x17de   :  { %v6061_v13 = vpop.xlane.xlu1 %6060  ;;  %v15029_v36 = vpop.xlane.xlu0 %7199 }
0x17df   :  { %11050 = vrcp.f32 %v6061_v13 }
0x17e0   :  { %11052 = vrcp.f32 %v6420_v56 }
0x17e2   :  { %v15031_v25 = vpop.xlane.xlu1 %7202  ;;  %v6058_v34 = vpop.xlane.xlu0 %6057 }
0x17e3   :  { %11054 = vrcp.f32 %v6058_v34 }
0x17e4   :  { %v11047_v0 = vpop.eup %11046  ;;  %11056 = vrcp.f32 %v6423_v58 }
0x17e5   :  { %v6196_v52 = vmul.f32 %v11047_v0, %v14898_v6 }
0x17e6   :  { %v6067_v42 = vpop.xlane.xlu1 %6066  ;;  %v15034_v1 = vpop.xlane.xlu0 %7205 }
0x17e7   :  { %v6206_v11 = vadd.f32 %v6196_v52, %v14250_v7  ;;  %11058 = vrcp.f32 %v6067_v42 }
0x17e8   :  { %v11049_v44 = vpop.eup %11048 }
0x17e9   :  { %6216 = vst.msk [vmem:[#allocation2 + $0x18] sm:$0xff] %vm550_vm5, %v6206_v11  ;;  %v6195_v3 = vmul.f32 %v11049_v44, %v14882_v18 }
0x17ea   :  { %v15039_v40 = vpop.xlane.xlu1 %7208  ;;  %v6064_v12 = vpop.xlane.xlu0 %6063 }
0x17eb   :  { %v6205_v48 = vadd.f32 %v6195_v3, %v14258_v51  ;;  %11060 = vrcp.f32 %v6064_v12  ;;  %v15826_v12 = vld [vmem:[#allocation20_spill] sm:$0xff] }
0x17ec   :  { %v11051_v23 = vpop.eup %11050 }
0x17ed   :  { %v6198_v6 = vmul.f32 %v11051_v23, %v14922_v39  ;;  %v11053_v63 = vpop.eup %11052  ;;  %6215 = vst.msk [vmem:[#allocation2 + $0x10] sm:$0xff] %vm550_vm5, %v6205_v48 }
0x17ee   :  { %v6528_v19 = vpop.f32.mrf.mxu1  ;;  %v6070_v27 = vpop.xlane.xlu1 %6069 }
0x17ef   :  { %v6208_v32 = vadd.f32 %v6198_v6, %v15822_v45  ;;  %v6555_v14 = vmul.f32 %v11053_v63, %v6528_v19  ;;  %11062 = vrcp.f32 %v6070_v27  ;;  %v15045_v56 = vpop.xlane.xlu0 %7211  ;;  %v15827_v63 = vld [vmem:[#allocation21_spill] sm:$0xff] }
0x17f0   :  { %v10127_v18 = vpop.f32.mrf.mxu1  ;;  %v11055_v61 = vpop.eup %11054 }
0x17f1   :  { %6218 = vst.msk [vmem:[#allocation2 + $0x28] sm:$0xff] %vm550_vm5, %v6208_v32  ;;  %6579 = vrot.lane.b32.xlu1 %v6555_v14, %s11205_s25  ;;  %v11057_v58 = vpop.eup %11056  ;;  %v6197_v39 = vmul.f32 %v11055_v61, %v14911_v29 }
0x17f2   :  { %v6531_v30 = vpop.f32.mrf.mxu1 }
0x17f3   :  { %v6556_v43 = vmul.f32 %v11057_v58, %v6531_v30  ;;  %v6073_v57 = vpop.xlane.xlu0 %6072  ;;  %v6207_v37 = vadd.f32 %v6197_v39, %v15823_v38 }
0x17f4   :  { %v11059_v59 = vpop.eup %11058  ;;  %11064 = vrcp.f32 %v6073_v57  ;;  %v10128_v31 = vpop.f32.mrf.mxu1 }
0x17f5   :  { %v6200_v41 = vmul.f32 %v11059_v59, %v14938_v9  ;;  %6581 = vrot.lane.b32.xlu0 %v6556_v43, %s11205_s25  ;;  %6217 = vst.msk [vmem:[#allocation2 + $0x20] sm:$0xff] %vm550_vm5, %v6207_v37  ;;  %11066 = vrcp.f32 %v15007_v4  ;;  %v15825_v9 = vld [vmem:[#allocation15_spill] sm:$0xff]  ;;  %v10527_v59 = vld [vmem:[#allocation3 + $0xf0] sm:$0xff]  }
0x17f6   :  { %v15054_v60 = vpop.f32.mrf.mxu1  ;;  %11068 = vrcp.f32 %v15005_v5  ;;  %10250 = vmatpush3.bf16.msra.mxu0 %v10527_v59 }
0x17f7   :  { %v6210_v47 = vadd.f32 %v6200_v41, %v15824_v16  ;;  %11070 = vrcp.f32 %v15011_v8  ;;  %10251 = vmatprep.subr.bf16.mxu0 %v15799_v22 }
0x17f8   :  { %v10131_v13 = vpop.f32.mrf.mxu1  ;;  %v11061_v29 = vpop.eup %11060  ;;  %11072 = vrcp.f32 %v15009_v55 }
0x17f9   :  { %6220 = vst.msk [vmem:[#allocation2 + $0x38] sm:$0xff] %vm550_vm5, %v6210_v47  ;;  %v6199_v34 = vmul.f32 %v11061_v29, %v14930_v20  ;;  %11074 = vrcp.f32 %v15015_v28 }
0x17fa   :  { %v15060_v0 = vpop.f32.mrf.mxu1  ;;  %11076 = vrcp.f32 %v15013_v26 }
0x17fb   :  { %v6209_v42 = vadd.f32 %v6199_v34, %v15825_v9  ;;  %11078 = vrcp.f32 %v15025_v24 }
0x17fc   :  { %v11063_v52 = vpop.eup %11062  ;;  %v10132_v11 = vpop.f32.mrf.mxu1  ;;  %11080 = vrcp.f32 %v14997_v17 }
0x17fd   :  { %v6201_v44 = vmul.f32 %v11063_v52, %v14945_v21  ;;  %6219 = vst.msk [vmem:[#allocation2 + $0x30] sm:$0xff] %vm550_vm5, %v6209_v42  ;;  %11082 = vrcp.f32 %v15027_v46 }
0x17fe   :  { %v15066_v3 = vpop.f32.mrf.mxu1  ;;  %11084 = vrcp.f32 %v14995_v62 }
0x17ff   :  { %v6211_v4 = vadd.f32 %v6201_v44, %v15826_v12  ;;  %v15089_v44 = vpop.xlane.xlu1 %7214  ;;  %11086 = vrcp.f32 %v15029_v36 }
0x1800   :  { %v10135_v23 = vpop.f32.mrf.mxu1  ;;  %11088 = vrcp.f32 %v15019_v10 }
0x1801   :  { %v11065_v48 = vpop.eup %11064  ;;  %6221 = vst.msk [vmem:[#allocation2 + $0x40] sm:$0xff] %vm550_vm5, %v6211_v4  ;;  %11090 = vrcp.f32 %v15031_v25 }
0x1802   :  { %v6202_v20 = vmul.f32 %v11065_v48, %v14953_v33  ;;  %v15072_v6 = vpop.f32.mrf.mxu1  ;;  %v11067_v21 = vpop.eup %11066  ;;  %11092 = vrcp.f32 %v15017_v15 }
0x1803   :  { %v11069_v8 = vpop.eup %11068  ;;  %11094 = vrcp.f32 %v15034_v1 }
0x1804   :  { %v6212_v5 = vadd.f32 %v6202_v20, %v15827_v63  ;;  %v10136_v19 = vpop.f32.mrf.mxu1  ;;  %v11071_v58 = vpop.eup %11070  ;;  %11096 = vrcp.f32 %v15002_v2 }
0x1805   :  { %v11073_v43 = vpop.eup %11072  ;;  %11098 = vrcp.f32 %v15039_v40 }
0x1806   :  { %6222 = vst.msk [vmem:[#allocation2 + $0x48] sm:$0xff] %vm550_vm5, %v6212_v5  ;;  %v6905_v27 = vpop.f32.mrf.mxu1  ;;  %v11075_v31 = vpop.eup %11074  ;;  %11100 = vrcp.f32 %v15000_v53 }
0x1807   :  { %v6944_v32 = vmul.f32 %v11067_v21, %v6905_v27  ;;  %v11077_v13 = vpop.eup %11076  ;;  %11102 = vrcp.f32 %v15045_v56 }
0x1808   :  { %v10175_v14 = vpop.f32.mrf.mxu1  ;;  %v11079_v62 = vpop.eup %11078  ;;  %11104 = vrcp.f32 %v15023_v54 }
0x1809   :  { %6964 = vrot.lane.b32.xlu1 %v6944_v32, %s11206_s26  ;;  %v10528_v32 = vld [vmem:[#allocation3 + $0xe8] sm:$0xff]   ;;  %11106 = vrcp.f32 %v15089_v44 }
0x180a   :  { %v6908_v18 = vpop.f32.mrf.mxu1  ;;  %10252 = vmatpush3.bf16.msra.mxu0 %v10528_v32  ;;  %11108 = vrcp.f32 %v15021_v35 }
0x180b   :  { %v6945_v33 = vmul.f32 %v11069_v8, %v6908_v18  ;;  %10305 = vmatprep.subr.bf16.mxu0 %v15799_v22 }
0x180c   :  { %v10176_v61 = vpop.f32.mrf.mxu1 }
0x180d   :  { %6966 = vrot.lane.b32.xlu0 %v6945_v33, %s11206_s26 }
0x180e   :  { %v6913_v55 = vpop.f32.mrf.mxu1 }
0x180f   :  { %v6946_v39 = vmul.f32 %v11071_v58, %v6913_v55  ;;  %v11081_v58 = vpop.eup %11080 }
0x1810   :  { %v10179_v30 = vpop.f32.mrf.mxu1  ;;  %v11083_v10 = vpop.eup %11082 }
0x1811   :  { %6968 = vrot.lane.b32.xlu1 %v6946_v39, %s11206_s26  ;;  %v6557_v39 = vmul.f32 %v11081_v58, %v15054_v60  ;;  %v11085_v15 = vpop.eup %11084 }
0x1812   :  { %v6916_v57 = vpop.f32.mrf.mxu1  ;;  %v11087_v1 = vpop.eup %11086 }
0x1813   :  { %v6947_v28 = vmul.f32 %v11073_v43, %v6916_v57 }
0x1814   :  { %v10180_v37 = vpop.f32.mrf.mxu1 }
0x1815   :  { %6970 = vrot.lane.b32.xlu0 %v6947_v28, %s11206_s26  ;;  %v6558_v28 = vmul.f32 %v11085_v15, %v15060_v0 }
0x1816   :  { %v6921_v26 = vpop.f32.mrf.mxu1  ;;  %v15097_v20 = vpop.xlane.xlu1 %7220 }
0x1817   :  { %v6948_v41 = vmul.f32 %v11075_v31, %v6921_v26  ;;  %v15091_v4 = vpop.xlane.xlu0 %7217  ;;  %v11089_v31 = vpop.eup %11088 }
0x1818   :  { %v10183_v47 = vpop.f32.mrf.mxu1  ;;  %v11091_v2 = vpop.eup %11090  ;;  %11110 = vrcp.f32 %v15091_v4 }
0x1819   :  { %6972 = vrot.lane.b32.xlu1 %v6948_v41, %s11206_s26  ;;  %v11093_v0 = vpop.eup %11092  ;;  %11112 = vrcp.f32 %v15097_v20 }
0x181a   :  { %v6924_v29 = vpop.f32.mrf.mxu1  ;;  %v11095_v53 = vpop.eup %11094 }
0x181b   :  { %v6949_v34 = vmul.f32 %v11077_v13, %v6924_v29 }
0x181c   :  { %v10184_v52 = vpop.f32.mrf.mxu1 }
0x181d   :  { %6974 = vrot.lane.b32.xlu0 %v6949_v34, %s11206_s26  ;;  %v11097_v52 = vpop.eup %11096 }
0x181e   :  { %v15086_v42 = vpop.f32.mrf.mxu1  ;;  %v11099_v54 = vpop.eup %11098 }
0x181f   :  { %v6950_v26 = vmul.f32 %v11089_v31, %v15086_v42 }
0x1820   :  { %v10187_v11 = vpop.f32.mrf.mxu1 }
0x1821   :  { %v6559_v11 = vmul.f32 %v11097_v52, %v15066_v3 }
0x1822   :  { %v15093_v23 = vpop.f32.mrf.mxu1 }
0x1823   :  { %v6951_v13 = vmul.f32 %v11093_v0, %v15093_v23 }
0x1824   :  { %v10188_v48 = vpop.f32.mrf.mxu1 }
0x1826   :  { %v15099_v5 = vpop.f32.mrf.mxu1  ;;  %v6572_v19 = vpop.permute.xlu0 %6571 }
0x1827   :  { %v6601_v21 = vadd.f32 %v6572_v19, %v14248_v50  ;;  %v11101_v19 = vpop.eup %11100 }
0x1828   :  { %v10191_v24 = vpop.f32.mrf.mxu1  ;;  %v11103_v23 = vpop.eup %11102 }
0x1829   :  { %6611 = vst.msk [vmem:[#allocation2] sm:$0xff] %vm1187_vm15, %v6601_v21  ;;  %v6560_v21 = vmul.f32 %v11101_v19, %v15072_v6  ;;  %v11105_v32 = vpop.eup %11104 }
0x182a   :  { %v15105_v27 = vpop.f32.mrf.mxu1  ;;  %v6574_v17 = vpop.permute.xlu1 %6573 }
0x182b   :  { %v6602_v46 = vadd.f32 %v6574_v17, %v14244_v49  ;;  %v11107_v3 = vpop.eup %11106 }
0x182c   :  { %v10192_v14 = vpop.f32.mrf.mxu1  ;;  %v11109_v20 = vpop.eup %11108 }
0x182d   :  { %6612 = vst.msk [vmem:[#allocation2 + $0x8] sm:$0xff] %vm1187_vm15, %v6602_v46  ;;  %v6952_v46 = vmul.f32 %v11105_v32, %v15099_v5  ;;  %v6953_v6 = vmul.f32 %v11109_v20, %v15105_v27 }
0x182e   :  { %v7298_v36 = vpop.f32.mrf.mxu1  ;;  %v6576_v8 = vpop.permute.xlu0 %6575 }
0x182f   :  { %v7337_v18 = vmul.f32 %v11079_v62, %v7298_v36  ;;  %v6603_v33 = vadd.f32 %v6576_v8, %v14258_v51  ;;  %v11111_v36 = vpop.eup %11110 }
0x1830   :  { %v10231_v61 = vpop.f32.mrf.mxu1 }
0x1831   :  { %6613 = vst.msk [vmem:[#allocation2 + $0x10] sm:$0xff] %vm1187_vm15, %v6603_v33  ;;  %7357 = vrot.lane.b32.xlu1 %v7337_v18, %s11207_s27  ;;  %v11113_v61 = vpop.eup %11112 }
0x1832   :  { %v7301_v25 = vpop.f32.mrf.mxu1  ;;  %v6578_v55 = vpop.permute.xlu1 %6577 }
0x1833   :  { %v7338_v30 = vmul.f32 %v11083_v10, %v7301_v25  ;;  %v6604_v43 = vadd.f32 %v6578_v55, %v14250_v7  ;;  %v10529_v25 = vld [vmem:[#allocation3 + $0x100] ss:$0 sps:$4 sm:$0xff]  }
0x1834   :  { %v10232_v57 = vpop.f32.mrf.mxu1  ;;  %v7581_v55 = vsel %vm7579_vm6, %v10529_v25, 0 }
0x1835   :  { %6614 = vst.msk [vmem:[#allocation2 + $0x18] sm:$0xff] %vm1187_vm15, %v6604_v43  ;;  %7359 = vrot.lane.b32.xlu0 %v7338_v30, %s11207_s27  ;;  %6583 = vrot.lane.b32.xlu1 %v6557_v39, %s11205_s25  ;;  %v10530_v39 = vld [vmem:[#allocation3 + $0xf8] sm:$0xff]  }
0x1836   :  { %v7306_v59 = vpop.f32.mrf.mxu1  ;;  %10274 = vmatpush3.bf16.msra.mxu1 %v7581_v55 }
0x1837   :  { %v7339_v60 = vmul.f32 %v11087_v1, %v7306_v59  ;;  %10275 = vmatprep.subr.bf16.mxu1 %v15799_v22 }
0x1838   :  { %v10235_v37 = vpop.f32.mrf.mxu1 }
0x1839   :  { %6585 = vrot.lane.b32.xlu0 %v6558_v28, %s11205_s25  ;;  %7361 = vrot.lane.b32.xlu1 %v7339_v60, %s11207_s27 }
0x183a   :  { %v7309_v40 = vpop.f32.mrf.mxu1  ;;  %10276 = vmatpush3.bf16.msra.mxu1 %v10530_v39 }
0x183b   :  { %v7340_v41 = vmul.f32 %v11091_v2, %v7309_v40  ;;  %10281 = vmatprep.subr.bf16.mxu1 %v15799_v22 }
0x183c   :  { %v10236_v47 = vpop.f32.mrf.mxu1 }
0x183d   :  { %7363 = vrot.lane.b32.xlu0 %v7340_v41, %s11207_s27  ;;  %6976 = vrot.lane.b32.xlu1 %v6950_v26, %s11206_s26 }
0x183e   :  { %v7314_v56 = vpop.f32.mrf.mxu1 }
0x183f   :  { %v7341_v29 = vmul.f32 %v11095_v53, %v7314_v56 }
0x1840   :  { %v10239_v34 = vpop.f32.mrf.mxu1 }
0x1841   :  { %6978 = vrot.lane.b32.xlu0 %v6951_v13, %s11206_s26  ;;  %7365 = vrot.lane.b32.xlu1 %v7341_v29, %s11207_s27 }
0x1842   :  { %v7317_v42 = vpop.f32.mrf.mxu1 }
0x1843   :  { %v7342_v44 = vmul.f32 %v11099_v54, %v7317_v42 }
0x1844   :  { %v10240_v48 = vpop.f32.mrf.mxu1 }
0x1845   :  { %7367 = vrot.lane.b32.xlu0 %v7342_v44, %s11207_s27  ;;  %6587 = vrot.lane.b32.xlu1 %v6559_v11, %s11205_s25 }
0x1846   :  { %v7322_v35 = vpop.f32.mrf.mxu1 }
0x1847   :  { %v7343_v24 = vmul.f32 %v11103_v23, %v7322_v35 }
0x1848   :  { %v10243_v17 = vpop.f32.mrf.mxu1 }
0x1849   :  { %6589 = vrot.lane.b32.xlu0 %v6560_v21, %s11205_s25  ;;  %7369 = vrot.lane.b32.xlu1 %v7343_v24, %s11207_s27 }
0x184a   :  { %v7325_v4 = vpop.f32.mrf.mxu1 }
0x184b   :  { %v7344_v14 = vmul.f32 %v11107_v3, %v7325_v4 }
0x184c   :  { %v10244_v62 = vpop.f32.mrf.mxu1 }
0x184d   :  { %7371 = vrot.lane.b32.xlu0 %v7344_v14, %s11207_s27  ;;  %6980 = vrot.lane.b32.xlu1 %v6952_v46, %s11206_s26 }
0x184f   :  { %v7330_v8 = vpop.f32.mrf.mxu1 }
0x1850   :  { %v7345_v18 = vmul.f32 %v11111_v36, %v7330_v8 }
0x1851   :  { %v10247_v33 = vpop.f32.mrf.mxu1  ;;  %6982 = vrot.lane.b32.xlu0 %v6953_v6, %s11206_s26 }
0x1852   :  { %7373 = vrot.lane.b32.xlu1 %v7345_v18, %s11207_s27 }
0x1853   :  { %v7333_v58 = vpop.f32.mrf.mxu1 }
0x1854   :  { %v7346_v5 = vmul.f32 %v11113_v61, %v7333_v58 }
0x1855   :  { %v10248_v10 = vpop.f32.mrf.mxu1 }
0x1856   :  { %7375 = vrot.lane.b32.xlu0 %v7346_v5, %s11207_s27 }
0x1863   :  { %v6580_v27 = vpop.permute.xlu1 %6579 }
0x1864   :  { %v6605_v30 = vadd.f32 %v6580_v27, %v15823_v38 }
0x1866   :  { %6615 = vst.msk [vmem:[#allocation2 + $0x20] sm:$0xff] %vm1187_vm15, %v6605_v30 }
0x1867   :  { %v6582_v43 = vpop.permute.xlu0 %6581 }
0x1868   :  { %v6606_v57 = vadd.f32 %v6582_v43, %v15822_v45 }
0x186a   :  { %6616 = vst.msk [vmem:[#allocation2 + $0x28] sm:$0xff] %vm1187_vm15, %v6606_v57 }
0x187b   :  { %v6965_v15 = vpop.permute.xlu1 %6964 }
0x187c   :  { %v6994_v1 = vadd.f32 %v6965_v15, %v14248_v50  ;;  %v10531_v15 = vld [vmem:[%s15588_s2] sm:$0xff]  }
0x187d   :  { %10278 = vmatmul.mubr.msk.bf16.vlgmr.msra.gmra.mxu1 %vm7575_vm8, %v10531_v15 }
0x187e   :  { %7004 = vst.msk [vmem:[#allocation2] sm:$0xff] %vm1530_vm1, %v6994_v1  ;;  %10285 = vmatprep.mubr.msk.bf16.mxu1 %vm11195_vm0, %v15799_v22  ;;  %v10532_v1 = vld [vmem:[#allocation3 + $0x110] sm:$0xff]  }
0x187f   :  { %v6967_v59 = vpop.permute.xlu0 %6966  ;;  %10282 = vmatpush3.bf16.msra.mxu1 %v10532_v1 }
0x1880   :  { %v6995_v28 = vadd.f32 %v6967_v59, %v14244_v49  ;;  %10283 = vmatprep.subr.bf16.mxu1 %v15799_v22  ;;  %v10533_v59 = vld [vmem:[#allocation3 + $0x108] sm:$0xff]  }
0x1882   :  { %7005 = vst.msk [vmem:[#allocation2 + $0x8] sm:$0xff] %vm1530_vm1, %v6995_v28  ;;  %v8808_v28 = vld [vmem:[%s15595_s9 + $0xc] ss:$0 sm:$0xff] }
0x1883   :  { %v6969_v60 = vpop.permute.xlu1 %6968  ;;  %10284 = vmatpush3.bf16.msra.mxu1 %v10533_v59 }
0x1884   :  { %v6996_v37 = vadd.f32 %v6969_v60, %v14258_v51  ;;  %10319 = vmatprep.subr.bf16.mxu1 %v15799_v22 }
0x1886   :  { %7006 = vst.msk [vmem:[#allocation2 + $0x10] sm:$0xff] %vm1530_vm1, %v6996_v37 }
0x1887   :  { %v6971_v31 = vpop.permute.xlu0 %6970 }
0x1888   :  { %v6997_v2 = vadd.f32 %v6971_v31, %v14250_v7 }
0x188a   :  { %7007 = vst.msk [vmem:[#allocation2 + $0x18] sm:$0xff] %vm1530_vm1, %v6997_v2 }
0x188b   :  { %v6973_v40 = vpop.permute.xlu1 %6972 }
0x188c   :  { %v6998_v26 = vadd.f32 %v6973_v40, %v15823_v38 }
0x188e   :  { %7008 = vst.msk [vmem:[#allocation2 + $0x20] sm:$0xff] %vm1530_vm1, %v6998_v26 }
0x188f   :  { %v6975_v41 = vpop.permute.xlu0 %6974 }
0x1890   :  { %v6999_v47 = vadd.f32 %v6975_v41, %v15822_v45 }
0x1892   :  { %7009 = vst.msk [vmem:[#allocation2 + $0x28] sm:$0xff] %vm1530_vm1, %v6999_v47 }
0x18a3   :  { %v7358_v0 = vpop.permute.xlu1 %7357 }
0x18a4   :  { %v7387_v53 = vadd.f32 %v7358_v0, %v14248_v50 }
0x18a6   :  { %7397 = vst.msk [vmem:[#allocation2] sm:$0xff] %vm1873_vm2, %v7387_v53 }
0x18a7   :  { %v6584_v56 = vpop.permute.xlu1 %6583  ;;  %v7360_v13 = vpop.permute.xlu0 %7359 }
0x18a8   :  { %v6607_v29 = vadd.f32 %v6584_v56, %v15825_v9  ;;  %v7388_v34 = vadd.f32 %v7360_v13, %v14244_v49 }
0x18aa   :  { %6617 = vst.msk [vmem:[#allocation2 + $0x30] sm:$0xff] %vm1187_vm15, %v6607_v29 }
0x18ab   :  { %7398 = vst.msk [vmem:[#allocation2 + $0x8] sm:$0xff] %vm1873_vm2, %v7388_v34  ;;  %v7362_v52 = vpop.permute.xlu1 %7361  ;;  %v6586_v54 = vpop.permute.xlu0 %6585 }
0x18ac   :  { %v7389_v42 = vadd.f32 %v7362_v52, %v14258_v51  ;;  %v6608_v11 = vadd.f32 %v6586_v54, %v15824_v16 }
0x18ad   :  { %v15183_v19 = vld [vmem:[#allocation2] sm:$0xff] }
0x18ae   :  { %7399 = vst.msk [vmem:[#allocation2 + $0x10] sm:$0xff] %vm1873_vm2, %v7389_v42 }
0x18af   :  { %6618 = vst.msk [vmem:[#allocation2 + $0x38] sm:$0xff] %vm1187_vm15, %v6608_v11  ;;  %v6977_v50 = vpop.permute.xlu1 %6976  ;;  %v7364_v44 = vpop.permute.xlu0 %7363 }
0x18b0   :  { %v7000_v48 = vadd.f32 %v6977_v50, %v15825_v9  ;;  %v7390_v49 = vadd.f32 %v7364_v44, %v14250_v7 }
0x18b2   :  { %v15185_v23 = vld [vmem:[#allocation2 + $0x8] sm:$0xff]  ;;  %7010 = vst.msk [vmem:[#allocation2 + $0x30] sm:$0xff] %vm1530_vm1, %v7000_v48 }
0x18b3   :  { %7400 = vst.msk [vmem:[#allocation2 + $0x18] sm:$0xff] %vm1873_vm2, %v7390_v49  ;;  %v7417_v51 = vpack.c.bf16 %v15185_v23, %v15183_v19  ;;  %v7366_v35 = vpop.permute.xlu1 %7365  ;;  %v6979_v21 = vpop.permute.xlu0 %6978 }
0x18b4   :  { %v7391_v24 = vadd.f32 %v7366_v35, %v15823_v38  ;;  %v7001_v17 = vadd.f32 %v6979_v21, %v15824_v16 }
0x18b5   :  { %10254 = vmatmul.mubr.msk.bf16.vlgmr.msra.gmra.mxu0 %vm286_vm3, %v7417_v51  ;;  %v15200_v46 = vld [vmem:[#allocation2 + $0x10] sm:$0xff] }
0x18b6   :  { %10257 = vmatprep.mubr.msk.bf16.mxu0 %vm11195_vm0, %v15799_v22  ;;  %7401 = vst.msk [vmem:[#allocation2 + $0x20] sm:$0xff] %vm1873_vm2, %v7391_v24 }
0x18b7   :  { %7011 = vst.msk [vmem:[#allocation2 + $0x38] sm:$0xff] %vm1530_vm1, %v7001_v17  ;;  %v6588_v7 = vpop.permute.xlu1 %6587  ;;  %v7368_v32 = vpop.permute.xlu0 %7367 }
0x18b8   :  { %v6609_v3 = vadd.f32 %v6588_v7, %v15826_v12  ;;  %v7392_v4 = vadd.f32 %v7368_v32, %v15822_v45 }
0x18ba   :  { %v15202_v38 = vld [vmem:[#allocation2 + $0x18] sm:$0xff]  ;;  %6619 = vst.msk [vmem:[#allocation2 + $0x40] sm:$0xff] %vm1187_vm15, %v6609_v3 }
0x18bb   :  { %7402 = vst.msk [vmem:[#allocation2 + $0x28] sm:$0xff] %vm1873_vm2, %v7392_v4  ;;  %v7418_v14 = vpack.c.bf16 %v15202_v38, %v15200_v46  ;;  %v7370_v62 = vpop.permute.xlu1 %7369  ;;  %v6590_v20 = vpop.permute.xlu0 %6589 }
0x18bc   :  { %v7393_v36 = vadd.f32 %v7370_v62, %v15825_v9  ;;  %v6610_v6 = vadd.f32 %v6590_v20, %v15827_v63 }
0x18bd   :  { %10258 = vmatmul.mubr.msk.bf16.gmra.mxu0 %vm286_vm3, %v7418_v14  ;;  %v15217_v61 = vld [vmem:[#allocation2 + $0x20] sm:$0xff] }
0x18be   :  { %10261 = vmatprep.mubr.msk.bf16.mxu0 %vm11195_vm0, %v15799_v22  ;;  %7403 = vst.msk [vmem:[#allocation2 + $0x30] sm:$0xff] %vm1873_vm2, %v7393_v36 }
0x18bf   :  { %6620 = vst.msk [vmem:[#allocation2 + $0x48] sm:$0xff] %vm1187_vm15, %v6610_v6  ;;  %v6981_v45 = vpop.permute.xlu1 %6980  ;;  %v7372_v8 = vpop.permute.xlu0 %7371 }
0x18c0   :  { %v7002_v18 = vadd.f32 %v6981_v45, %v15826_v12  ;;  %v7394_v33 = vadd.f32 %v7372_v8, %v15824_v16 }
0x18c2   :  { %v15219_v9 = vld [vmem:[#allocation2 + $0x28] sm:$0xff]  ;;  %7012 = vst.msk [vmem:[#allocation2 + $0x40] sm:$0xff] %vm1530_vm1, %v7002_v18 }
0x18c3   :  { %7404 = vst.msk [vmem:[#allocation2 + $0x38] sm:$0xff] %vm1873_vm2, %v7394_v33  ;;  %v7419_v58 = vpack.c.bf16 %v15219_v9, %v15217_v61  ;;  %v6983_v5 = vpop.permute.xlu0 %6982 }
0x18c4   :  { %v7003_v10 = vadd.f32 %v6983_v5, %v15827_v63  ;;  %v7374_v25 = vpop.permute.xlu1 %7373 }
0x18c5   :  { %10262 = vmatmul.mubr.msk.bf16.gmra.mxu0 %vm286_vm3, %v7419_v58  ;;  %v7395_v55 = vadd.f32 %v7374_v25, %v15826_v12  ;;  %v15233_v27 = vld [vmem:[#allocation2 + $0x30] sm:$0xff] }
0x18c6   :  { %10265 = vmatprep.mubr.msk.bf16.mxu0 %vm11195_vm0, %v15799_v22  ;;  %7013 = vst.msk [vmem:[#allocation2 + $0x48] sm:$0xff] %vm1530_vm1, %v7003_v10 }
0x18c7   :  { %7405 = vst.msk [vmem:[#allocation2 + $0x40] sm:$0xff] %vm1873_vm2, %v7395_v55 }
0x18c8   :  { %v7376_v16 = vpop.permute.xlu0 %7375 }
0x18c9   :  { %v7396_v39 = vadd.f32 %v7376_v16, %v15827_v63 }
0x18ca   :  { %v15235_v30 = vld [vmem:[#allocation2 + $0x38] sm:$0xff] }
0x18cb   :  { %v7420_v43 = vpack.c.bf16 %v15235_v30, %v15233_v27  ;;  %7406 = vst.msk [vmem:[#allocation2 + $0x48] sm:$0xff] %vm1873_vm2, %v7396_v39 }
0x18cd   :  { %10266 = vmatmul.mubr.msk.bf16.gmra.mxu0 %vm286_vm3, %v7420_v43 }
0x18ce   :  { %10269 = vmatprep.mubr.msk.bf16.mxu0 %vm11195_vm0, %v15799_v22  ;;  %v15243_v12 = vld [vmem:[#allocation2 + $0x40] sm:$0xff] }
0x18d2   :  { %v15245_v57 = vld [vmem:[#allocation2 + $0x48] sm:$0xff] }
0x18d3   :  { %v7421_v63 = vpack.c.bf16 %v15245_v57, %v15243_v12 }
0x18d5   :  { %10270 = vmatmul.mubr.msk.bf16.gmra.mxu0 %vm286_vm3, %v7421_v63 }
0x18d6   :  { %10315 = vmatprep.mubr.msk.bf16.mxu0 %vm11195_vm0, %v15799_v22 }
0x1975   :  { %v7492_v60 = vpop.f32.mrf.mxu0 }
0x1976   :  { %v7493_v37 = vadd.f32 %v8808_v28, %v7492_v60 }
0x1977   :  { %v10255_v31 = vpop.f32.mrf.mxu0 }
0x1978   :  { %v7531_v40 = vmax.f32 %v7493_v37, 0.0 }
0x1979   :  { %v7495_v2 = vpop.f32.mrf.mxu0 }
0x197a   :  { %v7496_v26 = vadd.f32 %v8808_v28, %v7495_v2  ;;  %v7541_v53 = vadd.f32 %v7531_v40, %v15183_v19 }
0x197b   :  { %v10256_v41 = vpop.f32.mrf.mxu0 }
0x197c   :  { %v7532_v47 = vmax.f32 %v7496_v26, 0.0 }
0x197d   :  { %v7500_v0 = vpop.f32.mrf.mxu0 }
0x197e   :  { %v7542_v56 = vadd.f32 %v7532_v47, %v15185_v23  ;;  %v7501_v13 = vadd.f32 %v8808_v28, %v7500_v0 }
0x197f   :  { %v10259_v29 = vpop.f32.mrf.mxu0 }
0x1980   :  { %v7624_v34 = vpack.c.bf16 %v7542_v56, %v7541_v53  ;;  %v7533_v54 = vmax.f32 %v7501_v13, 0.0  ;;  %v8816_v56 = vld [vmem:[%s15595_s9 + $0xd] ss:$0 sm:$0xff]  ;;  %v8821_v13 = vld [vmem:[%s15595_s9 + $0xe] ss:$0 sm:$0xff] }
0x1981   :  { %v7503_v52 = vpop.f32.mrf.mxu0 }
0x1982   :  { %v7504_v42 = vadd.f32 %v8808_v28, %v7503_v52  ;;  %10286 = vmatmul.mubr.msk.bf16.vlgmr.msra.gmra.mxu1 %vm286_vm3, %v7624_v34  ;;  %v7543_v48 = vadd.f32 %v7533_v54, %v15200_v46 }
0x1983   :  { %v10260_v11 = vpop.f32.mrf.mxu0  ;;  %10289 = vmatprep.mubr.msk.bf16.mxu1 %vm11195_vm0, %v15799_v22 }
0x1984   :  { %v7534_v50 = vmax.f32 %v7504_v42, 0.0 }
0x1985   :  { %v7508_v44 = vpop.f32.mrf.mxu0 }
0x1986   :  { %v7544_v49 = vadd.f32 %v7534_v50, %v15202_v38  ;;  %v7509_v19 = vadd.f32 %v8808_v28, %v7508_v44 }
0x1987   :  { %v10263_v23 = vpop.f32.mrf.mxu0 }
0x1988   :  { %v7625_v51 = vpack.c.bf16 %v7544_v49, %v7543_v48  ;;  %v7535_v21 = vmax.f32 %v7509_v19, 0.0 }
0x1989   :  { %v7511_v35 = vpop.f32.mrf.mxu0 }
0x198a   :  { %v7512_v24 = vadd.f32 %v8808_v28, %v7511_v35  ;;  %10290 = vmatmul.mubr.msk.bf16.gmra.mxu1 %vm286_vm3, %v7625_v51  ;;  %v7545_v3 = vadd.f32 %v7535_v21, %v15217_v61 }
0x198b   :  { %v10264_v17 = vpop.f32.mrf.mxu0  ;;  %10293 = vmatprep.mubr.msk.bf16.mxu1 %vm11195_vm0, %v15799_v22 }
0x198c   :  { %v7536_v7 = vmax.f32 %v7512_v24, 0.0 }
0x198d   :  { %v7516_v32 = vpop.f32.mrf.mxu0 }
0x198e   :  { %v7546_v4 = vadd.f32 %v7536_v7, %v15219_v9  ;;  %v7517_v46 = vadd.f32 %v8808_v28, %v7516_v32 }
0x198f   :  { %v10267_v38 = vpop.f32.mrf.mxu0 }
0x1990   :  { %v7626_v14 = vpack.c.bf16 %v7546_v4, %v7545_v3  ;;  %v7537_v20 = vmax.f32 %v7517_v46, 0.0 }
0x1991   :  { %v7519_v62 = vpop.f32.mrf.mxu0 }
0x1992   :  { %v7520_v36 = vadd.f32 %v8808_v28, %v7519_v62  ;;  %10294 = vmatmul.mubr.msk.bf16.gmra.mxu1 %vm286_vm3, %v7626_v14  ;;  %v7547_v8 = vadd.f32 %v7537_v20, %v15233_v27  ;;  %v236_v14 = vld [vmem:[%s15593_s7 + $0x8] sm:$0xff] }
0x1993   :  { %v10268_v6 = vpop.f32.mrf.mxu0  ;;  %10297 = vmatprep.mubr.msk.bf16.mxu1 %vm11195_vm0, %v15799_v22 }
0x1994   :  { %v7538_v45 = vmax.f32 %v7520_v36, 0.0 }
0x1995   :  { %v7524_v33 = vpop.f32.mrf.mxu0 }
0x1996   :  { %v7548_v18 = vadd.f32 %v7538_v45, %v15235_v30  ;;  %v7525_v61 = vadd.f32 %v8808_v28, %v7524_v33  ;;  %v7617_v30 = vpop.f32.mrf.mxu1 }
0x1997   :  { %v10271_v58 = vpop.f32.mrf.mxu0  ;;  %v15293_v42 = vadd.f32 %v8816_v56, %v7617_v30 }
0x1998   :  { %v7627_v9 = vpack.c.bf16 %v7548_v18, %v7547_v8  ;;  %v7539_v10 = vmax.f32 %v7525_v61, 0.0  ;;  %v10279_v63 = vpop.f32.mrf.mxu1  ;;  %v235_v8 = vld [vmem:[%s15593_s7] sm:$0xff] }
0x1999   :  { %v7527_v5 = vpop.f32.mrf.mxu0  ;;  %v7738_v51 = vmul.f32 0.17677669, %v15293_v42 }
0x199a   :  { %10298 = vmatmul.mubr.msk.bf16.gmra.mxu1 %vm286_vm3, %v7627_v9  ;;  %v7528_v25 = vadd.f32 %v8808_v28, %v7527_v5  ;;  %v7549_v39 = vadd.f32 %v7539_v10, %v15243_v12  ;;  %v7620_v15 = vpop.f32.mrf.mxu1 }
0x199b   :  { %10301 = vmatprep.mubr.msk.bf16.mxu1 %vm11195_vm0, %v15799_v22  ;;  %v10272_v55 = vpop.f32.mrf.mxu0  ;;  %v15295_v11 = vadd.f32 %v8816_v56, %v7620_v15 }
0x199c   :  { %v7540_v16 = vmax.f32 %v7528_v25, 0.0  ;;  %v10280_v1 = vpop.f32.mrf.mxu1 }
0x199d   :  { %v7739_v35 = vmul.f32 0.17677669, %v15295_v11 }
0x199e   :  { %v7550_v27 = vadd.f32 %v7540_v16, %v15245_v57 }
0x199f   :  { %v15307_v32 = vpack.c.bf16 %v7739_v35, %v7738_v51 }
0x19a0   :  { %v7628_v43 = vpack.c.bf16 %v7550_v27, %v7549_v39 }
0x19a2   :  { %10302 = vmatmul.mubr.msk.bf16.gmra.mxu1 %vm286_vm3, %v7628_v43 }
0x19a3   :  { %10329 = vmatprep.mubr.msk.bf16.mxu1 %vm11195_vm0, %v15799_v22 }
0x1a42   :  { %v7699_v59 = vpop.f32.mrf.mxu1 }
0x1a43   :  { %v7700_v36 = vadd.f32 %v8821_v13, %v7699_v59 }
0x1a44   :  { %v10287_v28 = vpop.f32.mrf.mxu1 }
0x1a46   :  { %v7702_v60 = vpop.f32.mrf.mxu1 }
0x1a47   :  { %v7703_v62 = vadd.f32 %v8821_v13, %v7702_v60 }
0x1a48   :  { %v10288_v37 = vpop.f32.mrf.mxu1 }
0x1a49   :  { %v15325_v6 = vpack.c.bf16 %v7703_v62, %v7700_v36 }
0x1a4a   :  { %v7707_v31 = vpop.f32.mrf.mxu1 }
0x1a4b   :  { %v7708_v48 = vadd.f32 %v8821_v13, %v7707_v31  ;;  %v7764_v61 = vsel %vm550_vm5, %v15325_v6, 0  ;;  %v11146_v31 = vld [vmem:[%s15590_s4] ss:$0 sm:$0xff] }
0x1a4c   :  { %v10291_v2 = vpop.f32.mrf.mxu1 }
0x1a4d   :  { %v15828_v2 = vmov -1e+30  }
0x1a4e   :  { %v7710_v40 = vpop.f32.mrf.mxu1 }
0x1a4f   :  { %v7711_v50 = vadd.f32 %v8821_v13, %v7710_v40 }
0x1a50   :  { %v10292_v12 = vpop.f32.mrf.mxu1 }
0x1a51   :  { %v15301_v19 = vpack.c.bf16 %v7711_v50, %v7708_v48 }
0x1a52   :  { %v7715_v26 = vpop.f32.mrf.mxu1 }
0x1a53   :  { %v7716_v46 = vadd.f32 %v8821_v13, %v7715_v26  ;;  %v7767_v33 = vsel %vm550_vm5, %v15301_v19, 0 }
0x1a54   :  { %v10295_v57 = vpop.f32.mrf.mxu1 }
0x1a56   :  { %v7718_v41 = vpop.f32.mrf.mxu1 }
0x1a57   :  { %v7719_v3 = vadd.f32 %v8821_v13, %v7718_v41 }
0x1a58   :  { %v10296_v47 = vpop.f32.mrf.mxu1 }
0x1a59   :  { %v15320_v20 = vpack.c.bf16 %v7719_v3, %v7716_v46 }
0x1a5a   :  { %v7723_v0 = vpop.f32.mrf.mxu1 }
0x1a5b   :  { %v7724_v34 = vadd.f32 %v8821_v13, %v7723_v0  ;;  %v7770_v18 = vsel %vm550_vm5, %v15320_v20, 0 }
0x1a5c   :  { %v10299_v53 = vpop.f32.mrf.mxu1 }
0x1a5e   :  { %v7726_v29 = vpop.f32.mrf.mxu1 }
0x1a5f   :  { %v7727_v52 = vadd.f32 %v8821_v13, %v7726_v29 }
0x1a60   :  { %v10300_v54 = vpop.f32.mrf.mxu1 }
0x1a61   :  { %v15297_v44 = vpack.c.bf16 %v7727_v52, %v7724_v34 }
0x1a62   :  { %v7731_v49 = vpop.f32.mrf.mxu1 }
0x1a63   :  { %7919 = vrot.lane.b32.xlu0 %v15297_v44, %s11197_s22  ;;  %v7732_v24 = vadd.f32 %v8821_v13, %v7731_v49  ;;  %v7773_v45 = vsel %vm550_vm5, %v15297_v44, 0 }
0x1a64   :  { %v10303_v23 = vpop.f32.mrf.mxu1 }
0x1a66   :  { %v7734_v21 = vpop.f32.mrf.mxu1 }
0x1a67   :  { %7915 = vrot.lane.b32.xlu0 %v15301_v19, %s11197_s22  ;;  %v7735_v17 = vadd.f32 %v8821_v13, %v7734_v21 }
0x1a68   :  { %v10304_v7 = vpop.f32.mrf.mxu1 }
0x1a69   :  { %v15309_v4 = vpack.c.bf16 %v7735_v17, %v7732_v24 }
0x1a6b   :  { %7911 = vrot.lane.b32.xlu0 %v15307_v32, %s11197_s22  ;;  %7921 = vrot.lane.b32.xlu1 %v15309_v4, %s11197_s22  ;;  %v7776_v38 = vsel %vm550_vm5, %v15309_v4, 0 }
0x1a6c   :  { %10306 = vmatpush3.bf16.xpose.msra.mxu0 %v7776_v38 }
0x1a6d   :  { %10307 = vmatprep.subr.bf16.mxu0 %v15799_v22 }
0x1a6f   :  { %7747 = vperm.xlu0 %10492, %v236_v14   ;;  %7917 = vrot.lane.b32.xlu1 %v15320_v20, %s11197_s22 }
0x1a73   :  { %7847 = vrot.lane.b32.xlu0 %v15301_v19, %s11199_s13  ;;  %7913 = vrot.lane.b32.xlu1 %v15325_v6, %s11197_s22 }
0x1a74   :  { %10308 = vmatpush3.bf16.xpose.msra.mxu0 %v7773_v45 }
0x1a75   :  { %10309 = vmatprep.subr.bf16.mxu0 %v15799_v22 }
0x1a77   :  { %7853 = vrot.lane.b32.xlu0 %v15309_v4, %s11199_s13  ;;  %7742 = vperm.xlu1 %10493, %v235_v8  }
0x1a7b   :  { %8011 = vrot.lane.b32.xlu0 %v15309_v4, %s11200_s18  ;;  %7851 = vrot.lane.b32.xlu1 %v15297_v44, %s11199_s13 }
0x1a7c   :  { %10310 = vmatpush3.bf16.xpose.msra.mxu0 %v7770_v18 }
0x1a7d   :  { %10311 = vmatprep.subr.bf16.mxu0 %v15799_v22 }
0x1a7f   :  { %7849 = vrot.lane.b32.xlu1 %v15320_v20, %s11199_s13 }
0x1a83   :  { %7845 = vrot.lane.b32.xlu1 %v15325_v6, %s11199_s13 }
0x1a84   :  { %10312 = vmatpush3.bf16.xpose.msra.mxu0 %v7767_v33 }
0x1a85   :  { %10313 = vmatprep.subr.bf16.mxu0 %v15799_v22 }
0x1a87   :  { %8009 = vrot.lane.b32.xlu1 %v15297_v44, %s11200_s18 }
0x1a8c   :  { %10314 = vmatpush3.bf16.xpose.msra.mxu0 %v7764_v61 }
0x1a8d   :  { %10333 = vmatprep.subr.bf16.mxu0 %v15799_v22 }
0x1a93   :  { %10316 = vmatmul.mubr.msk.bf16.vlgmr.msra.gmra.mxu0 %vm550_vm5, %v15307_v32 }
0x1a94   :  { %10343 = vmatprep.mubr.msk.bf16.mxu0 %vm11195_vm0, %v15799_v22 }
0x1ad5   :  { %v7920_v9 = vpop.permute.xlu0 %7919 }
0x1ad6   :  { %v7936_v55 = vsel %vm550_vm5, %v7920_v9, 0 }
0x1ad9   :  { %v7916_v10 = vpop.permute.xlu0 %7915 }
0x1ada   :  { %v7930_v1 = vsel %vm550_vm5, %v7916_v10, 0 }
0x1add   :  { %v7922_v58 = vpop.permute.xlu1 %7921  ;;  %v7912_v25 = vpop.permute.xlu0 %7911 }
0x1ade   :  { %v7939_v5 = vsel %vm550_vm5, %v7922_v58, 0 }
0x1adf   :  { %10334 = vmatpush3.bf16.xpose.msra.mxu0 %v7939_v5 }
0x1ae0   :  { %10335 = vmatprep.subr.bf16.mxu0 %v15799_v22 }
0x1ae1   :  { %v7918_v16 = vpop.permute.xlu1 %7917 }
0x1ae2   :  { %v7933_v43 = vsel %vm550_vm5, %v7918_v16, 0 }
0x1ae5   :  { %v7914_v30 = vpop.permute.xlu1 %7913 }
0x1ae6   :  { %v7927_v60 = vsel %vm550_vm5, %v7914_v30, 0 }
0x1ae7   :  { %10336 = vmatpush3.bf16.xpose.msra.mxu0 %v7936_v55 }
0x1ae8   :  { %10337 = vmatprep.subr.bf16.mxu0 %v15799_v22 }
0x1aea   :  { %v7748_v39 = vpop.permute.xlu0 %7747 }
0x1aeb   :  { %vm7751_vm11 = vcmp.eq.f32.partialorder %v7748_v39, %v11146_v31 }
0x1aec   :  { %v15389_v47 = vsel %vm7751_vm11, 0.0, %v15828_v2 }
0x1aee   :  { %v7848_v27 = vpop.permute.xlu0 %7847 }
0x1aef   :  { %10338 = vmatpush3.bf16.xpose.msra.mxu0 %v7933_v43 }
0x1af0   :  { %10339 = vmatprep.subr.bf16.mxu0 %v15799_v22 }
0x1af2   :  { %v7854_v63 = vpop.permute.xlu0 %7853  ;;  %v7743_v15 = vpop.permute.xlu1 %7742 }
0x1af3   :  { %10320 = vmatpush3.bf16.msra.mxu1 %v7854_v63  ;;  %vm7750_vm10 = vcmp.eq.f32.partialorder %v7743_v15, %v11146_v31 }
0x1af4   :  { %10321 = vmatprep.subr.bf16.mxu1 %v15799_v22  ;;  %v15384_v40 = vsel %vm7750_vm10, 0.0, %v15828_v2 }
0x1af6   :  { %v7852_v59 = vpop.permute.xlu1 %7851  ;;  %v8012_v35 = vpop.permute.xlu0 %8011 }
0x1af7   :  { %10322 = vmatpush3.bf16.msra.mxu1 %v7852_v59  ;;  %10340 = vmatpush3.bf16.xpose.msra.mxu0 %v7930_v1 }
0x1af8   :  { %10323 = vmatprep.subr.bf16.mxu1 %v15799_v22  ;;  %10341 = vmatprep.subr.bf16.mxu0 %v15799_v22 }
0x1afa   :  { %v7850_v28 = vpop.permute.xlu1 %7849 }
0x1afb   :  { %10324 = vmatpush3.bf16.msra.mxu1 %v7850_v28 }
0x1afc   :  { %10325 = vmatprep.subr.bf16.mxu1 %v15799_v22 }
0x1afe   :  { %v7846_v37 = vpop.permute.xlu1 %7845 }
0x1aff   :  { %10326 = vmatpush3.bf16.msra.mxu1 %v7848_v27  ;;  %10342 = vmatpush3.bf16.xpose.msra.mxu0 %v7927_v60 }
0x1b00   :  { %10327 = vmatprep.subr.bf16.mxu1 %v15799_v22  ;;  %10375 = vmatprep.subr.bf16.mxu0 %v15799_v22 }
0x1b02   :  { %v8010_v51 = vpop.permute.xlu1 %8009 }
0x1b03   :  { %10328 = vmatpush3.bf16.msra.mxu1 %v7846_v37 }
0x1b04   :  { %10347 = vmatprep.subr.bf16.mxu1 %v15799_v22 }
0x1b06   :  { %10344 = vmatmul.mubr.msk.bf16.vlgmr.msra.gmra.mxu0 %vm550_vm5, %v7912_v25 }
0x1b07   :  { %10385 = vmatprep.mubr.msk.bf16.mxu0 %vm11195_vm0, %v15799_v22 }
0x1b53   :  { %v7812_v12 = vpop.f32.mrf.mxu0 }
0x1b54   :  { %v7813_v26 = vadd.f32 %v7812_v12, %v15384_v40 }
0x1b55   :  { %v10317_v57 = vpop.f32.mrf.mxu0 }
0x1b56   :  { %v7819_v41 = vsel %vm643_vm9, %v7813_v26, -inf }
0x1b57   :  { %7820 = vmax.xlane.f32.xlu1 %v7819_v41  ;;  %v7815_v0 = vpop.f32.mrf.mxu0 }
0x1b58   :  { %v7816_v53 = vadd.f32 %v7815_v0, %v15389_v47 }
0x1b59   :  { %v10318_v56 = vpop.f32.mrf.mxu0 }
0x1b5a   :  { %v7822_v13 = vsel %vm643_vm9, %v7816_v53, -inf }
0x1b5b   :  { %7823 = vmax.xlane.f32.xlu0 %v7822_v13 }
0x1b68   :  { %8005 = vrot.lane.b32.xlu1 %v15301_v19, %s11200_s18 }
0x1b71   :  { %8007 = vrot.lane.b32.xlu0 %v15320_v20, %s11200_s18 }
0x1bc6   :  { %v7975_v29 = vpop.f32.mrf.mxu0 }
0x1bc7   :  { %v7976_v34 = vadd.f32 %v7975_v29, %v15384_v40 }
0x1bc8   :  { %v10345_v52 = vpop.f32.mrf.mxu0 }
0x1bc9   :  { %v7982_v54 = vsel %vm643_vm9, %v7976_v34, -inf }
0x1bca   :  { %7983 = vmax.xlane.f32.xlu0 %v7982_v54  ;;  %v7978_v50 = vpop.f32.mrf.mxu0 }
0x1bcb   :  { %v7979_v48 = vadd.f32 %v7978_v50, %v15389_v47 }
0x1bcc   :  { %v10346_v49 = vpop.f32.mrf.mxu0 }
0x1bcd   :  { %v7985_v23 = vsel %vm643_vm9, %v7979_v48, -inf }
0x1bce   :  { %7986 = vmax.xlane.f32.xlu1 %v7985_v23 }
0x1bdf   :  { %8086 = vrot.lane.b32.xlu1 %v15309_v4, %s11198_s23 }
0x1be0   :  { %v7821_v21 = vpop.xlane.xlu1 %7820  ;;  %8003 = vrot.lane.b32.xlu0 %v15325_v6, %s11200_s18 }
0x1be1   :  { %v7825_v24 = vsub.f32 %v7813_v26, %v7821_v21 }
0x1be3   :  { %8082 = vrot.lane.b32.xlu1 %v15320_v20, %s11198_s23  ;;  %v7827_v17 = vmul.f32 1.442695, %v7825_v24 }
0x1be4   :  { %v7824_v7 = vpop.xlane.xlu0 %7823  ;;  %8084 = vrot.lane.b32.xlu0 %v15297_v44, %s11198_s23  ;;  %v8006_v45 = vpop.permute.xlu1 %8005 }
0x1be5   :  { %v7826_v3 = vsub.f32 %v7816_v53, %v7824_v7  ;;  %11114 = vpow2.f32 %v7827_v17 }
0x1be7   :  { %v7829_v46 = vmul.f32 1.442695, %v7826_v3  ;;  %8078 = vrot.lane.b32.xlu1 %v15325_v6, %s11198_s23 }
0x1be8   :  { %8080 = vrot.lane.b32.xlu0 %v15301_v19, %s11198_s23  ;;  %v8008_v36 = vpop.permute.xlu0 %8007 }
0x1be9   :  { %11116 = vpow2.f32 %v7829_v46 }
0x1beb   :  { %8174 = vrot.lane.b32.xlu1 %v15297_v44, %s11201_s21 }
0x1bec   :  { %8076 = vrot.lane.b32.xlu0 %v15307_v32, %s11198_s23 }
0x1bef   :  { %8172 = vrot.lane.b32.xlu1 %v15320_v20, %s11201_s21 }
0x1bf0   :  { %8176 = vrot.lane.b32.xlu0 %v15309_v4, %s11201_s21 }
0x1bf2   :  { %v15423_v38 = vpop.eup %11114 }
0x1bf4   :  { %8170 = vrot.lane.b32.xlu0 %v15301_v19, %s11201_s21 }
0x1bf6   :  { %v15425_v14 = vpop.eup %11116 }
0x1bf7   :  { %v7839_v62 = vpack.c.bf16 %v15425_v14, %v15423_v38 }
0x1bf9   :  { %10330 = vmatmul.mubr.msk.bf16.vlgmr.msra.gmra.mxu1 %vm643_vm9, %v7839_v62 }
0x1bfa   :  { %10348 = vmatpush3.bf16.msra.mxu1 %v8012_v35  ;;  %10357 = vmatprep.mubr.msk.bf16.mxu1 %vm11195_vm0, %v15799_v22 }
0x1bfb   :  { %10349 = vmatprep.subr.bf16.mxu1 %v15799_v22 }
0x1bfe   :  { %10350 = vmatpush3.bf16.msra.mxu1 %v8010_v51 }
0x1bff   :  { %10351 = vmatprep.subr.bf16.mxu1 %v15799_v22 }
0x1c02   :  { %10352 = vmatpush3.bf16.msra.mxu1 %v8008_v36 }
0x1c03   :  { %10353 = vmatprep.subr.bf16.mxu1 %v15799_v22 }
0x1c06   :  { %10354 = vmatpush3.bf16.msra.mxu1 %v8006_v45 }
0x1c07   :  { %10355 = vmatprep.subr.bf16.mxu1 %v15799_v22 }
0x1c53   :  { %v7984_v8 = vpop.xlane.xlu0 %7983 }
0x1c54   :  { %v7988_v18 = vsub.f32 %v7976_v34, %v7984_v8 }
0x1c56   :  { %v7990_v33 = vmul.f32 1.442695, %v7988_v18 }
0x1c57   :  { %v8004_v61 = vpop.permute.xlu0 %8003  ;;  %v7987_v9 = vpop.xlane.xlu1 %7986 }
0x1c58   :  { %v7989_v58 = vsub.f32 %v7979_v48, %v7987_v9  ;;  %10356 = vmatpush3.bf16.msra.mxu1 %v8004_v61  ;;  %11118 = vpow2.f32 %v7990_v33 }
0x1c59   :  { %10361 = vmatprep.subr.bf16.mxu1 %v15799_v22 }
0x1c5a   :  { %v7992_v5 = vmul.f32 1.442695, %v7989_v58 }
0x1c5b   :  { %v8085_v10 = vpop.permute.xlu0 %8084  ;;  %v8087_v25 = vpop.permute.xlu1 %8086 }
0x1c5c   :  { %11120 = vpow2.f32 %v7992_v5  ;;  %v8104_v59 = vsel %vm550_vm5, %v8087_v25, 0  ;;  %v8101_v37 = vsel %vm550_vm5, %v8085_v10, 0 }
0x1c5f   :  { %v8081_v55 = vpop.permute.xlu0 %8080  ;;  %v8083_v16 = vpop.permute.xlu1 %8082 }
0x1c60   :  { %v8098_v31 = vsel %vm550_vm5, %v8083_v16, 0  ;;  %v8095_v2 = vsel %vm550_vm5, %v8081_v55, 0 }
0x1c63   :  { %v8077_v39 = vpop.permute.xlu0 %8076  ;;  %v8079_v27 = vpop.permute.xlu1 %8078 }
0x1c64   :  { %v8092_v12 = vsel %vm550_vm5, %v8079_v27, 0 }
0x1c65   :  { %v15437_v30 = vpop.eup %11118 }
0x1c67   :  { %v8177_v43 = vpop.permute.xlu0 %8176  ;;  %v8175_v15 = vpop.permute.xlu1 %8174 }
0x1c68   :  { %10376 = vmatpush3.bf16.msra.mxu0 %v8177_v43 }
0x1c69   :  { %v15439_v63 = vpop.eup %11120  ;;  %10377 = vmatprep.subr.bf16.mxu0 %v15799_v22 }
0x1c6a   :  { %v8002_v1 = vpack.c.bf16 %v15439_v63, %v15437_v30 }
0x1c6b   :  { %v8173_v28 = vpop.permute.xlu1 %8172  ;;  %v8171_v60 = vpop.permute.xlu0 %8170 }
0x1c6c   :  { %10358 = vmatmul.mubr.msk.bf16.vlgmr.msra.gmra.mxu1 %vm643_vm9, %v8002_v1  ;;  %10378 = vmatpush3.bf16.msra.mxu0 %v8175_v15 }
0x1c6d   :  { %10362 = vmatpush3.bf16.xpose.msra.mxu1 %v8104_v59  ;;  %10379 = vmatprep.subr.bf16.mxu0 %v15799_v22 }
0x1c6e   :  { %10363 = vmatprep.subr.bf16.mxu1 %v15799_v22  ;;  %10371 = vmatprep.mubr.msk.bf16.mxu1 %vm11195_vm0, %v15799_v22 }
0x1c70   :  { %10380 = vmatpush3.bf16.msra.mxu0 %v8173_v28 }
0x1c71   :  { %10381 = vmatprep.subr.bf16.mxu0 %v15799_v22 }
0x1c74   :  { %10382 = vmatpush3.bf16.msra.mxu0 %v8171_v60 }
0x1c75   :  { %10364 = vmatpush3.bf16.xpose.msra.mxu1 %v8101_v37  ;;  %10383 = vmatprep.subr.bf16.mxu0 %v15799_v22 }
0x1c76   :  { %10365 = vmatprep.subr.bf16.mxu1 %v15799_v22 }
0x1c7d   :  { %10366 = vmatpush3.bf16.xpose.msra.mxu1 %v8098_v31 }
0x1c7e   :  { %10367 = vmatprep.subr.bf16.mxu1 %v15799_v22 }
0x1c85   :  { %10368 = vmatpush3.bf16.xpose.msra.mxu1 %v8095_v2 }
0x1c86   :  { %10369 = vmatprep.subr.bf16.mxu1 %v15799_v22 }
0x1c8d   :  { %10370 = vmatpush3.bf16.xpose.msra.mxu1 %v8092_v12 }
0x1c8e   :  { %10403 = vmatprep.subr.bf16.mxu1 %v15799_v22 }
0x1c94   :  { %10372 = vmatmul.mubr.msk.bf16.vlgmr.msra.gmra.mxu1 %vm550_vm5, %v8077_v39 }
0x1c95   :  { %10413 = vmatprep.mubr.msk.bf16.mxu1 %vm11195_vm0, %v15799_v22 }
0x1cb9   :  { %v15463_v26 = vpop.f32.mrf.mxu1 }
0x1cbb   :  { %v10331_v57 = vpop.f32.mrf.mxu1 }
0x1cbc   :  { %v7994_v57 = vsel %vm643_vm9, %v15437_v30, 0.0 }
0x1cbd   :  { %v15465_v41 = vpop.f32.mrf.mxu1 }
0x1cbf   :  { %v10332_v0 = vpop.f32.mrf.mxu1 }
0x1d2c   :  { %v15467_v53 = vpop.f32.mrf.mxu1 }
0x1d2e   :  { %v10359_v56 = vpop.f32.mrf.mxu1 }
0x1d30   :  { %v15469_v13 = vpop.f32.mrf.mxu1 }
0x1d32   :  { %v10360_v29 = vpop.f32.mrf.mxu1 }
0x1d54   :  { %v8140_v34 = vpop.f32.mrf.mxu1 }
0x1d55   :  { %v8141_v52 = vadd.f32 %v8140_v34, %v15384_v40 }
0x1d56   :  { %v10373_v54 = vpop.f32.mrf.mxu1 }
0x1d57   :  { %v8147_v50 = vsel %vm643_vm9, %v8141_v52, -inf }
0x1d58   :  { %8148 = vmax.xlane.f32.xlu1 %v8147_v50  ;;  %v8143_v48 = vpop.f32.mrf.mxu1 }
0x1d59   :  { %v8144_v49 = vadd.f32 %v8143_v48, %v15389_v47 }
0x1d5a   :  { %v10374_v23 = vpop.f32.mrf.mxu1 }
0x1d5b   :  { %v8150_v51 = vsel %vm643_vm9, %v8144_v49, -inf }
0x1d5c   :  { %8151 = vmax.xlane.f32.xlu0 %v8150_v51  ;;  %v7834_v51 = vsel %vm643_vm9, %v15425_v14, 0.0 }
0x1d69   :  { %8168 = vrot.lane.b32.xlu1 %v15325_v6, %s11201_s21  ;;  %s11208_s21 = smov [#allocation6]  }
0x1d6d   :  { %8249 = vrot.lane.b32.xlu1 %v15297_v44, %s11203_s8 }
0x1d71   :  { %8245 = vrot.lane.b32.xlu1 %v15301_v19, %s11203_s8 }
0x1d72   :  { %8251 = vrot.lane.b32.xlu0 %v15309_v4, %s11203_s8 }
0x1d75   :  { %8241 = vrot.lane.b32.xlu1 %v15307_v32, %s11203_s8 }
0x1d76   :  { %8247 = vrot.lane.b32.xlu0 %v15320_v20, %s11203_s8 }
0x1d79   :  { %8339 = vrot.lane.b32.xlu1 %v15297_v44, %s11204_s24 }
0x1d7a   :  { %8243 = vrot.lane.b32.xlu0 %v15325_v6, %s11203_s8  ;;  %s8551_s8 = sshll.u32 %s11208_s21, 4  ;;  %s8552_s8 = int_to_ptr.vmem [resolvable:$true] %s8551_s8 }
0x1d7b   :  { %p11172_p6 = scmp.lt.s32.totalorder %s8552_s8, %s8552_s8 }
0x1d7e   :  { %8341 = vrot.lane.b32.xlu0 %v15309_v4, %s11204_s24 }
0x1d82   :  { %8337 = vrot.lane.b32.xlu0 %v15320_v20, %s11204_s24 }
0x1de1   :  { %v8149_v35 = vpop.xlane.xlu1 %8148 }
0x1de2   :  { %v8153_v21 = vsub.f32 %v8141_v52, %v8149_v35 }
0x1de4   :  { %v8155_v24 = vmul.f32 1.442695, %v8153_v21 }
0x1de5   :  { %v8152_v17 = vpop.xlane.xlu0 %8151  ;;  %v8169_v32 = vpop.permute.xlu1 %8168 }
0x1de6   :  { %v8154_v7 = vsub.f32 %v8144_v49, %v8152_v17  ;;  %10384 = vmatpush3.bf16.msra.mxu0 %v8169_v32  ;;  %11122 = vpow2.f32 %v8155_v24  ;;  %v7831_v49 = vsel %vm643_vm9, %v15423_v38, 0.0 }
0x1de7   :  { %10389 = vmatprep.subr.bf16.mxu0 %v15799_v22 }
0x1de8   :  { %v8157_v3 = vmul.f32 1.442695, %v8154_v7 }
0x1de9   :  { %v8252_v44 = vpop.permute.xlu0 %8251  ;;  %v8250_v46 = vpop.permute.xlu1 %8249 }
0x1dea   :  { %11124 = vpow2.f32 %v8157_v3  ;;  %v8269_v9 = vsel %vm550_vm5, %v8252_v44, 0  ;;  %v8266_v5 = vsel %vm550_vm5, %v8250_v46, 0 }
0x1ded   :  { %v8248_v62 = vpop.permute.xlu0 %8247  ;;  %v8246_v36 = vpop.permute.xlu1 %8245 }
0x1dee   :  { %v8263_v10 = vsel %vm550_vm5, %v8248_v62, 0  ;;  %v8260_v25 = vsel %vm550_vm5, %v8246_v36, 0 }
0x1df1   :  { %v8244_v4 = vpop.permute.xlu0 %8243  ;;  %v8242_v45 = vpop.permute.xlu1 %8241 }
0x1df2   :  { %v8257_v55 = vsel %vm550_vm5, %v8244_v4, 0 }
0x1df3   :  { %v11123_v20 = vpop.eup %11122 }
0x1df4   :  { %v8159_v12 = vsel %vm643_vm9, %v11123_v20, 0.0 }
0x1df5   :  { %v8342_v8 = vpop.permute.xlu0 %8341  ;;  %v8340_v61 = vpop.permute.xlu1 %8339 }
0x1df6   :  { %10404 = vmatpush3.bf16.msra.mxu1 %v8342_v8 }
0x1df7   :  { %v11125_v18 = vpop.eup %11124  ;;  %10405 = vmatprep.subr.bf16.mxu1 %v15799_v22 }
0x1df8   :  { %v8167_v33 = vpack.c.bf16 %v11125_v18, %v11123_v20 }
0x1df9   :  { %v8338_v58 = vpop.permute.xlu0 %8337 }
0x1dfa   :  { %10386 = vmatmul.mubr.msk.bf16.vlgmr.msra.gmra.mxu0 %vm643_vm9, %v8167_v33  ;;  %10406 = vmatpush3.bf16.msra.mxu1 %v8340_v61 }
0x1dfb   :  { %10390 = vmatpush3.bf16.xpose.msra.mxu0 %v8269_v9  ;;  %10407 = vmatprep.subr.bf16.mxu1 %v15799_v22 }
0x1dfc   :  { %10391 = vmatprep.subr.bf16.mxu0 %v15799_v22  ;;  %10399 = vmatprep.mubr.msk.bf16.mxu0 %vm11195_vm0, %v15799_v22 }
0x1dfe   :  { %10408 = vmatpush3.bf16.msra.mxu1 %v8338_v58 }
0x1dff   :  { %10409 = vmatprep.subr.bf16.mxu1 %v15799_v22 }
0x1e03   :  { %10392 = vmatpush3.bf16.xpose.msra.mxu0 %v8266_v5 }
0x1e04   :  { %10393 = vmatprep.subr.bf16.mxu0 %v15799_v22 }
0x1e0b   :  { %10394 = vmatpush3.bf16.xpose.msra.mxu0 %v8263_v10 }
0x1e0c   :  { %10395 = vmatprep.subr.bf16.mxu0 %v15799_v22 }
0x1e13   :  { %10396 = vmatpush3.bf16.xpose.msra.mxu0 %v8260_v25 }
0x1e14   :  { %10397 = vmatprep.subr.bf16.mxu0 %v15799_v22 }
0x1e1b   :  { %10398 = vmatpush3.bf16.xpose.msra.mxu0 %v8257_v55 }
0x1e1c   :  { %10425 = vmatprep.subr.bf16.mxu0 %v15799_v22 }
0x1e22   :  { %10400 = vmatmul.mubr.msk.bf16.vlgmr.msra.gmra.mxu0 %vm550_vm5, %v8242_v45 }
0x1e23   :  { %10429 = vmatprep.mubr.msk.bf16.mxu0 %vm11195_vm0, %v15799_v22 }
0x1eba   :  { %v15515_v16 = vpop.f32.mrf.mxu0 }
0x1ebc   :  { %v10387_v39 = vpop.f32.mrf.mxu0 }
0x1ebd   :  { %v10535_v39 = vld [vmem:[#allocation3 + $0x118] sm:$0xff]  }
0x1ebe   :  { %v15517_v27 = vpop.f32.mrf.mxu0 }
0x1ec0   :  { %v10388_v43 = vpop.f32.mrf.mxu0 }
0x1ee2   :  { %v8305_v15 = vpop.f32.mrf.mxu0 }
0x1ee3   :  { %v8306_v1 = vadd.f32 %v8305_v15, %v15384_v40  ;;  %v7997_v40 = vsel %vm643_vm9, %v15439_v63, 0.0 }
0x1ee4   :  { %v10401_v59 = vpop.f32.mrf.mxu0 }
0x1ee5   :  { %v8312_v28 = vsel %vm643_vm9, %v8306_v1, -inf }
0x1ee6   :  { %8313 = vmax.xlane.f32.xlu0 %v8312_v28  ;;  %v8308_v60 = vpop.f32.mrf.mxu0 }
0x1ee7   :  { %v8309_v37 = vadd.f32 %v8308_v60, %v15389_v47  ;;  %v8162_v47 = vsel %vm643_vm9, %v11125_v18, 0.0 }
0x1ee8   :  { %v10402_v31 = vpop.f32.mrf.mxu0 }
0x1ee9   :  { %v8315_v2 = vsel %vm643_vm9, %v8309_v37, -inf }
0x1eea   :  { %8316 = vmax.xlane.f32.xlu1 %v8315_v2 }
0x1efb   :  { %8335 = vrot.lane.b32.xlu1 %v15301_v19, %s11204_s24 }
0x1efc   :  { %8333 = vrot.lane.b32.xlu0 %v15325_v6, %s11204_s24  ;;  %s11167_s24 = scalar_lea.vmem %s8552_s8, 256 }
0x1efd   :  { %p11168_p5 = scmp.ne.s32.totalorder %s8552_s8, %s11167_s24  ;;  %p11173_p7 = scmp.lt.s32.totalorder %s11167_s24, %s11167_s24 }
0x1eff   :  { %p11174_p8 = por %p11173_p7, %p11172_p6 }
0x1f01   :  { %p11175_p9 = pnand %p11174_p8, %p11168_p5 }
0x1f1b   :  { %7998 = vadd.xlane.f32.xlu0 %v7997_v40 }
0x1f1f   :  { %8160 = vadd.xlane.f32.xlu0 %v8159_v12  ;;  %7995 = vadd.xlane.f32.xlu1 %v7994_v57 }
0x1f23   :  { %8163 = vadd.xlane.f32.xlu1 %v8162_v47 }
0x1f6f   :  { %v8314_v0 = vpop.xlane.xlu0 %8313 }
0x1f70   :  { %v8318_v56 = vsub.f32 %v8306_v1, %v8314_v0 }
0x1f72   :  { %v8320_v19 = vmul.f32 1.442695, %v8318_v56  ;;  %v10536_v56 = vld [vmem:[#allocation3 + $0x130] sm:$0xff]  }
0x1f73   :  { %v8317_v29 = vpop.xlane.xlu1 %8316  ;;  %v8334_v63 = vpop.permute.xlu0 %8333  ;;  %10426 = vmatpush3.bf16.msra.mxu0 %v10536_v56 }
0x1f74   :  { %11126 = vpow2.f32 %v8320_v19  ;;  %v8319_v6 = vsub.f32 %v8309_v37, %v8317_v29  ;;  %10427 = vmatprep.subr.bf16.mxu0 %v15799_v22  ;;  %v10537_v19 = vld [vmem:[#allocation3 + $0x128] sm:$0xff]  }
0x1f76   :  { %v8322_v34 = vmul.f32 1.442695, %v8319_v6 }
0x1f77   :  { %v8336_v52 = vpop.permute.xlu1 %8335  ;;  %10428 = vmatpush3.bf16.msra.mxu0 %v10537_v19 }
0x1f78   :  { %11128 = vpow2.f32 %v8322_v34  ;;  %10410 = vmatpush3.bf16.msra.mxu1 %v8336_v52 }
0x1f79   :  { %10411 = vmatprep.subr.bf16.mxu1 %v15799_v22 }
0x1f7c   :  { %10412 = vmatpush3.bf16.msra.mxu1 %v8334_v63 }
0x1f7d   :  { %10417 = vmatprep.subr.bf16.mxu1 %v15799_v22 }
0x1f81   :  { %v11127_v30 = vpop.eup %11126 }
0x1f82   :  { %v8324_v54 = vsel %vm643_vm9, %v11127_v30, 0.0 }
0x1f83   :  { %8325 = vadd.xlane.f32.xlu0 %v8324_v54 }
0x1f85   :  { %v11129_v50 = vpop.eup %11128 }
0x1f86   :  { %v8332_v48 = vpack.c.bf16 %v11129_v50, %v11127_v30  ;;  %v8327_v23 = vsel %vm643_vm9, %v11129_v50, 0.0 }
0x1f87   :  { %7832 = vadd.xlane.f32.xlu0 %v7831_v49  ;;  %8328 = vadd.xlane.f32.xlu1 %v8327_v23 }
0x1f88   :  { %10414 = vmatmul.mubr.msk.bf16.vlgmr.msra.gmra.mxu1 %vm643_vm9, %v8332_v48 }
0x1f89   :  { %10421 = vmatprep.mubr.msk.bf16.mxu1 %vm11195_vm0, %v15799_v22 }
0x1f8b   :  { %7835 = vadd.xlane.f32.xlu1 %v7834_v51 }
0x1fa4   :  { %v7999_v35 = vpop.xlane.xlu0 %7998 }
0x1fa5   :  { %11130 = vrcp.f32 %v7999_v35 }
0x1fa8   :  { %v8161_v21 = vpop.xlane.xlu0 %8160  ;;  %v7996_v24 = vpop.xlane.xlu1 %7995 }
0x1fa9   :  { %11132 = vrcp.f32 %v8161_v21 }
0x1faa   :  { %11134 = vrcp.f32 %v7996_v24 }
0x1fac   :  { %v8164_v38 = vpop.xlane.xlu1 %8163 }
0x1fad   :  { %11136 = vrcp.f32 %v8164_v38 }
0x1fb2   :  { %v11131_v17 = vpop.eup %11130 }
0x1fb3   :  { %v8063_v32 = vmul.f32 %v11131_v17, %v15469_v13 }
0x1fb5   :  { %8068 = vrot.lane.b32.xlu1 %v8063_v32, %s11205_s25 }
0x1fb6   :  { %v11133_v7 = vpop.eup %11132 }
0x1fb7   :  { %v11135_v3 = vpop.eup %11134  ;;  %v8227_v44 = vmul.f32 %v11133_v7, %v15515_v16  ;;  %v10534_v16 = vld [vmem:[#allocation3 + $0x120] sm:$0xff]  }
0x1fb8   :  { %v8062_v14 = vmul.f32 %v11135_v3, %v15467_v53  ;;  %10418 = vmatpush3.bf16.msra.mxu1 %v10534_v16 }
0x1fb9   :  { %8231 = vrot.lane.b32.xlu1 %v8227_v44, %s11206_s26  ;;  %10419 = vmatprep.subr.bf16.mxu1 %v15799_v22  ;;  %v8841_v22 = vld [vmem:[%s15595_s9 + $0x10] ss:$0 sm:$0xff] }
0x1fba   :  { %v11137_v46 = vpop.eup %11136  ;;  %8066 = vrot.lane.b32.xlu0 %v8062_v14, %s11205_s25 }
0x1fbb   :  { %v8228_v62 = vmul.f32 %v11137_v46, %v15517_v27 }
0x1fbc   :  { %10420 = vmatpush3.bf16.msra.mxu1 %v10535_v39 }
0x1fbe   :  { %8233 = vrot.lane.b32.xlu0 %v8228_v62, %s11206_s26 }
0x200c   :  { %v8326_v36 = vpop.xlane.xlu0 %8325 }
0x2010   :  { %v7833_v4 = vpop.xlane.xlu0 %7832  ;;  %v8329_v13 = vpop.xlane.xlu1 %8328 }
0x2011   :  { %11138 = vrcp.f32 %v7833_v4 }
0x2014   :  { %v7836_v45 = vpop.xlane.xlu1 %7835 }
0x2015   :  { %11140 = vrcp.f32 %v7836_v45 }
0x2016   :  { %11142 = vrcp.f32 %v8326_v36 }
0x2017   :  { %11144 = vrcp.f32 %v8329_v13 }
0x201e   :  { %v11139_v8 = vpop.eup %11138 }
0x201f   :  { %v7904_v20 = vmul.f32 %v11139_v8, %v15463_v26 }
0x2021   :  { %v7906_v53 = vadd.f32 %v7904_v20, %v15293_v42 }
0x2022   :  { %v11141_v18 = vpop.eup %11140 }
0x2023   :  { %7908 = vst.msk [vmem:[#allocation2] sm:$0xff] %vm550_vm5, %v7906_v53  ;;  %v7905_v33 = vmul.f32 %v11141_v18, %v15465_v41  ;;  %v11143_v27 = vpop.eup %11142 }
0x2024   :  { %v11145_v59 = vpop.eup %11144 }
0x2025   :  { %v7907_v61 = vadd.f32 %v7905_v33, %v15295_v11 }
0x2027   :  { %7909 = vst.msk [vmem:[#allocation2 + $0x8] sm:$0xff] %vm550_vm5, %v7907_v61  ;;  %v8069_v9 = vpop.permute.xlu1 %8068 }
0x2028   :  { %v8073_v58 = vadd.f32 %v8069_v9, %v15295_v11 }
0x202a   :  { %8075 = vst.msk [vmem:[#allocation2 + $0x8] sm:$0xff] %vm1187_vm15, %v8073_v58 }
0x202b   :  { %v8232_v5 = vpop.permute.xlu1 %8231 }
0x202c   :  { %v8067_v10 = vpop.permute.xlu0 %8066  ;;  %v8237_v26 = vadd.f32 %v8232_v5, %v15293_v42 }
0x202d   :  { %v8072_v25 = vadd.f32 %v8067_v10, %v15293_v42 }
0x202f   :  { %8074 = vst.msk [vmem:[#allocation2] sm:$0xff] %vm1187_vm15, %v8072_v25 }
0x2030   :  { %8239 = vst.msk [vmem:[#allocation2] sm:$0xff] %vm1530_vm1, %v8237_v26  ;;  %v8234_v41 = vpop.permute.xlu0 %8233 }
0x2031   :  { %v8238_v55 = vadd.f32 %v8234_v41, %v15295_v11 }
0x2033   :  { %8240 = vst.msk [vmem:[#allocation2 + $0x8] sm:$0xff] %vm1530_vm1, %v8238_v55 }
0x2048   :  { %v8385_v43 = vpop.f32.mrf.mxu1 }
0x2049   :  { %v8392_v15 = vmul.f32 %v11143_v27, %v8385_v43 }
0x204a   :  { %v10415_v1 = vpop.f32.mrf.mxu1 }
0x204b   :  { %8396 = vrot.lane.b32.xlu1 %v8392_v15, %s11207_s27 }
0x204c   :  { %v8388_v28 = vpop.f32.mrf.mxu1 }
0x204d   :  { %v8393_v60 = vmul.f32 %v11145_v59, %v8388_v28 }
0x204e   :  { %v10416_v37 = vpop.f32.mrf.mxu1 }
0x204f   :  { %8398 = vrot.lane.b32.xlu0 %v8393_v60, %s11207_s27 }
0x20bd   :  { %v8397_v31 = vpop.permute.xlu1 %8396 }
0x20be   :  { %v8402_v2 = vadd.f32 %v8397_v31, %v15293_v42  ;;  %v8837_v42 = vld [vmem:[%s15595_s9 + $0xf] ss:$0 sm:$0xff] }
0x20c0   :  { %8404 = vst.msk [vmem:[#allocation2] sm:$0xff] %vm1873_vm2, %v8402_v2 }
0x20c1   :  { %v8399_v40 = vpop.permute.xlu0 %8398 }
0x20c2   :  { %v8403_v12 = vadd.f32 %v8399_v40, %v15295_v11 }
0x20c4   :  { %8405 = vst.msk [vmem:[#allocation2 + $0x8] sm:$0xff] %vm1873_vm2, %v8403_v12 }
0x20c7   :  { %v8406_v57 = vld [vmem:[#allocation2] sm:$0xff] }
0x20cb   :  { %v8407_v47 = vld [vmem:[#allocation2 + $0x8] sm:$0xff] }
0x20cc   :  { %v8408_v0 = vpack.c.bf16 %v8407_v47, %v8406_v57 }
0x20ce   :  { %10422 = vmatmul.mubr.msk.bf16.vlgmr.msra.gmra.mxu1 %vm286_vm3, %v8408_v0 }
0x218e   :  { %v8467_v29 = vpop.f32.mrf.mxu1 }
0x218f   :  { %v8468_v6 = vadd.f32 %v8837_v42, %v8467_v29 }
0x2190   :  { %v10423_v11 = vpop.f32.mrf.mxu1 }
0x2191   :  { %v8474_v52 = vmax.f32 %v8468_v6, 0.0 }
0x2192   :  { %v8470_v34 = vpop.f32.mrf.mxu1 }
0x2193   :  { %v8471_v63 = vadd.f32 %v8837_v42, %v8470_v34  ;;  %v8476_v50 = vadd.f32 %v8474_v52, %v8406_v57 }
0x2194   :  { %v10424_v30 = vpop.f32.mrf.mxu1 }
0x2195   :  { %v8475_v54 = vmax.f32 %v8471_v63, 0.0 }
0x2197   :  { %v8477_v48 = vadd.f32 %v8475_v54, %v8407_v47 }
0x2199   :  { %v8478_v49 = vpack.c.bf16 %v8477_v48, %v8476_v50 }
0x219b   :  { %10430 = vmatmul.mubr.msk.bf16.vlgmr.msra.gmra.mxu0 %vm286_vm3, %v8478_v49 }
0x225b   :  { %v8537_v23 = vpop.f32.mrf.mxu0 }
0x225c   :  { %v8538_v51 = vadd.f32 %v8841_v22, %v8537_v23 }
0x225d   :  { %v10431_v35 = vpop.f32.mrf.mxu0 }
0x225e   :  { %8544 = vst [vmem:[#allocation6] sm:$0xff] %v8538_v51 }
0x225f   :  { %v8540_v21 = vpop.f32.mrf.mxu0 }
0x2260   :  { %v8541_v24 = vadd.f32 %v8841_v22, %v8540_v21 }
0x2261   :  { %v10432_v38 = vpop.f32.mrf.mxu0 }
0x2262   :  { %8545 = vst [vmem:[#allocation6 + $0x8] sm:$0xff] %v8541_v24 }
0x2263   :  { %11178 = shalt.err (!%p11175_p9)
}
0x2264   :  { %s11209_s26 = smov 128  }
0x2265   :  { %8557 = dma.vmem_to_hbm [thread:$0]  %s8552_s8, 256, %s15596_s10, [#allocation5], %s11209_s26, %s11209_s26, %s11205_s25  }
0x2266   :  { %11189 = dma.done.wait [#allocation5], 256  }
0x2267   :  { %11190 = vsyncadd [#allocation5], 4294967040 }
0x2268   :  { %8561 = vsyncpa [#allocation4], 1 }
0x2269   :  { %8562 = vsyncpa [#allocation5], 1 }

</bundles_post_ra>
